<compile_context>
chip_gen: v7x
topology: tpu7x:2x2x1
jax: 0.10.0
libtpu: 0.0.40
codegen_flags: <defaults>
</compile_context>

<pallas_src>
import functools
import math

import jax
import jax.numpy as jnp
from jax.experimental import pallas as pl
from jax.experimental.pallas import tpu as pltpu

EPS = 1e-5


def _round_up(a, m):
    return ((a + m - 1) // m) * m


# ----------------------------------------------------------------------------
# Pallas kernels
# ----------------------------------------------------------------------------
def _stem_conv3x3_kernel(xp_ref, w_ref, o_ref, acc_ref, *, H, W):
    """3x3 conv (pad=1, stride=1) from a zero-padded, row-flattened input slab.

    xp_ref : (Lp, Cin)      per-batch padded input, row index = h_pad*(W+2)+w_pad
    w_ref  : (9, Cin, CP)   bf16 tap weights, tap = dh*3 + dw
    o_ref  : (HWp, CP)      per-batch output slab rows, row index = h*W + w
    acc_ref: (H*(W+2), CP)  f32 accumulator over the padded-width output rows
    """
    P = W + 2
    o_ref[...] = jnp.zeros_like(o_ref)          # keeps the HWp tail rows zero
    for t in range(9):
        dh, dw = divmod(t, 3)
        patch = xp_ref[pl.ds(dh * P + dw, H * P), :].astype(jnp.bfloat16)
        contrib = jnp.dot(patch, w_ref[t], preferred_element_type=jnp.float32)
        if t == 0:
            acc_ref[...] = contrib
        else:
            acc_ref[...] += contrib
    # Gather the valid (w < W) columns back into dense HxW rows.
    for h in range(H):
        o_ref[pl.ds(h * W, W), :] = acc_ref[pl.ds(h * P, W), :].astype(o_ref.dtype)


def _dense_stage_kernel(x_ref, s1_ref, b1_ref, w1_ref, s2_ref, b2_ref, w2_ref,
                        o_ref, pad_ref, acc_ref, *, H, W):
    """One DenseNet Bottleneck per grid step; the slab stays resident in VMEM
    across the block axis (j) and is only written back to HBM once per batch.

    new      = conv3x3( relu(bn2( conv1x1( relu(bn1(slab)) ) )) )
    slab    += new    (w2 places `new` in its own zeroed channel slice, so the
                       add realizes the channel concatenation)
    """
    P = W + 2
    j = pl.program_id(1)

    @pl.when(j == 0)
    def _init():
        o_ref[...] = x_ref[...]                 # carry existing channels + zero pad rows
        pad_ref[...] = jnp.zeros_like(pad_ref)  # border rows/cols stay zero for all j

    x = o_ref[...]                              # (HWp, CP) f32 resident slab

    # BN1 + ReLU (f32 epilogue) then 1x1 conv on the MXU in bf16.
    a = jnp.maximum(x * s1_ref[0] + b1_ref[0], 0.0)
    h1 = jnp.dot(a.astype(jnp.bfloat16), w1_ref[...],
                 preferred_element_type=jnp.float32)
    # BN2 + ReLU (f32).
    h1 = jnp.maximum(h1 * s2_ref[0] + b2_ref[0], 0.0)

    # Zero-padded (pad=1) scatter of the post-activation map into a flattened
    # VMEM scratch: row index = (h+1)*P + (w+1).  Border stays zero.
    for h in range(H):
        pad_ref[pl.ds((h + 1) * P + 1, W), :] = h1[h * W:(h + 1) * W, :]

    # 3x3 conv as 9 shifted matmuls on the flattened padded slab (no im2col).
    for t in range(9):
        dh, dw = divmod(t, 3)
        patch = pad_ref[pl.ds(dh * P + dw, H * P), :].astype(jnp.bfloat16)
        contrib = jnp.dot(patch, w2_ref[t], preferred_element_type=jnp.float32)
        if t == 0:
            acc_ref[...] = contrib
        else:
            acc_ref[...] += contrib

    # Gather valid columns and append-in-place into the resident slab.
    for h in range(H):
        o_ref[pl.ds(h * W, W), :] = (o_ref[pl.ds(h * W, W), :]
                                     + acc_ref[pl.ds(h * P, W), :])


def _transition_kernel(x_ref, s_ref, b_ref, w_ref, o_ref):
    """relu(bn(x)) @ w  (1x1 conv).  The 2x2 avg-pool is done by the caller."""
    a = jnp.maximum(x_ref[...] * s_ref[...] + b_ref[...], 0.0)
    o_ref[...] = jnp.dot(a.astype(jnp.bfloat16), w_ref[...],
                         preferred_element_type=jnp.float32).astype(o_ref.dtype)


def _head_kernel(x_ref, w_ref, is_ref, ib_ref, os_ref, ob_ref, o_ref, *,
                 apply_in, relu_in, apply_out):
    """o = [out-affine]( [relu]( [in-affine](x) ) @ w ) — small FC heads.

    Static flags skip unused affine math entirely (no ones/zeros multiplies).
    """
    x = x_ref[...].astype(jnp.float32)
    if apply_in:
        x = x * is_ref[...] + ib_ref[...]
        if relu_in:
            x = jnp.maximum(x, 0.0)
    acc = jnp.dot(x.astype(jnp.bfloat16), w_ref[...],
                  preferred_element_type=jnp.float32)
    if apply_out:
        acc = acc * os_ref[...] + ob_ref[...]
    o_ref[...] = acc.astype(o_ref.dtype)


# ----------------------------------------------------------------------------
# pallas_call wrappers
# ----------------------------------------------------------------------------
def stem_conv(xp_flat, w_taps, N, H, W, Lp, HWp, CP):
    P = W + 2
    Cin = xp_flat.shape[-1]
    return pl.pallas_call(
        functools.partial(_stem_conv3x3_kernel, H=H, W=W),
        out_shape=jax.ShapeDtypeStruct((N * HWp, CP), jnp.float32),
        grid=(N,),
        in_specs=[
            pl.BlockSpec((Lp, Cin), lambda n: (n, 0)),
            pl.BlockSpec((9, Cin, CP), lambda n: (0, 0, 0)),
        ],
        out_specs=pl.BlockSpec((HWp, CP), lambda n: (n, 0)),
        scratch_shapes=[pltpu.VMEM((H * P, CP), jnp.float32)],
        compiler_params=pltpu.CompilerParams(dimension_semantics=("parallel",)),
    )(xp_flat, w_taps)


def dense_stage_call(slab, st, N, H, W, HWp, CP, CH):
    """All bottlenecks of one dense block in a single pallas_call; the slab is a
    VMEM-resident accumulator across the (inner, 'arbitrary') block axis."""
    nb = st['s1'].shape[0]
    P = W + 2
    pad_rows = _round_up((H + 2) * P + 2, 8)
    return pl.pallas_call(
        functools.partial(_dense_stage_kernel, H=H, W=W),
        out_shape=jax.ShapeDtypeStruct((N * HWp, CP), jnp.float32),
        grid=(N, nb),
        in_specs=[
            pl.BlockSpec((HWp, CP), lambda n, j: (n, 0)),       # slab (loaded once/batch)
            pl.BlockSpec((1, 1, CP), lambda n, j: (j, 0, 0)),   # bn1 scale
            pl.BlockSpec((1, 1, CP), lambda n, j: (j, 0, 0)),   # bn1 shift
            pl.BlockSpec((CP, CH), lambda n, j: (j, 0)),        # w1 (bf16)
            pl.BlockSpec((1, 1, CH), lambda n, j: (j, 0, 0)),   # bn2 scale
            pl.BlockSpec((1, 1, CH), lambda n, j: (j, 0, 0)),   # bn2 shift
            pl.BlockSpec((9, CH, CP), lambda n, j: (j, 0, 0)),  # w2 taps (bf16)
        ],
        out_specs=pl.BlockSpec((HWp, CP), lambda n, j: (n, 0)),  # resident across j
        scratch_shapes=[pltpu.VMEM((pad_rows, CH), jnp.float32),
                        pltpu.VMEM((H * P, CP), jnp.float32)],
        input_output_aliases={0: 0},                              # append in place
        compiler_params=pltpu.CompilerParams(
            dimension_semantics=("parallel", "arbitrary")),
    )(slab, st['s1'], st['b1'], st['w1'], st['s2'], st['b2'], st['w2'])


def transition_call(slab, tp, N, HWp, CP):
    return pl.pallas_call(
        _transition_kernel,
        out_shape=jax.ShapeDtypeStruct((N * HWp, CP), jnp.float32),
        grid=(N,),
        in_specs=[
            pl.BlockSpec((HWp, CP), lambda n: (n, 0)),
            pl.BlockSpec((1, CP), lambda n: (0, 0)),
            pl.BlockSpec((1, CP), lambda n: (0, 0)),
            pl.BlockSpec((CP, CP), lambda n: (0, 0)),
        ],
        out_specs=pl.BlockSpec((HWp, CP), lambda n: (n, 0)),
        compiler_params=pltpu.CompilerParams(dimension_semantics=("parallel",)),
    )(slab, tp['s'], tp['b'], tp['w'])


def head_call(x, w, in_scale=None, in_shift=None, out_scale=None,
              out_shift=None, relu_in=False):
    M, K = x.shape
    Nout = w.shape[-1]
    apply_in = in_scale is not None
    apply_out = (out_scale is not None) or (out_shift is not None)
    if in_scale is None:
        in_scale = jnp.ones((1, K), jnp.float32)
        in_shift = jnp.zeros((1, K), jnp.float32)
    if out_scale is None:
        out_scale = jnp.ones((1, Nout), jnp.float32)
    if out_shift is None:
        out_shift = jnp.zeros((1, Nout), jnp.float32)
    return pl.pallas_call(
        functools.partial(_head_kernel, apply_in=apply_in, relu_in=relu_in,
                          apply_out=apply_out),
        out_shape=jax.ShapeDtypeStruct((M, Nout), jnp.float32),
        grid=(1,),
        in_specs=[
            pl.BlockSpec((M, K), lambda i: (0, 0)),
            pl.BlockSpec((K, Nout), lambda i: (0, 0)),
            pl.BlockSpec((1, K), lambda i: (0, 0)),
            pl.BlockSpec((1, K), lambda i: (0, 0)),
            pl.BlockSpec((1, Nout), lambda i: (0, 0)),
            pl.BlockSpec((1, Nout), lambda i: (0, 0)),
        ],
        out_specs=pl.BlockSpec((M, Nout), lambda i: (0, 0)),
    )(x.astype(jnp.float32), w,
      in_scale.reshape(1, K).astype(jnp.float32),
      in_shift.reshape(1, K).astype(jnp.float32),
      out_scale.reshape(1, Nout).astype(jnp.float32),
      out_shift.reshape(1, Nout).astype(jnp.float32))


# ----------------------------------------------------------------------------
# JAX glue (cheap reshapes / tiny reductions)
# ----------------------------------------------------------------------------
def bn_fold(bn, eps=EPS):
    gamma, beta, mean, var = bn
    scale = gamma / jnp.sqrt(var + eps)
    shift = beta - mean * scale
    return scale, shift


def prep_stem_input(x_nchw, H, W, Lp):
    """NCHW -> NHWC -> zero spatial pad -> row-flattened per-batch slab."""
    N = x_nchw.shape[0]
    x = jnp.transpose(x_nchw.astype(jnp.float32), (0, 2, 3, 1))
    xp = jnp.pad(x, ((0, 0), (1, 1), (1, 1), (0, 0)))
    P = W + 2
    xp = xp.reshape(N, (H + 2) * P, x.shape[-1])
    xp = jnp.pad(xp, ((0, 0), (0, Lp - (H + 2) * P), (0, 0)))
    return xp.reshape(N * Lp, x.shape[-1])


def avg_pool2_glue(y, N, H, W, HWp, CP, HWp_next):
    """F.avg_pool2d(., 2) on the slab layout; re-pads rows for the next stage."""
    z = y.reshape(N, HWp, CP)[:, :H * W, :].reshape(N, H, W, CP)
    z = z.reshape(N, H // 2, 2, W // 2, 2, CP).mean(axis=(2, 4))
    z = z.reshape(N, (H // 2) * (W // 2), CP)
    pad = HWp_next - (H // 2) * (W // 2)
    if pad:
        z = jnp.pad(z, ((0, 0), (0, pad), (0, 0)))
    return z.reshape(N * HWp_next, CP)


# ----------------------------------------------------------------------------
# Forward pass
# ----------------------------------------------------------------------------
def densenet_forward(prepped, x_nchw, cfg):
    N = x_nchw.shape[0]
    CP, CH = cfg['CP'], cfg['CH']
    H, W = x_nchw.shape[2], x_nchw.shape[3]
    HWp = _round_up(H * W, 8)
    Lp = _round_up((H + 2) * (W + 2) + 2, 8)

    xp = prep_stem_input(x_nchw, H, W, Lp)
    slab = stem_conv(xp, prepped['stem_w'], N, H, W, Lp, HWp, CP)

    for d in range(4):
        slab = dense_stage_call(slab, prepped['dense'][d], N, H, W, HWp, CP, CH)
        if d < 3:
            y = transition_call(slab, prepped['trans'][d], N, HWp, CP)
            Ho, Wo = H // 2, W // 2
            HWp_o = _round_up(Ho * Wo, 8)
            slab = avg_pool2_glue(y, N, H, W, HWp, CP, HWp_o)
            H, W, HWp = Ho, Wo, HWp_o

    # Final BN + ReLU + global average pool (tiny; XLA glue).
    Cf = cfg['c_final']
    z = slab.reshape(N, HWp, CP)[:, :H * W, :Cf]
    z = jnp.maximum(z * prepped['final_scale'] + prepped['final_shift'], 0.0)
    feat = z.mean(axis=1)                       # [N, Cf]

    if prepped['embedding'] is not None:
        ep = prepped['embedding']
        # Dropout(p=0) = identity; Linear(no bias) + BN1d fused in the epilogue.
        emb = head_call(feat, ep['w'], out_scale=ep['s'], out_shift=ep['b'])
    else:
        emb = feat

    cl = prepped['cls']
    cls = head_call(emb, cl['w'], in_scale=cl['s'], in_shift=cl['b'],
                    out_shift=cl['bias'])
    return {'embedding': emb, 'cls_output': cls}


# ----------------------------------------------------------------------------
# Parameters: deterministic init (natural shapes) + padded/bf16 preparation
# ----------------------------------------------------------------------------
def init_conv(key, k, cin, cout):
    fan = k * k * cin
    return jax.random.normal(key, (k, k, cin, cout), jnp.float32) / math.sqrt(fan)


def init_bn(key, c):
    k1, k2, k3, k4 = jax.random.split(key, 4)
    gamma = 1.0 + 0.1 * jax.random.normal(k1, (c,), jnp.float32)
    beta = 0.1 * jax.random.normal(k2, (c,), jnp.float32)
    mean = 0.1 * jax.random.normal(k3, (c,), jnp.float32)
    var = 1.0 + 0.1 * jax.random.uniform(k4, (c,), jnp.float32)
    return gamma, beta, mean, var


def init_linear(key, cin, cout, bias=True):
    k1, k2 = jax.random.split(key)
    w = jax.random.normal(k1, (cin, cout), jnp.float32) / math.sqrt(cin)
    b = jax.random.normal(k2, (cout,), jnp.float32) / math.sqrt(cin) if bias else None
    return w, b


def build_params(key, nblocks, growth_rate=12, reduction=0.5,
                 num_classes=16, embedding_size=64):
    keys = iter(jax.random.split(key, 256))
    params = {}
    num_planes = 2 * growth_rate
    params['conv1'] = init_conv(next(keys), 3, 3, num_planes)
    for d in range(4):
        blocks = []
        for _ in range(nblocks[d]):
            blocks.append({
                'bn1': init_bn(next(keys), num_planes),
                'conv1': init_conv(next(keys), 1, num_planes, 4 * growth_rate),
                'bn2': init_bn(next(keys), 4 * growth_rate),
                'conv2': init_conv(next(keys), 3, 4 * growth_rate, growth_rate),
            })
            num_planes += growth_rate
        params[f'dense{d + 1}'] = blocks
        if d < 3:
            out_planes = int(math.floor(num_planes * reduction))
            params[f'trans{d + 1}'] = {
                'bn': init_bn(next(keys), num_planes),
                'conv': init_conv(next(keys), 1, num_planes, out_planes),
            }
            num_planes = out_planes
    params['bn'] = init_bn(next(keys), num_planes)
    if embedding_size != num_planes:
        w, _ = init_linear(next(keys), num_planes, embedding_size, bias=False)
        params['embedding'] = {'linear_w': w, 'bn': init_bn(next(keys), embedding_size)}
    else:
        params['embedding'] = None
    w, b = init_linear(next(keys), embedding_size, num_classes, bias=True)
    params['cls_head'] = {'bn': init_bn(next(keys), embedding_size),
                          'linear_w': w, 'linear_b': b}
    return params


def prepare_params(params, nblocks, growth_rate=12, reduction=0.5):
    """Fold BN into scale/shift, zero-pad channels to the 128-aligned slab width,
    place each bottleneck's output channels into its slab slice, stack per-stage
    weights for the fused dense-stage kernel, cast MXU weights to bf16."""
    g = growth_rate
    g4 = 4 * g
    widths = [2 * g, g4]
    c = 2 * g
    for d in range(4):
        c += nblocks[d] * g
        widths.append(c)
        if d < 3:
            c = int(math.floor(c * reduction))
            widths.append(c)
    CP = _round_up(max(widths), 128)          # slab channel width
    CH = _round_up(g4, 128)                   # bottleneck intermediate width

    prepped = {}
    c0 = 2 * g
    cin0 = params['conv1'].shape[2]
    stem = jnp.zeros((9, cin0, CP), jnp.float32)
    stem = stem.at[:, :, :c0].set(params['conv1'].reshape(9, cin0, c0))
    prepped['stem_w'] = stem.astype(jnp.bfloat16)

    dense, trans = [], []
    cin = c0
    for d in range(4):
        s1s, b1s, w1s, s2s, b2s, w2s = [], [], [], [], [], []
        for blk in params[f'dense{d + 1}']:
            s1, b1 = bn_fold(blk['bn1'])
            s2, b2 = bn_fold(blk['bn2'])
            w1 = blk['conv1'].reshape(cin, g4)
            w2 = blk['conv2'].reshape(9, g4, g)
            s1s.append(jnp.zeros((1, CP), jnp.float32).at[0, :cin].set(s1))
            b1s.append(jnp.zeros((1, CP), jnp.float32).at[0, :cin].set(b1))
            w1s.append(jnp.zeros((CP, CH), jnp.float32).at[:cin, :g4].set(w1))
            s2s.append(jnp.zeros((1, CH), jnp.float32).at[0, :g4].set(s2))
            b2s.append(jnp.zeros((1, CH), jnp.float32).at[0, :g4].set(b2))
            # new channels land in slab columns [cin, cin+g)
            w2s.append(jnp.zeros((9, CH, CP), jnp.float32)
                       .at[:, :g4, cin:cin + g].set(w2))
            cin += g
        dense.append({
            's1': jnp.stack(s1s),                                    # (nb, 1, CP)
            'b1': jnp.stack(b1s),                                    # (nb, 1, CP)
            'w1': jnp.concatenate(w1s, 0).astype(jnp.bfloat16),      # (nb*CP, CH)
            's2': jnp.stack(s2s),                                    # (nb, 1, CH)
            'b2': jnp.stack(b2s),                                    # (nb, 1, CH)
            'w2': jnp.concatenate(w2s, 0).astype(jnp.bfloat16),      # (nb*9, CH, CP)
        })
        if d < 3:
            cout = int(math.floor(cin * reduction))
            s, b = bn_fold(params[f'trans{d + 1}']['bn'])
            wt = params[f'trans{d + 1}']['conv'].reshape(cin, cout)
            trans.append({
                's': jnp.zeros((1, CP), jnp.float32).at[0, :cin].set(s),
                'b': jnp.zeros((1, CP), jnp.float32).at[0, :cin].set(b),
                'w': jnp.zeros((CP, CP), jnp.float32)
                     .at[:cin, :cout].set(wt).astype(jnp.bfloat16),
            })
            cin = cout
    prepped['dense'] = dense
    prepped['trans'] = trans

    fs, fb = bn_fold(params['bn'])
    prepped['final_scale'] = fs
    prepped['final_shift'] = fb

    if params['embedding'] is not None:
        es, eb = bn_fold(params['embedding']['bn'])
        prepped['embedding'] = {'w': params['embedding']['linear_w'].astype(jnp.bfloat16),
                                's': es.reshape(1, -1), 'b': eb.reshape(1, -1)}
    else:
        prepped['embedding'] = None
    cs, cb = bn_fold(params['cls_head']['bn'])
    prepped['cls'] = {'w': params['cls_head']['linear_w'].astype(jnp.bfloat16),
                      's': cs.reshape(1, -1), 'b': cb.reshape(1, -1),
                      'bias': params['cls_head']['linear_b'].reshape(1, -1)}

    cfg = {'CP': CP, 'CH': CH, 'c_final': cin}
    return prepped, cfg


# ----------------------------------------------------------------------------
if __name__ == "__main__":
    key = jax.random.PRNGKey(0)
    k_params, k_x = jax.random.split(key)

    # Small DenseNet: nblocks=[2,2,2,2], growth=12, embedding=64, classes=16
    nblocks = [2, 2, 2, 2]
    params = build_params(k_params, nblocks, growth_rate=12, reduction=0.5,
                          num_classes=16, embedding_size=64)
    prepped, cfg = prepare_params(params, nblocks, growth_rate=12, reduction=0.5)

    # Input consistent with conv1: 3 input channels, NCHW like PyTorch.
    x = jax.random.normal(k_x, (2, 3, 16, 16), jnp.float32)

    fwd = jax.jit(functools.partial(densenet_forward, cfg=cfg))
    out = fwd(prepped, x)
    jax.block_until_ready(out)

    assert out['embedding'].shape == (2, 64)
    assert out['cls_output'].shape == (2, 16)
    assert jnp.all(jnp.isfinite(out['embedding'])) and jnp.all(jnp.isfinite(out['cls_output']))
    print("KERNEL_OK")
</pallas_src>

<mosaic_0001>
module attributes {stable_mosaic.version = 11 : i64} {
  func.func @_transition_kernel(%arg0: i32, %arg1: memref<256x128xf32, #tpu.memory_space<vmem>>, %arg2: memref<1x128xf32, #tpu.memory_space<vmem>>, %arg3: memref<1x128xf32, #tpu.memory_space<vmem>>, %arg4: memref<128x128xbf16, #tpu.memory_space<vmem>>, %arg5: memref<256x128xf32, #tpu.memory_space<vmem>>) attributes {dimension_semantics = [#tpu.dimension_semantics<parallel>], iteration_bounds = array<i64: 2>, scalar_prefetch = 0 : i64, scratch_operands = 0 : i64, tpu.core_type = #tpu.core_type<tc>, window_params = [{transform_indices = @transform_0, window_bounds = array<i64: 256, 128>}, {pipeline_mode = #tpu.pipeline_mode<synchronous>, transform_indices = @transform_1, window_bounds = array<i64: 1, 128>}, {pipeline_mode = #tpu.pipeline_mode<synchronous>, transform_indices = @transform_2, window_bounds = array<i64: 1, 128>}, {pipeline_mode = #tpu.pipeline_mode<synchronous>, transform_indices = @transform_3, window_bounds = array<i64: 128, 128>}, {transform_indices = @transform_4, window_bounds = array<i64: 256, 128>}]} {
    %c0 = arith.constant 0 : index
    %c0_0 = arith.constant 0 : index
    %0 = vector.load %arg1[%c0, %c0_0] : memref<256x128xf32, #tpu.memory_space<vmem>>, vector<256x128xf32>
    %c0_1 = arith.constant 0 : index
    %c0_2 = arith.constant 0 : index
    %1 = vector.load %arg2[%c0_1, %c0_2] : memref<1x128xf32, #tpu.memory_space<vmem>>, vector<1x128xf32>
    %2 = vector.broadcast %1 : vector<1x128xf32> to vector<256x128xf32>
    %3 = arith.mulf %0, %2 : vector<256x128xf32>
    %c0_3 = arith.constant 0 : index
    %c0_4 = arith.constant 0 : index
    %4 = vector.load %arg3[%c0_3, %c0_4] : memref<1x128xf32, #tpu.memory_space<vmem>>, vector<1x128xf32>
    %5 = vector.broadcast %4 : vector<1x128xf32> to vector<256x128xf32>
    %6 = arith.addf %3, %5 : vector<256x128xf32>
    %cst = arith.constant 0.000000e+00 : f32
    %7 = vector.broadcast %cst : f32 to vector<256x128xf32>
    %8 = arith.maximumf %6, %7 : vector<256x128xf32>
    %9 = arith.truncf %8 : vector<256x128xf32> to vector<256x128xbf16>
    %c0_5 = arith.constant 0 : index
    %c0_6 = arith.constant 0 : index
    %10 = vector.load %arg4[%c0_5, %c0_6] : memref<128x128xbf16, #tpu.memory_space<vmem>>, vector<128x128xbf16>
    %cst_7 = arith.constant dense<0.000000e+00> : vector<256x128xf32>
    %11 = tpu.matmul %9, %10, %cst_7 {dimension_numbers = #tpu.dot_dimension_numbers<[1], [0], [0], [1], [0, 0, 1, 1], [], []>} : vector<256x128xbf16>, vector<128x128xbf16>, vector<256x128xf32> -> vector<256x128xf32>
    %c0_8 = arith.constant 0 : index
    %c0_9 = arith.constant 0 : index
    %12 = vector.load %arg5[%c0_8, %c0_9] : memref<256x128xf32, #tpu.memory_space<vmem>>, vector<256x128xf32>
    tpu.vector_store %arg5[%c0_8, %c0_9], %11 {strides = array<i32>} : memref<256x128xf32, #tpu.memory_space<vmem>>, vector<256x128xf32>,
    return
  }
  func.func @transform_0(%arg0: i32) -> (i32, i32) {
    %c0_i32 = arith.constant 0 : i32
    %c0_i32_0 = arith.constant 0 : i32
    return %arg0, %c0_i32 : i32, i32
  }
  func.func @transform_1(%arg0: i32) -> (i32, i32) {
    %c0_i32 = arith.constant 0 : i32
    %c0_i32_0 = arith.constant 0 : i32
    %c0_i32_1 = arith.constant 0 : i32
    return %c0_i32, %c0_i32_0 : i32, i32
  }
  func.func @transform_2(%arg0: i32) -> (i32, i32) {
    %c0_i32 = arith.constant 0 : i32
    %c0_i32_0 = arith.constant 0 : i32
    %c0_i32_1 = arith.constant 0 : i32
    return %c0_i32, %c0_i32_0 : i32, i32
  }
  func.func @transform_3(%arg0: i32) -> (i32, i32) {
    %c0_i32 = arith.constant 0 : i32
    %c0_i32_0 = arith.constant 0 : i32
    %c0_i32_1 = arith.constant 0 : i32
    return %c0_i32, %c0_i32_0 : i32, i32
  }
  func.func @transform_4(%arg0: i32) -> (i32, i32) {
    %c0_i32 = arith.constant 0 : i32
    %c0_i32_0 = arith.constant 0 : i32
    return %arg0, %c0_i32 : i32, i32
  }
}

module attributes {stable_mosaic.version = 11 : i64} {
  func.func @_stem_conv3x3_kernel(%arg0: i32, %arg1: memref<328x3xf32, #tpu.memory_space<vmem>>, %arg2: memref<9x3x128xbf16, #tpu.memory_space<vmem>>, %arg3: memref<256x128xf32, #tpu.memory_space<vmem>>, %arg4: memref<288x128xf32, #tpu.memory_space<vmem>>) attributes {dimension_semantics = [#tpu.dimension_semantics<parallel>], iteration_bounds = array<i64: 2>, scalar_prefetch = 0 : i64, scratch_operands = 1 : i64, tpu.core_type = #tpu.core_type<tc>, window_params = [{transform_indices = @transform_0, window_bounds = array<i64: 328, 3>}, {pipeline_mode = #tpu.pipeline_mode<synchronous>, transform_indices = @transform_1, window_bounds = array<i64: 9, 3, 128>}, {transform_indices = @transform_2, window_bounds = array<i64: 256, 128>}]} {
    %cst = arith.constant 0.000000e+00 : f32
    %0 = vector.broadcast %cst : f32 to vector<256x128xf32>
    %c0 = arith.constant 0 : index
    %c0_0 = arith.constant 0 : index
    %1 = vector.load %arg3[%c0, %c0_0] : memref<256x128xf32, #tpu.memory_space<vmem>>, vector<256x128xf32>
    tpu.vector_store %arg3[%c0, %c0_0], %0 {strides = array<i32>} : memref<256x128xf32, #tpu.memory_space<vmem>>, vector<256x128xf32>,
    %c0_1 = arith.constant 0 : index
    %c0_2 = arith.constant 0 : index
    %2 = vector.load %arg1[%c0_1, %c0_2] : memref<328x3xf32, #tpu.memory_space<vmem>>, vector<288x3xf32>
    %3 = arith.truncf %2 : vector<288x3xf32> to vector<288x3xbf16>
    %c0_3 = arith.constant 0 : index
    %c0_4 = arith.constant 0 : index
    %c0_5 = arith.constant 0 : index
    %4 = vector.load %arg2[%c0_3, %c0_4, %c0_5] : memref<9x3x128xbf16, #tpu.memory_space<vmem>>, vector<1x3x128xbf16>
    %5 = vector.shape_cast %4 : vector<1x3x128xbf16> to vector<3x128xbf16>
    %cst_6 = arith.constant dense<0.000000e+00> : vector<288x128xf32>
    %6 = tpu.matmul %3, %5, %cst_6 {dimension_numbers = #tpu.dot_dimension_numbers<[1], [0], [0], [1], [0, 0, 1, 1], [], []>} : vector<288x3xbf16>, vector<3x128xbf16>, vector<288x128xf32> -> vector<288x128xf32>
    %c0_7 = arith.constant 0 : index
    %c0_8 = arith.constant 0 : index
    %7 = vector.load %arg4[%c0_7, %c0_8] : memref<288x128xf32, #tpu.memory_space<vmem>>, vector<288x128xf32>
    tpu.vector_store %arg4[%c0_7, %c0_8], %6 {strides = array<i32>} : memref<288x128xf32, #tpu.memory_space<vmem>>, vector<288x128xf32>,
    %c1 = arith.constant 1 : index
    %c0_9 = arith.constant 0 : index
    %8 = vector.load %arg1[%c1, %c0_9] : memref<328x3xf32, #tpu.memory_space<vmem>>, vector<288x3xf32>
    %9 = arith.truncf %8 : vector<288x3xf32> to vector<288x3xbf16>
    %c1_10 = arith.constant 1 : index
    %c0_11 = arith.constant 0 : index
    %c0_12 = arith.constant 0 : index
    %10 = vector.load %arg2[%c1_10, %c0_11, %c0_12] : memref<9x3x128xbf16, #tpu.memory_space<vmem>>, vector<1x3x128xbf16>
    %11 = vector.shape_cast %10 : vector<1x3x128xbf16> to vector<3x128xbf16>
    %cst_13 = arith.constant dense<0.000000e+00> : vector<288x128xf32>
    %12 = tpu.matmul %9, %11, %cst_13 {dimension_numbers = #tpu.dot_dimension_numbers<[1], [0], [0], [1], [0, 0, 1, 1], [], []>} : vector<288x3xbf16>, vector<3x128xbf16>, vector<288x128xf32> -> vector<288x128xf32>
    %c0_14 = arith.constant 0 : index
    %c0_15 = arith.constant 0 : index
    %13 = vector.load %arg4[%c0_14, %c0_15] : memref<288x128xf32, #tpu.memory_space<vmem>>, vector<288x128xf32>
    %14 = arith.addf %13, %12 : vector<288x128xf32>
    %c0_16 = arith.constant 0 : index
    %c0_17 = arith.constant 0 : index
    %15 = vector.load %arg4[%c0_16, %c0_17] : memref<288x128xf32, #tpu.memory_space<vmem>>, vector<288x128xf32>
    tpu.vector_store %arg4[%c0_16, %c0_17], %14 {strides = array<i32>} : memref<288x128xf32, #tpu.memory_space<vmem>>, vector<288x128xf32>,
    %c2 = arith.constant 2 : index
    %c0_18 = arith.constant 0 : index
    %16 = vector.load %arg1[%c2, %c0_18] : memref<328x3xf32, #tpu.memory_space<vmem>>, vector<288x3xf32>
    %17 = arith.truncf %16 : vector<288x3xf32> to vector<288x3xbf16>
    %c2_19 = arith.constant 2 : index
    %c0_20 = arith.constant 0 : index
    %c0_21 = arith.constant 0 : index
    %18 = vector.load %arg2[%c2_19, %c0_20, %c0_21] : memref<9x3x128xbf16, #tpu.memory_space<vmem>>, vector<1x3x128xbf16>
    %19 = vector.shape_cast %18 : vector<1x3x128xbf16> to vector<3x128xbf16>
    %cst_22 = arith.constant dense<0.000000e+00> : vector<288x128xf32>
    %20 = tpu.matmul %17, %19, %cst_22 {dimension_numbers = #tpu.dot_dimension_numbers<[1], [0], [0], [1], [0, 0, 1, 1], [], []>} : vector<288x3xbf16>, vector<3x128xbf16>, vector<288x128xf32> -> vector<288x128xf32>
    %c0_23 = arith.constant 0 : index
    %c0_24 = arith.constant 0 : index
    %21 = vector.load %arg4[%c0_23, %c0_24] : memref<288x128xf32, #tpu.memory_space<vmem>>, vector<288x128xf32>
    %22 = arith.addf %21, %20 : vector<288x128xf32>
    %c0_25 = arith.constant 0 : index
    %c0_26 = arith.constant 0 : index
    %23 = vector.load %arg4[%c0_25, %c0_26] : memref<288x128xf32, #tpu.memory_space<vmem>>, vector<288x128xf32>
    tpu.vector_store %arg4[%c0_25, %c0_26], %22 {strides = array<i32>} : memref<288x128xf32, #tpu.memory_space<vmem>>, vector<288x128xf32>,
    %c18 = arith.constant 18 : index
    %c0_27 = arith.constant 0 : index
    %24 = vector.load %arg1[%c18, %c0_27] : memref<328x3xf32, #tpu.memory_space<vmem>>, vector<288x3xf32>
    %25 = arith.truncf %24 : vector<288x3xf32> to vector<288x3xbf16>
    %c3 = arith.constant 3 : index
    %c0_28 = arith.constant 0 : index
    %c0_29 = arith.constant 0 : index
    %26 = vector.load %arg2[%c3, %c0_28, %c0_29] : memref<9x3x128xbf16, #tpu.memory_space<vmem>>, vector<1x3x128xbf16>
    %27 = vector.shape_cast %26 : vector<1x3x128xbf16> to vector<3x128xbf16>
    %cst_30 = arith.constant dense<0.000000e+00> : vector<288x128xf32>
    %28 = tpu.matmul %25, %27, %cst_30 {dimension_numbers = #tpu.dot_dimension_numbers<[1], [0], [0], [1], [0, 0, 1, 1], [], []>} : vector<288x3xbf16>, vector<3x128xbf16>, vector<288x128xf32> -> vector<288x128xf32>
    %c0_31 = arith.constant 0 : index
    %c0_32 = arith.constant 0 : index
    %29 = vector.load %arg4[%c0_31, %c0_32] : memref<288x128xf32, #tpu.memory_space<vmem>>, vector<288x128xf32>
    %30 = arith.addf %29, %28 : vector<288x128xf32>
    %c0_33 = arith.constant 0 : index
    %c0_34 = arith.constant 0 : index
    %31 = vector.load %arg4[%c0_33, %c0_34] : memref<288x128xf32, #tpu.memory_space<vmem>>, vector<288x128xf32>
    tpu.vector_store %arg4[%c0_33, %c0_34], %30 {strides = array<i32>} : memref<288x128xf32, #tpu.memory_space<vmem>>, vector<288x128xf32>,
    %c19 = arith.constant 19 : index
    %c0_35 = arith.constant 0 : index
    %32 = vector.load %arg1[%c19, %c0_35] : memref<328x3xf32, #tpu.memory_space<vmem>>, vector<288x3xf32>
    %33 = arith.truncf %32 : vector<288x3xf32> to vector<288x3xbf16>
    %c4 = arith.constant 4 : index
    %c0_36 = arith.constant 0 : index
    %c0_37 = arith.constant 0 : index
    %34 = vector.load %arg2[%c4, %c0_36, %c0_37] : memref<9x3x128xbf16, #tpu.memory_space<vmem>>, vector<1x3x128xbf16>
    %35 = vector.shape_cast %34 : vector<1x3x128xbf16> to vector<3x128xbf16>
    %cst_38 = arith.constant dense<0.000000e+00> : vector<288x128xf32>
    %36 = tpu.matmul %33, %35, %cst_38 {dimension_numbers = #tpu.dot_dimension_numbers<[1], [0], [0], [1], [0, 0, 1, 1], [], []>} : vector<288x3xbf16>, vector<3x128xbf16>, vector<288x128xf32> -> vector<288x128xf32>
    %c0_39 = arith.constant 0 : index
    %c0_40 = arith.constant 0 : index
    %37 = vector.load %arg4[%c0_39, %c0_40] : memref<288x128xf32, #tpu.memory_space<vmem>>, vector<288x128xf32>
    %38 = arith.addf %37, %36 : vector<288x128xf32>
    %c0_41 = arith.constant 0 : index
    %c0_42 = arith.constant 0 : index
    %39 = vector.load %arg4[%c0_41, %c0_42] : memref<288x128xf32, #tpu.memory_space<vmem>>, vector<288x128xf32>
    tpu.vector_store %arg4[%c0_41, %c0_42], %38 {strides = array<i32>} : memref<288x128xf32, #tpu.memory_space<vmem>>, vector<288x128xf32>,
    %c20 = arith.constant 20 : index
    %c0_43 = arith.constant 0 : index
    %40 = vector.load %arg1[%c20, %c0_43] : memref<328x3xf32, #tpu.memory_space<vmem>>, vector<288x3xf32>
    %41 = arith.truncf %40 : vector<288x3xf32> to vector<288x3xbf16>
    %c5 = arith.constant 5 : index
    %c0_44 = arith.constant 0 : index
    %c0_45 = arith.constant 0 : index
    %42 = vector.load %arg2[%c5, %c0_44, %c0_45] : memref<9x3x128xbf16, #tpu.memory_space<vmem>>, vector<1x3x128xbf16>
    %43 = vector.shape_cast %42 : vector<1x3x128xbf16> to vector<3x128xbf16>
    %cst_46 = arith.constant dense<0.000000e+00> : vector<288x128xf32>
    %44 = tpu.matmul %41, %43, %cst_46 {dimension_numbers = #tpu.dot_dimension_numbers<[1], [0], [0], [1], [0, 0, 1, 1], [], []>} : vector<288x3xbf16>, vector<3x128xbf16>, vector<288x128xf32> -> vector<288x128xf32>
    %c0_47 = arith.constant 0 : index
    %c0_48 = arith.constant 0 : index
    %45 = vector.load %arg4[%c0_47, %c0_48] : memref<288x128xf32, #tpu.memory_space<vmem>>, vector<288x128xf32>
    %46 = arith.addf %45, %44 : vector<288x128xf32>
    %c0_49 = arith.constant 0 : index
    %c0_50 = arith.constant 0 : index
    %47 = vector.load %arg4[%c0_49, %c0_50] : memref<288x128xf32, #tpu.memory_space<vmem>>, vector<288x128xf32>
    tpu.vector_store %arg4[%c0_49, %c0_50], %46 {strides = array<i32>} : memref<288x128xf32, #tpu.memory_space<vmem>>, vector<288x128xf32>,
    %c36 = arith.constant 36 : index
    %c0_51 = arith.constant 0 : index
    %48 = vector.load %arg1[%c36, %c0_51] : memref<328x3xf32, #tpu.memory_space<vmem>>, vector<288x3xf32>
    %49 = arith.truncf %48 : vector<288x3xf32> to vector<288x3xbf16>
    %c6 = arith.constant 6 : index
    %c0_52 = arith.constant 0 : index
    %c0_53 = arith.constant 0 : index
    %50 = vector.load %arg2[%c6, %c0_52, %c0_53] : memref<9x3x128xbf16, #tpu.memory_space<vmem>>, vector<1x3x128xbf16>
    %51 = vector.shape_cast %50 : vector<1x3x128xbf16> to vector<3x128xbf16>
    %cst_54 = arith.constant dense<0.000000e+00> : vector<288x128xf32>
    %52 = tpu.matmul %49, %51, %cst_54 {dimension_numbers = #tpu.dot_dimension_numbers<[1], [0], [0], [1], [0, 0, 1, 1], [], []>} : vector<288x3xbf16>, vector<3x128xbf16>, vector<288x128xf32> -> vector<288x128xf32>
    %c0_55 = arith.constant 0 : index
    %c0_56 = arith.constant 0 : index
    %53 = vector.load %arg4[%c0_55, %c0_56] : memref<288x128xf32, #tpu.memory_space<vmem>>, vector<288x128xf32>
    %54 = arith.addf %53, %52 : vector<288x128xf32>
    %c0_57 = arith.constant 0 : index
    %c0_58 = arith.constant 0 : index
    %55 = vector.load %arg4[%c0_57, %c0_58] : memref<288x128xf32, #tpu.memory_space<vmem>>, vector<288x128xf32>
    tpu.vector_store %arg4[%c0_57, %c0_58], %54 {strides = array<i32>} : memref<288x128xf32, #tpu.memory_space<vmem>>, vector<288x128xf32>,
    %c37 = arith.constant 37 : index
    %c0_59 = arith.constant 0 : index
    %56 = vector.load %arg1[%c37, %c0_59] : memref<328x3xf32, #tpu.memory_space<vmem>>, vector<288x3xf32>
    %57 = arith.truncf %56 : vector<288x3xf32> to vector<288x3xbf16>
    %c7 = arith.constant 7 : index
    %c0_60 = arith.constant 0 : index
    %c0_61 = arith.constant 0 : index
    %58 = vector.load %arg2[%c7, %c0_60, %c0_61] : memref<9x3x128xbf16, #tpu.memory_space<vmem>>, vector<1x3x128xbf16>
    %59 = vector.shape_cast %58 : vector<1x3x128xbf16> to vector<3x128xbf16>
    %cst_62 = arith.constant dense<0.000000e+00> : vector<288x128xf32>
    %60 = tpu.matmul %57, %59, %cst_62 {dimension_numbers = #tpu.dot_dimension_numbers<[1], [0], [0], [1], [0, 0, 1, 1], [], []>} : vector<288x3xbf16>, vector<3x128xbf16>, vector<288x128xf32> -> vector<288x128xf32>
    %c0_63 = arith.constant 0 : index
    %c0_64 = arith.constant 0 : index
    %61 = vector.load %arg4[%c0_63, %c0_64] : memref<288x128xf32, #tpu.memory_space<vmem>>, vector<288x128xf32>
    %62 = arith.addf %61, %60 : vector<288x128xf32>
    %c0_65 = arith.constant 0 : index
    %c0_66 = arith.constant 0 : index
    %63 = vector.load %arg4[%c0_65, %c0_66] : memref<288x128xf32, #tpu.memory_space<vmem>>, vector<288x128xf32>
    tpu.vector_store %arg4[%c0_65, %c0_66], %62 {strides = array<i32>} : memref<288x128xf32, #tpu.memory_space<vmem>>, vector<288x128xf32>,
    %c38 = arith.constant 38 : index
    %c0_67 = arith.constant 0 : index
    %64 = vector.load %arg1[%c38, %c0_67] : memref<328x3xf32, #tpu.memory_space<vmem>>, vector<288x3xf32>
    %65 = arith.truncf %64 : vector<288x3xf32> to vector<288x3xbf16>
    %c8 = arith.constant 8 : index
    %c0_68 = arith.constant 0 : index
    %c0_69 = arith.constant 0 : index
    %66 = vector.load %arg2[%c8, %c0_68, %c0_69] : memref<9x3x128xbf16, #tpu.memory_space<vmem>>, vector<1x3x128xbf16>
    %67 = vector.shape_cast %66 : vector<1x3x128xbf16> to vector<3x128xbf16>
    %cst_70 = arith.constant dense<0.000000e+00> : vector<288x128xf32>
    %68 = tpu.matmul %65, %67, %cst_70 {dimension_numbers = #tpu.dot_dimension_numbers<[1], [0], [0], [1], [0, 0, 1, 1], [], []>} : vector<288x3xbf16>, vector<3x128xbf16>, vector<288x128xf32> -> vector<288x128xf32>
    %c0_71 = arith.constant 0 : index
    %c0_72 = arith.constant 0 : index
    %69 = vector.load %arg4[%c0_71, %c0_72] : memref<288x128xf32, #tpu.memory_space<vmem>>, vector<288x128xf32>
    %70 = arith.addf %69, %68 : vector<288x128xf32>
    %c0_73 = arith.constant 0 : index
    %c0_74 = arith.constant 0 : index
    %71 = vector.load %arg4[%c0_73, %c0_74] : memref<288x128xf32, #tpu.memory_space<vmem>>, vector<288x128xf32>
    tpu.vector_store %arg4[%c0_73, %c0_74], %70 {strides = array<i32>} : memref<288x128xf32, #tpu.memory_space<vmem>>, vector<288x128xf32>,
    %c0_75 = arith.constant 0 : index
    %c0_76 = arith.constant 0 : index
    %72 = vector.load %arg4[%c0_75, %c0_76] : memref<288x128xf32, #tpu.memory_space<vmem>>, vector<16x128xf32>
    %c0_77 = arith.constant 0 : index
    %c0_78 = arith.constant 0 : index
    %73 = vector.load %arg3[%c0_77, %c0_78] : memref<256x128xf32, #tpu.memory_space<vmem>>, vector<16x128xf32>
    tpu.vector_store %arg3[%c0_77, %c0_78], %72 {strides = array<i32>} : memref<256x128xf32, #tpu.memory_space<vmem>>, vector<16x128xf32>,
    %c18_79 = arith.constant 18 : index
    %c0_80 = arith.constant 0 : index
    %74 = vector.load %arg4[%c18_79, %c0_80] : memref<288x128xf32, #tpu.memory_space<vmem>>, vector<16x128xf32>
    %c16 = arith.constant 16 : index
    %c0_81 = arith.constant 0 : index
    %75 = vector.load %arg3[%c16, %c0_81] : memref<256x128xf32, #tpu.memory_space<vmem>>, vector<16x128xf32>
    tpu.vector_store %arg3[%c16, %c0_81], %74 {strides = array<i32>} : memref<256x128xf32, #tpu.memory_space<vmem>>, vector<16x128xf32>,
    %c36_82 = arith.constant 36 : index
    %c0_83 = arith.constant 0 : index
    %76 = vector.load %arg4[%c36_82, %c0_83] : memref<288x128xf32, #tpu.memory_space<vmem>>, vector<16x128xf32>
    %c32 = arith.constant 32 : index
    %c0_84 = arith.constant 0 : index
    %77 = vector.load %arg3[%c32, %c0_84] : memref<256x128xf32, #tpu.memory_space<vmem>>, vector<16x128xf32>
    tpu.vector_store %arg3[%c32, %c0_84], %76 {strides = array<i32>} : memref<256x128xf32, #tpu.memory_space<vmem>>, vector<16x128xf32>,
    %c54 = arith.constant 54 : index
    %c0_85 = arith.constant 0 : index
    %78 = vector.load %arg4[%c54, %c0_85] : memref<288x128xf32, #tpu.memory_space<vmem>>, vector<16x128xf32>
    %c48 = arith.constant 48 : index
    %c0_86 = arith.constant 0 : index
    %79 = vector.load %arg3[%c48, %c0_86] : memref<256x128xf32, #tpu.memory_space<vmem>>, vector<16x128xf32>
    tpu.vector_store %arg3[%c48, %c0_86], %78 {strides = array<i32>} : memref<256x128xf32, #tpu.memory_space<vmem>>, vector<16x128xf32>,
    %c72 = arith.constant 72 : index
    %c0_87 = arith.constant 0 : index
    %80 = vector.load %arg4[%c72, %c0_87] : memref<288x128xf32, #tpu.memory_space<vmem>>, vector<16x128xf32>
    %c64 = arith.constant 64 : index
    %c0_88 = arith.constant 0 : index
    %81 = vector.load %arg3[%c64, %c0_88] : memref<256x128xf32, #tpu.memory_space<vmem>>, vector<16x128xf32>
    tpu.vector_store %arg3[%c64, %c0_88], %80 {strides = array<i32>} : memref<256x128xf32, #tpu.memory_space<vmem>>, vector<16x128xf32>,
    %c90 = arith.constant 90 : index
    %c0_89 = arith.constant 0 : index
    %82 = vector.load %arg4[%c90, %c0_89] : memref<288x128xf32, #tpu.memory_space<vmem>>, vector<16x128xf32>
    %c80 = arith.constant 80 : index
    %c0_90 = arith.constant 0 : index
    %83 = vector.load %arg3[%c80, %c0_90] : memref<256x128xf32, #tpu.memory_space<vmem>>, vector<16x128xf32>
    tpu.vector_store %arg3[%c80, %c0_90], %82 {strides = array<i32>} : memref<256x128xf32, #tpu.memory_space<vmem>>, vector<16x128xf32>,
    %c108 = arith.constant 108 : index
    %c0_91 = arith.constant 0 : index
    %84 = vector.load %arg4[%c108, %c0_91] : memref<288x128xf32, #tpu.memory_space<vmem>>, vector<16x128xf32>
    %c96 = arith.constant 96 : index
    %c0_92 = arith.constant 0 : index
    %85 = vector.load %arg3[%c96, %c0_92] : memref<256x128xf32, #tpu.memory_space<vmem>>, vector<16x128xf32>
    tpu.vector_store %arg3[%c96, %c0_92], %84 {strides = array<i32>} : memref<256x128xf32, #tpu.memory_space<vmem>>, vector<16x128xf32>,
    %c126 = arith.constant 126 : index
    %c0_93 = arith.constant 0 : index
    %86 = vector.load %arg4[%c126, %c0_93] : memref<288x128xf32, #tpu.memory_space<vmem>>, vector<16x128xf32>
    %c112 = arith.constant 112 : index
    %c0_94 = arith.constant 0 : index
    %87 = vector.load %arg3[%c112, %c0_94] : memref<256x128xf32, #tpu.memory_space<vmem>>, vector<16x128xf32>
    tpu.vector_store %arg3[%c112, %c0_94], %86 {strides = array<i32>} : memref<256x128xf32, #tpu.memory_space<vmem>>, vector<16x128xf32>,
    %c144 = arith.constant 144 : index
    %c0_95 = arith.constant 0 : index
    %88 = vector.load %arg4[%c144, %c0_95] : memref<288x128xf32, #tpu.memory_space<vmem>>, vector<16x128xf32>
    %c128 = arith.constant 128 : index
    %c0_96 = arith.constant 0 : index
    %89 = vector.load %arg3[%c128, %c0_96] : memref<256x128xf32, #tpu.memory_space<vmem>>, vector<16x128xf32>
    tpu.vector_store %arg3[%c128, %c0_96], %88 {strides = array<i32>} : memref<256x128xf32, #tpu.memory_space<vmem>>, vector<16x128xf32>,
    %c162 = arith.constant 162 : index
    %c0_97 = arith.constant 0 : index
    %90 = vector.load %arg4[%c162, %c0_97] : memref<288x128xf32, #tpu.memory_space<vmem>>, vector<16x128xf32>
    %c144_98 = arith.constant 144 : index
    %c0_99 = arith.constant 0 : index
    %91 = vector.load %arg3[%c144_98, %c0_99] : memref<256x128xf32, #tpu.memory_space<vmem>>, vector<16x128xf32>
    tpu.vector_store %arg3[%c144_98, %c0_99], %90 {strides = array<i32>} : memref<256x128xf32, #tpu.memory_space<vmem>>, vector<16x128xf32>,
    %c180 = arith.constant 180 : index
    %c0_100 = arith.constant 0 : index
    %92 = vector.load %arg4[%c180, %c0_100] : memref<288x128xf32, #tpu.memory_space<vmem>>, vector<16x128xf32>
    %c160 = arith.constant 160 : index
    %c0_101 = arith.constant 0 : index
    %93 = vector.load %arg3[%c160, %c0_101] : memref<256x128xf32, #tpu.memory_space<vmem>>, vector<16x128xf32>
    tpu.vector_store %arg3[%c160, %c0_101], %92 {strides = array<i32>} : memref<256x128xf32, #tpu.memory_space<vmem>>, vector<16x128xf32>,
    %c198 = arith.constant 198 : index
    %c0_102 = arith.constant 0 : index
    %94 = vector.load %arg4[%c198, %c0_102] : memref<288x128xf32, #tpu.memory_space<vmem>>, vector<16x128xf32>
    %c176 = arith.constant 176 : index
    %c0_103 = arith.constant 0 : index
    %95 = vector.load %arg3[%c176, %c0_103] : memref<256x128xf32, #tpu.memory_space<vmem>>, vector<16x128xf32>
    tpu.vector_store %arg3[%c176, %c0_103], %94 {strides = array<i32>} : memref<256x128xf32, #tpu.memory_space<vmem>>, vector<16x128xf32>,
    %c216 = arith.constant 216 : index
    %c0_104 = arith.constant 0 : index
    %96 = vector.load %arg4[%c216, %c0_104] : memref<288x128xf32, #tpu.memory_space<vmem>>, vector<16x128xf32>
    %c192 = arith.constant 192 : index
    %c0_105 = arith.constant 0 : index
    %97 = vector.load %arg3[%c192, %c0_105] : memref<256x128xf32, #tpu.memory_space<vmem>>, vector<16x128xf32>
    tpu.vector_store %arg3[%c192, %c0_105], %96 {strides = array<i32>} : memref<256x128xf32, #tpu.memory_space<vmem>>, vector<16x128xf32>,
    %c234 = arith.constant 234 : index
    %c0_106 = arith.constant 0 : index
    %98 = vector.load %arg4[%c234, %c0_106] : memref<288x128xf32, #tpu.memory_space<vmem>>, vector<16x128xf32>
    %c208 = arith.constant 208 : index
    %c0_107 = arith.constant 0 : index
    %99 = vector.load %arg3[%c208, %c0_107] : memref<256x128xf32, #tpu.memory_space<vmem>>, vector<16x128xf32>
    tpu.vector_store %arg3[%c208, %c0_107], %98 {strides = array<i32>} : memref<256x128xf32, #tpu.memory_space<vmem>>, vector<16x128xf32>,
    %c252 = arith.constant 252 : index
    %c0_108 = arith.constant 0 : index
    %100 = vector.load %arg4[%c252, %c0_108] : memref<288x128xf32, #tpu.memory_space<vmem>>, vector<16x128xf32>
    %c224 = arith.constant 224 : index
    %c0_109 = arith.constant 0 : index
    %101 = vector.load %arg3[%c224, %c0_109] : memref<256x128xf32, #tpu.memory_space<vmem>>, vector<16x128xf32>
    tpu.vector_store %arg3[%c224, %c0_109], %100 {strides = array<i32>} : memref<256x128xf32, #tpu.memory_space<vmem>>, vector<16x128xf32>,
    %c270 = arith.constant 270 : index
    %c0_110 = arith.constant 0 : index
    %102 = vector.load %arg4[%c270, %c0_110] : memref<288x128xf32, #tpu.memory_space<vmem>>, vector<16x128xf32>
    %c240 = arith.constant 240 : index
    %c0_111 = arith.constant 0 : index
    %103 = vector.load %arg3[%c240, %c0_111] : memref<256x128xf32, #tpu.memory_space<vmem>>, vector<16x128xf32>
    tpu.vector_store %arg3[%c240, %c0_111], %102 {strides = array<i32>} : memref<256x128xf32, #tpu.memory_space<vmem>>, vector<16x128xf32>,
    return
  }
  func.func @transform_0(%arg0: i32) -> (i32, i32) {
    %c0_i32 = arith.constant 0 : i32
    %c0_i32_0 = arith.constant 0 : i32
    return %arg0, %c0_i32 : i32, i32
  }
  func.func @transform_1(%arg0: i32) -> (i32, i32, i32) {
    %c0_i32 = arith.constant 0 : i32
    %c0_i32_0 = arith.constant 0 : i32
    %c0_i32_1 = arith.constant 0 : i32
    %c0_i32_2 = arith.constant 0 : i32
    return %c0_i32, %c0_i32_0, %c0_i32_1 : i32, i32, i32
  }
  func.func @transform_2(%arg0: i32) -> (i32, i32) {
    %c0_i32 = arith.constant 0 : i32
    %c0_i32_0 = arith.constant 0 : i32
    return %arg0, %c0_i32 : i32, i32
  }
}

module attributes {stable_mosaic.version = 11 : i64} {
  func.func @_dense_stage_kernel(%arg0: i32, %arg1: i32, %arg2: memref<256x128xf32, #tpu.memory_space<vmem>>, %arg3: memref<1x1x128xf32, #tpu.memory_space<vmem>>, %arg4: memref<1x1x128xf32, #tpu.memory_space<vmem>>, %arg5: memref<128x128xbf16, #tpu.memory_space<vmem>>, %arg6: memref<1x1x128xf32, #tpu.memory_space<vmem>>, %arg7: memref<1x1x128xf32, #tpu.memory_space<vmem>>, %arg8: memref<9x128x128xbf16, #tpu.memory_space<vmem>>, %arg9: memref<256x128xf32, #tpu.memory_space<vmem>>, %arg10: memref<328x128xf32, #tpu.memory_space<vmem>>, %arg11: memref<288x128xf32, #tpu.memory_space<vmem>>) attributes {dimension_semantics = [#tpu.dimension_semantics<parallel>, #tpu.dimension_semantics<arbitrary>], iteration_bounds = array<i64: 2, 2>, scalar_prefetch = 0 : i64, scratch_operands = 2 : i64, tpu.core_type = #tpu.core_type<tc>, window_params = [{transform_indices = @transform_0, window_bounds = array<i64: 256, 128>}, {transform_indices = @transform_1, window_bounds = array<i64: 1, 1, 128>}, {transform_indices = @transform_2, window_bounds = array<i64: 1, 1, 128>}, {transform_indices = @transform_3, window_bounds = array<i64: 128, 128>}, {transform_indices = @transform_4, window_bounds = array<i64: 1, 1, 128>}, {transform_indices = @transform_5, window_bounds = array<i64: 1, 1, 128>}, {transform_indices = @transform_6, window_bounds = array<i64: 9, 128, 128>}, {transform_indices = @transform_7, window_bounds = array<i64: 256, 128>}]} {
    %c0_i32 = arith.constant 0 : i32
    %0 = arith.cmpi eq, %arg1, %c0_i32 : i32
    %1 = arith.extui %0 : i1 to i32
    %c0_i32_0 = arith.constant 0 : i32
    %2 = arith.cmpi ne, %1, %c0_i32_0 : i32
    scf.if %2 {
      %c0_179 = arith.constant 0 : index
      %c0_180 = arith.constant 0 : index
      %193 = vector.load %arg2[%c0_179, %c0_180] : memref<256x128xf32, #tpu.memory_space<vmem>>, vector<256x128xf32>
      %c0_181 = arith.constant 0 : index
      %c0_182 = arith.constant 0 : index
      %194 = vector.load %arg9[%c0_181, %c0_182] : memref<256x128xf32, #tpu.memory_space<vmem>>, vector<256x128xf32>
      tpu.vector_store %arg9[%c0_181, %c0_182], %193 {strides = array<i32>} : memref<256x128xf32, #tpu.memory_space<vmem>>, vector<256x128xf32>,
      %cst_183 = arith.constant 0.000000e+00 : f32
      %195 = vector.broadcast %cst_183 : f32 to vector<328x128xf32>
      %c0_184 = arith.constant 0 : index
      %c0_185 = arith.constant 0 : index
      %196 = vector.load %arg10[%c0_184, %c0_185] : memref<328x128xf32, #tpu.memory_space<vmem>>, vector<328x128xf32>
      tpu.vector_store %arg10[%c0_184, %c0_185], %195 {strides = array<i32>} : memref<328x128xf32, #tpu.memory_space<vmem>>, vector<328x128xf32>,
    } else {
    }
    %c0 = arith.constant 0 : index
    %c0_1 = arith.constant 0 : index
    %3 = vector.load %arg9[%c0, %c0_1] : memref<256x128xf32, #tpu.memory_space<vmem>>, vector<256x128xf32>
    %c0_2 = arith.constant 0 : index
    %c0_3 = arith.constant 0 : index
    %c0_4 = arith.constant 0 : index
    %4 = vector.load %arg3[%c0_2, %c0_3, %c0_4] : memref<1x1x128xf32, #tpu.memory_space<vmem>>, vector<1x1x128xf32>
    %5 = vector.shape_cast %4 : vector<1x1x128xf32> to vector<1x128xf32>
    %6 = vector.broadcast %5 : vector<1x128xf32> to vector<256x128xf32>
    %7 = arith.mulf %3, %6 : vector<256x128xf32>
    %c0_5 = arith.constant 0 : index
    %c0_6 = arith.constant 0 : index
    %c0_7 = arith.constant 0 : index
    %8 = vector.load %arg4[%c0_5, %c0_6, %c0_7] : memref<1x1x128xf32, #tpu.memory_space<vmem>>, vector<1x1x128xf32>
    %9 = vector.shape_cast %8 : vector<1x1x128xf32> to vector<1x128xf32>
    %10 = vector.broadcast %9 : vector<1x128xf32> to vector<256x128xf32>
    %11 = arith.addf %7, %10 : vector<256x128xf32>
    %cst = arith.constant 0.000000e+00 : f32
    %12 = vector.broadcast %cst : f32 to vector<256x128xf32>
    %13 = arith.maximumf %11, %12 : vector<256x128xf32>
    %14 = arith.truncf %13 : vector<256x128xf32> to vector<256x128xbf16>
    %c0_8 = arith.constant 0 : index
    %c0_9 = arith.constant 0 : index
    %15 = vector.load %arg5[%c0_8, %c0_9] : memref<128x128xbf16, #tpu.memory_space<vmem>>, vector<128x128xbf16>
    %cst_10 = arith.constant dense<0.000000e+00> : vector<256x128xf32>
    %16 = tpu.matmul %14, %15, %cst_10 {dimension_numbers = #tpu.dot_dimension_numbers<[1], [0], [0], [1], [0, 0, 1, 1], [], []>} : vector<256x128xbf16>, vector<128x128xbf16>, vector<256x128xf32> -> vector<256x128xf32>
    %c0_11 = arith.constant 0 : index
    %c0_12 = arith.constant 0 : index
    %c0_13 = arith.constant 0 : index
    %17 = vector.load %arg6[%c0_11, %c0_12, %c0_13] : memref<1x1x128xf32, #tpu.memory_space<vmem>>, vector<1x1x128xf32>
    %18 = vector.shape_cast %17 : vector<1x1x128xf32> to vector<1x128xf32>
    %19 = vector.broadcast %18 : vector<1x128xf32> to vector<256x128xf32>
    %20 = arith.mulf %16, %19 : vector<256x128xf32>
    %c0_14 = arith.constant 0 : index
    %c0_15 = arith.constant 0 : index
    %c0_16 = arith.constant 0 : index
    %21 = vector.load %arg7[%c0_14, %c0_15, %c0_16] : memref<1x1x128xf32, #tpu.memory_space<vmem>>, vector<1x1x128xf32>
    %22 = vector.shape_cast %21 : vector<1x1x128xf32> to vector<1x128xf32>
    %23 = vector.broadcast %22 : vector<1x128xf32> to vector<256x128xf32>
    %24 = arith.addf %20, %23 : vector<256x128xf32>
    %cst_17 = arith.constant 0.000000e+00 : f32
    %25 = vector.broadcast %cst_17 : f32 to vector<256x128xf32>
    %26 = arith.maximumf %24, %25 : vector<256x128xf32>
    %27 = vector.extract_strided_slice %26 {offsets = [0, 0], sizes = [16, 128], strides = [1, 1]} : vector<256x128xf32> to vector<16x128xf32>
    %c19 = arith.constant 19 : index
    %c0_18 = arith.constant 0 : index
    %28 = vector.load %arg10[%c19, %c0_18] : memref<328x128xf32, #tpu.memory_space<vmem>>, vector<16x128xf32>
    tpu.vector_store %arg10[%c19, %c0_18], %27 {strides = array<i32>} : memref<328x128xf32, #tpu.memory_space<vmem>>, vector<16x128xf32>,
    %29 = vector.extract_strided_slice %26 {offsets = [16, 0], sizes = [16, 128], strides = [1, 1]} : vector<256x128xf32> to vector<16x128xf32>
    %c37 = arith.constant 37 : index
    %c0_19 = arith.constant 0 : index
    %30 = vector.load %arg10[%c37, %c0_19] : memref<328x128xf32, #tpu.memory_space<vmem>>, vector<16x128xf32>
    tpu.vector_store %arg10[%c37, %c0_19], %29 {strides = array<i32>} : memref<328x128xf32, #tpu.memory_space<vmem>>, vector<16x128xf32>,
    %31 = vector.extract_strided_slice %26 {offsets = [32, 0], sizes = [16, 128], strides = [1, 1]} : vector<256x128xf32> to vector<16x128xf32>
    %c55 = arith.constant 55 : index
    %c0_20 = arith.constant 0 : index
    %32 = vector.load %arg10[%c55, %c0_20] : memref<328x128xf32, #tpu.memory_space<vmem>>, vector<16x128xf32>
    tpu.vector_store %arg10[%c55, %c0_20], %31 {strides = array<i32>} : memref<328x128xf32, #tpu.memory_space<vmem>>, vector<16x128xf32>,
    %33 = vector.extract_strided_slice %26 {offsets = [48, 0], sizes = [16, 128], strides = [1, 1]} : vector<256x128xf32> to vector<16x128xf32>
    %c73 = arith.constant 73 : index
    %c0_21 = arith.constant 0 : index
    %34 = vector.load %arg10[%c73, %c0_21] : memref<328x128xf32, #tpu.memory_space<vmem>>, vector<16x128xf32>
    tpu.vector_store %arg10[%c73, %c0_21], %33 {strides = array<i32>} : memref<328x128xf32, #tpu.memory_space<vmem>>, vector<16x128xf32>,
    %35 = vector.extract_strided_slice %26 {offsets = [64, 0], sizes = [16, 128], strides = [1, 1]} : vector<256x128xf32> to vector<16x128xf32>
    %c91 = arith.constant 91 : index
    %c0_22 = arith.constant 0 : index
    %36 = vector.load %arg10[%c91, %c0_22] : memref<328x128xf32, #tpu.memory_space<vmem>>, vector<16x128xf32>
    tpu.vector_store %arg10[%c91, %c0_22], %35 {strides = array<i32>} : memref<328x128xf32, #tpu.memory_space<vmem>>, vector<16x128xf32>,
    %37 = vector.extract_strided_slice %26 {offsets = [80, 0], sizes = [16, 128], strides = [1, 1]} : vector<256x128xf32> to vector<16x128xf32>
    %c109 = arith.constant 109 : index
    %c0_23 = arith.constant 0 : index
    %38 = vector.load %arg10[%c109, %c0_23] : memref<328x128xf32, #tpu.memory_space<vmem>>, vector<16x128xf32>
    tpu.vector_store %arg10[%c109, %c0_23], %37 {strides = array<i32>} : memref<328x128xf32, #tpu.memory_space<vmem>>, vector<16x128xf32>,
    %39 = vector.extract_strided_slice %26 {offsets = [96, 0], sizes = [16, 128], strides = [1, 1]} : vector<256x128xf32> to vector<16x128xf32>
    %c127 = arith.constant 127 : index
    %c0_24 = arith.constant 0 : index
    %40 = vector.load %arg10[%c127, %c0_24] : memref<328x128xf32, #tpu.memory_space<vmem>>, vector<16x128xf32>
    tpu.vector_store %arg10[%c127, %c0_24], %39 {strides = array<i32>} : memref<328x128xf32, #tpu.memory_space<vmem>>, vector<16x128xf32>,
    %41 = vector.extract_strided_slice %26 {offsets = [112, 0], sizes = [16, 128], strides = [1, 1]} : vector<256x128xf32> to vector<16x128xf32>
    %c145 = arith.constant 145 : index
    %c0_25 = arith.constant 0 : index
    %42 = vector.load %arg10[%c145, %c0_25] : memref<328x128xf32, #tpu.memory_space<vmem>>, vector<16x128xf32>
    tpu.vector_store %arg10[%c145, %c0_25], %41 {strides = array<i32>} : memref<328x128xf32, #tpu.memory_space<vmem>>, vector<16x128xf32>,
    %43 = vector.extract_strided_slice %26 {offsets = [128, 0], sizes = [16, 128], strides = [1, 1]} : vector<256x128xf32> to vector<16x128xf32>
    %c163 = arith.constant 163 : index
    %c0_26 = arith.constant 0 : index
    %44 = vector.load %arg10[%c163, %c0_26] : memref<328x128xf32, #tpu.memory_space<vmem>>, vector<16x128xf32>
    tpu.vector_store %arg10[%c163, %c0_26], %43 {strides = array<i32>} : memref<328x128xf32, #tpu.memory_space<vmem>>, vector<16x128xf32>,
    %45 = vector.extract_strided_slice %26 {offsets = [144, 0], sizes = [16, 128], strides = [1, 1]} : vector<256x128xf32> to vector<16x128xf32>
    %c181 = arith.constant 181 : index
    %c0_27 = arith.constant 0 : index
    %46 = vector.load %arg10[%c181, %c0_27] : memref<328x128xf32, #tpu.memory_space<vmem>>, vector<16x128xf32>
    tpu.vector_store %arg10[%c181, %c0_27], %45 {strides = array<i32>} : memref<328x128xf32, #tpu.memory_space<vmem>>, vector<16x128xf32>,
    %47 = vector.extract_strided_slice %26 {offsets = [160, 0], sizes = [16, 128], strides = [1, 1]} : vector<256x128xf32> to vector<16x128xf32>
    %c199 = arith.constant 199 : index
    %c0_28 = arith.constant 0 : index
    %48 = vector.load %arg10[%c199, %c0_28] : memref<328x128xf32, #tpu.memory_space<vmem>>, vector<16x128xf32>
    tpu.vector_store %arg10[%c199, %c0_28], %47 {strides = array<i32>} : memref<328x128xf32, #tpu.memory_space<vmem>>, vector<16x128xf32>,
    %49 = vector.extract_strided_slice %26 {offsets = [176, 0], sizes = [16, 128], strides = [1, 1]} : vector<256x128xf32> to vector<16x128xf32>
    %c217 = arith.constant 217 : index
    %c0_29 = arith.constant 0 : index
    %50 = vector.load %arg10[%c217, %c0_29] : memref<328x128xf32, #tpu.memory_space<vmem>>, vector<16x128xf32>
    tpu.vector_store %arg10[%c217, %c0_29], %49 {strides = array<i32>} : memref<328x128xf32, #tpu.memory_space<vmem>>, vector<16x128xf32>,
    %51 = vector.extract_strided_slice %26 {offsets = [192, 0], sizes = [16, 128], strides = [1, 1]} : vector<256x128xf32> to vector<16x128xf32>
    %c235 = arith.constant 235 : index
    %c0_30 = arith.constant 0 : index
    %52 = vector.load %arg10[%c235, %c0_30] : memref<328x128xf32, #tpu.memory_space<vmem>>, vector<16x128xf32>
    tpu.vector_store %arg10[%c235, %c0_30], %51 {strides = array<i32>} : memref<328x128xf32, #tpu.memory_space<vmem>>, vector<16x128xf32>,
    %53 = vector.extract_strided_slice %26 {offsets = [208, 0], sizes = [16, 128], strides = [1, 1]} : vector<256x128xf32> to vector<16x128xf32>
    %c253 = arith.constant 253 : index
    %c0_31 = arith.constant 0 : index
    %54 = vector.load %arg10[%c253, %c0_31] : memref<328x128xf32, #tpu.memory_space<vmem>>, vector<16x128xf32>
    tpu.vector_store %arg10[%c253, %c0_31], %53 {strides = array<i32>} : memref<328x128xf32, #tpu.memory_space<vmem>>, vector<16x128xf32>,
    %55 = vector.extract_strided_slice %26 {offsets = [224, 0], sizes = [16, 128], strides = [1, 1]} : vector<256x128xf32> to vector<16x128xf32>
    %c271 = arith.constant 271 : index
    %c0_32 = arith.constant 0 : index
    %56 = vector.load %arg10[%c271, %c0_32] : memref<328x128xf32, #tpu.memory_space<vmem>>, vector<16x128xf32>
    tpu.vector_store %arg10[%c271, %c0_32], %55 {strides = array<i32>} : memref<328x128xf32, #tpu.memory_space<vmem>>, vector<16x128xf32>,
    %57 = vector.extract_strided_slice %26 {offsets = [240, 0], sizes = [16, 128], strides = [1, 1]} : vector<256x128xf32> to vector<16x128xf32>
    %c289 = arith.constant 289 : index
    %c0_33 = arith.constant 0 : index
    %58 = vector.load %arg10[%c289, %c0_33] : memref<328x128xf32, #tpu.memory_space<vmem>>, vector<16x128xf32>
    tpu.vector_store %arg10[%c289, %c0_33], %57 {strides = array<i32>} : memref<328x128xf32, #tpu.memory_space<vmem>>, vector<16x128xf32>,
    %c0_34 = arith.constant 0 : index
    %c0_35 = arith.constant 0 : index
    %59 = vector.load %arg10[%c0_34, %c0_35] : memref<328x128xf32, #tpu.memory_space<vmem>>, vector<288x128xf32>
    %60 = arith.truncf %59 : vector<288x128xf32> to vector<288x128xbf16>
    %c0_36 = arith.constant 0 : index
    %c0_37 = arith.constant 0 : index
    %c0_38 = arith.constant 0 : index
    %61 = vector.load %arg8[%c0_36, %c0_37, %c0_38] : memref<9x128x128xbf16, #tpu.memory_space<vmem>>, vector<1x128x128xbf16>
    %62 = vector.shape_cast %61 : vector<1x128x128xbf16> to vector<128x128xbf16>
    %cst_39 = arith.constant dense<0.000000e+00> : vector<288x128xf32>
    %63 = tpu.matmul %60, %62, %cst_39 {dimension_numbers = #tpu.dot_dimension_numbers<[1], [0], [0], [1], [0, 0, 1, 1], [], []>} : vector<288x128xbf16>, vector<128x128xbf16>, vector<288x128xf32> -> vector<288x128xf32>
    %c0_40 = arith.constant 0 : index
    %c0_41 = arith.constant 0 : index
    %64 = vector.load %arg11[%c0_40, %c0_41] : memref<288x128xf32, #tpu.memory_space<vmem>>, vector<288x128xf32>
    tpu.vector_store %arg11[%c0_40, %c0_41], %63 {strides = array<i32>} : memref<288x128xf32, #tpu.memory_space<vmem>>, vector<288x128xf32>,
    %c1 = arith.constant 1 : index
    %c0_42 = arith.constant 0 : index
    %65 = vector.load %arg10[%c1, %c0_42] : memref<328x128xf32, #tpu.memory_space<vmem>>, vector<288x128xf32>
    %66 = arith.truncf %65 : vector<288x128xf32> to vector<288x128xbf16>
    %c1_43 = arith.constant 1 : index
    %c0_44 = arith.constant 0 : index
    %c0_45 = arith.constant 0 : index
    %67 = vector.load %arg8[%c1_43, %c0_44, %c0_45] : memref<9x128x128xbf16, #tpu.memory_space<vmem>>, vector<1x128x128xbf16>
    %68 = vector.shape_cast %67 : vector<1x128x128xbf16> to vector<128x128xbf16>
    %cst_46 = arith.constant dense<0.000000e+00> : vector<288x128xf32>
    %69 = tpu.matmul %66, %68, %cst_46 {dimension_numbers = #tpu.dot_dimension_numbers<[1], [0], [0], [1], [0, 0, 1, 1], [], []>} : vector<288x128xbf16>, vector<128x128xbf16>, vector<288x128xf32> -> vector<288x128xf32>
    %c0_47 = arith.constant 0 : index
    %c0_48 = arith.constant 0 : index
    %70 = vector.load %arg11[%c0_47, %c0_48] : memref<288x128xf32, #tpu.memory_space<vmem>>, vector<288x128xf32>
    %71 = arith.addf %70, %69 : vector<288x128xf32>
    %c0_49 = arith.constant 0 : index
    %c0_50 = arith.constant 0 : index
    %72 = vector.load %arg11[%c0_49, %c0_50] : memref<288x128xf32, #tpu.memory_space<vmem>>, vector<288x128xf32>
    tpu.vector_store %arg11[%c0_49, %c0_50], %71 {strides = array<i32>} : memref<288x128xf32, #tpu.memory_space<vmem>>, vector<288x128xf32>,
    %c2 = arith.constant 2 : index
    %c0_51 = arith.constant 0 : index
    %73 = vector.load %arg10[%c2, %c0_51] : memref<328x128xf32, #tpu.memory_space<vmem>>, vector<288x128xf32>
    %74 = arith.truncf %73 : vector<288x128xf32> to vector<288x128xbf16>
    %c2_52 = arith.constant 2 : index
    %c0_53 = arith.constant 0 : index
    %c0_54 = arith.constant 0 : index
    %75 = vector.load %arg8[%c2_52, %c0_53, %c0_54] : memref<9x128x128xbf16, #tpu.memory_space<vmem>>, vector<1x128x128xbf16>
    %76 = vector.shape_cast %75 : vector<1x128x128xbf16> to vector<128x128xbf16>
    %cst_55 = arith.constant dense<0.000000e+00> : vector<288x128xf32>
    %77 = tpu.matmul %74, %76, %cst_55 {dimension_numbers = #tpu.dot_dimension_numbers<[1], [0], [0], [1], [0, 0, 1, 1], [], []>} : vector<288x128xbf16>, vector<128x128xbf16>, vector<288x128xf32> -> vector<288x128xf32>
    %c0_56 = arith.constant 0 : index
    %c0_57 = arith.constant 0 : index
    %78 = vector.load %arg11[%c0_56, %c0_57] : memref<288x128xf32, #tpu.memory_space<vmem>>, vector<288x128xf32>
    %79 = arith.addf %78, %77 : vector<288x128xf32>
    %c0_58 = arith.constant 0 : index
    %c0_59 = arith.constant 0 : index
    %80 = vector.load %arg11[%c0_58, %c0_59] : memref<288x128xf32, #tpu.memory_space<vmem>>, vector<288x128xf32>
    tpu.vector_store %arg11[%c0_58, %c0_59], %79 {strides = array<i32>} : memref<288x128xf32, #tpu.memory_space<vmem>>, vector<288x128xf32>,
    %c18 = arith.constant 18 : index
    %c0_60 = arith.constant 0 : index
    %81 = vector.load %arg10[%c18, %c0_60] : memref<328x128xf32, #tpu.memory_space<vmem>>, vector<288x128xf32>
    %82 = arith.truncf %81 : vector<288x128xf32> to vector<288x128xbf16>
    %c3 = arith.constant 3 : index
    %c0_61 = arith.constant 0 : index
    %c0_62 = arith.constant 0 : index
    %83 = vector.load %arg8[%c3, %c0_61, %c0_62] : memref<9x128x128xbf16, #tpu.memory_space<vmem>>, vector<1x128x128xbf16>
    %84 = vector.shape_cast %83 : vector<1x128x128xbf16> to vector<128x128xbf16>
    %cst_63 = arith.constant dense<0.000000e+00> : vector<288x128xf32>
    %85 = tpu.matmul %82, %84, %cst_63 {dimension_numbers = #tpu.dot_dimension_numbers<[1], [0], [0], [1], [0, 0, 1, 1], [], []>} : vector<288x128xbf16>, vector<128x128xbf16>, vector<288x128xf32> -> vector<288x128xf32>
    %c0_64 = arith.constant 0 : index
    %c0_65 = arith.constant 0 : index
    %86 = vector.load %arg11[%c0_64, %c0_65] : memref<288x128xf32, #tpu.memory_space<vmem>>, vector<288x128xf32>
    %87 = arith.addf %86, %85 : vector<288x128xf32>
    %c0_66 = arith.constant 0 : index
    %c0_67 = arith.constant 0 : index
    %88 = vector.load %arg11[%c0_66, %c0_67] : memref<288x128xf32, #tpu.memory_space<vmem>>, vector<288x128xf32>
    tpu.vector_store %arg11[%c0_66, %c0_67], %87 {strides = array<i32>} : memref<288x128xf32, #tpu.memory_space<vmem>>, vector<288x128xf32>,
    %c19_68 = arith.constant 19 : index
    %c0_69 = arith.constant 0 : index
    %89 = vector.load %arg10[%c19_68, %c0_69] : memref<328x128xf32, #tpu.memory_space<vmem>>, vector<288x128xf32>
    %90 = arith.truncf %89 : vector<288x128xf32> to vector<288x128xbf16>
    %c4 = arith.constant 4 : index
    %c0_70 = arith.constant 0 : index
    %c0_71 = arith.constant 0 : index
    %91 = vector.load %arg8[%c4, %c0_70, %c0_71] : memref<9x128x128xbf16, #tpu.memory_space<vmem>>, vector<1x128x128xbf16>
    %92 = vector.shape_cast %91 : vector<1x128x128xbf16> to vector<128x128xbf16>
    %cst_72 = arith.constant dense<0.000000e+00> : vector<288x128xf32>
    %93 = tpu.matmul %90, %92, %cst_72 {dimension_numbers = #tpu.dot_dimension_numbers<[1], [0], [0], [1], [0, 0, 1, 1], [], []>} : vector<288x128xbf16>, vector<128x128xbf16>, vector<288x128xf32> -> vector<288x128xf32>
    %c0_73 = arith.constant 0 : index
    %c0_74 = arith.constant 0 : index
    %94 = vector.load %arg11[%c0_73, %c0_74] : memref<288x128xf32, #tpu.memory_space<vmem>>, vector<288x128xf32>
    %95 = arith.addf %94, %93 : vector<288x128xf32>
    %c0_75 = arith.constant 0 : index
    %c0_76 = arith.constant 0 : index
    %96 = vector.load %arg11[%c0_75, %c0_76] : memref<288x128xf32, #tpu.memory_space<vmem>>, vector<288x128xf32>
    tpu.vector_store %arg11[%c0_75, %c0_76], %95 {strides = array<i32>} : memref<288x128xf32, #tpu.memory_space<vmem>>, vector<288x128xf32>,
    %c20 = arith.constant 20 : index
    %c0_77 = arith.constant 0 : index
    %97 = vector.load %arg10[%c20, %c0_77] : memref<328x128xf32, #tpu.memory_space<vmem>>, vector<288x128xf32>
    %98 = arith.truncf %97 : vector<288x128xf32> to vector<288x128xbf16>
    %c5 = arith.constant 5 : index
    %c0_78 = arith.constant 0 : index
    %c0_79 = arith.constant 0 : index
    %99 = vector.load %arg8[%c5, %c0_78, %c0_79] : memref<9x128x128xbf16, #tpu.memory_space<vmem>>, vector<1x128x128xbf16>
    %100 = vector.shape_cast %99 : vector<1x128x128xbf16> to vector<128x128xbf16>
    %cst_80 = arith.constant dense<0.000000e+00> : vector<288x128xf32>
    %101 = tpu.matmul %98, %100, %cst_80 {dimension_numbers = #tpu.dot_dimension_numbers<[1], [0], [0], [1], [0, 0, 1, 1], [], []>} : vector<288x128xbf16>, vector<128x128xbf16>, vector<288x128xf32> -> vector<288x128xf32>
    %c0_81 = arith.constant 0 : index
    %c0_82 = arith.constant 0 : index
    %102 = vector.load %arg11[%c0_81, %c0_82] : memref<288x128xf32, #tpu.memory_space<vmem>>, vector<288x128xf32>
    %103 = arith.addf %102, %101 : vector<288x128xf32>
    %c0_83 = arith.constant 0 : index
    %c0_84 = arith.constant 0 : index
    %104 = vector.load %arg11[%c0_83, %c0_84] : memref<288x128xf32, #tpu.memory_space<vmem>>, vector<288x128xf32>
    tpu.vector_store %arg11[%c0_83, %c0_84], %103 {strides = array<i32>} : memref<288x128xf32, #tpu.memory_space<vmem>>, vector<288x128xf32>,
    %c36 = arith.constant 36 : index
    %c0_85 = arith.constant 0 : index
    %105 = vector.load %arg10[%c36, %c0_85] : memref<328x128xf32, #tpu.memory_space<vmem>>, vector<288x128xf32>
    %106 = arith.truncf %105 : vector<288x128xf32> to vector<288x128xbf16>
    %c6 = arith.constant 6 : index
    %c0_86 = arith.constant 0 : index
    %c0_87 = arith.constant 0 : index
    %107 = vector.load %arg8[%c6, %c0_86, %c0_87] : memref<9x128x128xbf16, #tpu.memory_space<vmem>>, vector<1x128x128xbf16>
    %108 = vector.shape_cast %107 : vector<1x128x128xbf16> to vector<128x128xbf16>
    %cst_88 = arith.constant dense<0.000000e+00> : vector<288x128xf32>
    %109 = tpu.matmul %106, %108, %cst_88 {dimension_numbers = #tpu.dot_dimension_numbers<[1], [0], [0], [1], [0, 0, 1, 1], [], []>} : vector<288x128xbf16>, vector<128x128xbf16>, vector<288x128xf32> -> vector<288x128xf32>
    %c0_89 = arith.constant 0 : index
    %c0_90 = arith.constant 0 : index
    %110 = vector.load %arg11[%c0_89, %c0_90] : memref<288x128xf32, #tpu.memory_space<vmem>>, vector<288x128xf32>
    %111 = arith.addf %110, %109 : vector<288x128xf32>
    %c0_91 = arith.constant 0 : index
    %c0_92 = arith.constant 0 : index
    %112 = vector.load %arg11[%c0_91, %c0_92] : memref<288x128xf32, #tpu.memory_space<vmem>>, vector<288x128xf32>
    tpu.vector_store %arg11[%c0_91, %c0_92], %111 {strides = array<i32>} : memref<288x128xf32, #tpu.memory_space<vmem>>, vector<288x128xf32>,
    %c37_93 = arith.constant 37 : index
    %c0_94 = arith.constant 0 : index
    %113 = vector.load %arg10[%c37_93, %c0_94] : memref<328x128xf32, #tpu.memory_space<vmem>>, vector<288x128xf32>
    %114 = arith.truncf %113 : vector<288x128xf32> to vector<288x128xbf16>
    %c7 = arith.constant 7 : index
    %c0_95 = arith.constant 0 : index
    %c0_96 = arith.constant 0 : index
    %115 = vector.load %arg8[%c7, %c0_95, %c0_96] : memref<9x128x128xbf16, #tpu.memory_space<vmem>>, vector<1x128x128xbf16>
    %116 = vector.shape_cast %115 : vector<1x128x128xbf16> to vector<128x128xbf16>
    %cst_97 = arith.constant dense<0.000000e+00> : vector<288x128xf32>
    %117 = tpu.matmul %114, %116, %cst_97 {dimension_numbers = #tpu.dot_dimension_numbers<[1], [0], [0], [1], [0, 0, 1, 1], [], []>} : vector<288x128xbf16>, vector<128x128xbf16>, vector<288x128xf32> -> vector<288x128xf32>
    %c0_98 = arith.constant 0 : index
    %c0_99 = arith.constant 0 : index
    %118 = vector.load %arg11[%c0_98, %c0_99] : memref<288x128xf32, #tpu.memory_space<vmem>>, vector<288x128xf32>
    %119 = arith.addf %118, %117 : vector<288x128xf32>
    %c0_100 = arith.constant 0 : index
    %c0_101 = arith.constant 0 : index
    %120 = vector.load %arg11[%c0_100, %c0_101] : memref<288x128xf32, #tpu.memory_space<vmem>>, vector<288x128xf32>
    tpu.vector_store %arg11[%c0_100, %c0_101], %119 {strides = array<i32>} : memref<288x128xf32, #tpu.memory_space<vmem>>, vector<288x128xf32>,
    %c38 = arith.constant 38 : index
    %c0_102 = arith.constant 0 : index
    %121 = vector.load %arg10[%c38, %c0_102] : memref<328x128xf32, #tpu.memory_space<vmem>>, vector<288x128xf32>
    %122 = arith.truncf %121 : vector<288x128xf32> to vector<288x128xbf16>
    %c8 = arith.constant 8 : index
    %c0_103 = arith.constant 0 : index
    %c0_104 = arith.constant 0 : index
    %123 = vector.load %arg8[%c8, %c0_103, %c0_104] : memref<9x128x128xbf16, #tpu.memory_space<vmem>>, vector<1x128x128xbf16>
    %124 = vector.shape_cast %123 : vector<1x128x128xbf16> to vector<128x128xbf16>
    %cst_105 = arith.constant dense<0.000000e+00> : vector<288x128xf32>
    %125 = tpu.matmul %122, %124, %cst_105 {dimension_numbers = #tpu.dot_dimension_numbers<[1], [0], [0], [1], [0, 0, 1, 1], [], []>} : vector<288x128xbf16>, vector<128x128xbf16>, vector<288x128xf32> -> vector<288x128xf32>
    %c0_106 = arith.constant 0 : index
    %c0_107 = arith.constant 0 : index
    %126 = vector.load %arg11[%c0_106, %c0_107] : memref<288x128xf32, #tpu.memory_space<vmem>>, vector<288x128xf32>
    %127 = arith.addf %126, %125 : vector<288x128xf32>
    %c0_108 = arith.constant 0 : index
    %c0_109 = arith.constant 0 : index
    %128 = vector.load %arg11[%c0_108, %c0_109] : memref<288x128xf32, #tpu.memory_space<vmem>>, vector<288x128xf32>
    tpu.vector_store %arg11[%c0_108, %c0_109], %127 {strides = array<i32>} : memref<288x128xf32, #tpu.memory_space<vmem>>, vector<288x128xf32>,
    %c0_110 = arith.constant 0 : index
    %c0_111 = arith.constant 0 : index
    %129 = vector.load %arg9[%c0_110, %c0_111] : memref<256x128xf32, #tpu.memory_space<vmem>>, vector<16x128xf32>
    %c0_112 = arith.constant 0 : index
    %c0_113 = arith.constant 0 : index
    %130 = vector.load %arg11[%c0_112, %c0_113] : memref<288x128xf32, #tpu.memory_space<vmem>>, vector<16x128xf32>
    %131 = arith.addf %129, %130 : vector<16x128xf32>
    %c0_114 = arith.constant 0 : index
    %c0_115 = arith.constant 0 : index
    %132 = vector.load %arg9[%c0_114, %c0_115] : memref<256x128xf32, #tpu.memory_space<vmem>>, vector<16x128xf32>
    tpu.vector_store %arg9[%c0_114, %c0_115], %131 {strides = array<i32>} : memref<256x128xf32, #tpu.memory_space<vmem>>, vector<16x128xf32>,
    %c16 = arith.constant 16 : index
    %c0_116 = arith.constant 0 : index
    %133 = vector.load %arg9[%c16, %c0_116] : memref<256x128xf32, #tpu.memory_space<vmem>>, vector<16x128xf32>
    %c18_117 = arith.constant 18 : index
    %c0_118 = arith.constant 0 : index
    %134 = vector.load %arg11[%c18_117, %c0_118] : memref<288x128xf32, #tpu.memory_space<vmem>>, vector<16x128xf32>
    %135 = arith.addf %133, %134 : vector<16x128xf32>
    %c16_119 = arith.constant 16 : index
    %c0_120 = arith.constant 0 : index
    %136 = vector.load %arg9[%c16_119, %c0_120] : memref<256x128xf32, #tpu.memory_space<vmem>>, vector<16x128xf32>
    tpu.vector_store %arg9[%c16_119, %c0_120], %135 {strides = array<i32>} : memref<256x128xf32, #tpu.memory_space<vmem>>, vector<16x128xf32>,
    %c32 = arith.constant 32 : index
    %c0_121 = arith.constant 0 : index
    %137 = vector.load %arg9[%c32, %c0_121] : memref<256x128xf32, #tpu.memory_space<vmem>>, vector<16x128xf32>
    %c36_122 = arith.constant 36 : index
    %c0_123 = arith.constant 0 : index
    %138 = vector.load %arg11[%c36_122, %c0_123] : memref<288x128xf32, #tpu.memory_space<vmem>>, vector<16x128xf32>
    %139 = arith.addf %137, %138 : vector<16x128xf32>
    %c32_124 = arith.constant 32 : index
    %c0_125 = arith.constant 0 : index
    %140 = vector.load %arg9[%c32_124, %c0_125] : memref<256x128xf32, #tpu.memory_space<vmem>>, vector<16x128xf32>
    tpu.vector_store %arg9[%c32_124, %c0_125], %139 {strides = array<i32>} : memref<256x128xf32, #tpu.memory_space<vmem>>, vector<16x128xf32>,
    %c48 = arith.constant 48 : index
    %c0_126 = arith.constant 0 : index
    %141 = vector.load %arg9[%c48, %c0_126] : memref<256x128xf32, #tpu.memory_space<vmem>>, vector<16x128xf32>
    %c54 = arith.constant 54 : index
    %c0_127 = arith.constant 0 : index
    %142 = vector.load %arg11[%c54, %c0_127] : memref<288x128xf32, #tpu.memory_space<vmem>>, vector<16x128xf32>
    %143 = arith.addf %141, %142 : vector<16x128xf32>
    %c48_128 = arith.constant 48 : index
    %c0_129 = arith.constant 0 : index
    %144 = vector.load %arg9[%c48_128, %c0_129] : memref<256x128xf32, #tpu.memory_space<vmem>>, vector<16x128xf32>
    tpu.vector_store %arg9[%c48_128, %c0_129], %143 {strides = array<i32>} : memref<256x128xf32, #tpu.memory_space<vmem>>, vector<16x128xf32>,
    %c64 = arith.constant 64 : index
    %c0_130 = arith.constant 0 : index
    %145 = vector.load %arg9[%c64, %c0_130] : memref<256x128xf32, #tpu.memory_space<vmem>>, vector<16x128xf32>
    %c72 = arith.constant 72 : index
    %c0_131 = arith.constant 0 : index
    %146 = vector.load %arg11[%c72, %c0_131] : memref<288x128xf32, #tpu.memory_space<vmem>>, vector<16x128xf32>
    %147 = arith.addf %145, %146 : vector<16x128xf32>
    %c64_132 = arith.constant 64 : index
    %c0_133 = arith.constant 0 : index
    %148 = vector.load %arg9[%c64_132, %c0_133] : memref<256x128xf32, #tpu.memory_space<vmem>>, vector<16x128xf32>
    tpu.vector_store %arg9[%c64_132, %c0_133], %147 {strides = array<i32>} : memref<256x128xf32, #tpu.memory_space<vmem>>, vector<16x128xf32>,
    %c80 = arith.constant 80 : index
    %c0_134 = arith.constant 0 : index
    %149 = vector.load %arg9[%c80, %c0_134] : memref<256x128xf32, #tpu.memory_space<vmem>>, vector<16x128xf32>
    %c90 = arith.constant 90 : index
    %c0_135 = arith.constant 0 : index
    %150 = vector.load %arg11[%c90, %c0_135] : memref<288x128xf32, #tpu.memory_space<vmem>>, vector<16x128xf32>
    %151 = arith.addf %149, %150 : vector<16x128xf32>
    %c80_136 = arith.constant 80 : index
    %c0_137 = arith.constant 0 : index
    %152 = vector.load %arg9[%c80_136, %c0_137] : memref<256x128xf32, #tpu.memory_space<vmem>>, vector<16x128xf32>
    tpu.vector_store %arg9[%c80_136, %c0_137], %151 {strides = array<i32>} : memref<256x128xf32, #tpu.memory_space<vmem>>, vector<16x128xf32>,
    %c96 = arith.constant 96 : index
    %c0_138 = arith.constant 0 : index
    %153 = vector.load %arg9[%c96, %c0_138] : memref<256x128xf32, #tpu.memory_space<vmem>>, vector<16x128xf32>
    %c108 = arith.constant 108 : index
    %c0_139 = arith.constant 0 : index
    %154 = vector.load %arg11[%c108, %c0_139] : memref<288x128xf32, #tpu.memory_space<vmem>>, vector<16x128xf32>
    %155 = arith.addf %153, %154 : vector<16x128xf32>
    %c96_140 = arith.constant 96 : index
    %c0_141 = arith.constant 0 : index
    %156 = vector.load %arg9[%c96_140, %c0_141] : memref<256x128xf32, #tpu.memory_space<vmem>>, vector<16x128xf32>
    tpu.vector_store %arg9[%c96_140, %c0_141], %155 {strides = array<i32>} : memref<256x128xf32, #tpu.memory_space<vmem>>, vector<16x128xf32>,
    %c112 = arith.constant 112 : index
    %c0_142 = arith.constant 0 : index
    %157 = vector.load %arg9[%c112, %c0_142] : memref<256x128xf32, #tpu.memory_space<vmem>>, vector<16x128xf32>
    %c126 = arith.constant 126 : index
    %c0_143 = arith.constant 0 : index
    %158 = vector.load %arg11[%c126, %c0_143] : memref<288x128xf32, #tpu.memory_space<vmem>>, vector<16x128xf32>
    %159 = arith.addf %157, %158 : vector<16x128xf32>
    %c112_144 = arith.constant 112 : index
    %c0_145 = arith.constant 0 : index
    %160 = vector.load %arg9[%c112_144, %c0_145] : memref<256x128xf32, #tpu.memory_space<vmem>>, vector<16x128xf32>
    tpu.vector_store %arg9[%c112_144, %c0_145], %159 {strides = array<i32>} : memref<256x128xf32, #tpu.memory_space<vmem>>, vector<16x128xf32>,
    %c128 = arith.constant 128 : index
    %c0_146 = arith.constant 0 : index
    %161 = vector.load %arg9[%c128, %c0_146] : memref<256x128xf32, #tpu.memory_space<vmem>>, vector<16x128xf32>
    %c144 = arith.constant 144 : index
    %c0_147 = arith.constant 0 : index
    %162 = vector.load %arg11[%c144, %c0_147] : memref<288x128xf32, #tpu.memory_space<vmem>>, vector<16x128xf32>
    %163 = arith.addf %161, %162 : vector<16x128xf32>
    %c128_148 = arith.constant 128 : index
    %c0_149 = arith.constant 0 : index
    %164 = vector.load %arg9[%c128_148, %c0_149] : memref<256x128xf32, #tpu.memory_space<vmem>>, vector<16x128xf32>
    tpu.vector_store %arg9[%c128_148, %c0_149], %163 {strides = array<i32>} : memref<256x128xf32, #tpu.memory_space<vmem>>, vector<16x128xf32>,
    %c144_150 = arith.constant 144 : index
    %c0_151 = arith.constant 0 : index
    %165 = vector.load %arg9[%c144_150, %c0_151] : memref<256x128xf32, #tpu.memory_space<vmem>>, vector<16x128xf32>
    %c162 = arith.constant 162 : index
    %c0_152 = arith.constant 0 : index
    %166 = vector.load %arg11[%c162, %c0_152] : memref<288x128xf32, #tpu.memory_space<vmem>>, vector<16x128xf32>
    %167 = arith.addf %165, %166 : vector<16x128xf32>
    %c144_153 = arith.constant 144 : index
    %c0_154 = arith.constant 0 : index
    %168 = vector.load %arg9[%c144_153, %c0_154] : memref<256x128xf32, #tpu.memory_space<vmem>>, vector<16x128xf32>
    tpu.vector_store %arg9[%c144_153, %c0_154], %167 {strides = array<i32>} : memref<256x128xf32, #tpu.memory_space<vmem>>, vector<16x128xf32>,
    %c160 = arith.constant 160 : index
    %c0_155 = arith.constant 0 : index
    %169 = vector.load %arg9[%c160, %c0_155] : memref<256x128xf32, #tpu.memory_space<vmem>>, vector<16x128xf32>
    %c180 = arith.constant 180 : index
    %c0_156 = arith.constant 0 : index
    %170 = vector.load %arg11[%c180, %c0_156] : memref<288x128xf32, #tpu.memory_space<vmem>>, vector<16x128xf32>
    %171 = arith.addf %169, %170 : vector<16x128xf32>
    %c160_157 = arith.constant 160 : index
    %c0_158 = arith.constant 0 : index
    %172 = vector.load %arg9[%c160_157, %c0_158] : memref<256x128xf32, #tpu.memory_space<vmem>>, vector<16x128xf32>
    tpu.vector_store %arg9[%c160_157, %c0_158], %171 {strides = array<i32>} : memref<256x128xf32, #tpu.memory_space<vmem>>, vector<16x128xf32>,
    %c176 = arith.constant 176 : index
    %c0_159 = arith.constant 0 : index
    %173 = vector.load %arg9[%c176, %c0_159] : memref<256x128xf32, #tpu.memory_space<vmem>>, vector<16x128xf32>
    %c198 = arith.constant 198 : index
    %c0_160 = arith.constant 0 : index
    %174 = vector.load %arg11[%c198, %c0_160] : memref<288x128xf32, #tpu.memory_space<vmem>>, vector<16x128xf32>
    %175 = arith.addf %173, %174 : vector<16x128xf32>
    %c176_161 = arith.constant 176 : index
    %c0_162 = arith.constant 0 : index
    %176 = vector.load %arg9[%c176_161, %c0_162] : memref<256x128xf32, #tpu.memory_space<vmem>>, vector<16x128xf32>
    tpu.vector_store %arg9[%c176_161, %c0_162], %175 {strides = array<i32>} : memref<256x128xf32, #tpu.memory_space<vmem>>, vector<16x128xf32>,
    %c192 = arith.constant 192 : index
    %c0_163 = arith.constant 0 : index
    %177 = vector.load %arg9[%c192, %c0_163] : memref<256x128xf32, #tpu.memory_space<vmem>>, vector<16x128xf32>
    %c216 = arith.constant 216 : index
    %c0_164 = arith.constant 0 : index
    %178 = vector.load %arg11[%c216, %c0_164] : memref<288x128xf32, #tpu.memory_space<vmem>>, vector<16x128xf32>
    %179 = arith.addf %177, %178 : vector<16x128xf32>
    %c192_165 = arith.constant 192 : index
    %c0_166 = arith.constant 0 : index
    %180 = vector.load %arg9[%c192_165, %c0_166] : memref<256x128xf32, #tpu.memory_space<vmem>>, vector<16x128xf32>
    tpu.vector_store %arg9[%c192_165, %c0_166], %179 {strides = array<i32>} : memref<256x128xf32, #tpu.memory_space<vmem>>, vector<16x128xf32>,
    %c208 = arith.constant 208 : index
    %c0_167 = arith.constant 0 : index
    %181 = vector.load %arg9[%c208, %c0_167] : memref<256x128xf32, #tpu.memory_space<vmem>>, vector<16x128xf32>
    %c234 = arith.constant 234 : index
    %c0_168 = arith.constant 0 : index
    %182 = vector.load %arg11[%c234, %c0_168] : memref<288x128xf32, #tpu.memory_space<vmem>>, vector<16x128xf32>
    %183 = arith.addf %181, %182 : vector<16x128xf32>
    %c208_169 = arith.constant 208 : index
    %c0_170 = arith.constant 0 : index
    %184 = vector.load %arg9[%c208_169, %c0_170] : memref<256x128xf32, #tpu.memory_space<vmem>>, vector<16x128xf32>
    tpu.vector_store %arg9[%c208_169, %c0_170], %183 {strides = array<i32>} : memref<256x128xf32, #tpu.memory_space<vmem>>, vector<16x128xf32>,
    %c224 = arith.constant 224 : index
    %c0_171 = arith.constant 0 : index
    %185 = vector.load %arg9[%c224, %c0_171] : memref<256x128xf32, #tpu.memory_space<vmem>>, vector<16x128xf32>
    %c252 = arith.constant 252 : index
    %c0_172 = arith.constant 0 : index
    %186 = vector.load %arg11[%c252, %c0_172] : memref<288x128xf32, #tpu.memory_space<vmem>>, vector<16x128xf32>
    %187 = arith.addf %185, %186 : vector<16x128xf32>
    %c224_173 = arith.constant 224 : index
    %c0_174 = arith.constant 0 : index
    %188 = vector.load %arg9[%c224_173, %c0_174] : memref<256x128xf32, #tpu.memory_space<vmem>>, vector<16x128xf32>
    tpu.vector_store %arg9[%c224_173, %c0_174], %187 {strides = array<i32>} : memref<256x128xf32, #tpu.memory_space<vmem>>, vector<16x128xf32>,
    %c240 = arith.constant 240 : index
    %c0_175 = arith.constant 0 : index
    %189 = vector.load %arg9[%c240, %c0_175] : memref<256x128xf32, #tpu.memory_space<vmem>>, vector<16x128xf32>
    %c270 = arith.constant 270 : index
    %c0_176 = arith.constant 0 : index
    %190 = vector.load %arg11[%c270, %c0_176] : memref<288x128xf32, #tpu.memory_space<vmem>>, vector<16x128xf32>
    %191 = arith.addf %189, %190 : vector<16x128xf32>
    %c240_177 = arith.constant 240 : index
    %c0_178 = arith.constant 0 : index
    %192 = vector.load %arg9[%c240_177, %c0_178] : memref<256x128xf32, #tpu.memory_space<vmem>>, vector<16x128xf32>
    tpu.vector_store %arg9[%c240_177, %c0_178], %191 {strides = array<i32>} : memref<256x128xf32, #tpu.memory_space<vmem>>, vector<16x128xf32>,
    return
  }
  func.func @transform_0(%arg0: i32, %arg1: i32) -> (i32, i32) {
    %c0_i32 = arith.constant 0 : i32
    %c0_i32_0 = arith.constant 0 : i32
    return %arg0, %c0_i32 : i32, i32
  }
  func.func @transform_1(%arg0: i32, %arg1: i32) -> (i32, i32, i32) {
    %c0_i32 = arith.constant 0 : i32
    %c0_i32_0 = arith.constant 0 : i32
    %c0_i32_1 = arith.constant 0 : i32
    return %arg1, %c0_i32, %c0_i32_0 : i32, i32, i32
  }
  func.func @transform_2(%arg0: i32, %arg1: i32) -> (i32, i32, i32) {
    %c0_i32 = arith.constant 0 : i32
    %c0_i32_0 = arith.constant 0 : i32
    %c0_i32_1 = arith.constant 0 : i32
    return %arg1, %c0_i32, %c0_i32_0 : i32, i32, i32
  }
  func.func @transform_3(%arg0: i32, %arg1: i32) -> (i32, i32) {
    %c0_i32 = arith.constant 0 : i32
    %c0_i32_0 = arith.constant 0 : i32
    return %arg1, %c0_i32 : i32, i32
  }
  func.func @transform_4(%arg0: i32, %arg1: i32) -> (i32, i32, i32) {
    %c0_i32 = arith.constant 0 : i32
    %c0_i32_0 = arith.constant 0 : i32
    %c0_i32_1 = arith.constant 0 : i32
    return %arg1, %c0_i32, %c0_i32_0 : i32, i32, i32
  }
  func.func @transform_5(%arg0: i32, %arg1: i32) -> (i32, i32, i32) {
    %c0_i32 = arith.constant 0 : i32
    %c0_i32_0 = arith.constant 0 : i32
    %c0_i32_1 = arith.constant 0 : i32
    return %arg1, %c0_i32, %c0_i32_0 : i32, i32, i32
  }
  func.func @transform_6(%arg0: i32, %arg1: i32) -> (i32, i32, i32) {
    %c0_i32 = arith.constant 0 : i32
    %c0_i32_0 = arith.constant 0 : i32
    %c0_i32_1 = arith.constant 0 : i32
    return %arg1, %c0_i32, %c0_i32_0 : i32, i32, i32
  }
  func.func @transform_7(%arg0: i32, %arg1: i32) -> (i32, i32) {
    %c0_i32 = arith.constant 0 : i32
    %c0_i32_0 = arith.constant 0 : i32
    return %arg0, %c0_i32 : i32, i32
  }
}

module attributes {stable_mosaic.version = 11 : i64} {
  func.func @_transition_kernel(%arg0: i32, %arg1: memref<64x128xf32, #tpu.memory_space<vmem>>, %arg2: memref<1x128xf32, #tpu.memory_space<vmem>>, %arg3: memref<1x128xf32, #tpu.memory_space<vmem>>, %arg4: memref<128x128xbf16, #tpu.memory_space<vmem>>, %arg5: memref<64x128xf32, #tpu.memory_space<vmem>>) attributes {dimension_semantics = [#tpu.dimension_semantics<parallel>], iteration_bounds = array<i64: 2>, scalar_prefetch = 0 : i64, scratch_operands = 0 : i64, tpu.core_type = #tpu.core_type<tc>, window_params = [{transform_indices = @transform_0, window_bounds = array<i64: 64, 128>}, {pipeline_mode = #tpu.pipeline_mode<synchronous>, transform_indices = @transform_1, window_bounds = array<i64: 1, 128>}, {pipeline_mode = #tpu.pipeline_mode<synchronous>, transform_indices = @transform_2, window_bounds = array<i64: 1, 128>}, {pipeline_mode = #tpu.pipeline_mode<synchronous>, transform_indices = @transform_3, window_bounds = array<i64: 128, 128>}, {transform_indices = @transform_4, window_bounds = array<i64: 64, 128>}]} {
    %c0 = arith.constant 0 : index
    %c0_0 = arith.constant 0 : index
    %0 = vector.load %arg1[%c0, %c0_0] : memref<64x128xf32, #tpu.memory_space<vmem>>, vector<64x128xf32>
    %c0_1 = arith.constant 0 : index
    %c0_2 = arith.constant 0 : index
    %1 = vector.load %arg2[%c0_1, %c0_2] : memref<1x128xf32, #tpu.memory_space<vmem>>, vector<1x128xf32>
    %2 = vector.broadcast %1 : vector<1x128xf32> to vector<64x128xf32>
    %3 = arith.mulf %0, %2 : vector<64x128xf32>
    %c0_3 = arith.constant 0 : index
    %c0_4 = arith.constant 0 : index
    %4 = vector.load %arg3[%c0_3, %c0_4] : memref<1x128xf32, #tpu.memory_space<vmem>>, vector<1x128xf32>
    %5 = vector.broadcast %4 : vector<1x128xf32> to vector<64x128xf32>
    %6 = arith.addf %3, %5 : vector<64x128xf32>
    %cst = arith.constant 0.000000e+00 : f32
    %7 = vector.broadcast %cst : f32 to vector<64x128xf32>
    %8 = arith.maximumf %6, %7 : vector<64x128xf32>
    %9 = arith.truncf %8 : vector<64x128xf32> to vector<64x128xbf16>
    %c0_5 = arith.constant 0 : index
    %c0_6 = arith.constant 0 : index
    %10 = vector.load %arg4[%c0_5, %c0_6] : memref<128x128xbf16, #tpu.memory_space<vmem>>, vector<128x128xbf16>
    %cst_7 = arith.constant dense<0.000000e+00> : vector<64x128xf32>
    %11 = tpu.matmul %9, %10, %cst_7 {dimension_numbers = #tpu.dot_dimension_numbers<[1], [0], [0], [1], [0, 0, 1, 1], [], []>} : vector<64x128xbf16>, vector<128x128xbf16>, vector<64x128xf32> -> vector<64x128xf32>
    %c0_8 = arith.constant 0 : index
    %c0_9 = arith.constant 0 : index
    %12 = vector.load %arg5[%c0_8, %c0_9] : memref<64x128xf32, #tpu.memory_space<vmem>>, vector<64x128xf32>
    tpu.vector_store %arg5[%c0_8, %c0_9], %11 {strides = array<i32>} : memref<64x128xf32, #tpu.memory_space<vmem>>, vector<64x128xf32>,
    return
  }
  func.func @transform_0(%arg0: i32) -> (i32, i32) {
    %c0_i32 = arith.constant 0 : i32
    %c0_i32_0 = arith.constant 0 : i32
    return %arg0, %c0_i32 : i32, i32
  }
  func.func @transform_1(%arg0: i32) -> (i32, i32) {
    %c0_i32 = arith.constant 0 : i32
    %c0_i32_0 = arith.constant 0 : i32
    %c0_i32_1 = arith.constant 0 : i32
    return %c0_i32, %c0_i32_0 : i32, i32
  }
  func.func @transform_2(%arg0: i32) -> (i32, i32) {
    %c0_i32 = arith.constant 0 : i32
    %c0_i32_0 = arith.constant 0 : i32
    %c0_i32_1 = arith.constant 0 : i32
    return %c0_i32, %c0_i32_0 : i32, i32
  }
  func.func @transform_3(%arg0: i32) -> (i32, i32) {
    %c0_i32 = arith.constant 0 : i32
    %c0_i32_0 = arith.constant 0 : i32
    %c0_i32_1 = arith.constant 0 : i32
    return %c0_i32, %c0_i32_0 : i32, i32
  }
  func.func @transform_4(%arg0: i32) -> (i32, i32) {
    %c0_i32 = arith.constant 0 : i32
    %c0_i32_0 = arith.constant 0 : i32
    return %arg0, %c0_i32 : i32, i32
  }
}

module attributes {stable_mosaic.version = 11 : i64} {
  func.func @_dense_stage_kernel(%arg0: i32, %arg1: i32, %arg2: memref<64x128xf32, #tpu.memory_space<vmem>>, %arg3: memref<1x1x128xf32, #tpu.memory_space<vmem>>, %arg4: memref<1x1x128xf32, #tpu.memory_space<vmem>>, %arg5: memref<128x128xbf16, #tpu.memory_space<vmem>>, %arg6: memref<1x1x128xf32, #tpu.memory_space<vmem>>, %arg7: memref<1x1x128xf32, #tpu.memory_space<vmem>>, %arg8: memref<9x128x128xbf16, #tpu.memory_space<vmem>>, %arg9: memref<64x128xf32, #tpu.memory_space<vmem>>, %arg10: memref<104x128xf32, #tpu.memory_space<vmem>>, %arg11: memref<80x128xf32, #tpu.memory_space<vmem>>) attributes {dimension_semantics = [#tpu.dimension_semantics<parallel>, #tpu.dimension_semantics<arbitrary>], iteration_bounds = array<i64: 2, 2>, scalar_prefetch = 0 : i64, scratch_operands = 2 : i64, tpu.core_type = #tpu.core_type<tc>, window_params = [{transform_indices = @transform_0, window_bounds = array<i64: 64, 128>}, {transform_indices = @transform_1, window_bounds = array<i64: 1, 1, 128>}, {transform_indices = @transform_2, window_bounds = array<i64: 1, 1, 128>}, {transform_indices = @transform_3, window_bounds = array<i64: 128, 128>}, {transform_indices = @transform_4, window_bounds = array<i64: 1, 1, 128>}, {transform_indices = @transform_5, window_bounds = array<i64: 1, 1, 128>}, {transform_indices = @transform_6, window_bounds = array<i64: 9, 128, 128>}, {transform_indices = @transform_7, window_bounds = array<i64: 64, 128>}]} {
    %c0_i32 = arith.constant 0 : i32
    %0 = arith.cmpi eq, %arg1, %c0_i32 : i32
    %1 = arith.extui %0 : i1 to i32
    %c0_i32_0 = arith.constant 0 : i32
    %2 = arith.cmpi ne, %1, %c0_i32_0 : i32
    scf.if %2 {
      %c0_140 = arith.constant 0 : index
      %c0_141 = arith.constant 0 : index
      %145 = vector.load %arg2[%c0_140, %c0_141] : memref<64x128xf32, #tpu.memory_space<vmem>>, vector<64x128xf32>
      %c0_142 = arith.constant 0 : index
      %c0_143 = arith.constant 0 : index
      %146 = vector.load %arg9[%c0_142, %c0_143] : memref<64x128xf32, #tpu.memory_space<vmem>>, vector<64x128xf32>
      tpu.vector_store %arg9[%c0_142, %c0_143], %145 {strides = array<i32>} : memref<64x128xf32, #tpu.memory_space<vmem>>, vector<64x128xf32>,
      %cst_144 = arith.constant 0.000000e+00 : f32
      %147 = vector.broadcast %cst_144 : f32 to vector<104x128xf32>
      %c0_145 = arith.constant 0 : index
      %c0_146 = arith.constant 0 : index
      %148 = vector.load %arg10[%c0_145, %c0_146] : memref<104x128xf32, #tpu.memory_space<vmem>>, vector<104x128xf32>
      tpu.vector_store %arg10[%c0_145, %c0_146], %147 {strides = array<i32>} : memref<104x128xf32, #tpu.memory_space<vmem>>, vector<104x128xf32>,
    } else {
    }
    %c0 = arith.constant 0 : index
    %c0_1 = arith.constant 0 : index
    %3 = vector.load %arg9[%c0, %c0_1] : memref<64x128xf32, #tpu.memory_space<vmem>>, vector<64x128xf32>
    %c0_2 = arith.constant 0 : index
    %c0_3 = arith.constant 0 : index
    %c0_4 = arith.constant 0 : index
    %4 = vector.load %arg3[%c0_2, %c0_3, %c0_4] : memref<1x1x128xf32, #tpu.memory_space<vmem>>, vector<1x1x128xf32>
    %5 = vector.shape_cast %4 : vector<1x1x128xf32> to vector<1x128xf32>
    %6 = vector.broadcast %5 : vector<1x128xf32> to vector<64x128xf32>
    %7 = arith.mulf %3, %6 : vector<64x128xf32>
    %c0_5 = arith.constant 0 : index
    %c0_6 = arith.constant 0 : index
    %c0_7 = arith.constant 0 : index
    %8 = vector.load %arg4[%c0_5, %c0_6, %c0_7] : memref<1x1x128xf32, #tpu.memory_space<vmem>>, vector<1x1x128xf32>
    %9 = vector.shape_cast %8 : vector<1x1x128xf32> to vector<1x128xf32>
    %10 = vector.broadcast %9 : vector<1x128xf32> to vector<64x128xf32>
    %11 = arith.addf %7, %10 : vector<64x128xf32>
    %cst = arith.constant 0.000000e+00 : f32
    %12 = vector.broadcast %cst : f32 to vector<64x128xf32>
    %13 = arith.maximumf %11, %12 : vector<64x128xf32>
    %14 = arith.truncf %13 : vector<64x128xf32> to vector<64x128xbf16>
    %c0_8 = arith.constant 0 : index
    %c0_9 = arith.constant 0 : index
    %15 = vector.load %arg5[%c0_8, %c0_9] : memref<128x128xbf16, #tpu.memory_space<vmem>>, vector<128x128xbf16>
    %cst_10 = arith.constant dense<0.000000e+00> : vector<64x128xf32>
    %16 = tpu.matmul %14, %15, %cst_10 {dimension_numbers = #tpu.dot_dimension_numbers<[1], [0], [0], [1], [0, 0, 1, 1], [], []>} : vector<64x128xbf16>, vector<128x128xbf16>, vector<64x128xf32> -> vector<64x128xf32>
    %c0_11 = arith.constant 0 : index
    %c0_12 = arith.constant 0 : index
    %c0_13 = arith.constant 0 : index
    %17 = vector.load %arg6[%c0_11, %c0_12, %c0_13] : memref<1x1x128xf32, #tpu.memory_space<vmem>>, vector<1x1x128xf32>
    %18 = vector.shape_cast %17 : vector<1x1x128xf32> to vector<1x128xf32>
    %19 = vector.broadcast %18 : vector<1x128xf32> to vector<64x128xf32>
    %20 = arith.mulf %16, %19 : vector<64x128xf32>
    %c0_14 = arith.constant 0 : index
    %c0_15 = arith.constant 0 : index
    %c0_16 = arith.constant 0 : index
    %21 = vector.load %arg7[%c0_14, %c0_15, %c0_16] : memref<1x1x128xf32, #tpu.memory_space<vmem>>, vector<1x1x128xf32>
    %22 = vector.shape_cast %21 : vector<1x1x128xf32> to vector<1x128xf32>
    %23 = vector.broadcast %22 : vector<1x128xf32> to vector<64x128xf32>
    %24 = arith.addf %20, %23 : vector<64x128xf32>
    %cst_17 = arith.constant 0.000000e+00 : f32
    %25 = vector.broadcast %cst_17 : f32 to vector<64x128xf32>
    %26 = arith.maximumf %24, %25 : vector<64x128xf32>
    %27 = vector.extract_strided_slice %26 {offsets = [0, 0], sizes = [8, 128], strides = [1, 1]} : vector<64x128xf32> to vector<8x128xf32>
    %c11 = arith.constant 11 : index
    %c0_18 = arith.constant 0 : index
    %28 = vector.load %arg10[%c11, %c0_18] : memref<104x128xf32, #tpu.memory_space<vmem>>, vector<8x128xf32>
    tpu.vector_store %arg10[%c11, %c0_18], %27 {strides = array<i32>} : memref<104x128xf32, #tpu.memory_space<vmem>>, vector<8x128xf32>,
    %29 = vector.extract_strided_slice %26 {offsets = [8, 0], sizes = [8, 128], strides = [1, 1]} : vector<64x128xf32> to vector<8x128xf32>
    %c21 = arith.constant 21 : index
    %c0_19 = arith.constant 0 : index
    %30 = vector.load %arg10[%c21, %c0_19] : memref<104x128xf32, #tpu.memory_space<vmem>>, vector<8x128xf32>
    tpu.vector_store %arg10[%c21, %c0_19], %29 {strides = array<i32>} : memref<104x128xf32, #tpu.memory_space<vmem>>, vector<8x128xf32>,
    %31 = vector.extract_strided_slice %26 {offsets = [16, 0], sizes = [8, 128], strides = [1, 1]} : vector<64x128xf32> to vector<8x128xf32>
    %c31 = arith.constant 31 : index
    %c0_20 = arith.constant 0 : index
    %32 = vector.load %arg10[%c31, %c0_20] : memref<104x128xf32, #tpu.memory_space<vmem>>, vector<8x128xf32>
    tpu.vector_store %arg10[%c31, %c0_20], %31 {strides = array<i32>} : memref<104x128xf32, #tpu.memory_space<vmem>>, vector<8x128xf32>,
    %33 = vector.extract_strided_slice %26 {offsets = [24, 0], sizes = [8, 128], strides = [1, 1]} : vector<64x128xf32> to vector<8x128xf32>
    %c41 = arith.constant 41 : index
    %c0_21 = arith.constant 0 : index
    %34 = vector.load %arg10[%c41, %c0_21] : memref<104x128xf32, #tpu.memory_space<vmem>>, vector<8x128xf32>
    tpu.vector_store %arg10[%c41, %c0_21], %33 {strides = array<i32>} : memref<104x128xf32, #tpu.memory_space<vmem>>, vector<8x128xf32>,
    %35 = vector.extract_strided_slice %26 {offsets = [32, 0], sizes = [8, 128], strides = [1, 1]} : vector<64x128xf32> to vector<8x128xf32>
    %c51 = arith.constant 51 : index
    %c0_22 = arith.constant 0 : index
    %36 = vector.load %arg10[%c51, %c0_22] : memref<104x128xf32, #tpu.memory_space<vmem>>, vector<8x128xf32>
    tpu.vector_store %arg10[%c51, %c0_22], %35 {strides = array<i32>} : memref<104x128xf32, #tpu.memory_space<vmem>>, vector<8x128xf32>,
    %37 = vector.extract_strided_slice %26 {offsets = [40, 0], sizes = [8, 128], strides = [1, 1]} : vector<64x128xf32> to vector<8x128xf32>
    %c61 = arith.constant 61 : index
    %c0_23 = arith.constant 0 : index
    %38 = vector.load %arg10[%c61, %c0_23] : memref<104x128xf32, #tpu.memory_space<vmem>>, vector<8x128xf32>
    tpu.vector_store %arg10[%c61, %c0_23], %37 {strides = array<i32>} : memref<104x128xf32, #tpu.memory_space<vmem>>, vector<8x128xf32>,
    %39 = vector.extract_strided_slice %26 {offsets = [48, 0], sizes = [8, 128], strides = [1, 1]} : vector<64x128xf32> to vector<8x128xf32>
    %c71 = arith.constant 71 : index
    %c0_24 = arith.constant 0 : index
    %40 = vector.load %arg10[%c71, %c0_24] : memref<104x128xf32, #tpu.memory_space<vmem>>, vector<8x128xf32>
    tpu.vector_store %arg10[%c71, %c0_24], %39 {strides = array<i32>} : memref<104x128xf32, #tpu.memory_space<vmem>>, vector<8x128xf32>,
    %41 = vector.extract_strided_slice %26 {offsets = [56, 0], sizes = [8, 128], strides = [1, 1]} : vector<64x128xf32> to vector<8x128xf32>
    %c81 = arith.constant 81 : index
    %c0_25 = arith.constant 0 : index
    %42 = vector.load %arg10[%c81, %c0_25] : memref<104x128xf32, #tpu.memory_space<vmem>>, vector<8x128xf32>
    tpu.vector_store %arg10[%c81, %c0_25], %41 {strides = array<i32>} : memref<104x128xf32, #tpu.memory_space<vmem>>, vector<8x128xf32>,
    %c0_26 = arith.constant 0 : index
    %c0_27 = arith.constant 0 : index
    %43 = vector.load %arg10[%c0_26, %c0_27] : memref<104x128xf32, #tpu.memory_space<vmem>>, vector<80x128xf32>
    %44 = arith.truncf %43 : vector<80x128xf32> to vector<80x128xbf16>
    %c0_28 = arith.constant 0 : index
    %c0_29 = arith.constant 0 : index
    %c0_30 = arith.constant 0 : index
    %45 = vector.load %arg8[%c0_28, %c0_29, %c0_30] : memref<9x128x128xbf16, #tpu.memory_space<vmem>>, vector<1x128x128xbf16>
    %46 = vector.shape_cast %45 : vector<1x128x128xbf16> to vector<128x128xbf16>
    %cst_31 = arith.constant dense<0.000000e+00> : vector<80x128xf32>
    %47 = tpu.matmul %44, %46, %cst_31 {dimension_numbers = #tpu.dot_dimension_numbers<[1], [0], [0], [1], [0, 0, 1, 1], [], []>} : vector<80x128xbf16>, vector<128x128xbf16>, vector<80x128xf32> -> vector<80x128xf32>
    %c0_32 = arith.constant 0 : index
    %c0_33 = arith.constant 0 : index
    %48 = vector.load %arg11[%c0_32, %c0_33] : memref<80x128xf32, #tpu.memory_space<vmem>>, vector<80x128xf32>
    tpu.vector_store %arg11[%c0_32, %c0_33], %47 {strides = array<i32>} : memref<80x128xf32, #tpu.memory_space<vmem>>, vector<80x128xf32>,
    %c1 = arith.constant 1 : index
    %c0_34 = arith.constant 0 : index
    %49 = vector.load %arg10[%c1, %c0_34] : memref<104x128xf32, #tpu.memory_space<vmem>>, vector<80x128xf32>
    %50 = arith.truncf %49 : vector<80x128xf32> to vector<80x128xbf16>
    %c1_35 = arith.constant 1 : index
    %c0_36 = arith.constant 0 : index
    %c0_37 = arith.constant 0 : index
    %51 = vector.load %arg8[%c1_35, %c0_36, %c0_37] : memref<9x128x128xbf16, #tpu.memory_space<vmem>>, vector<1x128x128xbf16>
    %52 = vector.shape_cast %51 : vector<1x128x128xbf16> to vector<128x128xbf16>
    %cst_38 = arith.constant dense<0.000000e+00> : vector<80x128xf32>
    %53 = tpu.matmul %50, %52, %cst_38 {dimension_numbers = #tpu.dot_dimension_numbers<[1], [0], [0], [1], [0, 0, 1, 1], [], []>} : vector<80x128xbf16>, vector<128x128xbf16>, vector<80x128xf32> -> vector<80x128xf32>
    %c0_39 = arith.constant 0 : index
    %c0_40 = arith.constant 0 : index
    %54 = vector.load %arg11[%c0_39, %c0_40] : memref<80x128xf32, #tpu.memory_space<vmem>>, vector<80x128xf32>
    %55 = arith.addf %54, %53 : vector<80x128xf32>
    %c0_41 = arith.constant 0 : index
    %c0_42 = arith.constant 0 : index
    %56 = vector.load %arg11[%c0_41, %c0_42] : memref<80x128xf32, #tpu.memory_space<vmem>>, vector<80x128xf32>
    tpu.vector_store %arg11[%c0_41, %c0_42], %55 {strides = array<i32>} : memref<80x128xf32, #tpu.memory_space<vmem>>, vector<80x128xf32>,
    %c2 = arith.constant 2 : index
    %c0_43 = arith.constant 0 : index
    %57 = vector.load %arg10[%c2, %c0_43] : memref<104x128xf32, #tpu.memory_space<vmem>>, vector<80x128xf32>
    %58 = arith.truncf %57 : vector<80x128xf32> to vector<80x128xbf16>
    %c2_44 = arith.constant 2 : index
    %c0_45 = arith.constant 0 : index
    %c0_46 = arith.constant 0 : index
    %59 = vector.load %arg8[%c2_44, %c0_45, %c0_46] : memref<9x128x128xbf16, #tpu.memory_space<vmem>>, vector<1x128x128xbf16>
    %60 = vector.shape_cast %59 : vector<1x128x128xbf16> to vector<128x128xbf16>
    %cst_47 = arith.constant dense<0.000000e+00> : vector<80x128xf32>
    %61 = tpu.matmul %58, %60, %cst_47 {dimension_numbers = #tpu.dot_dimension_numbers<[1], [0], [0], [1], [0, 0, 1, 1], [], []>} : vector<80x128xbf16>, vector<128x128xbf16>, vector<80x128xf32> -> vector<80x128xf32>
    %c0_48 = arith.constant 0 : index
    %c0_49 = arith.constant 0 : index
    %62 = vector.load %arg11[%c0_48, %c0_49] : memref<80x128xf32, #tpu.memory_space<vmem>>, vector<80x128xf32>
    %63 = arith.addf %62, %61 : vector<80x128xf32>
    %c0_50 = arith.constant 0 : index
    %c0_51 = arith.constant 0 : index
    %64 = vector.load %arg11[%c0_50, %c0_51] : memref<80x128xf32, #tpu.memory_space<vmem>>, vector<80x128xf32>
    tpu.vector_store %arg11[%c0_50, %c0_51], %63 {strides = array<i32>} : memref<80x128xf32, #tpu.memory_space<vmem>>, vector<80x128xf32>,
    %c10 = arith.constant 10 : index
    %c0_52 = arith.constant 0 : index
    %65 = vector.load %arg10[%c10, %c0_52] : memref<104x128xf32, #tpu.memory_space<vmem>>, vector<80x128xf32>
    %66 = arith.truncf %65 : vector<80x128xf32> to vector<80x128xbf16>
    %c3 = arith.constant 3 : index
    %c0_53 = arith.constant 0 : index
    %c0_54 = arith.constant 0 : index
    %67 = vector.load %arg8[%c3, %c0_53, %c0_54] : memref<9x128x128xbf16, #tpu.memory_space<vmem>>, vector<1x128x128xbf16>
    %68 = vector.shape_cast %67 : vector<1x128x128xbf16> to vector<128x128xbf16>
    %cst_55 = arith.constant dense<0.000000e+00> : vector<80x128xf32>
    %69 = tpu.matmul %66, %68, %cst_55 {dimension_numbers = #tpu.dot_dimension_numbers<[1], [0], [0], [1], [0, 0, 1, 1], [], []>} : vector<80x128xbf16>, vector<128x128xbf16>, vector<80x128xf32> -> vector<80x128xf32>
    %c0_56 = arith.constant 0 : index
    %c0_57 = arith.constant 0 : index
    %70 = vector.load %arg11[%c0_56, %c0_57] : memref<80x128xf32, #tpu.memory_space<vmem>>, vector<80x128xf32>
    %71 = arith.addf %70, %69 : vector<80x128xf32>
    %c0_58 = arith.constant 0 : index
    %c0_59 = arith.constant 0 : index
    %72 = vector.load %arg11[%c0_58, %c0_59] : memref<80x128xf32, #tpu.memory_space<vmem>>, vector<80x128xf32>
    tpu.vector_store %arg11[%c0_58, %c0_59], %71 {strides = array<i32>} : memref<80x128xf32, #tpu.memory_space<vmem>>, vector<80x128xf32>,
    %c11_60 = arith.constant 11 : index
    %c0_61 = arith.constant 0 : index
    %73 = vector.load %arg10[%c11_60, %c0_61] : memref<104x128xf32, #tpu.memory_space<vmem>>, vector<80x128xf32>
    %74 = arith.truncf %73 : vector<80x128xf32> to vector<80x128xbf16>
    %c4 = arith.constant 4 : index
    %c0_62 = arith.constant 0 : index
    %c0_63 = arith.constant 0 : index
    %75 = vector.load %arg8[%c4, %c0_62, %c0_63] : memref<9x128x128xbf16, #tpu.memory_space<vmem>>, vector<1x128x128xbf16>
    %76 = vector.shape_cast %75 : vector<1x128x128xbf16> to vector<128x128xbf16>
    %cst_64 = arith.constant dense<0.000000e+00> : vector<80x128xf32>
    %77 = tpu.matmul %74, %76, %cst_64 {dimension_numbers = #tpu.dot_dimension_numbers<[1], [0], [0], [1], [0, 0, 1, 1], [], []>} : vector<80x128xbf16>, vector<128x128xbf16>, vector<80x128xf32> -> vector<80x128xf32>
    %c0_65 = arith.constant 0 : index
    %c0_66 = arith.constant 0 : index
    %78 = vector.load %arg11[%c0_65, %c0_66] : memref<80x128xf32, #tpu.memory_space<vmem>>, vector<80x128xf32>
    %79 = arith.addf %78, %77 : vector<80x128xf32>
    %c0_67 = arith.constant 0 : index
    %c0_68 = arith.constant 0 : index
    %80 = vector.load %arg11[%c0_67, %c0_68] : memref<80x128xf32, #tpu.memory_space<vmem>>, vector<80x128xf32>
    tpu.vector_store %arg11[%c0_67, %c0_68], %79 {strides = array<i32>} : memref<80x128xf32, #tpu.memory_space<vmem>>, vector<80x128xf32>,
    %c12 = arith.constant 12 : index
    %c0_69 = arith.constant 0 : index
    %81 = vector.load %arg10[%c12, %c0_69] : memref<104x128xf32, #tpu.memory_space<vmem>>, vector<80x128xf32>
    %82 = arith.truncf %81 : vector<80x128xf32> to vector<80x128xbf16>
    %c5 = arith.constant 5 : index
    %c0_70 = arith.constant 0 : index
    %c0_71 = arith.constant 0 : index
    %83 = vector.load %arg8[%c5, %c0_70, %c0_71] : memref<9x128x128xbf16, #tpu.memory_space<vmem>>, vector<1x128x128xbf16>
    %84 = vector.shape_cast %83 : vector<1x128x128xbf16> to vector<128x128xbf16>
    %cst_72 = arith.constant dense<0.000000e+00> : vector<80x128xf32>
    %85 = tpu.matmul %82, %84, %cst_72 {dimension_numbers = #tpu.dot_dimension_numbers<[1], [0], [0], [1], [0, 0, 1, 1], [], []>} : vector<80x128xbf16>, vector<128x128xbf16>, vector<80x128xf32> -> vector<80x128xf32>
    %c0_73 = arith.constant 0 : index
    %c0_74 = arith.constant 0 : index
    %86 = vector.load %arg11[%c0_73, %c0_74] : memref<80x128xf32, #tpu.memory_space<vmem>>, vector<80x128xf32>
    %87 = arith.addf %86, %85 : vector<80x128xf32>
    %c0_75 = arith.constant 0 : index
    %c0_76 = arith.constant 0 : index
    %88 = vector.load %arg11[%c0_75, %c0_76] : memref<80x128xf32, #tpu.memory_space<vmem>>, vector<80x128xf32>
    tpu.vector_store %arg11[%c0_75, %c0_76], %87 {strides = array<i32>} : memref<80x128xf32, #tpu.memory_space<vmem>>, vector<80x128xf32>,
    %c20 = arith.constant 20 : index
    %c0_77 = arith.constant 0 : index
    %89 = vector.load %arg10[%c20, %c0_77] : memref<104x128xf32, #tpu.memory_space<vmem>>, vector<80x128xf32>
    %90 = arith.truncf %89 : vector<80x128xf32> to vector<80x128xbf16>
    %c6 = arith.constant 6 : index
    %c0_78 = arith.constant 0 : index
    %c0_79 = arith.constant 0 : index
    %91 = vector.load %arg8[%c6, %c0_78, %c0_79] : memref<9x128x128xbf16, #tpu.memory_space<vmem>>, vector<1x128x128xbf16>
    %92 = vector.shape_cast %91 : vector<1x128x128xbf16> to vector<128x128xbf16>
    %cst_80 = arith.constant dense<0.000000e+00> : vector<80x128xf32>
    %93 = tpu.matmul %90, %92, %cst_80 {dimension_numbers = #tpu.dot_dimension_numbers<[1], [0], [0], [1], [0, 0, 1, 1], [], []>} : vector<80x128xbf16>, vector<128x128xbf16>, vector<80x128xf32> -> vector<80x128xf32>
    %c0_81 = arith.constant 0 : index
    %c0_82 = arith.constant 0 : index
    %94 = vector.load %arg11[%c0_81, %c0_82] : memref<80x128xf32, #tpu.memory_space<vmem>>, vector<80x128xf32>
    %95 = arith.addf %94, %93 : vector<80x128xf32>
    %c0_83 = arith.constant 0 : index
    %c0_84 = arith.constant 0 : index
    %96 = vector.load %arg11[%c0_83, %c0_84] : memref<80x128xf32, #tpu.memory_space<vmem>>, vector<80x128xf32>
    tpu.vector_store %arg11[%c0_83, %c0_84], %95 {strides = array<i32>} : memref<80x128xf32, #tpu.memory_space<vmem>>, vector<80x128xf32>,
    %c21_85 = arith.constant 21 : index
    %c0_86 = arith.constant 0 : index
    %97 = vector.load %arg10[%c21_85, %c0_86] : memref<104x128xf32, #tpu.memory_space<vmem>>, vector<80x128xf32>
    %98 = arith.truncf %97 : vector<80x128xf32> to vector<80x128xbf16>
    %c7 = arith.constant 7 : index
    %c0_87 = arith.constant 0 : index
    %c0_88 = arith.constant 0 : index
    %99 = vector.load %arg8[%c7, %c0_87, %c0_88] : memref<9x128x128xbf16, #tpu.memory_space<vmem>>, vector<1x128x128xbf16>
    %100 = vector.shape_cast %99 : vector<1x128x128xbf16> to vector<128x128xbf16>
    %cst_89 = arith.constant dense<0.000000e+00> : vector<80x128xf32>
    %101 = tpu.matmul %98, %100, %cst_89 {dimension_numbers = #tpu.dot_dimension_numbers<[1], [0], [0], [1], [0, 0, 1, 1], [], []>} : vector<80x128xbf16>, vector<128x128xbf16>, vector<80x128xf32> -> vector<80x128xf32>
    %c0_90 = arith.constant 0 : index
    %c0_91 = arith.constant 0 : index
    %102 = vector.load %arg11[%c0_90, %c0_91] : memref<80x128xf32, #tpu.memory_space<vmem>>, vector<80x128xf32>
    %103 = arith.addf %102, %101 : vector<80x128xf32>
    %c0_92 = arith.constant 0 : index
    %c0_93 = arith.constant 0 : index
    %104 = vector.load %arg11[%c0_92, %c0_93] : memref<80x128xf32, #tpu.memory_space<vmem>>, vector<80x128xf32>
    tpu.vector_store %arg11[%c0_92, %c0_93], %103 {strides = array<i32>} : memref<80x128xf32, #tpu.memory_space<vmem>>, vector<80x128xf32>,
    %c22 = arith.constant 22 : index
    %c0_94 = arith.constant 0 : index
    %105 = vector.load %arg10[%c22, %c0_94] : memref<104x128xf32, #tpu.memory_space<vmem>>, vector<80x128xf32>
    %106 = arith.truncf %105 : vector<80x128xf32> to vector<80x128xbf16>
    %c8 = arith.constant 8 : index
    %c0_95 = arith.constant 0 : index
    %c0_96 = arith.constant 0 : index
    %107 = vector.load %arg8[%c8, %c0_95, %c0_96] : memref<9x128x128xbf16, #tpu.memory_space<vmem>>, vector<1x128x128xbf16>
    %108 = vector.shape_cast %107 : vector<1x128x128xbf16> to vector<128x128xbf16>
    %cst_97 = arith.constant dense<0.000000e+00> : vector<80x128xf32>
    %109 = tpu.matmul %106, %108, %cst_97 {dimension_numbers = #tpu.dot_dimension_numbers<[1], [0], [0], [1], [0, 0, 1, 1], [], []>} : vector<80x128xbf16>, vector<128x128xbf16>, vector<80x128xf32> -> vector<80x128xf32>
    %c0_98 = arith.constant 0 : index
    %c0_99 = arith.constant 0 : index
    %110 = vector.load %arg11[%c0_98, %c0_99] : memref<80x128xf32, #tpu.memory_space<vmem>>, vector<80x128xf32>
    %111 = arith.addf %110, %109 : vector<80x128xf32>
    %c0_100 = arith.constant 0 : index
    %c0_101 = arith.constant 0 : index
    %112 = vector.load %arg11[%c0_100, %c0_101] : memref<80x128xf32, #tpu.memory_space<vmem>>, vector<80x128xf32>
    tpu.vector_store %arg11[%c0_100, %c0_101], %111 {strides = array<i32>} : memref<80x128xf32, #tpu.memory_space<vmem>>, vector<80x128xf32>,
    %c0_102 = arith.constant 0 : index
    %c0_103 = arith.constant 0 : index
    %113 = vector.load %arg9[%c0_102, %c0_103] : memref<64x128xf32, #tpu.memory_space<vmem>>, vector<8x128xf32>
    %c0_104 = arith.constant 0 : index
    %c0_105 = arith.constant 0 : index
    %114 = vector.load %arg11[%c0_104, %c0_105] : memref<80x128xf32, #tpu.memory_space<vmem>>, vector<8x128xf32>
    %115 = arith.addf %113, %114 : vector<8x128xf32>
    %c0_106 = arith.constant 0 : index
    %c0_107 = arith.constant 0 : index
    %116 = vector.load %arg9[%c0_106, %c0_107] : memref<64x128xf32, #tpu.memory_space<vmem>>, vector<8x128xf32>
    tpu.vector_store %arg9[%c0_106, %c0_107], %115 {strides = array<i32>} : memref<64x128xf32, #tpu.memory_space<vmem>>, vector<8x128xf32>,
    %c8_108 = arith.constant 8 : index
    %c0_109 = arith.constant 0 : index
    %117 = vector.load %arg9[%c8_108, %c0_109] : memref<64x128xf32, #tpu.memory_space<vmem>>, vector<8x128xf32>
    %c10_110 = arith.constant 10 : index
    %c0_111 = arith.constant 0 : index
    %118 = vector.load %arg11[%c10_110, %c0_111] : memref<80x128xf32, #tpu.memory_space<vmem>>, vector<8x128xf32>
    %119 = arith.addf %117, %118 : vector<8x128xf32>
    %c8_112 = arith.constant 8 : index
    %c0_113 = arith.constant 0 : index
    %120 = vector.load %arg9[%c8_112, %c0_113] : memref<64x128xf32, #tpu.memory_space<vmem>>, vector<8x128xf32>
    tpu.vector_store %arg9[%c8_112, %c0_113], %119 {strides = array<i32>} : memref<64x128xf32, #tpu.memory_space<vmem>>, vector<8x128xf32>,
    %c16 = arith.constant 16 : index
    %c0_114 = arith.constant 0 : index
    %121 = vector.load %arg9[%c16, %c0_114] : memref<64x128xf32, #tpu.memory_space<vmem>>, vector<8x128xf32>
    %c20_115 = arith.constant 20 : index
    %c0_116 = arith.constant 0 : index
    %122 = vector.load %arg11[%c20_115, %c0_116] : memref<80x128xf32, #tpu.memory_space<vmem>>, vector<8x128xf32>
    %123 = arith.addf %121, %122 : vector<8x128xf32>
    %c16_117 = arith.constant 16 : index
    %c0_118 = arith.constant 0 : index
    %124 = vector.load %arg9[%c16_117, %c0_118] : memref<64x128xf32, #tpu.memory_space<vmem>>, vector<8x128xf32>
    tpu.vector_store %arg9[%c16_117, %c0_118], %123 {strides = array<i32>} : memref<64x128xf32, #tpu.memory_space<vmem>>, vector<8x128xf32>,
    %c24 = arith.constant 24 : index
    %c0_119 = arith.constant 0 : index
    %125 = vector.load %arg9[%c24, %c0_119] : memref<64x128xf32, #tpu.memory_space<vmem>>, vector<8x128xf32>
    %c30 = arith.constant 30 : index
    %c0_120 = arith.constant 0 : index
    %126 = vector.load %arg11[%c30, %c0_120] : memref<80x128xf32, #tpu.memory_space<vmem>>, vector<8x128xf32>
    %127 = arith.addf %125, %126 : vector<8x128xf32>
    %c24_121 = arith.constant 24 : index
    %c0_122 = arith.constant 0 : index
    %128 = vector.load %arg9[%c24_121, %c0_122] : memref<64x128xf32, #tpu.memory_space<vmem>>, vector<8x128xf32>
    tpu.vector_store %arg9[%c24_121, %c0_122], %127 {strides = array<i32>} : memref<64x128xf32, #tpu.memory_space<vmem>>, vector<8x128xf32>,
    %c32 = arith.constant 32 : index
    %c0_123 = arith.constant 0 : index
    %129 = vector.load %arg9[%c32, %c0_123] : memref<64x128xf32, #tpu.memory_space<vmem>>, vector<8x128xf32>
    %c40 = arith.constant 40 : index
    %c0_124 = arith.constant 0 : index
    %130 = vector.load %arg11[%c40, %c0_124] : memref<80x128xf32, #tpu.memory_space<vmem>>, vector<8x128xf32>
    %131 = arith.addf %129, %130 : vector<8x128xf32>
    %c32_125 = arith.constant 32 : index
    %c0_126 = arith.constant 0 : index
    %132 = vector.load %arg9[%c32_125, %c0_126] : memref<64x128xf32, #tpu.memory_space<vmem>>, vector<8x128xf32>
    tpu.vector_store %arg9[%c32_125, %c0_126], %131 {strides = array<i32>} : memref<64x128xf32, #tpu.memory_space<vmem>>, vector<8x128xf32>,
    %c40_127 = arith.constant 40 : index
    %c0_128 = arith.constant 0 : index
    %133 = vector.load %arg9[%c40_127, %c0_128] : memref<64x128xf32, #tpu.memory_space<vmem>>, vector<8x128xf32>
    %c50 = arith.constant 50 : index
    %c0_129 = arith.constant 0 : index
    %134 = vector.load %arg11[%c50, %c0_129] : memref<80x128xf32, #tpu.memory_space<vmem>>, vector<8x128xf32>
    %135 = arith.addf %133, %134 : vector<8x128xf32>
    %c40_130 = arith.constant 40 : index
    %c0_131 = arith.constant 0 : index
    %136 = vector.load %arg9[%c40_130, %c0_131] : memref<64x128xf32, #tpu.memory_space<vmem>>, vector<8x128xf32>
    tpu.vector_store %arg9[%c40_130, %c0_131], %135 {strides = array<i32>} : memref<64x128xf32, #tpu.memory_space<vmem>>, vector<8x128xf32>,
    %c48 = arith.constant 48 : index
    %c0_132 = arith.constant 0 : index
    %137 = vector.load %arg9[%c48, %c0_132] : memref<64x128xf32, #tpu.memory_space<vmem>>, vector<8x128xf32>
    %c60 = arith.constant 60 : index
    %c0_133 = arith.constant 0 : index
    %138 = vector.load %arg11[%c60, %c0_133] : memref<80x128xf32, #tpu.memory_space<vmem>>, vector<8x128xf32>
    %139 = arith.addf %137, %138 : vector<8x128xf32>
    %c48_134 = arith.constant 48 : index
    %c0_135 = arith.constant 0 : index
    %140 = vector.load %arg9[%c48_134, %c0_135] : memref<64x128xf32, #tpu.memory_space<vmem>>, vector<8x128xf32>
    tpu.vector_store %arg9[%c48_134, %c0_135], %139 {strides = array<i32>} : memref<64x128xf32, #tpu.memory_space<vmem>>, vector<8x128xf32>,
    %c56 = arith.constant 56 : index
    %c0_136 = arith.constant 0 : index
    %141 = vector.load %arg9[%c56, %c0_136] : memref<64x128xf32, #tpu.memory_space<vmem>>, vector<8x128xf32>
    %c70 = arith.constant 70 : index
    %c0_137 = arith.constant 0 : index
    %142 = vector.load %arg11[%c70, %c0_137] : memref<80x128xf32, #tpu.memory_space<vmem>>, vector<8x128xf32>
    %143 = arith.addf %141, %142 : vector<8x128xf32>
    %c56_138 = arith.constant 56 : index
    %c0_139 = arith.constant 0 : index
    %144 = vector.load %arg9[%c56_138, %c0_139] : memref<64x128xf32, #tpu.memory_space<vmem>>, vector<8x128xf32>
    tpu.vector_store %arg9[%c56_138, %c0_139], %143 {strides = array<i32>} : memref<64x128xf32, #tpu.memory_space<vmem>>, vector<8x128xf32>,
    return
  }
  func.func @transform_0(%arg0: i32, %arg1: i32) -> (i32, i32) {
    %c0_i32 = arith.constant 0 : i32
    %c0_i32_0 = arith.constant 0 : i32
    return %arg0, %c0_i32 : i32, i32
  }
  func.func @transform_1(%arg0: i32, %arg1: i32) -> (i32, i32, i32) {
    %c0_i32 = arith.constant 0 : i32
    %c0_i32_0 = arith.constant 0 : i32
    %c0_i32_1 = arith.constant 0 : i32
    return %arg1, %c0_i32, %c0_i32_0 : i32, i32, i32
  }
  func.func @transform_2(%arg0: i32, %arg1: i32) -> (i32, i32, i32) {
    %c0_i32 = arith.constant 0 : i32
    %c0_i32_0 = arith.constant 0 : i32
    %c0_i32_1 = arith.constant 0 : i32
    return %arg1, %c0_i32, %c0_i32_0 : i32, i32, i32
  }
  func.func @transform_3(%arg0: i32, %arg1: i32) -> (i32, i32) {
    %c0_i32 = arith.constant 0 : i32
    %c0_i32_0 = arith.constant 0 : i32
    return %arg1, %c0_i32 : i32, i32
  }
  func.func @transform_4(%arg0: i32, %arg1: i32) -> (i32, i32, i32) {
    %c0_i32 = arith.constant 0 : i32
    %c0_i32_0 = arith.constant 0 : i32
    %c0_i32_1 = arith.constant 0 : i32
    return %arg1, %c0_i32, %c0_i32_0 : i32, i32, i32
  }
  func.func @transform_5(%arg0: i32, %arg1: i32) -> (i32, i32, i32) {
    %c0_i32 = arith.constant 0 : i32
    %c0_i32_0 = arith.constant 0 : i32
    %c0_i32_1 = arith.constant 0 : i32
    return %arg1, %c0_i32, %c0_i32_0 : i32, i32, i32
  }
  func.func @transform_6(%arg0: i32, %arg1: i32) -> (i32, i32, i32) {
    %c0_i32 = arith.constant 0 : i32
    %c0_i32_0 = arith.constant 0 : i32
    %c0_i32_1 = arith.constant 0 : i32
    return %arg1, %c0_i32, %c0_i32_0 : i32, i32, i32
  }
  func.func @transform_7(%arg0: i32, %arg1: i32) -> (i32, i32) {
    %c0_i32 = arith.constant 0 : i32
    %c0_i32_0 = arith.constant 0 : i32
    return %arg0, %c0_i32 : i32, i32
  }
}

module attributes {stable_mosaic.version = 11 : i64} {
  func.func @_dense_stage_kernel(%arg0: i32, %arg1: i32, %arg2: memref<16x128xf32, #tpu.memory_space<vmem>>, %arg3: memref<1x1x128xf32, #tpu.memory_space<vmem>>, %arg4: memref<1x1x128xf32, #tpu.memory_space<vmem>>, %arg5: memref<128x128xbf16, #tpu.memory_space<vmem>>, %arg6: memref<1x1x128xf32, #tpu.memory_space<vmem>>, %arg7: memref<1x1x128xf32, #tpu.memory_space<vmem>>, %arg8: memref<9x128x128xbf16, #tpu.memory_space<vmem>>, %arg9: memref<16x128xf32, #tpu.memory_space<vmem>>, %arg10: memref<40x128xf32, #tpu.memory_space<vmem>>, %arg11: memref<24x128xf32, #tpu.memory_space<vmem>>) attributes {dimension_semantics = [#tpu.dimension_semantics<parallel>, #tpu.dimension_semantics<arbitrary>], iteration_bounds = array<i64: 2, 2>, scalar_prefetch = 0 : i64, scratch_operands = 2 : i64, tpu.core_type = #tpu.core_type<tc>, window_params = [{transform_indices = @transform_0, window_bounds = array<i64: 16, 128>}, {transform_indices = @transform_1, window_bounds = array<i64: 1, 1, 128>}, {transform_indices = @transform_2, window_bounds = array<i64: 1, 1, 128>}, {transform_indices = @transform_3, window_bounds = array<i64: 128, 128>}, {transform_indices = @transform_4, window_bounds = array<i64: 1, 1, 128>}, {transform_indices = @transform_5, window_bounds = array<i64: 1, 1, 128>}, {transform_indices = @transform_6, window_bounds = array<i64: 9, 128, 128>}, {transform_indices = @transform_7, window_bounds = array<i64: 16, 128>}]} {
    %c0_i32 = arith.constant 0 : i32
    %0 = arith.cmpi eq, %arg1, %c0_i32 : i32
    %1 = arith.extui %0 : i1 to i32
    %c0_i32_0 = arith.constant 0 : i32
    %2 = arith.cmpi ne, %1, %c0_i32_0 : i32
    scf.if %2 {
      %c0_124 = arith.constant 0 : index
      %c0_125 = arith.constant 0 : index
      %121 = vector.load %arg2[%c0_124, %c0_125] : memref<16x128xf32, #tpu.memory_space<vmem>>, vector<16x128xf32>
      %c0_126 = arith.constant 0 : index
      %c0_127 = arith.constant 0 : index
      %122 = vector.load %arg9[%c0_126, %c0_127] : memref<16x128xf32, #tpu.memory_space<vmem>>, vector<16x128xf32>
      tpu.vector_store %arg9[%c0_126, %c0_127], %121 {strides = array<i32>} : memref<16x128xf32, #tpu.memory_space<vmem>>, vector<16x128xf32>,
      %cst_128 = arith.constant 0.000000e+00 : f32
      %123 = vector.broadcast %cst_128 : f32 to vector<40x128xf32>
      %c0_129 = arith.constant 0 : index
      %c0_130 = arith.constant 0 : index
      %124 = vector.load %arg10[%c0_129, %c0_130] : memref<40x128xf32, #tpu.memory_space<vmem>>, vector<40x128xf32>
      tpu.vector_store %arg10[%c0_129, %c0_130], %123 {strides = array<i32>} : memref<40x128xf32, #tpu.memory_space<vmem>>, vector<40x128xf32>,
    } else {
    }
    %c0 = arith.constant 0 : index
    %c0_1 = arith.constant 0 : index
    %3 = vector.load %arg9[%c0, %c0_1] : memref<16x128xf32, #tpu.memory_space<vmem>>, vector<16x128xf32>
    %c0_2 = arith.constant 0 : index
    %c0_3 = arith.constant 0 : index
    %c0_4 = arith.constant 0 : index
    %4 = vector.load %arg3[%c0_2, %c0_3, %c0_4] : memref<1x1x128xf32, #tpu.memory_space<vmem>>, vector<1x1x128xf32>
    %5 = vector.shape_cast %4 : vector<1x1x128xf32> to vector<1x128xf32>
    %6 = vector.broadcast %5 : vector<1x128xf32> to vector<16x128xf32>
    %7 = arith.mulf %3, %6 : vector<16x128xf32>
    %c0_5 = arith.constant 0 : index
    %c0_6 = arith.constant 0 : index
    %c0_7 = arith.constant 0 : index
    %8 = vector.load %arg4[%c0_5, %c0_6, %c0_7] : memref<1x1x128xf32, #tpu.memory_space<vmem>>, vector<1x1x128xf32>
    %9 = vector.shape_cast %8 : vector<1x1x128xf32> to vector<1x128xf32>
    %10 = vector.broadcast %9 : vector<1x128xf32> to vector<16x128xf32>
    %11 = arith.addf %7, %10 : vector<16x128xf32>
    %cst = arith.constant 0.000000e+00 : f32
    %12 = vector.broadcast %cst : f32 to vector<16x128xf32>
    %13 = arith.maximumf %11, %12 : vector<16x128xf32>
    %14 = arith.truncf %13 : vector<16x128xf32> to vector<16x128xbf16>
    %c0_8 = arith.constant 0 : index
    %c0_9 = arith.constant 0 : index
    %15 = vector.load %arg5[%c0_8, %c0_9] : memref<128x128xbf16, #tpu.memory_space<vmem>>, vector<128x128xbf16>
    %cst_10 = arith.constant dense<0.000000e+00> : vector<16x128xf32>
    %16 = tpu.matmul %14, %15, %cst_10 {dimension_numbers = #tpu.dot_dimension_numbers<[1], [0], [0], [1], [0, 0, 1, 1], [], []>} : vector<16x128xbf16>, vector<128x128xbf16>, vector<16x128xf32> -> vector<16x128xf32>
    %c0_11 = arith.constant 0 : index
    %c0_12 = arith.constant 0 : index
    %c0_13 = arith.constant 0 : index
    %17 = vector.load %arg6[%c0_11, %c0_12, %c0_13] : memref<1x1x128xf32, #tpu.memory_space<vmem>>, vector<1x1x128xf32>
    %18 = vector.shape_cast %17 : vector<1x1x128xf32> to vector<1x128xf32>
    %19 = vector.broadcast %18 : vector<1x128xf32> to vector<16x128xf32>
    %20 = arith.mulf %16, %19 : vector<16x128xf32>
    %c0_14 = arith.constant 0 : index
    %c0_15 = arith.constant 0 : index
    %c0_16 = arith.constant 0 : index
    %21 = vector.load %arg7[%c0_14, %c0_15, %c0_16] : memref<1x1x128xf32, #tpu.memory_space<vmem>>, vector<1x1x128xf32>
    %22 = vector.shape_cast %21 : vector<1x1x128xf32> to vector<1x128xf32>
    %23 = vector.broadcast %22 : vector<1x128xf32> to vector<16x128xf32>
    %24 = arith.addf %20, %23 : vector<16x128xf32>
    %cst_17 = arith.constant 0.000000e+00 : f32
    %25 = vector.broadcast %cst_17 : f32 to vector<16x128xf32>
    %26 = arith.maximumf %24, %25 : vector<16x128xf32>
    %27 = vector.extract_strided_slice %26 {offsets = [0, 0], sizes = [4, 128], strides = [1, 1]} : vector<16x128xf32> to vector<4x128xf32>
    %c7 = arith.constant 7 : index
    %c0_18 = arith.constant 0 : index
    %28 = vector.load %arg10[%c7, %c0_18] : memref<40x128xf32, #tpu.memory_space<vmem>>, vector<4x128xf32>
    tpu.vector_store %arg10[%c7, %c0_18], %27 {strides = array<i32>} : memref<40x128xf32, #tpu.memory_space<vmem>>, vector<4x128xf32>,
    %29 = vector.extract_strided_slice %26 {offsets = [4, 0], sizes = [4, 128], strides = [1, 1]} : vector<16x128xf32> to vector<4x128xf32>
    %c13 = arith.constant 13 : index
    %c0_19 = arith.constant 0 : index
    %30 = vector.load %arg10[%c13, %c0_19] : memref<40x128xf32, #tpu.memory_space<vmem>>, vector<4x128xf32>
    tpu.vector_store %arg10[%c13, %c0_19], %29 {strides = array<i32>} : memref<40x128xf32, #tpu.memory_space<vmem>>, vector<4x128xf32>,
    %31 = vector.extract_strided_slice %26 {offsets = [8, 0], sizes = [4, 128], strides = [1, 1]} : vector<16x128xf32> to vector<4x128xf32>
    %c19 = arith.constant 19 : index
    %c0_20 = arith.constant 0 : index
    %32 = vector.load %arg10[%c19, %c0_20] : memref<40x128xf32, #tpu.memory_space<vmem>>, vector<4x128xf32>
    tpu.vector_store %arg10[%c19, %c0_20], %31 {strides = array<i32>} : memref<40x128xf32, #tpu.memory_space<vmem>>, vector<4x128xf32>,
    %33 = vector.extract_strided_slice %26 {offsets = [12, 0], sizes = [4, 128], strides = [1, 1]} : vector<16x128xf32> to vector<4x128xf32>
    %c25 = arith.constant 25 : index
    %c0_21 = arith.constant 0 : index
    %34 = vector.load %arg10[%c25, %c0_21] : memref<40x128xf32, #tpu.memory_space<vmem>>, vector<4x128xf32>
    tpu.vector_store %arg10[%c25, %c0_21], %33 {strides = array<i32>} : memref<40x128xf32, #tpu.memory_space<vmem>>, vector<4x128xf32>,
    %c0_22 = arith.constant 0 : index
    %c0_23 = arith.constant 0 : index
    %35 = vector.load %arg10[%c0_22, %c0_23] : memref<40x128xf32, #tpu.memory_space<vmem>>, vector<24x128xf32>
    %36 = arith.truncf %35 : vector<24x128xf32> to vector<24x128xbf16>
    %c0_24 = arith.constant 0 : index
    %c0_25 = arith.constant 0 : index
    %c0_26 = arith.constant 0 : index
    %37 = vector.load %arg8[%c0_24, %c0_25, %c0_26] : memref<9x128x128xbf16, #tpu.memory_space<vmem>>, vector<1x128x128xbf16>
    %38 = vector.shape_cast %37 : vector<1x128x128xbf16> to vector<128x128xbf16>
    %cst_27 = arith.constant dense<0.000000e+00> : vector<24x128xf32>
    %39 = tpu.matmul %36, %38, %cst_27 {dimension_numbers = #tpu.dot_dimension_numbers<[1], [0], [0], [1], [0, 0, 1, 1], [], []>} : vector<24x128xbf16>, vector<128x128xbf16>, vector<24x128xf32> -> vector<24x128xf32>
    %c0_28 = arith.constant 0 : index
    %c0_29 = arith.constant 0 : index
    %40 = vector.load %arg11[%c0_28, %c0_29] : memref<24x128xf32, #tpu.memory_space<vmem>>, vector<24x128xf32>
    tpu.vector_store %arg11[%c0_28, %c0_29], %39 {strides = array<i32>} : memref<24x128xf32, #tpu.memory_space<vmem>>, vector<24x128xf32>,
    %c1 = arith.constant 1 : index
    %c0_30 = arith.constant 0 : index
    %41 = vector.load %arg10[%c1, %c0_30] : memref<40x128xf32, #tpu.memory_space<vmem>>, vector<24x128xf32>
    %42 = arith.truncf %41 : vector<24x128xf32> to vector<24x128xbf16>
    %c1_31 = arith.constant 1 : index
    %c0_32 = arith.constant 0 : index
    %c0_33 = arith.constant 0 : index
    %43 = vector.load %arg8[%c1_31, %c0_32, %c0_33] : memref<9x128x128xbf16, #tpu.memory_space<vmem>>, vector<1x128x128xbf16>
    %44 = vector.shape_cast %43 : vector<1x128x128xbf16> to vector<128x128xbf16>
    %cst_34 = arith.constant dense<0.000000e+00> : vector<24x128xf32>
    %45 = tpu.matmul %42, %44, %cst_34 {dimension_numbers = #tpu.dot_dimension_numbers<[1], [0], [0], [1], [0, 0, 1, 1], [], []>} : vector<24x128xbf16>, vector<128x128xbf16>, vector<24x128xf32> -> vector<24x128xf32>
    %c0_35 = arith.constant 0 : index
    %c0_36 = arith.constant 0 : index
    %46 = vector.load %arg11[%c0_35, %c0_36] : memref<24x128xf32, #tpu.memory_space<vmem>>, vector<24x128xf32>
    %47 = arith.addf %46, %45 : vector<24x128xf32>
    %c0_37 = arith.constant 0 : index
    %c0_38 = arith.constant 0 : index
    %48 = vector.load %arg11[%c0_37, %c0_38] : memref<24x128xf32, #tpu.memory_space<vmem>>, vector<24x128xf32>
    tpu.vector_store %arg11[%c0_37, %c0_38], %47 {strides = array<i32>} : memref<24x128xf32, #tpu.memory_space<vmem>>, vector<24x128xf32>,
    %c2 = arith.constant 2 : index
    %c0_39 = arith.constant 0 : index
    %49 = vector.load %arg10[%c2, %c0_39] : memref<40x128xf32, #tpu.memory_space<vmem>>, vector<24x128xf32>
    %50 = arith.truncf %49 : vector<24x128xf32> to vector<24x128xbf16>
    %c2_40 = arith.constant 2 : index
    %c0_41 = arith.constant 0 : index
    %c0_42 = arith.constant 0 : index
    %51 = vector.load %arg8[%c2_40, %c0_41, %c0_42] : memref<9x128x128xbf16, #tpu.memory_space<vmem>>, vector<1x128x128xbf16>
    %52 = vector.shape_cast %51 : vector<1x128x128xbf16> to vector<128x128xbf16>
    %cst_43 = arith.constant dense<0.000000e+00> : vector<24x128xf32>
    %53 = tpu.matmul %50, %52, %cst_43 {dimension_numbers = #tpu.dot_dimension_numbers<[1], [0], [0], [1], [0, 0, 1, 1], [], []>} : vector<24x128xbf16>, vector<128x128xbf16>, vector<24x128xf32> -> vector<24x128xf32>
    %c0_44 = arith.constant 0 : index
    %c0_45 = arith.constant 0 : index
    %54 = vector.load %arg11[%c0_44, %c0_45] : memref<24x128xf32, #tpu.memory_space<vmem>>, vector<24x128xf32>
    %55 = arith.addf %54, %53 : vector<24x128xf32>
    %c0_46 = arith.constant 0 : index
    %c0_47 = arith.constant 0 : index
    %56 = vector.load %arg11[%c0_46, %c0_47] : memref<24x128xf32, #tpu.memory_space<vmem>>, vector<24x128xf32>
    tpu.vector_store %arg11[%c0_46, %c0_47], %55 {strides = array<i32>} : memref<24x128xf32, #tpu.memory_space<vmem>>, vector<24x128xf32>,
    %c6 = arith.constant 6 : index
    %c0_48 = arith.constant 0 : index
    %57 = vector.load %arg10[%c6, %c0_48] : memref<40x128xf32, #tpu.memory_space<vmem>>, vector<24x128xf32>
    %58 = arith.truncf %57 : vector<24x128xf32> to vector<24x128xbf16>
    %c3 = arith.constant 3 : index
    %c0_49 = arith.constant 0 : index
    %c0_50 = arith.constant 0 : index
    %59 = vector.load %arg8[%c3, %c0_49, %c0_50] : memref<9x128x128xbf16, #tpu.memory_space<vmem>>, vector<1x128x128xbf16>
    %60 = vector.shape_cast %59 : vector<1x128x128xbf16> to vector<128x128xbf16>
    %cst_51 = arith.constant dense<0.000000e+00> : vector<24x128xf32>
    %61 = tpu.matmul %58, %60, %cst_51 {dimension_numbers = #tpu.dot_dimension_numbers<[1], [0], [0], [1], [0, 0, 1, 1], [], []>} : vector<24x128xbf16>, vector<128x128xbf16>, vector<24x128xf32> -> vector<24x128xf32>
    %c0_52 = arith.constant 0 : index
    %c0_53 = arith.constant 0 : index
    %62 = vector.load %arg11[%c0_52, %c0_53] : memref<24x128xf32, #tpu.memory_space<vmem>>, vector<24x128xf32>
    %63 = arith.addf %62, %61 : vector<24x128xf32>
    %c0_54 = arith.constant 0 : index
    %c0_55 = arith.constant 0 : index
    %64 = vector.load %arg11[%c0_54, %c0_55] : memref<24x128xf32, #tpu.memory_space<vmem>>, vector<24x128xf32>
    tpu.vector_store %arg11[%c0_54, %c0_55], %63 {strides = array<i32>} : memref<24x128xf32, #tpu.memory_space<vmem>>, vector<24x128xf32>,
    %c7_56 = arith.constant 7 : index
    %c0_57 = arith.constant 0 : index
    %65 = vector.load %arg10[%c7_56, %c0_57] : memref<40x128xf32, #tpu.memory_space<vmem>>, vector<24x128xf32>
    %66 = arith.truncf %65 : vector<24x128xf32> to vector<24x128xbf16>
    %c4 = arith.constant 4 : index
    %c0_58 = arith.constant 0 : index
    %c0_59 = arith.constant 0 : index
    %67 = vector.load %arg8[%c4, %c0_58, %c0_59] : memref<9x128x128xbf16, #tpu.memory_space<vmem>>, vector<1x128x128xbf16>
    %68 = vector.shape_cast %67 : vector<1x128x128xbf16> to vector<128x128xbf16>
    %cst_60 = arith.constant dense<0.000000e+00> : vector<24x128xf32>
    %69 = tpu.matmul %66, %68, %cst_60 {dimension_numbers = #tpu.dot_dimension_numbers<[1], [0], [0], [1], [0, 0, 1, 1], [], []>} : vector<24x128xbf16>, vector<128x128xbf16>, vector<24x128xf32> -> vector<24x128xf32>
    %c0_61 = arith.constant 0 : index
    %c0_62 = arith.constant 0 : index
    %70 = vector.load %arg11[%c0_61, %c0_62] : memref<24x128xf32, #tpu.memory_space<vmem>>, vector<24x128xf32>
    %71 = arith.addf %70, %69 : vector<24x128xf32>
    %c0_63 = arith.constant 0 : index
    %c0_64 = arith.constant 0 : index
    %72 = vector.load %arg11[%c0_63, %c0_64] : memref<24x128xf32, #tpu.memory_space<vmem>>, vector<24x128xf32>
    tpu.vector_store %arg11[%c0_63, %c0_64], %71 {strides = array<i32>} : memref<24x128xf32, #tpu.memory_space<vmem>>, vector<24x128xf32>,
    %c8 = arith.constant 8 : index
    %c0_65 = arith.constant 0 : index
    %73 = vector.load %arg10[%c8, %c0_65] : memref<40x128xf32, #tpu.memory_space<vmem>>, vector<24x128xf32>
    %74 = arith.truncf %73 : vector<24x128xf32> to vector<24x128xbf16>
    %c5 = arith.constant 5 : index
    %c0_66 = arith.constant 0 : index
    %c0_67 = arith.constant 0 : index
    %75 = vector.load %arg8[%c5, %c0_66, %c0_67] : memref<9x128x128xbf16, #tpu.memory_space<vmem>>, vector<1x128x128xbf16>
    %76 = vector.shape_cast %75 : vector<1x128x128xbf16> to vector<128x128xbf16>
    %cst_68 = arith.constant dense<0.000000e+00> : vector<24x128xf32>
    %77 = tpu.matmul %74, %76, %cst_68 {dimension_numbers = #tpu.dot_dimension_numbers<[1], [0], [0], [1], [0, 0, 1, 1], [], []>} : vector<24x128xbf16>, vector<128x128xbf16>, vector<24x128xf32> -> vector<24x128xf32>
    %c0_69 = arith.constant 0 : index
    %c0_70 = arith.constant 0 : index
    %78 = vector.load %arg11[%c0_69, %c0_70] : memref<24x128xf32, #tpu.memory_space<vmem>>, vector<24x128xf32>
    %79 = arith.addf %78, %77 : vector<24x128xf32>
    %c0_71 = arith.constant 0 : index
    %c0_72 = arith.constant 0 : index
    %80 = vector.load %arg11[%c0_71, %c0_72] : memref<24x128xf32, #tpu.memory_space<vmem>>, vector<24x128xf32>
    tpu.vector_store %arg11[%c0_71, %c0_72], %79 {strides = array<i32>} : memref<24x128xf32, #tpu.memory_space<vmem>>, vector<24x128xf32>,
    %c12 = arith.constant 12 : index
    %c0_73 = arith.constant 0 : index
    %81 = vector.load %arg10[%c12, %c0_73] : memref<40x128xf32, #tpu.memory_space<vmem>>, vector<24x128xf32>
    %82 = arith.truncf %81 : vector<24x128xf32> to vector<24x128xbf16>
    %c6_74 = arith.constant 6 : index
    %c0_75 = arith.constant 0 : index
    %c0_76 = arith.constant 0 : index
    %83 = vector.load %arg8[%c6_74, %c0_75, %c0_76] : memref<9x128x128xbf16, #tpu.memory_space<vmem>>, vector<1x128x128xbf16>
    %84 = vector.shape_cast %83 : vector<1x128x128xbf16> to vector<128x128xbf16>
    %cst_77 = arith.constant dense<0.000000e+00> : vector<24x128xf32>
    %85 = tpu.matmul %82, %84, %cst_77 {dimension_numbers = #tpu.dot_dimension_numbers<[1], [0], [0], [1], [0, 0, 1, 1], [], []>} : vector<24x128xbf16>, vector<128x128xbf16>, vector<24x128xf32> -> vector<24x128xf32>
    %c0_78 = arith.constant 0 : index
    %c0_79 = arith.constant 0 : index
    %86 = vector.load %arg11[%c0_78, %c0_79] : memref<24x128xf32, #tpu.memory_space<vmem>>, vector<24x128xf32>
    %87 = arith.addf %86, %85 : vector<24x128xf32>
    %c0_80 = arith.constant 0 : index
    %c0_81 = arith.constant 0 : index
    %88 = vector.load %arg11[%c0_80, %c0_81] : memref<24x128xf32, #tpu.memory_space<vmem>>, vector<24x128xf32>
    tpu.vector_store %arg11[%c0_80, %c0_81], %87 {strides = array<i32>} : memref<24x128xf32, #tpu.memory_space<vmem>>, vector<24x128xf32>,
    %c13_82 = arith.constant 13 : index
    %c0_83 = arith.constant 0 : index
    %89 = vector.load %arg10[%c13_82, %c0_83] : memref<40x128xf32, #tpu.memory_space<vmem>>, vector<24x128xf32>
    %90 = arith.truncf %89 : vector<24x128xf32> to vector<24x128xbf16>
    %c7_84 = arith.constant 7 : index
    %c0_85 = arith.constant 0 : index
    %c0_86 = arith.constant 0 : index
    %91 = vector.load %arg8[%c7_84, %c0_85, %c0_86] : memref<9x128x128xbf16, #tpu.memory_space<vmem>>, vector<1x128x128xbf16>
    %92 = vector.shape_cast %91 : vector<1x128x128xbf16> to vector<128x128xbf16>
    %cst_87 = arith.constant dense<0.000000e+00> : vector<24x128xf32>
    %93 = tpu.matmul %90, %92, %cst_87 {dimension_numbers = #tpu.dot_dimension_numbers<[1], [0], [0], [1], [0, 0, 1, 1], [], []>} : vector<24x128xbf16>, vector<128x128xbf16>, vector<24x128xf32> -> vector<24x128xf32>
    %c0_88 = arith.constant 0 : index
    %c0_89 = arith.constant 0 : index
    %94 = vector.load %arg11[%c0_88, %c0_89] : memref<24x128xf32, #tpu.memory_space<vmem>>, vector<24x128xf32>
    %95 = arith.addf %94, %93 : vector<24x128xf32>
    %c0_90 = arith.constant 0 : index
    %c0_91 = arith.constant 0 : index
    %96 = vector.load %arg11[%c0_90, %c0_91] : memref<24x128xf32, #tpu.memory_space<vmem>>, vector<24x128xf32>
    tpu.vector_store %arg11[%c0_90, %c0_91], %95 {strides = array<i32>} : memref<24x128xf32, #tpu.memory_space<vmem>>, vector<24x128xf32>,
    %c14 = arith.constant 14 : index
    %c0_92 = arith.constant 0 : index
    %97 = vector.load %arg10[%c14, %c0_92] : memref<40x128xf32, #tpu.memory_space<vmem>>, vector<24x128xf32>
    %98 = arith.truncf %97 : vector<24x128xf32> to vector<24x128xbf16>
    %c8_93 = arith.constant 8 : index
    %c0_94 = arith.constant 0 : index
    %c0_95 = arith.constant 0 : index
    %99 = vector.load %arg8[%c8_93, %c0_94, %c0_95] : memref<9x128x128xbf16, #tpu.memory_space<vmem>>, vector<1x128x128xbf16>
    %100 = vector.shape_cast %99 : vector<1x128x128xbf16> to vector<128x128xbf16>
    %cst_96 = arith.constant dense<0.000000e+00> : vector<24x128xf32>
    %101 = tpu.matmul %98, %100, %cst_96 {dimension_numbers = #tpu.dot_dimension_numbers<[1], [0], [0], [1], [0, 0, 1, 1], [], []>} : vector<24x128xbf16>, vector<128x128xbf16>, vector<24x128xf32> -> vector<24x128xf32>
    %c0_97 = arith.constant 0 : index
    %c0_98 = arith.constant 0 : index
    %102 = vector.load %arg11[%c0_97, %c0_98] : memref<24x128xf32, #tpu.memory_space<vmem>>, vector<24x128xf32>
    %103 = arith.addf %102, %101 : vector<24x128xf32>
    %c0_99 = arith.constant 0 : index
    %c0_100 = arith.constant 0 : index
    %104 = vector.load %arg11[%c0_99, %c0_100] : memref<24x128xf32, #tpu.memory_space<vmem>>, vector<24x128xf32>
    tpu.vector_store %arg11[%c0_99, %c0_100], %103 {strides = array<i32>} : memref<24x128xf32, #tpu.memory_space<vmem>>, vector<24x128xf32>,
    %c0_101 = arith.constant 0 : index
    %c0_102 = arith.constant 0 : index
    %105 = vector.load %arg9[%c0_101, %c0_102] : memref<16x128xf32, #tpu.memory_space<vmem>>, vector<4x128xf32>
    %c0_103 = arith.constant 0 : index
    %c0_104 = arith.constant 0 : index
    %106 = vector.load %arg11[%c0_103, %c0_104] : memref<24x128xf32, #tpu.memory_space<vmem>>, vector<4x128xf32>
    %107 = arith.addf %105, %106 : vector<4x128xf32>
    %c0_105 = arith.constant 0 : index
    %c0_106 = arith.constant 0 : index
    %108 = vector.load %arg9[%c0_105, %c0_106] : memref<16x128xf32, #tpu.memory_space<vmem>>, vector<4x128xf32>
    tpu.vector_store %arg9[%c0_105, %c0_106], %107 {strides = array<i32>} : memref<16x128xf32, #tpu.memory_space<vmem>>, vector<4x128xf32>,
    %c4_107 = arith.constant 4 : index
    %c0_108 = arith.constant 0 : index
    %109 = vector.load %arg9[%c4_107, %c0_108] : memref<16x128xf32, #tpu.memory_space<vmem>>, vector<4x128xf32>
    %c6_109 = arith.constant 6 : index
    %c0_110 = arith.constant 0 : index
    %110 = vector.load %arg11[%c6_109, %c0_110] : memref<24x128xf32, #tpu.memory_space<vmem>>, vector<4x128xf32>
    %111 = arith.addf %109, %110 : vector<4x128xf32>
    %c4_111 = arith.constant 4 : index
    %c0_112 = arith.constant 0 : index
    %112 = vector.load %arg9[%c4_111, %c0_112] : memref<16x128xf32, #tpu.memory_space<vmem>>, vector<4x128xf32>
    tpu.vector_store %arg9[%c4_111, %c0_112], %111 {strides = array<i32>} : memref<16x128xf32, #tpu.memory_space<vmem>>, vector<4x128xf32>,
    %c8_113 = arith.constant 8 : index
    %c0_114 = arith.constant 0 : index
    %113 = vector.load %arg9[%c8_113, %c0_114] : memref<16x128xf32, #tpu.memory_space<vmem>>, vector<4x128xf32>
    %c12_115 = arith.constant 12 : index
    %c0_116 = arith.constant 0 : index
    %114 = vector.load %arg11[%c12_115, %c0_116] : memref<24x128xf32, #tpu.memory_space<vmem>>, vector<4x128xf32>
    %115 = arith.addf %113, %114 : vector<4x128xf32>
    %c8_117 = arith.constant 8 : index
    %c0_118 = arith.constant 0 : index
    %116 = vector.load %arg9[%c8_117, %c0_118] : memref<16x128xf32, #tpu.memory_space<vmem>>, vector<4x128xf32>
    tpu.vector_store %arg9[%c8_117, %c0_118], %115 {strides = array<i32>} : memref<16x128xf32, #tpu.memory_space<vmem>>, vector<4x128xf32>,
    %c12_119 = arith.constant 12 : index
    %c0_120 = arith.constant 0 : index
    %117 = vector.load %arg9[%c12_119, %c0_120] : memref<16x128xf32, #tpu.memory_space<vmem>>, vector<4x128xf32>
    %c18 = arith.constant 18 : index
    %c0_121 = arith.constant 0 : index
    %118 = vector.load %arg11[%c18, %c0_121] : memref<24x128xf32, #tpu.memory_space<vmem>>, vector<4x128xf32>
    %119 = arith.addf %117, %118 : vector<4x128xf32>
    %c12_122 = arith.constant 12 : index
    %c0_123 = arith.constant 0 : index
    %120 = vector.load %arg9[%c12_122, %c0_123] : memref<16x128xf32, #tpu.memory_space<vmem>>, vector<4x128xf32>
    tpu.vector_store %arg9[%c12_122, %c0_123], %119 {strides = array<i32>} : memref<16x128xf32, #tpu.memory_space<vmem>>, vector<4x128xf32>,
    return
  }
  func.func @transform_0(%arg0: i32, %arg1: i32) -> (i32, i32) {
    %c0_i32 = arith.constant 0 : i32
    %c0_i32_0 = arith.constant 0 : i32
    return %arg0, %c0_i32 : i32, i32
  }
  func.func @transform_1(%arg0: i32, %arg1: i32) -> (i32, i32, i32) {
    %c0_i32 = arith.constant 0 : i32
    %c0_i32_0 = arith.constant 0 : i32
    %c0_i32_1 = arith.constant 0 : i32
    return %arg1, %c0_i32, %c0_i32_0 : i32, i32, i32
  }
  func.func @transform_2(%arg0: i32, %arg1: i32) -> (i32, i32, i32) {
    %c0_i32 = arith.constant 0 : i32
    %c0_i32_0 = arith.constant 0 : i32
    %c0_i32_1 = arith.constant 0 : i32
    return %arg1, %c0_i32, %c0_i32_0 : i32, i32, i32
  }
  func.func @transform_3(%arg0: i32, %arg1: i32) -> (i32, i32) {
    %c0_i32 = arith.constant 0 : i32
    %c0_i32_0 = arith.constant 0 : i32
    return %arg1, %c0_i32 : i32, i32
  }
  func.func @transform_4(%arg0: i32, %arg1: i32) -> (i32, i32, i32) {
    %c0_i32 = arith.constant 0 : i32
    %c0_i32_0 = arith.constant 0 : i32
    %c0_i32_1 = arith.constant 0 : i32
    return %arg1, %c0_i32, %c0_i32_0 : i32, i32, i32
  }
  func.func @transform_5(%arg0: i32, %arg1: i32) -> (i32, i32, i32) {
    %c0_i32 = arith.constant 0 : i32
    %c0_i32_0 = arith.constant 0 : i32
    %c0_i32_1 = arith.constant 0 : i32
    return %arg1, %c0_i32, %c0_i32_0 : i32, i32, i32
  }
  func.func @transform_6(%arg0: i32, %arg1: i32) -> (i32, i32, i32) {
    %c0_i32 = arith.constant 0 : i32
    %c0_i32_0 = arith.constant 0 : i32
    %c0_i32_1 = arith.constant 0 : i32
    return %arg1, %c0_i32, %c0_i32_0 : i32, i32, i32
  }
  func.func @transform_7(%arg0: i32, %arg1: i32) -> (i32, i32) {
    %c0_i32 = arith.constant 0 : i32
    %c0_i32_0 = arith.constant 0 : i32
    return %arg0, %c0_i32 : i32, i32
  }
}

module attributes {stable_mosaic.version = 11 : i64} {
  func.func @_transition_kernel(%arg0: i32, %arg1: memref<16x128xf32, #tpu.memory_space<vmem>>, %arg2: memref<1x128xf32, #tpu.memory_space<vmem>>, %arg3: memref<1x128xf32, #tpu.memory_space<vmem>>, %arg4: memref<128x128xbf16, #tpu.memory_space<vmem>>, %arg5: memref<16x128xf32, #tpu.memory_space<vmem>>) attributes {dimension_semantics = [#tpu.dimension_semantics<parallel>], iteration_bounds = array<i64: 2>, scalar_prefetch = 0 : i64, scratch_operands = 0 : i64, tpu.core_type = #tpu.core_type<tc>, window_params = [{transform_indices = @transform_0, window_bounds = array<i64: 16, 128>}, {pipeline_mode = #tpu.pipeline_mode<synchronous>, transform_indices = @transform_1, window_bounds = array<i64: 1, 128>}, {pipeline_mode = #tpu.pipeline_mode<synchronous>, transform_indices = @transform_2, window_bounds = array<i64: 1, 128>}, {pipeline_mode = #tpu.pipeline_mode<synchronous>, transform_indices = @transform_3, window_bounds = array<i64: 128, 128>}, {transform_indices = @transform_4, window_bounds = array<i64: 16, 128>}]} {
    %c0 = arith.constant 0 : index
    %c0_0 = arith.constant 0 : index
    %0 = vector.load %arg1[%c0, %c0_0] : memref<16x128xf32, #tpu.memory_space<vmem>>, vector<16x128xf32>
    %c0_1 = arith.constant 0 : index
    %c0_2 = arith.constant 0 : index
    %1 = vector.load %arg2[%c0_1, %c0_2] : memref<1x128xf32, #tpu.memory_space<vmem>>, vector<1x128xf32>
    %2 = vector.broadcast %1 : vector<1x128xf32> to vector<16x128xf32>
    %3 = arith.mulf %0, %2 : vector<16x128xf32>
    %c0_3 = arith.constant 0 : index
    %c0_4 = arith.constant 0 : index
    %4 = vector.load %arg3[%c0_3, %c0_4] : memref<1x128xf32, #tpu.memory_space<vmem>>, vector<1x128xf32>
    %5 = vector.broadcast %4 : vector<1x128xf32> to vector<16x128xf32>
    %6 = arith.addf %3, %5 : vector<16x128xf32>
    %cst = arith.constant 0.000000e+00 : f32
    %7 = vector.broadcast %cst : f32 to vector<16x128xf32>
    %8 = arith.maximumf %6, %7 : vector<16x128xf32>
    %9 = arith.truncf %8 : vector<16x128xf32> to vector<16x128xbf16>
    %c0_5 = arith.constant 0 : index
    %c0_6 = arith.constant 0 : index
    %10 = vector.load %arg4[%c0_5, %c0_6] : memref<128x128xbf16, #tpu.memory_space<vmem>>, vector<128x128xbf16>
    %cst_7 = arith.constant dense<0.000000e+00> : vector<16x128xf32>
    %11 = tpu.matmul %9, %10, %cst_7 {dimension_numbers = #tpu.dot_dimension_numbers<[1], [0], [0], [1], [0, 0, 1, 1], [], []>} : vector<16x128xbf16>, vector<128x128xbf16>, vector<16x128xf32> -> vector<16x128xf32>
    %c0_8 = arith.constant 0 : index
    %c0_9 = arith.constant 0 : index
    %12 = vector.load %arg5[%c0_8, %c0_9] : memref<16x128xf32, #tpu.memory_space<vmem>>, vector<16x128xf32>
    tpu.vector_store %arg5[%c0_8, %c0_9], %11 {strides = array<i32>} : memref<16x128xf32, #tpu.memory_space<vmem>>, vector<16x128xf32>,
    return
  }
  func.func @transform_0(%arg0: i32) -> (i32, i32) {
    %c0_i32 = arith.constant 0 : i32
    %c0_i32_0 = arith.constant 0 : i32
    return %arg0, %c0_i32 : i32, i32
  }
  func.func @transform_1(%arg0: i32) -> (i32, i32) {
    %c0_i32 = arith.constant 0 : i32
    %c0_i32_0 = arith.constant 0 : i32
    %c0_i32_1 = arith.constant 0 : i32
    return %c0_i32, %c0_i32_0 : i32, i32
  }
  func.func @transform_2(%arg0: i32) -> (i32, i32) {
    %c0_i32 = arith.constant 0 : i32
    %c0_i32_0 = arith.constant 0 : i32
    %c0_i32_1 = arith.constant 0 : i32
    return %c0_i32, %c0_i32_0 : i32, i32
  }
  func.func @transform_3(%arg0: i32) -> (i32, i32) {
    %c0_i32 = arith.constant 0 : i32
    %c0_i32_0 = arith.constant 0 : i32
    %c0_i32_1 = arith.constant 0 : i32
    return %c0_i32, %c0_i32_0 : i32, i32
  }
  func.func @transform_4(%arg0: i32) -> (i32, i32) {
    %c0_i32 = arith.constant 0 : i32
    %c0_i32_0 = arith.constant 0 : i32
    return %arg0, %c0_i32 : i32, i32
  }
}

module attributes {stable_mosaic.version = 11 : i64} {
  func.func @_dense_stage_kernel(%arg0: i32, %arg1: i32, %arg2: memref<8x128xf32, #tpu.memory_space<vmem>>, %arg3: memref<1x1x128xf32, #tpu.memory_space<vmem>>, %arg4: memref<1x1x128xf32, #tpu.memory_space<vmem>>, %arg5: memref<128x128xbf16, #tpu.memory_space<vmem>>, %arg6: memref<1x1x128xf32, #tpu.memory_space<vmem>>, %arg7: memref<1x1x128xf32, #tpu.memory_space<vmem>>, %arg8: memref<9x128x128xbf16, #tpu.memory_space<vmem>>, %arg9: memref<8x128xf32, #tpu.memory_space<vmem>>, %arg10: memref<24x128xf32, #tpu.memory_space<vmem>>, %arg11: memref<8x128xf32, #tpu.memory_space<vmem>>) attributes {dimension_semantics = [#tpu.dimension_semantics<parallel>, #tpu.dimension_semantics<arbitrary>], iteration_bounds = array<i64: 2, 2>, scalar_prefetch = 0 : i64, scratch_operands = 2 : i64, tpu.core_type = #tpu.core_type<tc>, window_params = [{transform_indices = @transform_0, window_bounds = array<i64: 8, 128>}, {transform_indices = @transform_1, window_bounds = array<i64: 1, 1, 128>}, {transform_indices = @transform_2, window_bounds = array<i64: 1, 1, 128>}, {transform_indices = @transform_3, window_bounds = array<i64: 128, 128>}, {transform_indices = @transform_4, window_bounds = array<i64: 1, 1, 128>}, {transform_indices = @transform_5, window_bounds = array<i64: 1, 1, 128>}, {transform_indices = @transform_6, window_bounds = array<i64: 9, 128, 128>}, {transform_indices = @transform_7, window_bounds = array<i64: 8, 128>}]} {
    %c0_i32 = arith.constant 0 : i32
    %0 = arith.cmpi eq, %arg1, %c0_i32 : i32
    %1 = arith.extui %0 : i1 to i32
    %c0_i32_0 = arith.constant 0 : i32
    %2 = arith.cmpi ne, %1, %c0_i32_0 : i32
    scf.if %2 {
      %c0_112 = arith.constant 0 : index
      %c0_113 = arith.constant 0 : index
      %109 = vector.load %arg2[%c0_112, %c0_113] : memref<8x128xf32, #tpu.memory_space<vmem>>, vector<8x128xf32>
      %c0_114 = arith.constant 0 : index
      %c0_115 = arith.constant 0 : index
      %110 = vector.load %arg9[%c0_114, %c0_115] : memref<8x128xf32, #tpu.memory_space<vmem>>, vector<8x128xf32>
      tpu.vector_store %arg9[%c0_114, %c0_115], %109 {strides = array<i32>} : memref<8x128xf32, #tpu.memory_space<vmem>>, vector<8x128xf32>,
      %cst_116 = arith.constant 0.000000e+00 : f32
      %111 = vector.broadcast %cst_116 : f32 to vector<24x128xf32>
      %c0_117 = arith.constant 0 : index
      %c0_118 = arith.constant 0 : index
      %112 = vector.load %arg10[%c0_117, %c0_118] : memref<24x128xf32, #tpu.memory_space<vmem>>, vector<24x128xf32>
      tpu.vector_store %arg10[%c0_117, %c0_118], %111 {strides = array<i32>} : memref<24x128xf32, #tpu.memory_space<vmem>>, vector<24x128xf32>,
    } else {
    }
    %c0 = arith.constant 0 : index
    %c0_1 = arith.constant 0 : index
    %3 = vector.load %arg9[%c0, %c0_1] : memref<8x128xf32, #tpu.memory_space<vmem>>, vector<8x128xf32>
    %c0_2 = arith.constant 0 : index
    %c0_3 = arith.constant 0 : index
    %c0_4 = arith.constant 0 : index
    %4 = vector.load %arg3[%c0_2, %c0_3, %c0_4] : memref<1x1x128xf32, #tpu.memory_space<vmem>>, vector<1x1x128xf32>
    %5 = vector.shape_cast %4 : vector<1x1x128xf32> to vector<1x128xf32>
    %6 = vector.broadcast %5 : vector<1x128xf32> to vector<8x128xf32>
    %7 = arith.mulf %3, %6 : vector<8x128xf32>
    %c0_5 = arith.constant 0 : index
    %c0_6 = arith.constant 0 : index
    %c0_7 = arith.constant 0 : index
    %8 = vector.load %arg4[%c0_5, %c0_6, %c0_7] : memref<1x1x128xf32, #tpu.memory_space<vmem>>, vector<1x1x128xf32>
    %9 = vector.shape_cast %8 : vector<1x1x128xf32> to vector<1x128xf32>
    %10 = vector.broadcast %9 : vector<1x128xf32> to vector<8x128xf32>
    %11 = arith.addf %7, %10 : vector<8x128xf32>
    %cst = arith.constant 0.000000e+00 : f32
    %12 = vector.broadcast %cst : f32 to vector<8x128xf32>
    %13 = arith.maximumf %11, %12 : vector<8x128xf32>
    %14 = arith.truncf %13 : vector<8x128xf32> to vector<8x128xbf16>
    %c0_8 = arith.constant 0 : index
    %c0_9 = arith.constant 0 : index
    %15 = vector.load %arg5[%c0_8, %c0_9] : memref<128x128xbf16, #tpu.memory_space<vmem>>, vector<128x128xbf16>
    %cst_10 = arith.constant dense<0.000000e+00> : vector<8x128xf32>
    %16 = tpu.matmul %14, %15, %cst_10 {dimension_numbers = #tpu.dot_dimension_numbers<[1], [0], [0], [1], [0, 0, 1, 1], [], []>} : vector<8x128xbf16>, vector<128x128xbf16>, vector<8x128xf32> -> vector<8x128xf32>
    %c0_11 = arith.constant 0 : index
    %c0_12 = arith.constant 0 : index
    %c0_13 = arith.constant 0 : index
    %17 = vector.load %arg6[%c0_11, %c0_12, %c0_13] : memref<1x1x128xf32, #tpu.memory_space<vmem>>, vector<1x1x128xf32>
    %18 = vector.shape_cast %17 : vector<1x1x128xf32> to vector<1x128xf32>
    %19 = vector.broadcast %18 : vector<1x128xf32> to vector<8x128xf32>
    %20 = arith.mulf %16, %19 : vector<8x128xf32>
    %c0_14 = arith.constant 0 : index
    %c0_15 = arith.constant 0 : index
    %c0_16 = arith.constant 0 : index
    %21 = vector.load %arg7[%c0_14, %c0_15, %c0_16] : memref<1x1x128xf32, #tpu.memory_space<vmem>>, vector<1x1x128xf32>
    %22 = vector.shape_cast %21 : vector<1x1x128xf32> to vector<1x128xf32>
    %23 = vector.broadcast %22 : vector<1x128xf32> to vector<8x128xf32>
    %24 = arith.addf %20, %23 : vector<8x128xf32>
    %cst_17 = arith.constant 0.000000e+00 : f32
    %25 = vector.broadcast %cst_17 : f32 to vector<8x128xf32>
    %26 = arith.maximumf %24, %25 : vector<8x128xf32>
    %27 = vector.extract_strided_slice %26 {offsets = [0, 0], sizes = [2, 128], strides = [1, 1]} : vector<8x128xf32> to vector<2x128xf32>
    %c5 = arith.constant 5 : index
    %c0_18 = arith.constant 0 : index
    %28 = vector.load %arg10[%c5, %c0_18] : memref<24x128xf32, #tpu.memory_space<vmem>>, vector<2x128xf32>
    tpu.vector_store %arg10[%c5, %c0_18], %27 {strides = array<i32>} : memref<24x128xf32, #tpu.memory_space<vmem>>, vector<2x128xf32>,
    %29 = vector.extract_strided_slice %26 {offsets = [2, 0], sizes = [2, 128], strides = [1, 1]} : vector<8x128xf32> to vector<2x128xf32>
    %c9 = arith.constant 9 : index
    %c0_19 = arith.constant 0 : index
    %30 = vector.load %arg10[%c9, %c0_19] : memref<24x128xf32, #tpu.memory_space<vmem>>, vector<2x128xf32>
    tpu.vector_store %arg10[%c9, %c0_19], %29 {strides = array<i32>} : memref<24x128xf32, #tpu.memory_space<vmem>>, vector<2x128xf32>,
    %c0_20 = arith.constant 0 : index
    %c0_21 = arith.constant 0 : index
    %31 = vector.load %arg10[%c0_20, %c0_21] : memref<24x128xf32, #tpu.memory_space<vmem>>, vector<8x128xf32>
    %32 = arith.truncf %31 : vector<8x128xf32> to vector<8x128xbf16>
    %c0_22 = arith.constant 0 : index
    %c0_23 = arith.constant 0 : index
    %c0_24 = arith.constant 0 : index
    %33 = vector.load %arg8[%c0_22, %c0_23, %c0_24] : memref<9x128x128xbf16, #tpu.memory_space<vmem>>, vector<1x128x128xbf16>
    %34 = vector.shape_cast %33 : vector<1x128x128xbf16> to vector<128x128xbf16>
    %cst_25 = arith.constant dense<0.000000e+00> : vector<8x128xf32>
    %35 = tpu.matmul %32, %34, %cst_25 {dimension_numbers = #tpu.dot_dimension_numbers<[1], [0], [0], [1], [0, 0, 1, 1], [], []>} : vector<8x128xbf16>, vector<128x128xbf16>, vector<8x128xf32> -> vector<8x128xf32>
    %c0_26 = arith.constant 0 : index
    %c0_27 = arith.constant 0 : index
    %36 = vector.load %arg11[%c0_26, %c0_27] : memref<8x128xf32, #tpu.memory_space<vmem>>, vector<8x128xf32>
    tpu.vector_store %arg11[%c0_26, %c0_27], %35 {strides = array<i32>} : memref<8x128xf32, #tpu.memory_space<vmem>>, vector<8x128xf32>,
    %c1 = arith.constant 1 : index
    %c0_28 = arith.constant 0 : index
    %37 = vector.load %arg10[%c1, %c0_28] : memref<24x128xf32, #tpu.memory_space<vmem>>, vector<8x128xf32>
    %38 = arith.truncf %37 : vector<8x128xf32> to vector<8x128xbf16>
    %c1_29 = arith.constant 1 : index
    %c0_30 = arith.constant 0 : index
    %c0_31 = arith.constant 0 : index
    %39 = vector.load %arg8[%c1_29, %c0_30, %c0_31] : memref<9x128x128xbf16, #tpu.memory_space<vmem>>, vector<1x128x128xbf16>
    %40 = vector.shape_cast %39 : vector<1x128x128xbf16> to vector<128x128xbf16>
    %cst_32 = arith.constant dense<0.000000e+00> : vector<8x128xf32>
    %41 = tpu.matmul %38, %40, %cst_32 {dimension_numbers = #tpu.dot_dimension_numbers<[1], [0], [0], [1], [0, 0, 1, 1], [], []>} : vector<8x128xbf16>, vector<128x128xbf16>, vector<8x128xf32> -> vector<8x128xf32>
    %c0_33 = arith.constant 0 : index
    %c0_34 = arith.constant 0 : index
    %42 = vector.load %arg11[%c0_33, %c0_34] : memref<8x128xf32, #tpu.memory_space<vmem>>, vector<8x128xf32>
    %43 = arith.addf %42, %41 : vector<8x128xf32>
    %c0_35 = arith.constant 0 : index
    %c0_36 = arith.constant 0 : index
    %44 = vector.load %arg11[%c0_35, %c0_36] : memref<8x128xf32, #tpu.memory_space<vmem>>, vector<8x128xf32>
    tpu.vector_store %arg11[%c0_35, %c0_36], %43 {strides = array<i32>} : memref<8x128xf32, #tpu.memory_space<vmem>>, vector<8x128xf32>,
    %c2 = arith.constant 2 : index
    %c0_37 = arith.constant 0 : index
    %45 = vector.load %arg10[%c2, %c0_37] : memref<24x128xf32, #tpu.memory_space<vmem>>, vector<8x128xf32>
    %46 = arith.truncf %45 : vector<8x128xf32> to vector<8x128xbf16>
    %c2_38 = arith.constant 2 : index
    %c0_39 = arith.constant 0 : index
    %c0_40 = arith.constant 0 : index
    %47 = vector.load %arg8[%c2_38, %c0_39, %c0_40] : memref<9x128x128xbf16, #tpu.memory_space<vmem>>, vector<1x128x128xbf16>
    %48 = vector.shape_cast %47 : vector<1x128x128xbf16> to vector<128x128xbf16>
    %cst_41 = arith.constant dense<0.000000e+00> : vector<8x128xf32>
    %49 = tpu.matmul %46, %48, %cst_41 {dimension_numbers = #tpu.dot_dimension_numbers<[1], [0], [0], [1], [0, 0, 1, 1], [], []>} : vector<8x128xbf16>, vector<128x128xbf16>, vector<8x128xf32> -> vector<8x128xf32>
    %c0_42 = arith.constant 0 : index
    %c0_43 = arith.constant 0 : index
    %50 = vector.load %arg11[%c0_42, %c0_43] : memref<8x128xf32, #tpu.memory_space<vmem>>, vector<8x128xf32>
    %51 = arith.addf %50, %49 : vector<8x128xf32>
    %c0_44 = arith.constant 0 : index
    %c0_45 = arith.constant 0 : index
    %52 = vector.load %arg11[%c0_44, %c0_45] : memref<8x128xf32, #tpu.memory_space<vmem>>, vector<8x128xf32>
    tpu.vector_store %arg11[%c0_44, %c0_45], %51 {strides = array<i32>} : memref<8x128xf32, #tpu.memory_space<vmem>>, vector<8x128xf32>,
    %c4 = arith.constant 4 : index
    %c0_46 = arith.constant 0 : index
    %53 = vector.load %arg10[%c4, %c0_46] : memref<24x128xf32, #tpu.memory_space<vmem>>, vector<8x128xf32>
    %54 = arith.truncf %53 : vector<8x128xf32> to vector<8x128xbf16>
    %c3 = arith.constant 3 : index
    %c0_47 = arith.constant 0 : index
    %c0_48 = arith.constant 0 : index
    %55 = vector.load %arg8[%c3, %c0_47, %c0_48] : memref<9x128x128xbf16, #tpu.memory_space<vmem>>, vector<1x128x128xbf16>
    %56 = vector.shape_cast %55 : vector<1x128x128xbf16> to vector<128x128xbf16>
    %cst_49 = arith.constant dense<0.000000e+00> : vector<8x128xf32>
    %57 = tpu.matmul %54, %56, %cst_49 {dimension_numbers = #tpu.dot_dimension_numbers<[1], [0], [0], [1], [0, 0, 1, 1], [], []>} : vector<8x128xbf16>, vector<128x128xbf16>, vector<8x128xf32> -> vector<8x128xf32>
    %c0_50 = arith.constant 0 : index
    %c0_51 = arith.constant 0 : index
    %58 = vector.load %arg11[%c0_50, %c0_51] : memref<8x128xf32, #tpu.memory_space<vmem>>, vector<8x128xf32>
    %59 = arith.addf %58, %57 : vector<8x128xf32>
    %c0_52 = arith.constant 0 : index
    %c0_53 = arith.constant 0 : index
    %60 = vector.load %arg11[%c0_52, %c0_53] : memref<8x128xf32, #tpu.memory_space<vmem>>, vector<8x128xf32>
    tpu.vector_store %arg11[%c0_52, %c0_53], %59 {strides = array<i32>} : memref<8x128xf32, #tpu.memory_space<vmem>>, vector<8x128xf32>,
    %c5_54 = arith.constant 5 : index
    %c0_55 = arith.constant 0 : index
    %61 = vector.load %arg10[%c5_54, %c0_55] : memref<24x128xf32, #tpu.memory_space<vmem>>, vector<8x128xf32>
    %62 = arith.truncf %61 : vector<8x128xf32> to vector<8x128xbf16>
    %c4_56 = arith.constant 4 : index
    %c0_57 = arith.constant 0 : index
    %c0_58 = arith.constant 0 : index
    %63 = vector.load %arg8[%c4_56, %c0_57, %c0_58] : memref<9x128x128xbf16, #tpu.memory_space<vmem>>, vector<1x128x128xbf16>
    %64 = vector.shape_cast %63 : vector<1x128x128xbf16> to vector<128x128xbf16>
    %cst_59 = arith.constant dense<0.000000e+00> : vector<8x128xf32>
    %65 = tpu.matmul %62, %64, %cst_59 {dimension_numbers = #tpu.dot_dimension_numbers<[1], [0], [0], [1], [0, 0, 1, 1], [], []>} : vector<8x128xbf16>, vector<128x128xbf16>, vector<8x128xf32> -> vector<8x128xf32>
    %c0_60 = arith.constant 0 : index
    %c0_61 = arith.constant 0 : index
    %66 = vector.load %arg11[%c0_60, %c0_61] : memref<8x128xf32, #tpu.memory_space<vmem>>, vector<8x128xf32>
    %67 = arith.addf %66, %65 : vector<8x128xf32>
    %c0_62 = arith.constant 0 : index
    %c0_63 = arith.constant 0 : index
    %68 = vector.load %arg11[%c0_62, %c0_63] : memref<8x128xf32, #tpu.memory_space<vmem>>, vector<8x128xf32>
    tpu.vector_store %arg11[%c0_62, %c0_63], %67 {strides = array<i32>} : memref<8x128xf32, #tpu.memory_space<vmem>>, vector<8x128xf32>,
    %c6 = arith.constant 6 : index
    %c0_64 = arith.constant 0 : index
    %69 = vector.load %arg10[%c6, %c0_64] : memref<24x128xf32, #tpu.memory_space<vmem>>, vector<8x128xf32>
    %70 = arith.truncf %69 : vector<8x128xf32> to vector<8x128xbf16>
    %c5_65 = arith.constant 5 : index
    %c0_66 = arith.constant 0 : index
    %c0_67 = arith.constant 0 : index
    %71 = vector.load %arg8[%c5_65, %c0_66, %c0_67] : memref<9x128x128xbf16, #tpu.memory_space<vmem>>, vector<1x128x128xbf16>
    %72 = vector.shape_cast %71 : vector<1x128x128xbf16> to vector<128x128xbf16>
    %cst_68 = arith.constant dense<0.000000e+00> : vector<8x128xf32>
    %73 = tpu.matmul %70, %72, %cst_68 {dimension_numbers = #tpu.dot_dimension_numbers<[1], [0], [0], [1], [0, 0, 1, 1], [], []>} : vector<8x128xbf16>, vector<128x128xbf16>, vector<8x128xf32> -> vector<8x128xf32>
    %c0_69 = arith.constant 0 : index
    %c0_70 = arith.constant 0 : index
    %74 = vector.load %arg11[%c0_69, %c0_70] : memref<8x128xf32, #tpu.memory_space<vmem>>, vector<8x128xf32>
    %75 = arith.addf %74, %73 : vector<8x128xf32>
    %c0_71 = arith.constant 0 : index
    %c0_72 = arith.constant 0 : index
    %76 = vector.load %arg11[%c0_71, %c0_72] : memref<8x128xf32, #tpu.memory_space<vmem>>, vector<8x128xf32>
    tpu.vector_store %arg11[%c0_71, %c0_72], %75 {strides = array<i32>} : memref<8x128xf32, #tpu.memory_space<vmem>>, vector<8x128xf32>,
    %c8 = arith.constant 8 : index
    %c0_73 = arith.constant 0 : index
    %77 = vector.load %arg10[%c8, %c0_73] : memref<24x128xf32, #tpu.memory_space<vmem>>, vector<8x128xf32>
    %78 = arith.truncf %77 : vector<8x128xf32> to vector<8x128xbf16>
    %c6_74 = arith.constant 6 : index
    %c0_75 = arith.constant 0 : index
    %c0_76 = arith.constant 0 : index
    %79 = vector.load %arg8[%c6_74, %c0_75, %c0_76] : memref<9x128x128xbf16, #tpu.memory_space<vmem>>, vector<1x128x128xbf16>
    %80 = vector.shape_cast %79 : vector<1x128x128xbf16> to vector<128x128xbf16>
    %cst_77 = arith.constant dense<0.000000e+00> : vector<8x128xf32>
    %81 = tpu.matmul %78, %80, %cst_77 {dimension_numbers = #tpu.dot_dimension_numbers<[1], [0], [0], [1], [0, 0, 1, 1], [], []>} : vector<8x128xbf16>, vector<128x128xbf16>, vector<8x128xf32> -> vector<8x128xf32>
    %c0_78 = arith.constant 0 : index
    %c0_79 = arith.constant 0 : index
    %82 = vector.load %arg11[%c0_78, %c0_79] : memref<8x128xf32, #tpu.memory_space<vmem>>, vector<8x128xf32>
    %83 = arith.addf %82, %81 : vector<8x128xf32>
    %c0_80 = arith.constant 0 : index
    %c0_81 = arith.constant 0 : index
    %84 = vector.load %arg11[%c0_80, %c0_81] : memref<8x128xf32, #tpu.memory_space<vmem>>, vector<8x128xf32>
    tpu.vector_store %arg11[%c0_80, %c0_81], %83 {strides = array<i32>} : memref<8x128xf32, #tpu.memory_space<vmem>>, vector<8x128xf32>,
    %c9_82 = arith.constant 9 : index
    %c0_83 = arith.constant 0 : index
    %85 = vector.load %arg10[%c9_82, %c0_83] : memref<24x128xf32, #tpu.memory_space<vmem>>, vector<8x128xf32>
    %86 = arith.truncf %85 : vector<8x128xf32> to vector<8x128xbf16>
    %c7 = arith.constant 7 : index
    %c0_84 = arith.constant 0 : index
    %c0_85 = arith.constant 0 : index
    %87 = vector.load %arg8[%c7, %c0_84, %c0_85] : memref<9x128x128xbf16, #tpu.memory_space<vmem>>, vector<1x128x128xbf16>
    %88 = vector.shape_cast %87 : vector<1x128x128xbf16> to vector<128x128xbf16>
    %cst_86 = arith.constant dense<0.000000e+00> : vector<8x128xf32>
    %89 = tpu.matmul %86, %88, %cst_86 {dimension_numbers = #tpu.dot_dimension_numbers<[1], [0], [0], [1], [0, 0, 1, 1], [], []>} : vector<8x128xbf16>, vector<128x128xbf16>, vector<8x128xf32> -> vector<8x128xf32>
    %c0_87 = arith.constant 0 : index
    %c0_88 = arith.constant 0 : index
    %90 = vector.load %arg11[%c0_87, %c0_88] : memref<8x128xf32, #tpu.memory_space<vmem>>, vector<8x128xf32>
    %91 = arith.addf %90, %89 : vector<8x128xf32>
    %c0_89 = arith.constant 0 : index
    %c0_90 = arith.constant 0 : index
    %92 = vector.load %arg11[%c0_89, %c0_90] : memref<8x128xf32, #tpu.memory_space<vmem>>, vector<8x128xf32>
    tpu.vector_store %arg11[%c0_89, %c0_90], %91 {strides = array<i32>} : memref<8x128xf32, #tpu.memory_space<vmem>>, vector<8x128xf32>,
    %c10 = arith.constant 10 : index
    %c0_91 = arith.constant 0 : index
    %93 = vector.load %arg10[%c10, %c0_91] : memref<24x128xf32, #tpu.memory_space<vmem>>, vector<8x128xf32>
    %94 = arith.truncf %93 : vector<8x128xf32> to vector<8x128xbf16>
    %c8_92 = arith.constant 8 : index
    %c0_93 = arith.constant 0 : index
    %c0_94 = arith.constant 0 : index
    %95 = vector.load %arg8[%c8_92, %c0_93, %c0_94] : memref<9x128x128xbf16, #tpu.memory_space<vmem>>, vector<1x128x128xbf16>
    %96 = vector.shape_cast %95 : vector<1x128x128xbf16> to vector<128x128xbf16>
    %cst_95 = arith.constant dense<0.000000e+00> : vector<8x128xf32>
    %97 = tpu.matmul %94, %96, %cst_95 {dimension_numbers = #tpu.dot_dimension_numbers<[1], [0], [0], [1], [0, 0, 1, 1], [], []>} : vector<8x128xbf16>, vector<128x128xbf16>, vector<8x128xf32> -> vector<8x128xf32>
    %c0_96 = arith.constant 0 : index
    %c0_97 = arith.constant 0 : index
    %98 = vector.load %arg11[%c0_96, %c0_97] : memref<8x128xf32, #tpu.memory_space<vmem>>, vector<8x128xf32>
    %99 = arith.addf %98, %97 : vector<8x128xf32>
    %c0_98 = arith.constant 0 : index
    %c0_99 = arith.constant 0 : index
    %100 = vector.load %arg11[%c0_98, %c0_99] : memref<8x128xf32, #tpu.memory_space<vmem>>, vector<8x128xf32>
    tpu.vector_store %arg11[%c0_98, %c0_99], %99 {strides = array<i32>} : memref<8x128xf32, #tpu.memory_space<vmem>>, vector<8x128xf32>,
    %c0_100 = arith.constant 0 : index
    %c0_101 = arith.constant 0 : index
    %101 = vector.load %arg9[%c0_100, %c0_101] : memref<8x128xf32, #tpu.memory_space<vmem>>, vector<2x128xf32>
    %c0_102 = arith.constant 0 : index
    %c0_103 = arith.constant 0 : index
    %102 = vector.load %arg11[%c0_102, %c0_103] : memref<8x128xf32, #tpu.memory_space<vmem>>, vector<2x128xf32>
    %103 = arith.addf %101, %102 : vector<2x128xf32>
    %c0_104 = arith.constant 0 : index
    %c0_105 = arith.constant 0 : index
    %104 = vector.load %arg9[%c0_104, %c0_105] : memref<8x128xf32, #tpu.memory_space<vmem>>, vector<2x128xf32>
    tpu.vector_store %arg9[%c0_104, %c0_105], %103 {strides = array<i32>} : memref<8x128xf32, #tpu.memory_space<vmem>>, vector<2x128xf32>,
    %c2_106 = arith.constant 2 : index
    %c0_107 = arith.constant 0 : index
    %105 = vector.load %arg9[%c2_106, %c0_107] : memref<8x128xf32, #tpu.memory_space<vmem>>, vector<2x128xf32>
    %c4_108 = arith.constant 4 : index
    %c0_109 = arith.constant 0 : index
    %106 = vector.load %arg11[%c4_108, %c0_109] : memref<8x128xf32, #tpu.memory_space<vmem>>, vector<2x128xf32>
    %107 = arith.addf %105, %106 : vector<2x128xf32>
    %c2_110 = arith.constant 2 : index
    %c0_111 = arith.constant 0 : index
    %108 = vector.load %arg9[%c2_110, %c0_111] : memref<8x128xf32, #tpu.memory_space<vmem>>, vector<2x128xf32>
    tpu.vector_store %arg9[%c2_110, %c0_111], %107 {strides = array<i32>} : memref<8x128xf32, #tpu.memory_space<vmem>>, vector<2x128xf32>,
    return
  }
  func.func @transform_0(%arg0: i32, %arg1: i32) -> (i32, i32) {
    %c0_i32 = arith.constant 0 : i32
    %c0_i32_0 = arith.constant 0 : i32
    return %arg0, %c0_i32 : i32, i32
  }
  func.func @transform_1(%arg0: i32, %arg1: i32) -> (i32, i32, i32) {
    %c0_i32 = arith.constant 0 : i32
    %c0_i32_0 = arith.constant 0 : i32
    %c0_i32_1 = arith.constant 0 : i32
    return %arg1, %c0_i32, %c0_i32_0 : i32, i32, i32
  }
  func.func @transform_2(%arg0: i32, %arg1: i32) -> (i32, i32, i32) {
    %c0_i32 = arith.constant 0 : i32
    %c0_i32_0 = arith.constant 0 : i32
    %c0_i32_1 = arith.constant 0 : i32
    return %arg1, %c0_i32, %c0_i32_0 : i32, i32, i32
  }
  func.func @transform_3(%arg0: i32, %arg1: i32) -> (i32, i32) {
    %c0_i32 = arith.constant 0 : i32
    %c0_i32_0 = arith.constant 0 : i32
    return %arg1, %c0_i32 : i32, i32
  }
  func.func @transform_4(%arg0: i32, %arg1: i32) -> (i32, i32, i32) {
    %c0_i32 = arith.constant 0 : i32
    %c0_i32_0 = arith.constant 0 : i32
    %c0_i32_1 = arith.constant 0 : i32
    return %arg1, %c0_i32, %c0_i32_0 : i32, i32, i32
  }
  func.func @transform_5(%arg0: i32, %arg1: i32) -> (i32, i32, i32) {
    %c0_i32 = arith.constant 0 : i32
    %c0_i32_0 = arith.constant 0 : i32
    %c0_i32_1 = arith.constant 0 : i32
    return %arg1, %c0_i32, %c0_i32_0 : i32, i32, i32
  }
  func.func @transform_6(%arg0: i32, %arg1: i32) -> (i32, i32, i32) {
    %c0_i32 = arith.constant 0 : i32
    %c0_i32_0 = arith.constant 0 : i32
    %c0_i32_1 = arith.constant 0 : i32
    return %arg1, %c0_i32, %c0_i32_0 : i32, i32, i32
  }
  func.func @transform_7(%arg0: i32, %arg1: i32) -> (i32, i32) {
    %c0_i32 = arith.constant 0 : i32
    %c0_i32_0 = arith.constant 0 : i32
    return %arg0, %c0_i32 : i32, i32
  }
}

module attributes {stable_mosaic.version = 11 : i64} {
  func.func @_head_kernel(%arg0: i32, %arg1: memref<2x48xf32, #tpu.memory_space<vmem>>, %arg2: memref<48x64xbf16, #tpu.memory_space<vmem>>, %arg3: memref<1x48xf32, #tpu.memory_space<vmem>>, %arg4: memref<1x48xf32, #tpu.memory_space<vmem>>, %arg5: memref<1x64xf32, #tpu.memory_space<vmem>>, %arg6: memref<1x64xf32, #tpu.memory_space<vmem>>, %arg7: memref<2x64xf32, #tpu.memory_space<vmem>>) attributes {dimension_semantics = [#tpu.dimension_semantics<arbitrary>], iteration_bounds = array<i64: 1>, scalar_prefetch = 0 : i64, scratch_operands = 0 : i64, tpu.core_type = #tpu.core_type<tc>, window_params = [{pipeline_mode = #tpu.pipeline_mode<synchronous>, transform_indices = @transform_0, window_bounds = array<i64: 2, 48>}, {pipeline_mode = #tpu.pipeline_mode<synchronous>, transform_indices = @transform_1, window_bounds = array<i64: 48, 64>}, {pipeline_mode = #tpu.pipeline_mode<synchronous>, transform_indices = @transform_2, window_bounds = array<i64: 1, 48>}, {pipeline_mode = #tpu.pipeline_mode<synchronous>, transform_indices = @transform_3, window_bounds = array<i64: 1, 48>}, {pipeline_mode = #tpu.pipeline_mode<synchronous>, transform_indices = @transform_4, window_bounds = array<i64: 1, 64>}, {pipeline_mode = #tpu.pipeline_mode<synchronous>, transform_indices = @transform_5, window_bounds = array<i64: 1, 64>}, {pipeline_mode = #tpu.pipeline_mode<synchronous>, transform_indices = @transform_6, window_bounds = array<i64: 2, 64>}]} {
    %c0 = arith.constant 0 : index
    %c0_0 = arith.constant 0 : index
    %0 = vector.load %arg1[%c0, %c0_0] : memref<2x48xf32, #tpu.memory_space<vmem>>, vector<2x48xf32>
    %1 = arith.truncf %0 : vector<2x48xf32> to vector<2x48xbf16>
    %c0_1 = arith.constant 0 : index
    %c0_2 = arith.constant 0 : index
    %2 = vector.load %arg2[%c0_1, %c0_2] : memref<48x64xbf16, #tpu.memory_space<vmem>>, vector<48x64xbf16>
    %cst = arith.constant dense<0.000000e+00> : vector<2x64xf32>
    %3 = tpu.matmul %1, %2, %cst {dimension_numbers = #tpu.dot_dimension_numbers<[1], [0], [0], [1], [0, 0, 1, 1], [], []>} : vector<2x48xbf16>, vector<48x64xbf16>, vector<2x64xf32> -> vector<2x64xf32>
    %c0_3 = arith.constant 0 : index
    %c0_4 = arith.constant 0 : index
    %4 = vector.load %arg5[%c0_3, %c0_4] : memref<1x64xf32, #tpu.memory_space<vmem>>, vector<1x64xf32>
    %5 = vector.broadcast %4 : vector<1x64xf32> to vector<2x64xf32>
    %6 = arith.mulf %3, %5 : vector<2x64xf32>
    %c0_5 = arith.constant 0 : index
    %c0_6 = arith.constant 0 : index
    %7 = vector.load %arg6[%c0_5, %c0_6] : memref<1x64xf32, #tpu.memory_space<vmem>>, vector<1x64xf32>
    %8 = vector.broadcast %7 : vector<1x64xf32> to vector<2x64xf32>
    %9 = arith.addf %6, %8 : vector<2x64xf32>
    %c0_7 = arith.constant 0 : index
    %c0_8 = arith.constant 0 : index
    %10 = vector.load %arg7[%c0_7, %c0_8] : memref<2x64xf32, #tpu.memory_space<vmem>>, vector<2x64xf32>
    tpu.vector_store %arg7[%c0_7, %c0_8], %9 {strides = array<i32>} : memref<2x64xf32, #tpu.memory_space<vmem>>, vector<2x64xf32>,
    return
  }
  func.func @transform_0(%arg0: i32) -> (i32, i32) {
    %c0_i32 = arith.constant 0 : i32
    %c0_i32_0 = arith.constant 0 : i32
    %c0_i32_1 = arith.constant 0 : i32
    return %c0_i32, %c0_i32_0 : i32, i32
  }
  func.func @transform_1(%arg0: i32) -> (i32, i32) {
    %c0_i32 = arith.constant 0 : i32
    %c0_i32_0 = arith.constant 0 : i32
    %c0_i32_1 = arith.constant 0 : i32
    return %c0_i32, %c0_i32_0 : i32, i32
  }
  func.func @transform_2(%arg0: i32) -> (i32, i32) {
    %c0_i32 = arith.constant 0 : i32
    %c0_i32_0 = arith.constant 0 : i32
    %c0_i32_1 = arith.constant 0 : i32
    return %c0_i32, %c0_i32_0 : i32, i32
  }
  func.func @transform_3(%arg0: i32) -> (i32, i32) {
    %c0_i32 = arith.constant 0 : i32
    %c0_i32_0 = arith.constant 0 : i32
    %c0_i32_1 = arith.constant 0 : i32
    return %c0_i32, %c0_i32_0 : i32, i32
  }
  func.func @transform_4(%arg0: i32) -> (i32, i32) {
    %c0_i32 = arith.constant 0 : i32
    %c0_i32_0 = arith.constant 0 : i32
    %c0_i32_1 = arith.constant 0 : i32
    return %c0_i32, %c0_i32_0 : i32, i32
  }
  func.func @transform_5(%arg0: i32) -> (i32, i32) {
    %c0_i32 = arith.constant 0 : i32
    %c0_i32_0 = arith.constant 0 : i32
    %c0_i32_1 = arith.constant 0 : i32
    return %c0_i32, %c0_i32_0 : i32, i32
  }
  func.func @transform_6(%arg0: i32) -> (i32, i32) {
    %c0_i32 = arith.constant 0 : i32
    %c0_i32_0 = arith.constant 0 : i32
    %c0_i32_1 = arith.constant 0 : i32
    return %c0_i32, %c0_i32_0 : i32, i32
  }
}

module attributes {stable_mosaic.version = 11 : i64} {
  func.func @_head_kernel(%arg0: i32, %arg1: memref<2x64xf32, #tpu.memory_space<vmem>>, %arg2: memref<64x16xbf16, #tpu.memory_space<vmem>>, %arg3: memref<1x64xf32, #tpu.memory_space<vmem>>, %arg4: memref<1x64xf32, #tpu.memory_space<vmem>>, %arg5: memref<1x16xf32, #tpu.memory_space<vmem>>, %arg6: memref<1x16xf32, #tpu.memory_space<vmem>>, %arg7: memref<2x16xf32, #tpu.memory_space<vmem>>) attributes {dimension_semantics = [#tpu.dimension_semantics<arbitrary>], iteration_bounds = array<i64: 1>, scalar_prefetch = 0 : i64, scratch_operands = 0 : i64, tpu.core_type = #tpu.core_type<tc>, window_params = [{pipeline_mode = #tpu.pipeline_mode<synchronous>, transform_indices = @transform_0, window_bounds = array<i64: 2, 64>}, {pipeline_mode = #tpu.pipeline_mode<synchronous>, transform_indices = @transform_1, window_bounds = array<i64: 64, 16>}, {pipeline_mode = #tpu.pipeline_mode<synchronous>, transform_indices = @transform_2, window_bounds = array<i64: 1, 64>}, {pipeline_mode = #tpu.pipeline_mode<synchronous>, transform_indices = @transform_3, window_bounds = array<i64: 1, 64>}, {pipeline_mode = #tpu.pipeline_mode<synchronous>, transform_indices = @transform_4, window_bounds = array<i64: 1, 16>}, {pipeline_mode = #tpu.pipeline_mode<synchronous>, transform_indices = @transform_5, window_bounds = array<i64: 1, 16>}, {pipeline_mode = #tpu.pipeline_mode<synchronous>, transform_indices = @transform_6, window_bounds = array<i64: 2, 16>}]} {
    %c0 = arith.constant 0 : index
    %c0_0 = arith.constant 0 : index
    %0 = vector.load %arg1[%c0, %c0_0] : memref<2x64xf32, #tpu.memory_space<vmem>>, vector<2x64xf32>
    %c0_1 = arith.constant 0 : index
    %c0_2 = arith.constant 0 : index
    %1 = vector.load %arg3[%c0_1, %c0_2] : memref<1x64xf32, #tpu.memory_space<vmem>>, vector<1x64xf32>
    %2 = vector.broadcast %1 : vector<1x64xf32> to vector<2x64xf32>
    %3 = arith.mulf %0, %2 : vector<2x64xf32>
    %c0_3 = arith.constant 0 : index
    %c0_4 = arith.constant 0 : index
    %4 = vector.load %arg4[%c0_3, %c0_4] : memref<1x64xf32, #tpu.memory_space<vmem>>, vector<1x64xf32>
    %5 = vector.broadcast %4 : vector<1x64xf32> to vector<2x64xf32>
    %6 = arith.addf %3, %5 : vector<2x64xf32>
    %7 = arith.truncf %6 : vector<2x64xf32> to vector<2x64xbf16>
    %c0_5 = arith.constant 0 : index
    %c0_6 = arith.constant 0 : index
    %8 = vector.load %arg2[%c0_5, %c0_6] : memref<64x16xbf16, #tpu.memory_space<vmem>>, vector<64x16xbf16>
    %cst = arith.constant dense<0.000000e+00> : vector<2x16xf32>
    %9 = tpu.matmul %7, %8, %cst {dimension_numbers = #tpu.dot_dimension_numbers<[1], [0], [0], [1], [0, 0, 1, 1], [], []>} : vector<2x64xbf16>, vector<64x16xbf16>, vector<2x16xf32> -> vector<2x16xf32>
    %c0_7 = arith.constant 0 : index
    %c0_8 = arith.constant 0 : index
    %10 = vector.load %arg5[%c0_7, %c0_8] : memref<1x16xf32, #tpu.memory_space<vmem>>, vector<1x16xf32>
    %11 = vector.broadcast %10 : vector<1x16xf32> to vector<2x16xf32>
    %12 = arith.mulf %9, %11 : vector<2x16xf32>
    %c0_9 = arith.constant 0 : index
    %c0_10 = arith.constant 0 : index
    %13 = vector.load %arg6[%c0_9, %c0_10] : memref<1x16xf32, #tpu.memory_space<vmem>>, vector<1x16xf32>
    %14 = vector.broadcast %13 : vector<1x16xf32> to vector<2x16xf32>
    %15 = arith.addf %12, %14 : vector<2x16xf32>
    %c0_11 = arith.constant 0 : index
    %c0_12 = arith.constant 0 : index
    %16 = vector.load %arg7[%c0_11, %c0_12] : memref<2x16xf32, #tpu.memory_space<vmem>>, vector<2x16xf32>
    tpu.vector_store %arg7[%c0_11, %c0_12], %15 {strides = array<i32>} : memref<2x16xf32, #tpu.memory_space<vmem>>, vector<2x16xf32>,
    return
  }
  func.func @transform_0(%arg0: i32) -> (i32, i32) {
    %c0_i32 = arith.constant 0 : i32
    %c0_i32_0 = arith.constant 0 : i32
    %c0_i32_1 = arith.constant 0 : i32
    return %c0_i32, %c0_i32_0 : i32, i32
  }
  func.func @transform_1(%arg0: i32) -> (i32, i32) {
    %c0_i32 = arith.constant 0 : i32
    %c0_i32_0 = arith.constant 0 : i32
    %c0_i32_1 = arith.constant 0 : i32
    return %c0_i32, %c0_i32_0 : i32, i32
  }
  func.func @transform_2(%arg0: i32) -> (i32, i32) {
    %c0_i32 = arith.constant 0 : i32
    %c0_i32_0 = arith.constant 0 : i32
    %c0_i32_1 = arith.constant 0 : i32
    return %c0_i32, %c0_i32_0 : i32, i32
  }
  func.func @transform_3(%arg0: i32) -> (i32, i32) {
    %c0_i32 = arith.constant 0 : i32
    %c0_i32_0 = arith.constant 0 : i32
    %c0_i32_1 = arith.constant 0 : i32
    return %c0_i32, %c0_i32_0 : i32, i32
  }
  func.func @transform_4(%arg0: i32) -> (i32, i32) {
    %c0_i32 = arith.constant 0 : i32
    %c0_i32_0 = arith.constant 0 : i32
    %c0_i32_1 = arith.constant 0 : i32
    return %c0_i32, %c0_i32_0 : i32, i32
  }
  func.func @transform_5(%arg0: i32) -> (i32, i32) {
    %c0_i32 = arith.constant 0 : i32
    %c0_i32_0 = arith.constant 0 : i32
    %c0_i32_1 = arith.constant 0 : i32
    return %c0_i32, %c0_i32_0 : i32, i32
  }
  func.func @transform_6(%arg0: i32) -> (i32, i32) {
    %c0_i32 = arith.constant 0 : i32
    %c0_i32_0 = arith.constant 0 : i32
    %c0_i32_1 = arith.constant 0 : i32
    return %c0_i32, %c0_i32_0 : i32, i32
  }
}

</mosaic_0001>

<bundles_post_ra>
// kernel: densenet_forward.12
= control target key start
LH: loop header
LB: loop body
LE: loop exit
PB: predicated region body
PF: predicated region fallthrough
CT: control target
= control target key end

     0   :  { %s831_s15 = smov 0   ;;  %s1021_s0 = inlined_call_operand.vmem [shape: f32[512,128], index: 0, kind: input, shape index: {}]   ;;  %s1022_s1 = inlined_call_operand.vmem [shape: f32[1,128], index: 1, kind: input, shape index: {}]   ;;  %s1023_s2 = inlined_call_operand.vmem [shape: f32[1,128], index: 2, kind: input, shape index: {}]   ;;  %s1024_s3 = inlined_call_operand.vmem [shape: bf16[128,128], index: 3, kind: input, shape index: {}]   ;;  %s1025_s4 = inlined_call_operand.vmem [shape: f32[512,128], index: 4, kind: output, shape index: {}]  }
   0x1 LB: > { %s673_s16 = sadd.s32 4294967295, %s804_s15   ;;  %p677_p0 = scmp.ge.s32.totalorder %s804_s15, 1  ;;  %s804_s15 = sphi %s831_s15, %s14_s15  }
   0x2   : > { %p163_p1 = scmp.lt.s32.totalorder %s804_s15, 3 }
   0x4   : > { %p164_p2 = pnand %p677_p0, %p163_p1 }
   0x5   : > { %v790_v0 = vld [vmem:[%s1024_s3] sm:$0xff] (!%p164_p2)   ;;  %s678_s19 = sshll.u32 (!%p164_p2), %s673_s16, 5  ;;  %v791_v1 = vld [vmem:[%s1024_s3 + $0x8] sm:$0xff] (!%p164_p2)   ;;  %v792_v2 = vld [vmem:[%s1024_s3 + $0x10] sm:$0xff] (!%p164_p2)  }
   0x6   : > { %167 = sbr.rel (%p164_p2) target bundleno = 278 (0x116), region = 36  ;;  %p190_p3 = scmp.lt.s32.totalorder (!%p164_p2), %s678_s19, 63  ;;  %718 = vmatprep.subr.bf16.mxu0 (!%p164_p2), %v790_v0  ;;  %766 = vmatprep.subr.bf16.mxu1 (!%p164_p2), %v790_v0  ;;  %v793_v3 = vld [vmem:[%s1024_s3 + $0x18] sm:$0xff] (!%p164_p2)   ;;  %v866_v6 = vld [vmem:[%s1022_s1] ss:$0 sm:$0xff] (!%p164_p2)  ;;  %v795_v30 = vld [vmem:[%s1024_s3 + $0x28] sm:$0xff] (!%p164_p2)  }
   0x7   : > { %719 = vmatpush3.bf16.msra.mxu0 (!%p164_p2), %v790_v0  ;;  %774 = vmatpush3.bf16.msra.mxu1 (!%p164_p2), %v790_v0  ;;  %v873_v9 = vld [vmem:[%s1023_s2] ss:$0 sm:$0xff] (!%p164_p2)  ;;  %v796_v42 = vld [vmem:[%s1024_s3 + $0x30] sm:$0xff] (!%p164_p2)   ;;  %v797_v60 = vld [vmem:[%s1024_s3 + $0x38] sm:$0xff] (!%p164_p2)  }
   0x8   : > { %720 = vmatprep.subr.bf16.mxu0 (!%p164_p2), %v791_v1  ;;  %767 = vmatprep.subr.bf16.mxu1 (!%p164_p2), %v791_v1  ;;  %v794_v16 = vld [vmem:[%s1024_s3 + $0x20] sm:$0xff] (!%p164_p2)  }
   0xb   : > { %721 = vmatpush3.bf16.msra.mxu0 (!%p164_p2), %v791_v1  ;;  %775 = vmatpush3.bf16.msra.mxu1 (!%p164_p2), %v791_v1 }
   0xc   : > { %722 = vmatprep.subr.bf16.mxu0 (!%p164_p2), %v792_v2  ;;  %768 = vmatprep.subr.bf16.mxu1 (!%p164_p2), %v792_v2 }
   0xd   : > { %s1027_s19 = smov (!%p190_p3, %s678_s19), 63 }
   0xe   : > { %s679_s24 = sshll.u32 %s1027_s19, 3 }
   0xf   : > { %s856_s27 = scalar_lea.vmem %s1021_s0, %s679_s24  ;;  %723 = vmatpush3.bf16.msra.mxu0 %v792_v2  ;;  %776 = vmatpush3.bf16.msra.mxu1 %v792_v2  ;;  %s984_s20 = scalar_lea.vmem %s1025_s4, %s679_s24 }
  0x10   : > { %v202_v4 = vld [vmem:[%s856_s27] sm:$0xff]  ;;  %v203_v5 = vld [vmem:[%s856_s27 + $0x8] sm:$0xff]  ;;  %724 = vmatprep.subr.bf16.mxu0 %v793_v3  ;;  %769 = vmatprep.subr.bf16.mxu1 %v793_v3  ;;  %v204_v21 = vld [vmem:[%s856_s27 + $0x10] sm:$0xff] }
  0x11   : > { %v241_v7 = vmul.f32 %v866_v6, %v202_v4  ;;  %v242_v8 = vmul.f32 %v866_v6, %v203_v5  ;;  %v218_v10 = vld [vmem:[%s856_s27 + $0x80] sm:$0xff]  ;;  %v219_v11 = vld [vmem:[%s856_s27 + $0x88] sm:$0xff]  ;;  %v205_v24 = vld [vmem:[%s856_s27 + $0x18] sm:$0xff]  ;;  %v243_v32 = vmul.f32 %v866_v6, %v204_v21 }
  0x12   : > { %v257_v12 = vmul.f32 %v866_v6, %v218_v10  ;;  %v258_v13 = vmul.f32 %v866_v6, %v219_v11  ;;  %v220_v25 = vld [vmem:[%s856_s27 + $0x90] sm:$0xff]  ;;  %v221_v26 = vld [vmem:[%s856_s27 + $0x98] sm:$0xff]  ;;  %v206_v28 = vld [vmem:[%s856_s27 + $0x20] sm:$0xff]  ;;  %v244_v35 = vmul.f32 %v866_v6, %v205_v24 }
  0x13   : > { %v280_v14 = vadd.f32 %v873_v9, %v241_v7  ;;  %v281_v15 = vadd.f32 %v873_v9, %v242_v8  ;;  %725 = vmatpush3.bf16.msra.mxu0 %v793_v3  ;;  %777 = vmatpush3.bf16.msra.mxu1 %v793_v3  ;;  %v207_v29 = vld [vmem:[%s856_s27 + $0x28] sm:$0xff]  ;;  %v222_v33 = vld [vmem:[%s856_s27 + $0xa0] sm:$0xff]  ;;  %v259_v36 = vmul.f32 %v866_v6, %v220_v25  ;;  %v208_v44 = vld [vmem:[%s856_s27 + $0x30] sm:$0xff] }
  0x14   : > { %v296_v17 = vadd.f32 %v873_v9, %v257_v12  ;;  %v297_v18 = vadd.f32 %v873_v9, %v258_v13  ;;  %726 = vmatprep.subr.bf16.mxu0 %v794_v16  ;;  %770 = vmatprep.subr.bf16.mxu1 %v794_v16  ;;  %v223_v34 = vld [vmem:[%s856_s27 + $0xa8] sm:$0xff]  ;;  %v260_v37 = vmul.f32 %v866_v6, %v221_v26  ;;  %v209_v48 = vld [vmem:[%s856_s27 + $0x38] sm:$0xff]  ;;  %v224_v49 = vld [vmem:[%s856_s27 + $0xb0] sm:$0xff] }
  0x15   : > { %v312_v19 = vmax.f32 %v280_v14, 0.0  ;;  %v313_v20 = vmax.f32 %v281_v15, 0.0  ;;  %v245_v38 = vmul.f32 %v866_v6, %v206_v28  ;;  %v246_v39 = vmul.f32 %v866_v6, %v207_v29  ;;  %v225_v50 = vld [vmem:[%s856_s27 + $0xb8] sm:$0xff]  ;;  %v210_v53 = vld [vmem:[%s856_s27 + $0x40] sm:$0xff]  ;;  %v211_v57 = vld [vmem:[%s856_s27 + $0x48] sm:$0xff] }
  0x16   : > { %v328_v22 = vmax.f32 %v296_v17, 0.0  ;;  %v329_v23 = vmax.f32 %v297_v18, 0.0  ;;  %v261_v40 = vmul.f32 %v866_v6, %v222_v33  ;;  %v262_v41 = vmul.f32 %v866_v6, %v223_v34  ;;  %v226_v58 = vld [vmem:[%s856_s27 + $0xc0] sm:$0xff]  ;;  %v227_v59 = vld [vmem:[%s856_s27 + $0xc8] sm:$0xff]  ;;  %v213_v25 = vld [vmem:[%s856_s27 + $0x58] sm:$0xff] }
  0x17   : > { %v344_v27 = vpack.c.bf16 %v313_v20, %v312_v19  ;;  %727 = vmatpush3.bf16.msra.mxu0 %v794_v16  ;;  %778 = vmatpush3.bf16.msra.mxu1 %v794_v16  ;;  %v282_v43 = vadd.f32 %v873_v9, %v243_v32  ;;  %v283_v45 = vadd.f32 %v873_v9, %v244_v35  ;;  %v212_v20 = vld [vmem:[%s856_s27 + $0x50] sm:$0xff] }
  0x18   : > { %v352_v31 = vpack.c.bf16 %v329_v23, %v328_v22  ;;  %728 = vmatprep.subr.bf16.mxu0 %v795_v30  ;;  %771 = vmatprep.subr.bf16.mxu1 %v795_v30  ;;  %v298_v46 = vadd.f32 %v873_v9, %v259_v36  ;;  %v299_v47 = vadd.f32 %v873_v9, %v260_v37  ;;  %v228_v26 = vld [vmem:[%s856_s27 + $0xd0] sm:$0xff]  ;;  %v215_v36 = vld [vmem:[%s856_s27 + $0x68] sm:$0xff]  ;;  %v230_v37 = vld [vmem:[%s856_s27 + $0xe0] sm:$0xff] }
  0x19   : > { %734 = vmatprep.mubr.bf16.mxu0 %v344_v27  ;;  %v284_v51 = vadd.f32 %v873_v9, %v245_v38  ;;  %v285_v52 = vadd.f32 %v873_v9, %v246_v39  ;;  %v300_v54 = vadd.f32 %v873_v9, %v261_v40  ;;  %v301_v55 = vadd.f32 %v873_v9, %v262_v41  ;;  %v229_v27 = vld [vmem:[%s856_s27 + $0xd8] sm:$0xff]  ;;  %v231_v38 = vld [vmem:[%s856_s27 + $0xe8] sm:$0xff] }
  0x1a   : > { %750 = vmatprep.mubr.bf16.mxu1 %v352_v31  ;;  %v247_v56 = vmul.f32 %v866_v6, %v208_v44  ;;  %v314_v61 = vmax.f32 %v282_v43, 0.0  ;;  %v248_v62 = vmul.f32 %v866_v6, %v209_v48  ;;  %v263_v63 = vmul.f32 %v866_v6, %v224_v49  ;;  %v214_v31 = vld [vmem:[%s856_s27 + $0x60] sm:$0xff] }
  0x1b   : > { %729 = vmatpush3.bf16.msra.mxu0 %v795_v30  ;;  %779 = vmatpush3.bf16.msra.mxu1 %v795_v30  ;;  %v264_v0 = vmul.f32 %v866_v6, %v225_v50  ;;  %v315_v1 = vmax.f32 %v283_v45, 0.0  ;;  %v330_v2 = vmax.f32 %v298_v46, 0.0  ;;  %v331_v3 = vmax.f32 %v299_v47, 0.0 }
  0x1c   : > { %730 = vmatprep.subr.bf16.mxu0 %v796_v42  ;;  %772 = vmatprep.subr.bf16.mxu1 %v796_v42  ;;  %v249_v4 = vmul.f32 %v866_v6, %v210_v53  ;;  %v316_v5 = vmax.f32 %v284_v51, 0.0  ;;  %v250_v7 = vmul.f32 %v866_v6, %v211_v57  ;;  %v265_v8 = vmul.f32 %v866_v6, %v226_v58  ;;  %v216_v58 = vld [vmem:[%s856_s27 + $0x70] sm:$0xff] }
  0x1d   : > { %v266_v10 = vmul.f32 %v866_v6, %v227_v59  ;;  %v317_v11 = vmax.f32 %v285_v52, 0.0  ;;  %v332_v12 = vmax.f32 %v300_v54, 0.0  ;;  %v333_v13 = vmax.f32 %v301_v55, 0.0 }
  0x1e   : > { %v286_v14 = vadd.f32 %v873_v9, %v247_v56  ;;  %v287_v15 = vadd.f32 %v873_v9, %v248_v62  ;;  %v302_v16 = vadd.f32 %v873_v9, %v263_v63  ;;  %v303_v17 = vadd.f32 %v873_v9, %v264_v0  ;;  %v217_v63 = vld [vmem:[%s856_s27 + $0x78] sm:$0xff]  ;;  %v232_v0 = vld [vmem:[%s856_s27 + $0xf0] sm:$0xff] }
  0x1f   : > { %731 = vmatpush3.bf16.msra.mxu0 %v796_v42  ;;  %780 = vmatpush3.bf16.msra.mxu1 %v796_v42  ;;  %v345_v18 = vpack.c.bf16 %v315_v1, %v314_v61  ;;  %v288_v19 = vadd.f32 %v873_v9, %v249_v4  ;;  %v353_v21 = vpack.c.bf16 %v331_v3, %v330_v2  ;;  %v233_v1 = vld [vmem:[%s856_s27 + $0xf8] sm:$0xff] }
  0x20   : > { %732 = vmatprep.subr.bf16.mxu0 %v797_v60  ;;  %773 = vmatprep.subr.bf16.mxu1 %v797_v60  ;;  %v289_v22 = vadd.f32 %v873_v9, %v250_v7  ;;  %v304_v23 = vadd.f32 %v873_v9, %v265_v8  ;;  %v305_v24 = vadd.f32 %v873_v9, %v266_v10  ;;  %v318_v30 = vmax.f32 %v286_v14, 0.0 }
  0x21   : > { %v346_v28 = vpack.c.bf16 %v317_v11, %v316_v5  ;;  %v354_v29 = vpack.c.bf16 %v333_v13, %v332_v12  ;;  %v319_v32 = vmax.f32 %v287_v15, 0.0  ;;  %v334_v33 = vmax.f32 %v302_v16, 0.0 }
  0x22   : > { %v335_v34 = vmax.f32 %v303_v17, 0.0  ;;  %v251_v35 = vmul.f32 %v866_v6, %v212_v20  ;;  %v320_v39 = vmax.f32 %v288_v19, 0.0  ;;  %v252_v40 = vmul.f32 %v866_v6, %v213_v25 }
  0x23   : > { %733 = vmatpush3.bf16.msra.mxu0 %v797_v60  ;;  %781 = vmatpush3.bf16.msra.mxu1 %v797_v60  ;;  %v267_v41 = vmul.f32 %v866_v6, %v228_v26  ;;  %v268_v42 = vmul.f32 %v866_v6, %v229_v27  ;;  %v321_v43 = vmax.f32 %v289_v22, 0.0  ;;  %v336_v44 = vmax.f32 %v304_v23, 0.0 }
  0x24   : > { %v337_v45 = vmax.f32 %v305_v24, 0.0  ;;  %v253_v46 = vmul.f32 %v866_v6, %v214_v31  ;;  %v254_v47 = vmul.f32 %v866_v6, %v215_v36  ;;  %v269_v48 = vmul.f32 %v866_v6, %v230_v37 }
  0x25   : > { %v270_v49 = vmul.f32 %v866_v6, %v231_v38  ;;  %v290_v50 = vadd.f32 %v873_v9, %v251_v35  ;;  %v291_v51 = vadd.f32 %v873_v9, %v252_v40  ;;  %v306_v52 = vadd.f32 %v873_v9, %v267_v41 }
  0x26   : > { %735 = vmatmul.mubr.bf16.vlgmr.msra.gmra.mrb[0].mxu0 %v345_v18  ;;  %751 = vmatmul.mubr.bf16.vlgmr.msra.gmra.mrb[0].mxu1 %v353_v21  ;;  %v307_v53 = vadd.f32 %v873_v9, %v268_v42  ;;  %v347_v54 = vpack.c.bf16 %v319_v32, %v318_v30  ;;  %v355_v55 = vpack.c.bf16 %v335_v34, %v334_v33 }
  0x27   : > { %738 = vmatprep.mubr.bf16.mxu0 %v346_v28  ;;  %754 = vmatprep.mubr.bf16.mxu1 %v354_v29  ;;  %v348_v56 = vpack.c.bf16 %v321_v43, %v320_v39  ;;  %v356_v57 = vpack.c.bf16 %v337_v45, %v336_v44  ;;  %v292_v59 = vadd.f32 %v873_v9, %v253_v46  ;;  %v322_v2 = vmax.f32 %v290_v50, 0.0 }
  0x28   : > { %v293_v60 = vadd.f32 %v873_v9, %v254_v47  ;;  %v308_v61 = vadd.f32 %v873_v9, %v269_v48  ;;  %v309_v62 = vadd.f32 %v873_v9, %v270_v49  ;;  %v323_v3 = vmax.f32 %v291_v51, 0.0 }
  0x29   : > { %v338_v4 = vmax.f32 %v306_v52, 0.0  ;;  %v339_v5 = vmax.f32 %v307_v53, 0.0  ;;  %v255_v7 = vmul.f32 %v866_v6, %v216_v58  ;;  %v256_v8 = vmul.f32 %v866_v6, %v217_v63 }
  0x2a   : > { %v271_v10 = vmul.f32 %v866_v6, %v232_v0  ;;  %v272_v11 = vmul.f32 %v866_v6, %v233_v1  ;;  %v324_v12 = vmax.f32 %v292_v59, 0.0  ;;  %v325_v13 = vmax.f32 %v293_v60, 0.0 }
  0x2b   : > { %v340_v14 = vmax.f32 %v308_v61, 0.0  ;;  %v341_v15 = vmax.f32 %v309_v62, 0.0  ;;  %v349_v16 = vpack.c.bf16 %v323_v3, %v322_v2  ;;  %v357_v17 = vpack.c.bf16 %v339_v5, %v338_v4 }
  0x2c   : > { %v294_v18 = vadd.f32 %v873_v9, %v255_v7  ;;  %v295_v19 = vadd.f32 %v873_v9, %v256_v8  ;;  %v310_v20 = vadd.f32 %v873_v9, %v271_v10  ;;  %v311_v21 = vadd.f32 %v873_v9, %v272_v11 }
  0x2d   : > { %v350_v22 = vpack.c.bf16 %v325_v13, %v324_v12  ;;  %v358_v23 = vpack.c.bf16 %v341_v15, %v340_v14 }
  0x2e   : > { %739 = vmatmul.mubr.bf16.gmra.mrb[4].mxu0 %v347_v54  ;;  %755 = vmatmul.mubr.bf16.gmra.mrb[4].mxu1 %v355_v55  ;;  %v326_v6 = vmax.f32 %v294_v18, 0.0  ;;  %v327_v24 = vmax.f32 %v295_v19, 0.0  ;;  %v342_v25 = vmax.f32 %v310_v20, 0.0  ;;  %v343_v26 = vmax.f32 %v311_v21, 0.0 }
  0x2f   : > { %742 = vmatprep.mubr.bf16.mxu0 %v348_v56  ;;  %758 = vmatprep.mubr.bf16.mxu1 %v356_v57 }
  0x30   : > { %v351_v27 = vpack.c.bf16 %v327_v24, %v326_v6  ;;  %v359_v28 = vpack.c.bf16 %v343_v26, %v342_v25 }
  0x36   : > { %743 = vmatmul.mubr.bf16.gmra.mrb[8].mxu0 %v349_v16  ;;  %759 = vmatmul.mubr.bf16.gmra.mrb[8].mxu1 %v357_v17 }
  0x37   : > { %746 = vmatprep.mubr.bf16.mxu0 %v350_v22  ;;  %762 = vmatprep.mubr.bf16.mxu1 %v358_v23 }
  0x3e   : > { %747 = vmatmul.mubr.bf16.gmra.mrb[12].mxu0 %v351_v27  ;;  %763 = vmatmul.mubr.bf16.gmra.mrb[12].mxu1 %v359_v28 }
  0xf9   : > { %v736_v9 = vpop.f32.mrb[0].mxu0  ;;  %v752_v29 = vpop.f32.mrb[0].mxu1 }
  0xfa   : > { %587 = vst [vmem:[%s984_s20 + $0x10] sm:$0xff] %v736_v9  ;;  %603 = vst [vmem:[%s984_s20 + $0x90] sm:$0xff] %v752_v29  ;;  %v458_v30 = vpop.f32.mrb[1].mxu0  ;;  %v522_v31 = vpop.f32.mrb[1].mxu1 }
  0xfb   : > { %585 = vst [vmem:[%s984_s20] sm:$0xff] %v458_v30  ;;  %601 = vst [vmem:[%s984_s20 + $0x80] sm:$0xff] %v522_v31  ;;  %v737_v32 = vpop.f32.mrb[2].mxu0  ;;  %v753_v33 = vpop.f32.mrb[2].mxu1 }
  0xfc   : > { %588 = vst [vmem:[%s984_s20 + $0x18] sm:$0xff] %v737_v32  ;;  %604 = vst [vmem:[%s984_s20 + $0x98] sm:$0xff] %v753_v33  ;;  %v461_v34 = vpop.f32.mrb[3].mxu0  ;;  %v525_v35 = vpop.f32.mrb[3].mxu1 }
  0xfd   : > { %586 = vst [vmem:[%s984_s20 + $0x8] sm:$0xff] %v461_v34  ;;  %602 = vst [vmem:[%s984_s20 + $0x88] sm:$0xff] %v525_v35 }
 0x101   : > { %v740_v36 = vpop.f32.mrb[4].mxu0  ;;  %v756_v37 = vpop.f32.mrb[4].mxu1 }
 0x102   : > { %591 = vst [vmem:[%s984_s20 + $0x30] sm:$0xff] %v740_v36  ;;  %607 = vst [vmem:[%s984_s20 + $0xb0] sm:$0xff] %v756_v37  ;;  %v474_v38 = vpop.f32.mrb[5].mxu0  ;;  %v538_v39 = vpop.f32.mrb[5].mxu1 }
 0x103   : > { %589 = vst [vmem:[%s984_s20 + $0x20] sm:$0xff] %v474_v38  ;;  %605 = vst [vmem:[%s984_s20 + $0xa0] sm:$0xff] %v538_v39  ;;  %v741_v40 = vpop.f32.mrb[6].mxu0  ;;  %v757_v41 = vpop.f32.mrb[6].mxu1 }
 0x104   : > { %592 = vst [vmem:[%s984_s20 + $0x38] sm:$0xff] %v741_v40  ;;  %608 = vst [vmem:[%s984_s20 + $0xb8] sm:$0xff] %v757_v41  ;;  %v477_v42 = vpop.f32.mrb[7].mxu0  ;;  %v541_v43 = vpop.f32.mrb[7].mxu1 }
 0x105   : > { %590 = vst [vmem:[%s984_s20 + $0x28] sm:$0xff] %v477_v42  ;;  %606 = vst [vmem:[%s984_s20 + $0xa8] sm:$0xff] %v541_v43 }
 0x109   : > { %v744_v44 = vpop.f32.mrb[8].mxu0  ;;  %v760_v45 = vpop.f32.mrb[8].mxu1 }
 0x10a   : > { %595 = vst [vmem:[%s984_s20 + $0x50] sm:$0xff] %v744_v44  ;;  %611 = vst [vmem:[%s984_s20 + $0xd0] sm:$0xff] %v760_v45  ;;  %v490_v46 = vpop.f32.mrb[9].mxu0  ;;  %v554_v47 = vpop.f32.mrb[9].mxu1 }
 0x10b   : > { %593 = vst [vmem:[%s984_s20 + $0x40] sm:$0xff] %v490_v46  ;;  %609 = vst [vmem:[%s984_s20 + $0xc0] sm:$0xff] %v554_v47  ;;  %v745_v48 = vpop.f32.mrb[10].mxu0  ;;  %v761_v49 = vpop.f32.mrb[10].mxu1 }
 0x10c   : > { %596 = vst [vmem:[%s984_s20 + $0x58] sm:$0xff] %v745_v48  ;;  %612 = vst [vmem:[%s984_s20 + $0xd8] sm:$0xff] %v761_v49  ;;  %v493_v50 = vpop.f32.mrb[11].mxu0  ;;  %v557_v51 = vpop.f32.mrb[11].mxu1 }
 0x10d   : > { %594 = vst [vmem:[%s984_s20 + $0x48] sm:$0xff] %v493_v50  ;;  %610 = vst [vmem:[%s984_s20 + $0xc8] sm:$0xff] %v557_v51 }
 0x111   : > { %v748_v52 = vpop.f32.mrb[12].mxu0  ;;  %v764_v53 = vpop.f32.mrb[12].mxu1 }
 0x112   : > { %599 = vst [vmem:[%s984_s20 + $0x70] sm:$0xff] %v748_v52  ;;  %615 = vst [vmem:[%s984_s20 + $0xf0] sm:$0xff] %v764_v53  ;;  %v506_v54 = vpop.f32.mrb[13].mxu0  ;;  %v570_v55 = vpop.f32.mrb[13].mxu1 }
 0x113   : > { %597 = vst [vmem:[%s984_s20 + $0x60] sm:$0xff] %v506_v54  ;;  %613 = vst [vmem:[%s984_s20 + $0xe0] sm:$0xff] %v570_v55  ;;  %v749_v56 = vpop.f32.mrb[14].mxu0  ;;  %v765_v57 = vpop.f32.mrb[14].mxu1 }
 0x114   : > { %600 = vst [vmem:[%s984_s20 + $0x78] sm:$0xff] %v749_v56  ;;  %616 = vst [vmem:[%s984_s20 + $0xf8] sm:$0xff] %v765_v57  ;;  %v509_v58 = vpop.f32.mrb[15].mxu0  ;;  %v573_v59 = vpop.f32.mrb[15].mxu1 }
 0x115   : > { %598 = vst [vmem:[%s984_s20 + $0x68] sm:$0xff] %v509_v58  ;;  %614 = vst [vmem:[%s984_s20 + $0xe8] sm:$0xff] %v573_v59 }
 0x116 PF: > { %s14_s15 = sadd.s32 1, %s804_s15  }
 0x117   : > { %p11_p4 = scmp.ge.s32.totalorder %s14_s15, 4  }
 0x119   :  { %13 = sbr.rel (!%p11_p4) target bundleno = 1 (0x1), region = 66 }

// kernel: densenet_forward.14
= control target key start
LH: loop header
LB: loop body
LE: loop exit
PB: predicated region body
PF: predicated region fallthrough
CT: control target
= control target key end

     0   :  { %s567_s15 = smov 0   ;;  %s631_s0 = inlined_call_operand.vmem [shape: f32[128,128], index: 0, kind: input, shape index: {}]   ;;  %s632_s1 = inlined_call_operand.vmem [shape: f32[1,128], index: 1, kind: input, shape index: {}]   ;;  %s633_s2 = inlined_call_operand.vmem [shape: f32[1,128], index: 2, kind: input, shape index: {}]   ;;  %s634_s3 = inlined_call_operand.vmem [shape: bf16[128,128], index: 3, kind: input, shape index: {}]   ;;  %s635_s4 = inlined_call_operand.vmem [shape: f32[128,128], index: 4, kind: output, shape index: {}]  }
   0x1 LB: > { %s445_s16 = sadd.s32 4294967295, %s540_s15   ;;  %p449_p0 = scmp.ge.s32.totalorder %s540_s15, 1  ;;  %s540_s15 = sphi %s567_s15, %s14_s15  }
   0x2   : > { %p163_p1 = scmp.lt.s32.totalorder %s540_s15, 3 }
   0x4   : > { %p164_p2 = pnand %p449_p0, %p163_p1 }
   0x5   : > { %v526_v0 = vld [vmem:[%s634_s3] sm:$0xff] (!%p164_p2)   ;;  %s450_s19 = sshll.u32 (!%p164_p2), %s445_s16, 3  ;;  %v527_v1 = vld [vmem:[%s634_s3 + $0x8] sm:$0xff] (!%p164_p2)   ;;  %v528_v2 = vld [vmem:[%s634_s3 + $0x10] sm:$0xff] (!%p164_p2)  }
   0x6   : > { %167 = sbr.rel (%p164_p2) target bundleno = 254 (0xfe), region = 36  ;;  %p190_p3 = scmp.lt.s32.totalorder (!%p164_p2), %s450_s19, 15  ;;  %478 = vmatprep.subr.bf16.mxu0 (!%p164_p2), %v526_v0  ;;  %502 = vmatprep.subr.bf16.mxu1 (!%p164_p2), %v526_v0  ;;  %v529_v3 = vld [vmem:[%s634_s3 + $0x18] sm:$0xff] (!%p164_p2)   ;;  %v454_v6 = vld [vmem:[%s632_s1] ss:$0 sm:$0xff] (!%p164_p2)  ;;  %v531_v28 = vld [vmem:[%s634_s3 + $0x28] sm:$0xff] (!%p164_p2)  }
   0x7   : > { %479 = vmatpush3.bf16.msra.mxu0 (!%p164_p2), %v526_v0  ;;  %510 = vmatpush3.bf16.msra.mxu1 (!%p164_p2), %v526_v0  ;;  %v455_v9 = vld [vmem:[%s633_s2] ss:$0 sm:$0xff] (!%p164_p2)  ;;  %v532_v34 = vld [vmem:[%s634_s3 + $0x30] sm:$0xff] (!%p164_p2)   ;;  %v533_v39 = vld [vmem:[%s634_s3 + $0x38] sm:$0xff] (!%p164_p2)  }
   0x8   : > { %480 = vmatprep.subr.bf16.mxu0 (!%p164_p2), %v527_v1  ;;  %503 = vmatprep.subr.bf16.mxu1 (!%p164_p2), %v527_v1  ;;  %v530_v16 = vld [vmem:[%s634_s3 + $0x20] sm:$0xff] (!%p164_p2)  }
   0xb   : > { %481 = vmatpush3.bf16.msra.mxu0 (!%p164_p2), %v527_v1  ;;  %511 = vmatpush3.bf16.msra.mxu1 (!%p164_p2), %v527_v1 }
   0xc   : > { %482 = vmatprep.subr.bf16.mxu0 (!%p164_p2), %v528_v2  ;;  %504 = vmatprep.subr.bf16.mxu1 (!%p164_p2), %v528_v2 }
   0xd   : > { %s637_s19 = smov (!%p190_p3, %s450_s19), 15 }
   0xe   : > { %s451_s24 = sshll.u32 %s637_s19, 3 }
   0xf   : > { %s592_s27 = scalar_lea.vmem %s631_s0, %s451_s24  ;;  %483 = vmatpush3.bf16.msra.mxu0 %v528_v2  ;;  %512 = vmatpush3.bf16.msra.mxu1 %v528_v2  ;;  %s199_s20 = scalar_lea.vmem %s635_s4, %s451_s24 }
  0x10   : > { %v202_v4 = vld [vmem:[%s592_s27] sm:$0xff]  ;;  %v203_v5 = vld [vmem:[%s592_s27 + $0x8] sm:$0xff]  ;;  %484 = vmatprep.subr.bf16.mxu0 %v529_v3  ;;  %505 = vmatprep.subr.bf16.mxu1 %v529_v3  ;;  %v204_v23 = vld [vmem:[%s592_s27 + $0x10] sm:$0xff] }
  0x11   : > { %v217_v7 = vmul.f32 %v454_v6, %v202_v4  ;;  %v218_v8 = vmul.f32 %v454_v6, %v203_v5  ;;  %v206_v10 = vld [vmem:[%s592_s27 + $0x20] sm:$0xff]  ;;  %v207_v11 = vld [vmem:[%s592_s27 + $0x28] sm:$0xff]  ;;  %v205_v25 = vld [vmem:[%s592_s27 + $0x18] sm:$0xff]  ;;  %v219_v30 = vmul.f32 %v454_v6, %v204_v23 }
  0x12   : > { %v221_v12 = vmul.f32 %v454_v6, %v206_v10  ;;  %v222_v13 = vmul.f32 %v454_v6, %v207_v11  ;;  %v208_v26 = vld [vmem:[%s592_s27 + $0x30] sm:$0xff]  ;;  %v209_v27 = vld [vmem:[%s592_s27 + $0x38] sm:$0xff]  ;;  %v220_v31 = vmul.f32 %v454_v6, %v205_v25 }
  0x13   : > { %v232_v14 = vadd.f32 %v455_v9, %v217_v7  ;;  %v233_v15 = vadd.f32 %v455_v9, %v218_v8  ;;  %485 = vmatpush3.bf16.msra.mxu0 %v529_v3  ;;  %513 = vmatpush3.bf16.msra.mxu1 %v529_v3  ;;  %v223_v32 = vmul.f32 %v454_v6, %v208_v26 }
  0x14   : > { %v236_v17 = vadd.f32 %v455_v9, %v221_v12  ;;  %v237_v18 = vadd.f32 %v455_v9, %v222_v13  ;;  %486 = vmatprep.subr.bf16.mxu0 %v530_v16  ;;  %506 = vmatprep.subr.bf16.mxu1 %v530_v16  ;;  %v224_v33 = vmul.f32 %v454_v6, %v209_v27 }
  0x15   : > { %v240_v19 = vmax.f32 %v232_v14, 0.0  ;;  %v241_v20 = vmax.f32 %v233_v15, 0.0  ;;  %v234_v35 = vadd.f32 %v455_v9, %v219_v30  ;;  %v235_v36 = vadd.f32 %v455_v9, %v220_v31 }
  0x16   : > { %v244_v21 = vmax.f32 %v236_v17, 0.0  ;;  %v245_v22 = vmax.f32 %v237_v18, 0.0  ;;  %v238_v37 = vadd.f32 %v455_v9, %v223_v32  ;;  %v239_v38 = vadd.f32 %v455_v9, %v224_v33 }
  0x17   : > { %v248_v24 = vpack.c.bf16 %v241_v20, %v240_v19  ;;  %487 = vmatpush3.bf16.msra.mxu0 %v530_v16  ;;  %514 = vmatpush3.bf16.msra.mxu1 %v530_v16  ;;  %v242_v40 = vmax.f32 %v234_v35, 0.0  ;;  %v243_v41 = vmax.f32 %v235_v36, 0.0 }
  0x18   : > { %v250_v29 = vpack.c.bf16 %v245_v22, %v244_v21  ;;  %488 = vmatprep.subr.bf16.mxu0 %v531_v28  ;;  %507 = vmatprep.subr.bf16.mxu1 %v531_v28  ;;  %v246_v42 = vmax.f32 %v238_v37, 0.0  ;;  %v247_v43 = vmax.f32 %v239_v38, 0.0 }
  0x19   : > { %494 = vmatprep.mubr.bf16.mxu0 %v248_v24  ;;  %v249_v44 = vpack.c.bf16 %v243_v41, %v242_v40 }
  0x1a   : > { %498 = vmatprep.mubr.bf16.mxu1 %v250_v29  ;;  %v251_v45 = vpack.c.bf16 %v247_v43, %v246_v42 }
  0x1b   : > { %489 = vmatpush3.bf16.msra.mxu0 %v531_v28  ;;  %515 = vmatpush3.bf16.msra.mxu1 %v531_v28 }
  0x1c   : > { %490 = vmatprep.subr.bf16.mxu0 %v532_v34  ;;  %508 = vmatprep.subr.bf16.mxu1 %v532_v34 }
  0x1f   : > { %491 = vmatpush3.bf16.msra.mxu0 %v532_v34  ;;  %516 = vmatpush3.bf16.msra.mxu1 %v532_v34 }
  0x20   : > { %492 = vmatprep.subr.bf16.mxu0 %v533_v39  ;;  %509 = vmatprep.subr.bf16.mxu1 %v533_v39 }
  0x23   : > { %493 = vmatpush3.bf16.msra.mxu0 %v533_v39  ;;  %517 = vmatpush3.bf16.msra.mxu1 %v533_v39 }
  0x26   : > { %495 = vmatmul.mubr.bf16.vlgmr.msra.gmra.mrb[0].mxu0 %v249_v44  ;;  %499 = vmatmul.mubr.bf16.vlgmr.msra.gmra.mrb[0].mxu1 %v251_v45 }
  0xf9   : > { %v496_v46 = vpop.f32.mrb[0].mxu0  ;;  %v500_v47 = vpop.f32.mrb[0].mxu1 }
  0xfa   : > { %383 = vst [vmem:[%s199_s20 + $0x10] sm:$0xff] %v496_v46  ;;  %387 = vst [vmem:[%s199_s20 + $0x30] sm:$0xff] %v500_v47  ;;  %v350_v48 = vpop.f32.mrb[1].mxu0  ;;  %v366_v49 = vpop.f32.mrb[1].mxu1 }
  0xfb   : > { %381 = vst [vmem:[%s199_s20] sm:$0xff] %v350_v48  ;;  %385 = vst [vmem:[%s199_s20 + $0x20] sm:$0xff] %v366_v49  ;;  %v497_v50 = vpop.f32.mrb[2].mxu0  ;;  %v501_v51 = vpop.f32.mrb[2].mxu1 }
  0xfc   : > { %384 = vst [vmem:[%s199_s20 + $0x18] sm:$0xff] %v497_v50  ;;  %388 = vst [vmem:[%s199_s20 + $0x38] sm:$0xff] %v501_v51  ;;  %v353_v52 = vpop.f32.mrb[3].mxu0  ;;  %v369_v53 = vpop.f32.mrb[3].mxu1 }
  0xfd   : > { %382 = vst [vmem:[%s199_s20 + $0x8] sm:$0xff] %v353_v52  ;;  %386 = vst [vmem:[%s199_s20 + $0x28] sm:$0xff] %v369_v53 }
  0xfe PF: > { %s14_s15 = sadd.s32 1, %s540_s15  }
  0xff   : > { %p11_p4 = scmp.ge.s32.totalorder %s14_s15, 4  }
 0x101   :  { %13 = sbr.rel (!%p11_p4) target bundleno = 1 (0x1), region = 66 }

// kernel: densenet_forward.10
= control target key start
LH: loop header
LB: loop body
LE: loop exit
PB: predicated region body
PF: predicated region fallthrough
CT: control target
= control target key end

     0   :  { %s4903_s9 = smov 0   ;;  %s5596_s0 = inlined_call_operand.vmem [shape: f32[656,3], index: 0, kind: input, shape index: {}]   ;;  %s5597_s1 = inlined_call_operand.vmem [shape: bf16[9,3,128], index: 1, kind: input, shape index: {}]   ;;  %s5598_s2 = inlined_call_operand.vmem [shape: f32[512,128], index: 2, kind: output, shape index: {}]  }
   0x1 LB: > { %s3814_s10 = sadd.s32 4294967295, %s4885_s9   ;;  %p3818_p0 = scmp.ge.s32.totalorder %s4885_s9, 1  ;;  %s4885_s9 = sphi %s4903_s9, %s12_s9  }
   0x2   : > { %p113_p1 = scmp.lt.s32.totalorder %s4885_s9, 3 }
   0x4   : > { %p114_p2 = pnand %p3818_p0, %p113_p1 }
   0x5   : > { %v234_v0 = vld [vmem:[%s5597_s1] sm:$0x3] (!%p114_p2)  ;;  %vm290_vm0 = vcmask (!%p114_p2), 1040384   ;;  %vm291_vm1 = vcmask (!%p114_p2), 1041408   ;;  %s135_s13 = smul.u32 (!%p114_p2), 41, %s3814_s10  ;;  %v4887_v1 = vmov (!%p114_p2), 65535  }
   0x6   : > { %117 = sbr.rel (%p114_p2) target bundleno = 567 (0x237), region = 28  ;;  %v292_v2 = vsel (!%p114_p2), %vm290_vm0, 4294967295, %v4887_v1  ;;  %v3897_v3 = vld [vmem:[%s5597_s1 + $0x8] sm:$0x3] (!%p114_p2)  ;;  %v3840_v4 = vld [vmem:[%s5597_s1 + $0x2] sm:$0x3] (!%p114_p2) }
   0x7   : > { %v4922_v5 = vsel (!%p114_p2), %vm291_vm1, %v292_v2, 0  ;;  %p136_p3 = scmp.lt.s32.totalorder (!%p114_p2), %s135_s13, 81  ;;  %v3916_v6 = vld [vmem:[%s5597_s1 + $0xa] sm:$0x3] (!%p114_p2)  ;;  %v3935_v11 = vld [vmem:[%s5597_s1 + $0xc] sm:$0x3] (!%p114_p2) }
   0x8   : > { %v295_v7 = vand.u32 (!%p114_p2), %v4922_v5, %v234_v0  ;;  %v4929_v8 = vand.u32 (!%p114_p2), %v3897_v3, %v4922_v5  ;;  %v621_v9 = vand.u32 (!%p114_p2), %v3840_v4, %v4922_v5  ;;  %v2213_v10 = vand.u32 (!%p114_p2), %v3916_v6, %v4922_v5  ;;  %v3859_v12 = vld [vmem:[%s5597_s1 + $0x4] sm:$0x3] (!%p114_p2)  ;;  %s3820_s6 = sshll.u32 (!%p114_p2), %s3814_s10, 5 }
   0x9   : > { %vm235_vm2 = vcmask (!%p114_p2), 23552   ;;  %v4960_v29 = vand.u32 (!%p114_p2), %v3935_v11, %v4922_v5  ;;  %v4965_v32 = vand.u32 (!%p114_p2), %v3859_v12, %v4922_v5  ;;  %p142_p4 = scmp.lt.s32.totalorder (!%p114_p2), %s3820_s6, 63 }
   0xa   : > { %4165 = vmatprep.subr.bf16.mxu1 (!%p114_p2), %v295_v7  ;;  %4317 = vmatprep.subr.bf16.mxu0 (!%p114_p2), %v4929_v8 }
   0xb   : > { %4166 = vmatpush3.bf16.msra.mxu1 (!%p114_p2), %v295_v7  ;;  %4318 = vmatpush3.bf16.msra.mxu0 (!%p114_p2), %v4929_v8 }
   0xc   : > { %4203 = vmatprep.subr.bf16.mxu1 (!%p114_p2), %v621_v9  ;;  %4355 = vmatprep.subr.bf16.mxu0 (!%p114_p2), %v2213_v10 }
   0xd   : > { %s5600_s13 = smov (!%p136_p3, %s135_s13), 81  ;;  %s5602_s6 = smov (!%p142_p4, %s3820_s6), 63 }
   0xe   : > { %s3819_s20 = sshll.u32 %s5600_s13, 3  ;;  %s3821_s7 = sshll.u32 %s5602_s6, 3 }
   0xf   : > { %s4938_s23 = scalar_lea.vmem %s5596_s0, %s3819_s20  ;;  %s5553_s12 = scalar_lea.vmem %s5598_s2, %s3821_s7 }
  0x10   : > { %v180_v13 = vld [vmem:[%s4938_s23] sm:$0xff]  ;;  %v181_v14 = vld [vmem:[%s4938_s23 + $0x8] sm:$0xff]  ;;  %v1704_v15 = vld [vmem:[%s4938_s23 + $0x13] sm:$0xff] }
  0x11   : > { %v216_v16 = vpack.c.bf16 %v181_v14, %v180_v13  ;;  %v1705_v17 = vld [vmem:[%s4938_s23 + $0x1b] sm:$0xff]  ;;  %v182_v18 = vld [vmem:[%s4938_s23 + $0x10] sm:$0xff]  ;;  %v1706_v22 = vld [vmem:[%s4938_s23 + $0x23] sm:$0xff] }
  0x12   : > { %v183_v19 = vld [vmem:[%s4938_s23 + $0x18] sm:$0xff]  ;;  %v1740_v20 = vpack.c.bf16 %v1705_v17, %v1704_v15  ;;  %v1707_v23 = vld [vmem:[%s4938_s23 + $0x2b] sm:$0xff]  ;;  %v184_v24 = vld [vmem:[%s4938_s23 + $0x20] sm:$0xff] }
  0x13   : > { %v217_v21 = vpack.c.bf16 %v183_v19, %v182_v18  ;;  %4167 = vmatprep.mubr.msk.bf16.mxu1 %vm235_vm2, %v216_v16  ;;  %v1741_v25 = vpack.c.bf16 %v1707_v23, %v1706_v22  ;;  %v185_v26 = vld [vmem:[%s4938_s23 + $0x28] sm:$0xff]  ;;  %v1708_v27 = vld [vmem:[%s4938_s23 + $0x33] sm:$0xff]  ;;  %v1709_v28 = vld [vmem:[%s4938_s23 + $0x3b] sm:$0xff] }
  0x14   : > { %4319 = vmatprep.mubr.msk.bf16.mxu0 %vm235_vm2, %v1740_v20  ;;  %v218_v30 = vpack.c.bf16 %v185_v26, %v184_v24  ;;  %v1742_v31 = vpack.c.bf16 %v1709_v28, %v1708_v27  ;;  %v186_v33 = vld [vmem:[%s4938_s23 + $0x30] sm:$0xff]  ;;  %v187_v34 = vld [vmem:[%s4938_s23 + $0x38] sm:$0xff]  ;;  %v1710_v35 = vld [vmem:[%s4938_s23 + $0x43] sm:$0xff] }
  0x15   : > { %4168 = vmatmul.mubr.msk.bf16.vlgmr.msra.gmra.mrb[0].mxu1 %vm235_vm2, %v217_v21  ;;  %4320 = vmatmul.mubr.msk.bf16.vlgmr.msra.gmra.mrb[0].mxu0 %vm235_vm2, %v1741_v25  ;;  %v1711_v36 = vld [vmem:[%s4938_s23 + $0x4b] sm:$0xff]  ;;  %v188_v37 = vld [vmem:[%s4938_s23 + $0x40] sm:$0xff]  ;;  %v1712_v39 = vld [vmem:[%s4938_s23 + $0x53] sm:$0xff]  ;;  %v219_v41 = vpack.c.bf16 %v187_v34, %v186_v33 }
  0x16   : > { %4204 = vmatpush3.bf16.msra.mxu1 %v621_v9  ;;  %4356 = vmatpush3.bf16.msra.mxu0 %v2213_v10  ;;  %v189_v38 = vld [vmem:[%s4938_s23 + $0x48] sm:$0xff]  ;;  %v1713_v40 = vld [vmem:[%s4938_s23 + $0x5b] sm:$0xff]  ;;  %v1743_v42 = vpack.c.bf16 %v1711_v36, %v1710_v35  ;;  %v190_v45 = vld [vmem:[%s4938_s23 + $0x50] sm:$0xff] }
  0x17   : > { %4171 = vmatprep.mubr.msk.bf16.mxu1 %vm235_vm2, %v218_v30  ;;  %4323 = vmatprep.mubr.msk.bf16.mxu0 %vm235_vm2, %v1742_v31  ;;  %v220_v43 = vpack.c.bf16 %v189_v38, %v188_v37  ;;  %v1744_v44 = vpack.c.bf16 %v1713_v40, %v1712_v39  ;;  %v191_v46 = vld [vmem:[%s4938_s23 + $0x58] sm:$0xff]  ;;  %v1714_v47 = vld [vmem:[%s4938_s23 + $0x63] sm:$0xff]  ;;  %v1715_v48 = vld [vmem:[%s4938_s23 + $0x6b] sm:$0xff] }
  0x18   : > { %4393 = vmatprep.subr.bf16.mxu0 %v4960_v29  ;;  %4241 = vmatprep.subr.bf16.mxu1 %v4965_v32  ;;  %v192_v49 = vld [vmem:[%s4938_s23 + $0x60] sm:$0xff]  ;;  %v193_v50 = vld [vmem:[%s4938_s23 + $0x68] sm:$0xff]  ;;  %v1716_v51 = vld [vmem:[%s4938_s23 + $0x73] sm:$0xff]  ;;  %v221_v53 = vpack.c.bf16 %v191_v46, %v190_v45  ;;  %v1745_v54 = vpack.c.bf16 %v1715_v48, %v1714_v47 }
  0x19   : > { %v1717_v52 = vld [vmem:[%s4938_s23 + $0x7b] sm:$0xff]  ;;  %v222_v55 = vpack.c.bf16 %v193_v50, %v192_v49  ;;  %v194_v57 = vld [vmem:[%s4938_s23 + $0x70] sm:$0xff]  ;;  %v1718_v59 = vld [vmem:[%s4938_s23 + $0x83] sm:$0xff] }
  0x1a   : > { %v1746_v56 = vpack.c.bf16 %v1717_v52, %v1716_v51  ;;  %v195_v58 = vld [vmem:[%s4938_s23 + $0x78] sm:$0xff]  ;;  %v1719_v60 = vld [vmem:[%s4938_s23 + $0x8b] sm:$0xff]  ;;  %v196_v61 = vld [vmem:[%s4938_s23 + $0x80] sm:$0xff] }
  0x1b   : > { %v197_v62 = vld [vmem:[%s4938_s23 + $0x88] sm:$0xff]  ;;  %v1720_v63 = vld [vmem:[%s4938_s23 + $0x93] sm:$0xff]  ;;  %v1721_v0 = vld [vmem:[%s4938_s23 + $0x9b] sm:$0xff]  ;;  %v223_v1 = vpack.c.bf16 %v195_v58, %v194_v57  ;;  %v1747_v2 = vpack.c.bf16 %v1719_v60, %v1718_v59 }
  0x1c   : > { %v224_v3 = vpack.c.bf16 %v197_v62, %v196_v61  ;;  %v1748_v4 = vpack.c.bf16 %v1721_v0, %v1720_v63  ;;  %v198_v6 = vld [vmem:[%s4938_s23 + $0x90] sm:$0xff]  ;;  %v199_v7 = vld [vmem:[%s4938_s23 + $0x98] sm:$0xff]  ;;  %v1722_v9 = vld [vmem:[%s4938_s23 + $0xa3] sm:$0xff] }
  0x1d   : > { %4172 = vmatmul.mubr.msk.bf16.gmra.mrb[4].mxu1 %vm235_vm2, %v219_v41  ;;  %4324 = vmatmul.mubr.msk.bf16.gmra.mrb[4].mxu0 %vm235_vm2, %v1743_v42  ;;  %v1723_v10 = vld [vmem:[%s4938_s23 + $0xab] sm:$0xff]  ;;  %v200_v11 = vld [vmem:[%s4938_s23 + $0xa0] sm:$0xff]  ;;  %v2102_v13 = vld [vmem:[%s4938_s23 + $0x14] sm:$0xff]  ;;  %v225_v15 = vpack.c.bf16 %v199_v7, %v198_v6 }
  0x1e   : > { %4175 = vmatprep.mubr.msk.bf16.mxu1 %vm235_vm2, %v220_v43  ;;  %4327 = vmatprep.mubr.msk.bf16.mxu0 %vm235_vm2, %v1744_v44  ;;  %v201_v12 = vld [vmem:[%s4938_s23 + $0xa8] sm:$0xff]  ;;  %v2103_v14 = vld [vmem:[%s4938_s23 + $0x1c] sm:$0xff]  ;;  %v1749_v16 = vpack.c.bf16 %v1723_v10, %v1722_v9  ;;  %v202_v19 = vld [vmem:[%s4938_s23 + $0xb0] sm:$0xff] }
  0x1f   : > { %v226_v17 = vpack.c.bf16 %v201_v12, %v200_v11  ;;  %v2138_v18 = vpack.c.bf16 %v2103_v14, %v2102_v13  ;;  %v203_v20 = vld [vmem:[%s4938_s23 + $0xb8] sm:$0xff]  ;;  %v2104_v21 = vld [vmem:[%s4938_s23 + $0x24] sm:$0xff]  ;;  %v2105_v22 = vld [vmem:[%s4938_s23 + $0x2c] sm:$0xff] }
  0x20   : > { %v204_v23 = vld [vmem:[%s4938_s23 + $0xc0] sm:$0xff]  ;;  %v205_v24 = vld [vmem:[%s4938_s23 + $0xc8] sm:$0xff]  ;;  %v2106_v25 = vld [vmem:[%s4938_s23 + $0x34] sm:$0xff]  ;;  %v227_v27 = vpack.c.bf16 %v203_v20, %v202_v19  ;;  %v5031_v30 = vpack.c.bf16 %v2105_v22, %v2104_v21 }
  0x21   : > { %v2107_v26 = vld [vmem:[%s4938_s23 + $0x3c] sm:$0xff]  ;;  %v3954_v28 = vld [vmem:[%s5597_s1 + $0xe] sm:$0x3]  ;;  %v228_v31 = vpack.c.bf16 %v205_v24, %v204_v23  ;;  %v206_v35 = vld [vmem:[%s4938_s23 + $0xd0] sm:$0xff] }
  0x22   : > { %v5033_v33 = vpack.c.bf16 %v2107_v26, %v2106_v25  ;;  %v5036_v34 = vand.u32 %v3954_v28, %v4922_v5  ;;  %v207_v36 = vld [vmem:[%s4938_s23 + $0xd8] sm:$0xff]  ;;  %v2108_v37 = vld [vmem:[%s4938_s23 + $0x44] sm:$0xff]  ;;  %v2109_v38 = vld [vmem:[%s4938_s23 + $0x4c] sm:$0xff] }
  0x23   : > { %v208_v39 = vld [vmem:[%s4938_s23 + $0xe0] sm:$0xff]  ;;  %v209_v40 = vld [vmem:[%s4938_s23 + $0xe8] sm:$0xff]  ;;  %v2110_v41 = vld [vmem:[%s4938_s23 + $0x54] sm:$0xff]  ;;  %v229_v43 = vpack.c.bf16 %v207_v36, %v206_v35  ;;  %v5054_v44 = vpack.c.bf16 %v2109_v38, %v2108_v37 }
  0x24   : > { %v2111_v42 = vld [vmem:[%s4938_s23 + $0x5c] sm:$0xff]  ;;  %v210_v46 = vld [vmem:[%s4938_s23 + $0xf0] sm:$0xff]  ;;  %v2112_v48 = vld [vmem:[%s4938_s23 + $0x64] sm:$0xff] }
  0x25   : > { %4176 = vmatmul.mubr.msk.bf16.gmra.mrb[8].mxu1 %vm235_vm2, %v221_v53  ;;  %4328 = vmatmul.mubr.msk.bf16.gmra.mrb[8].mxu0 %vm235_vm2, %v1745_v54  ;;  %v5056_v45 = vpack.c.bf16 %v2111_v42, %v2110_v41  ;;  %v211_v47 = vld [vmem:[%s4938_s23 + $0xf8] sm:$0xff]  ;;  %v2113_v49 = vld [vmem:[%s4938_s23 + $0x6c] sm:$0xff]  ;;  %v212_v50 = vld [vmem:[%s4938_s23 + $0x100] sm:$0xff] }
  0x26   : > { %4179 = vmatprep.mubr.msk.bf16.mxu1 %vm235_vm2, %v222_v55  ;;  %4331 = vmatprep.mubr.msk.bf16.mxu0 %vm235_vm2, %v1746_v56  ;;  %v213_v51 = vld [vmem:[%s4938_s23 + $0x108] sm:$0xff]  ;;  %v2114_v52 = vld [vmem:[%s4938_s23 + $0x74] sm:$0xff]  ;;  %v2115_v53 = vld [vmem:[%s4938_s23 + $0x7c] sm:$0xff]  ;;  %v231_v54 = vpack.c.bf16 %v211_v47, %v210_v46  ;;  %v5072_v55 = vpack.c.bf16 %v2113_v49, %v2112_v48 }
  0x27   : > { %v232_v56 = vpack.c.bf16 %v213_v51, %v212_v50  ;;  %v5074_v57 = vpack.c.bf16 %v2115_v53, %v2114_v52  ;;  %v214_v58 = vld [vmem:[%s4938_s23 + $0x110] sm:$0xff]  ;;  %v215_v59 = vld [vmem:[%s4938_s23 + $0x118] sm:$0xff]  ;;  %v2116_v60 = vld [vmem:[%s4938_s23 + $0x84] sm:$0xff] }
  0x28   : > { %v2117_v61 = vld [vmem:[%s4938_s23 + $0x8c] sm:$0xff]  ;;  %v510_v62 = vld [vmem:[%s4938_s23 + $0x1] sm:$0xff]  ;;  %v2118_v0 = vld [vmem:[%s4938_s23 + $0x94] sm:$0xff] }
  0x29   : > { %v511_v63 = vld [vmem:[%s4938_s23 + $0x9] sm:$0xff]  ;;  %v512_v7 = vld [vmem:[%s4938_s23 + $0x11] sm:$0xff]  ;;  %v513_v9 = vld [vmem:[%s4938_s23 + $0x19] sm:$0xff] }
  0x2a   : > { %v2120_v10 = vld [vmem:[%s4938_s23 + $0xa4] sm:$0xff]  ;;  %v2121_v11 = vld [vmem:[%s4938_s23 + $0xac] sm:$0xff]  ;;  %v2122_v14 = vld [vmem:[%s4938_s23 + $0xb4] sm:$0xff] }
  0x2b   : > { %v514_v12 = vld [vmem:[%s4938_s23 + $0x21] sm:$0xff]  ;;  %v515_v13 = vld [vmem:[%s4938_s23 + $0x29] sm:$0xff]  ;;  %v516_v22 = vld [vmem:[%s4938_s23 + $0x31] sm:$0xff] }
  0x2c   : > { %v548_v19 = vpack.c.bf16 %v515_v13, %v514_v12  ;;  %v517_v23 = vld [vmem:[%s4938_s23 + $0x39] sm:$0xff]  ;;  %v2124_v24 = vld [vmem:[%s4938_s23 + $0xc4] sm:$0xff]  ;;  %v2125_v25 = vld [vmem:[%s4938_s23 + $0xcc] sm:$0xff] }
  0x2d   : > { %4180 = vmatmul.mubr.msk.bf16.gmra.mrb[12].mxu1 %vm235_vm2, %v223_v1  ;;  %4332 = vmatmul.mubr.msk.bf16.gmra.mrb[12].mxu0 %vm235_vm2, %v1747_v2  ;;  %v2119_v1 = vld [vmem:[%s4938_s23 + $0x9c] sm:$0xff]  ;;  %v233_v2 = vpack.c.bf16 %v215_v59, %v214_v58  ;;  %v5134_v35 = vpack.c.bf16 %v2125_v25, %v2124_v24  ;;  %v520_v38 = vld [vmem:[%s4938_s23 + $0x51] sm:$0xff]  ;;  %v2132_v53 = vld [vmem:[%s4938_s23 + $0x104] sm:$0xff] }
  0x2e   : > { %4183 = vmatprep.mubr.msk.bf16.mxu1 %vm235_vm2, %v224_v3  ;;  %4335 = vmatprep.mubr.msk.bf16.mxu0 %vm235_vm2, %v1748_v4  ;;  %v5090_v3 = vpack.c.bf16 %v2117_v61, %v2116_v60  ;;  %v546_v4 = vpack.c.bf16 %v511_v63, %v510_v62  ;;  %v5092_v6 = vpack.c.bf16 %v2119_v1, %v2118_v0  ;;  %v518_v26 = vld [vmem:[%s4938_s23 + $0x41] sm:$0xff]  ;;  %v2129_v41 = vld [vmem:[%s4938_s23 + $0xec] sm:$0xff]  ;;  %v525_v52 = vld [vmem:[%s4938_s23 + $0x79] sm:$0xff] }
  0x2f   : > { %v2127_v28 = vld [vmem:[%s4938_s23 + $0xdc] sm:$0xff]  ;;  %v524_v51 = vld [vmem:[%s4938_s23 + $0x71] sm:$0xff]  ;;  %v527_v58 = vld [vmem:[%s4938_s23 + $0x89] sm:$0xff] }
  0x30   : > { %v522_v42 = vld [vmem:[%s4938_s23 + $0x61] sm:$0xff]  ;;  %v2134_v59 = vld [vmem:[%s4938_s23 + $0x114] sm:$0xff]  ;;  %v553_v61 = vpack.c.bf16 %v525_v52, %v524_v51 }
  0x31   : > { %v2131_v46 = vld [vmem:[%s4938_s23 + $0xfc] sm:$0xff]  ;;  %v528_v1 = vld [vmem:[%s4938_s23 + $0x91] sm:$0xff] }
  0x32   : > { %v2135_v60 = vld [vmem:[%s4938_s23 + $0x11c] sm:$0xff] }
  0x33   : > { %v5172_v0 = vpack.c.bf16 %v2135_v60, %v2134_v59  ;;  %v537_v25 = vld [vmem:[%s4938_s23 + $0xd9] sm:$0xff]  ;;  %v920_v52 = vld [vmem:[%s4938_s23 + $0x62] sm:$0xff]  ;;  %v925_v59 = vld [vmem:[%s4938_s23 + $0x8a] sm:$0xff] }
  0x35   : > { %4184 = vmatmul.mubr.msk.bf16.gmra.mrb[16].mxu1 %vm235_vm2, %v225_v15  ;;  %4336 = vmatmul.mubr.msk.bf16.gmra.mrb[16].mxu0 %vm235_vm2, %v1749_v16  ;;  %v2123_v15 = vld [vmem:[%s4938_s23 + $0xbc] sm:$0xff]  ;;  %v547_v16 = vpack.c.bf16 %v513_v9, %v512_v7  ;;  %v2137_v7 = vld [vmem:[%s4938_s23 + $0x12c] sm:$0xff] }
  0x36   : > { %4187 = vmatprep.mubr.msk.bf16.mxu1 %vm235_vm2, %v226_v17  ;;  %4357 = vmatprep.mubr.msk.bf16.mxu0 %vm235_vm2, %v2138_v18  ;;  %v3878_v17 = vld [vmem:[%s5597_s1 + $0x6] sm:$0x3]  ;;  %v5111_v18 = vpack.c.bf16 %v2121_v11, %v2120_v10  ;;  %v5113_v20 = vpack.c.bf16 %v2123_v15, %v2122_v14  ;;  %v531_v10 = vld [vmem:[%s4938_s23 + $0xa9] sm:$0xff]  ;;  %v532_v14 = vld [vmem:[%s4938_s23 + $0xb1] sm:$0xff] }
  0x37   : > { %v5116_v21 = vand.u32 %v3878_v17, %v4922_v5  ;;  %v530_v9 = vld [vmem:[%s4938_s23 + $0xa1] sm:$0xff]  ;;  %v533_v15 = vld [vmem:[%s4938_s23 + $0xb9] sm:$0xff]  ;;  %v535_v17 = vld [vmem:[%s4938_s23 + $0xc9] sm:$0xff] }
  0x38   : > { %v556_v13 = vpack.c.bf16 %v531_v10, %v530_v9 }
  0x3d   : > { %4188 = vmatmul.mubr.msk.bf16.gmra.mrb[20].mxu1 %vm235_vm2, %v227_v27  ;;  %4358 = vmatmul.mubr.msk.bf16.vlgmr.msra.gmra.mrb[0].mxu0 %vm235_vm2, %v5031_v30  ;;  %v519_v27 = vld [vmem:[%s4938_s23 + $0x49] sm:$0xff] }
  0x3e   : > { %4191 = vmatprep.mubr.msk.bf16.mxu1 %vm235_vm2, %v228_v31  ;;  %4394 = vmatpush3.bf16.msra.mxu0 %v4960_v29  ;;  %v230_v29 = vpack.c.bf16 %v209_v40, %v208_v39  ;;  %v549_v31 = vpack.c.bf16 %v517_v23, %v516_v22  ;;  %v550_v36 = vpack.c.bf16 %v519_v27, %v518_v26  ;;  %v521_v39 = vld [vmem:[%s4938_s23 + $0x59] sm:$0xff]  ;;  %v2128_v40 = vld [vmem:[%s4938_s23 + $0xe4] sm:$0xff]  ;;  %v3973_v22 = vld [vmem:[%s5597_s1 + $0x10] sm:$0x3] }
  0x3f   : > { %4361 = vmatprep.mubr.msk.bf16.mxu0 %vm235_vm2, %v5033_v33  ;;  %4431 = vmatprep.subr.bf16.mxu0 %v5036_v34  ;;  %v551_v47 = vpack.c.bf16 %v521_v39, %v520_v38  ;;  %v5152_v48 = vpack.c.bf16 %v2129_v41, %v2128_v40  ;;  %v5202_v24 = vand.u32 %v3973_v22, %v4922_v5  ;;  %v538_v5 = vld [vmem:[%s4938_s23 + $0xe1] sm:$0xff]  ;;  %v539_v26 = vld [vmem:[%s4938_s23 + $0xe9] sm:$0xff]  ;;  %v545_v38 = vld [vmem:[%s4938_s23 + $0x119] sm:$0xff] }
  0x40   : > { %v909_v39 = vld [vmem:[%s4938_s23 + $0xa] sm:$0xff] }
  0x41   : > { %v2902_v22 = vld [vmem:[%s4938_s23 + $0x45] sm:$0xff] }
  0x45   : > { %4192 = vmatmul.mubr.msk.bf16.gmra.mrb[24].mxu1 %vm235_vm2, %v229_v43  ;;  %4362 = vmatmul.mubr.msk.bf16.gmra.mrb[4].mxu0 %vm235_vm2, %v5054_v44  ;;  %v523_v43 = vld [vmem:[%s4938_s23 + $0x69] sm:$0xff] }
  0x46   : > { %4195 = vmatprep.mubr.msk.bf16.mxu1 %vm235_vm2, %v230_v29  ;;  %4365 = vmatprep.mubr.msk.bf16.mxu0 %vm235_vm2, %v5056_v45  ;;  %v2130_v29 = vld [vmem:[%s4938_s23 + $0xf4] sm:$0xff]  ;;  %v552_v49 = vpack.c.bf16 %v523_v43, %v522_v42  ;;  %v913_v43 = vld [vmem:[%s4938_s23 + $0x2a] sm:$0xff] }
  0x47   : > { %v5154_v50 = vpack.c.bf16 %v2131_v46, %v2130_v29  ;;  %v911_v42 = vld [vmem:[%s4938_s23 + $0x1a] sm:$0xff] }
  0x4d   : > { %4196 = vmatmul.mubr.msk.bf16.gmra.mrb[28].mxu1 %vm235_vm2, %v231_v54  ;;  %4366 = vmatmul.mubr.msk.bf16.gmra.mrb[8].mxu0 %vm235_vm2, %v5072_v55  ;;  %v2133_v54 = vld [vmem:[%s4938_s23 + $0x10c] sm:$0xff] }
  0x4e   : > { %4199 = vmatprep.mubr.msk.bf16.mxu1 %vm235_vm2, %v232_v56  ;;  %4369 = vmatprep.mubr.msk.bf16.mxu0 %vm235_vm2, %v5074_v57  ;;  %v526_v56 = vld [vmem:[%s4938_s23 + $0x81] sm:$0xff]  ;;  %v5170_v62 = vpack.c.bf16 %v2133_v54, %v2132_v53  ;;  %v921_v53 = vld [vmem:[%s4938_s23 + $0x6a] sm:$0xff] }
  0x4f   : > { %v554_v63 = vpack.c.bf16 %v527_v58, %v526_v56  ;;  %v5282_v56 = vpack.c.bf16 %v921_v53, %v920_v52  ;;  %v924_v58 = vld [vmem:[%s4938_s23 + $0x82] sm:$0xff]  ;;  %v943_v52 = vld [vmem:[%s4938_s23 + $0x11a] sm:$0xff] }
  0x50   : > { %v2912_v53 = vld [vmem:[%s4938_s23 + $0x95] sm:$0xff] }
  0x55   : > { %4200 = vmatmul.mubr.msk.bf16.gmra.mrb[32].mxu1 %vm235_vm2, %v233_v2  ;;  %4370 = vmatmul.mubr.msk.bf16.gmra.mrb[12].mxu0 %vm235_vm2, %v5090_v3  ;;  %v529_v2 = vld [vmem:[%s4938_s23 + $0x99] sm:$0xff] }
  0x56   : > { %4205 = vmatprep.mubr.msk.bf16.mxu1 %vm235_vm2, %v546_v4  ;;  %4373 = vmatprep.mubr.msk.bf16.mxu0 %vm235_vm2, %v5092_v6  ;;  %v2136_v4 = vld [vmem:[%s4938_s23 + $0x124] sm:$0xff]  ;;  %v555_v11 = vpack.c.bf16 %v529_v2, %v528_v1  ;;  %v2535_v1 = vld [vmem:[%s4938_s23 + $0x13c] sm:$0xff] }
  0x57   : > { %v5186_v12 = vpack.c.bf16 %v2137_v7, %v2136_v4  ;;  %v928_v2 = vld [vmem:[%s4938_s23 + $0xa2] sm:$0xff]  ;;  %v929_v4 = vld [vmem:[%s4938_s23 + $0xaa] sm:$0xff] }
  0x58   : > { %v2898_v7 = vld [vmem:[%s4938_s23 + $0x25] sm:$0xff] }
  0x5d   : > { %4206 = vmatmul.mubr.msk.bf16.vlgmr.msra.gmra.mrb[0].mxu1 %vm235_vm2, %v547_v16  ;;  %4374 = vmatmul.mubr.msk.bf16.gmra.mrb[16].mxu0 %vm235_vm2, %v5111_v18  ;;  %v534_v16 = vld [vmem:[%s4938_s23 + $0xc1] sm:$0xff] }
  0x5e   : > { %4242 = vmatpush3.bf16.msra.mxu1 %v4965_v32  ;;  %4209 = vmatprep.mubr.msk.bf16.mxu1 %vm235_vm2, %v548_v19  ;;  %v2126_v32 = vld [vmem:[%s4938_s23 + $0xd4] sm:$0xff]  ;;  %v557_v19 = vpack.c.bf16 %v533_v15, %v532_v14  ;;  %v558_v23 = vpack.c.bf16 %v535_v17, %v534_v16  ;;  %v2901_v16 = vld [vmem:[%s4938_s23 + $0x3d] sm:$0xff] }
  0x5f   : > { %4377 = vmatprep.mubr.msk.bf16.mxu0 %vm235_vm2, %v5113_v20  ;;  %4279 = vmatprep.subr.bf16.mxu1 %v5116_v21  ;;  %v5136_v37 = vpack.c.bf16 %v2127_v28, %v2126_v32  ;;  %v560_v32 = vpack.c.bf16 %v539_v26, %v538_v5  ;;  %v543_v28 = vld [vmem:[%s4938_s23 + $0x109] sm:$0xff]  ;;  %v931_v14 = vld [vmem:[%s4938_s23 + $0xba] sm:$0xff] }
  0x60   : > { %v2900_v15 = vld [vmem:[%s4938_s23 + $0x35] sm:$0xff]  ;;  %v932_v17 = vld [vmem:[%s4938_s23 + $0xc2] sm:$0xff] }
  0x65   : > { %4210 = vmatmul.mubr.msk.bf16.gmra.mrb[4].mxu1 %vm235_vm2, %v549_v31  ;;  %4378 = vmatmul.mubr.msk.bf16.gmra.mrb[20].mxu0 %vm235_vm2, %v5134_v35 }
  0x66   : > { %4213 = vmatprep.mubr.msk.bf16.mxu1 %vm235_vm2, %v550_v36  ;;  %4381 = vmatprep.mubr.msk.bf16.mxu0 %vm235_vm2, %v5136_v37 }
  0x6d   : > { %4214 = vmatmul.mubr.msk.bf16.gmra.mrb[8].mxu1 %vm235_vm2, %v551_v47  ;;  %4382 = vmatmul.mubr.msk.bf16.gmra.mrb[24].mxu0 %vm235_vm2, %v5152_v48  ;;  %v916_v47 = vld [vmem:[%s4938_s23 + $0x42] sm:$0xff] }
  0x6e   : > { %4217 = vmatprep.mubr.msk.bf16.mxu1 %vm235_vm2, %v552_v49  ;;  %4385 = vmatprep.mubr.msk.bf16.mxu0 %vm235_vm2, %v5154_v50  ;;  %v917_v49 = vld [vmem:[%s4938_s23 + $0x4a] sm:$0xff] }
  0x75   : > { %4218 = vmatmul.mubr.msk.bf16.gmra.mrb[12].mxu1 %vm235_vm2, %v553_v61  ;;  %4386 = vmatmul.mubr.msk.bf16.gmra.mrb[28].mxu0 %vm235_vm2, %v5170_v62  ;;  %v5298_v61 = vpack.c.bf16 %v925_v59, %v924_v58  ;;  %v2915_v58 = vld [vmem:[%s4938_s23 + $0xad] sm:$0xff] }
  0x76   : > { %4221 = vmatprep.mubr.msk.bf16.mxu1 %vm235_vm2, %v554_v63  ;;  %4389 = vmatprep.mubr.msk.bf16.mxu0 %vm235_vm2, %v5172_v0  ;;  %v927_v63 = vld [vmem:[%s4938_s23 + $0x9a] sm:$0xff] }
  0x7d   : > { %4222 = vmatmul.mubr.msk.bf16.gmra.mrb[16].mxu1 %vm235_vm2, %v555_v11  ;;  %4390 = vmatmul.mubr.msk.bf16.gmra.mrb[32].mxu0 %vm235_vm2, %v5186_v12  ;;  %v5318_v11 = vpack.c.bf16 %v929_v4, %v928_v2  ;;  %v2918_v2 = vld [vmem:[%s4938_s23 + $0xc5] sm:$0xff]  ;;  %v2919_v4 = vld [vmem:[%s4938_s23 + $0xcd] sm:$0xff] }
  0x7e   : > { %4225 = vmatprep.mubr.msk.bf16.mxu1 %vm235_vm2, %v556_v13  ;;  %4395 = vmatprep.mubr.msk.bf16.mxu0 %vm235_vm2, %v5031_v30  ;;  %v536_v30 = vld [vmem:[%s4938_s23 + $0xd1] sm:$0xff] }
  0x7f   : > { %v559_v27 = vpack.c.bf16 %v537_v25, %v536_v30  ;;  %v2935_v25 = vpack.c.bf16 %v2901_v16, %v2900_v15  ;;  %v2927_v16 = vld [vmem:[%s4938_s23 + $0x10d] sm:$0xff] }
  0x85   : > { %4226 = vmatmul.mubr.msk.bf16.gmra.mrb[20].mxu1 %vm235_vm2, %v557_v19  ;;  %4396 = vmatmul.mubr.msk.bf16.vlgmr.msra.gmra.mrb[0].mxu0 %vm235_vm2, %v5033_v33  ;;  %v540_v33 = vld [vmem:[%s4938_s23 + $0xf1] sm:$0xff] }
  0x86   : > { %4229 = vmatprep.mubr.msk.bf16.mxu1 %vm235_vm2, %v558_v23  ;;  %4432 = vmatpush3.bf16.msra.mxu0 %v5036_v34  ;;  %v541_v34 = vld [vmem:[%s4938_s23 + $0xf9] sm:$0xff]  ;;  %v933_v19 = vld [vmem:[%s4938_s23 + $0xca] sm:$0xff] }
  0x87   : > { %4399 = vmatprep.mubr.msk.bf16.mxu0 %vm235_vm2, %v5054_v44  ;;  %4469 = vmatprep.subr.bf16.mxu0 %v5202_v24  ;;  %v542_v44 = vld [vmem:[%s4938_s23 + $0x101] sm:$0xff]  ;;  %v561_v31 = vpack.c.bf16 %v541_v34, %v540_v33  ;;  %v2903_v23 = vld [vmem:[%s4938_s23 + $0x4d] sm:$0xff]  ;;  %v5336_v5 = vpack.c.bf16 %v933_v19, %v932_v17  ;;  %v2904_v33 = vld [vmem:[%s4938_s23 + $0x55] sm:$0xff] }
  0x88   : > { %v562_v36 = vpack.c.bf16 %v543_v28, %v542_v44  ;;  %v2936_v26 = vpack.c.bf16 %v2903_v23, %v2902_v22  ;;  %v2905_v34 = vld [vmem:[%s4938_s23 + $0x5d] sm:$0xff]  ;;  %v937_v28 = vld [vmem:[%s4938_s23 + $0xea] sm:$0xff] }
  0x89   : > { %v936_v44 = vld [vmem:[%s4938_s23 + $0xe2] sm:$0xff]  ;;  %v2931_v23 = vld [vmem:[%s4938_s23 + $0x12d] sm:$0xff] }
  0x8a   : > { %v2930_v22 = vld [vmem:[%s4938_s23 + $0x125] sm:$0xff] }
  0x8d   : > { %4230 = vmatmul.mubr.msk.bf16.gmra.mrb[24].mxu1 %vm235_vm2, %v559_v27  ;;  %4400 = vmatmul.mubr.msk.bf16.gmra.mrb[4].mxu0 %vm235_vm2, %v5056_v45  ;;  %v544_v45 = vld [vmem:[%s4938_s23 + $0x111] sm:$0xff] }
  0x8e   : > { %4233 = vmatprep.mubr.msk.bf16.mxu1 %vm235_vm2, %v560_v32  ;;  %4403 = vmatprep.mubr.msk.bf16.mxu0 %vm235_vm2, %v5072_v55  ;;  %v908_v55 = vld [vmem:[%s4938_s23 + $0x2] sm:$0xff]  ;;  %v563_v40 = vpack.c.bf16 %v545_v38, %v544_v45  ;;  %v934_v27 = vld [vmem:[%s4938_s23 + $0xd2] sm:$0xff]  ;;  %v935_v32 = vld [vmem:[%s4938_s23 + $0xda] sm:$0xff]  ;;  %v2937_v38 = vpack.c.bf16 %v2905_v34, %v2904_v33 }
  0x8f   : > { %v944_v41 = vpack.c.bf16 %v909_v39, %v908_v55  ;;  %v5353_v45 = vpack.c.bf16 %v935_v32, %v934_v27  ;;  %v5355_v55 = vpack.c.bf16 %v937_v28, %v936_v44  ;;  %v3296_v27 = vld [vmem:[%s4938_s23 + $0x26] sm:$0xff]  ;;  %v3297_v32 = vld [vmem:[%s4938_s23 + $0x2e] sm:$0xff] }
  0x90   : > { %v3332_v34 = vpack.c.bf16 %v3297_v32, %v3296_v27  ;;  %v3300_v44 = vld [vmem:[%s4938_s23 + $0x46] sm:$0xff]  ;;  %v3301_v28 = vld [vmem:[%s4938_s23 + $0x4e] sm:$0xff] }
  0x91   : > { %v3324_v27 = vld [vmem:[%s4938_s23 + $0x106] sm:$0xff]  ;;  %v3325_v32 = vld [vmem:[%s4938_s23 + $0x10e] sm:$0xff] }
  0x95   : > { %4234 = vmatmul.mubr.msk.bf16.gmra.mrb[28].mxu1 %vm235_vm2, %v561_v31  ;;  %4404 = vmatmul.mubr.msk.bf16.gmra.mrb[8].mxu0 %vm235_vm2, %v5074_v57  ;;  %v910_v57 = vld [vmem:[%s4938_s23 + $0x12] sm:$0xff]  ;;  %v2906_v31 = vld [vmem:[%s4938_s23 + $0x65] sm:$0xff] }
  0x96   : > { %4237 = vmatprep.mubr.msk.bf16.mxu1 %vm235_vm2, %v562_v36  ;;  %4407 = vmatprep.mubr.msk.bf16.mxu0 %vm235_vm2, %v5090_v3  ;;  %v912_v3 = vld [vmem:[%s4938_s23 + $0x22] sm:$0xff]  ;;  %v5246_v29 = vpack.c.bf16 %v911_v42, %v910_v57  ;;  %v2907_v36 = vld [vmem:[%s4938_s23 + $0x6d] sm:$0xff] }
  0x97   : > { %v5248_v46 = vpack.c.bf16 %v913_v43, %v912_v3  ;;  %v2938_v39 = vpack.c.bf16 %v2907_v36, %v2906_v31  ;;  %v2909_v57 = vld [vmem:[%s4938_s23 + $0x7d] sm:$0xff]  ;;  %v941_v3 = vld [vmem:[%s4938_s23 + $0x10a] sm:$0xff]  ;;  %v3334_v36 = vpack.c.bf16 %v3301_v28, %v3300_v44 }
  0x98   : > { %v940_v42 = vld [vmem:[%s4938_s23 + $0x102] sm:$0xff]  ;;  %v1739_v28 = vld [vmem:[%s4938_s23 + $0x12b] sm:$0xff] }
  0x99   : > { %v2910_v43 = vld [vmem:[%s4938_s23 + $0x85] sm:$0xff] }
  0x9a   : > { %v1738_v44 = vld [vmem:[%s4938_s23 + $0x123] sm:$0xff] }
  0x9d   : > { %4238 = vmatmul.mubr.msk.bf16.gmra.mrb[32].mxu1 %vm235_vm2, %v563_v40  ;;  %4408 = vmatmul.mubr.msk.bf16.gmra.mrb[12].mxu0 %vm235_vm2, %v5092_v6  ;;  %v914_v6 = vld [vmem:[%s4938_s23 + $0x32] sm:$0xff]  ;;  %v939_v40 = vld [vmem:[%s4938_s23 + $0xfa] sm:$0xff] }
  0x9e   : > { %4243 = vmatprep.mubr.msk.bf16.mxu1 %vm235_vm2, %v944_v41  ;;  %4411 = vmatprep.mubr.msk.bf16.mxu0 %vm235_vm2, %v5111_v18  ;;  %v915_v18 = vld [vmem:[%s4938_s23 + $0x3a] sm:$0xff] }
  0x9f   : > { %v5264_v51 = vpack.c.bf16 %v915_v18, %v914_v6  ;;  %v2908_v41 = vld [vmem:[%s4938_s23 + $0x75] sm:$0xff]  ;;  %v2911_v6 = vld [vmem:[%s4938_s23 + $0x8d] sm:$0xff] }
  0xa5   : > { %4244 = vmatmul.mubr.msk.bf16.vlgmr.msra.gmra.mrb[0].mxu1 %vm235_vm2, %v5246_v29  ;;  %4412 = vmatmul.mubr.msk.bf16.gmra.mrb[16].mxu0 %vm235_vm2, %v5113_v20  ;;  %v918_v20 = vld [vmem:[%s4938_s23 + $0x52] sm:$0xff] }
  0xa6   : > { %4280 = vmatpush3.bf16.msra.mxu1 %v5116_v21  ;;  %4247 = vmatprep.mubr.msk.bf16.mxu1 %vm235_vm2, %v5248_v46  ;;  %v5266_v21 = vpack.c.bf16 %v917_v49, %v916_v47  ;;  %v2939_v47 = vpack.c.bf16 %v2909_v57, %v2908_v41  ;;  %v5373_v49 = vpack.c.bf16 %v941_v3, %v940_v42  ;;  %v3308_v41 = vld [vmem:[%s4938_s23 + $0x86] sm:$0xff]  ;;  %v3309_v57 = vld [vmem:[%s4938_s23 + $0x8e] sm:$0xff] }
  0xa7   : > { %4415 = vmatprep.mubr.msk.bf16.mxu0 %vm235_vm2, %v5134_v35  ;;  %4507 = vmatprep.subr.bf16.mxu1 %v4929_v8  ;;  %v919_v35 = vld [vmem:[%s4938_s23 + $0x5a] sm:$0xff]  ;;  %v3338_v3 = vpack.c.bf16 %v3309_v57, %v3308_v41 }
  0xa8   : > { %v5280_v54 = vpack.c.bf16 %v919_v35, %v918_v20  ;;  %v2940_v20 = vpack.c.bf16 %v2911_v6, %v2910_v43  ;;  %v942_v35 = vld [vmem:[%s4938_s23 + $0x112] sm:$0xff]  ;;  %v1341_v43 = vld [vmem:[%s4938_s23 + $0x12a] sm:$0xff] }
  0xa9   : > { %v5387_v59 = vpack.c.bf16 %v943_v52, %v942_v35  ;;  %v3310_v6 = vld [vmem:[%s4938_s23 + $0x96] sm:$0xff]  ;;  %v3313_v35 = vld [vmem:[%s4938_s23 + $0xae] sm:$0xff] }
  0xad   : > { %4248 = vmatmul.mubr.msk.bf16.gmra.mrb[4].mxu1 %vm235_vm2, %v5264_v51  ;;  %4416 = vmatmul.mubr.msk.bf16.gmra.mrb[20].mxu0 %vm235_vm2, %v5136_v37  ;;  %v922_v37 = vld [vmem:[%s4938_s23 + $0x72] sm:$0xff] }
  0xae   : > { %4251 = vmatprep.mubr.msk.bf16.mxu1 %vm235_vm2, %v5266_v21  ;;  %4419 = vmatprep.mubr.msk.bf16.mxu0 %vm235_vm2, %v5152_v48  ;;  %v923_v48 = vld [vmem:[%s4938_s23 + $0x7a] sm:$0xff] }
  0xaf   : > { %v5296_v60 = vpack.c.bf16 %v923_v48, %v922_v37  ;;  %v2913_v37 = vld [vmem:[%s4938_s23 + $0x9d] sm:$0xff]  ;;  %v2914_v48 = vld [vmem:[%s4938_s23 + $0xa5] sm:$0xff] }
  0xb5   : > { %4252 = vmatmul.mubr.msk.bf16.gmra.mrb[8].mxu1 %vm235_vm2, %v5280_v54  ;;  %4420 = vmatmul.mubr.msk.bf16.gmra.mrb[24].mxu0 %vm235_vm2, %v5154_v50  ;;  %v926_v50 = vld [vmem:[%s4938_s23 + $0x92] sm:$0xff] }
  0xb6   : > { %4255 = vmatprep.mubr.msk.bf16.mxu1 %vm235_vm2, %v5282_v56  ;;  %4423 = vmatprep.mubr.msk.bf16.mxu0 %vm235_vm2, %v5170_v62  ;;  %v2534_v62 = vld [vmem:[%s4938_s23 + $0x134] sm:$0xff]  ;;  %v5316_v9 = vpack.c.bf16 %v927_v63, %v926_v50  ;;  %v2941_v50 = vpack.c.bf16 %v2913_v37, %v2912_v53  ;;  %v2942_v63 = vpack.c.bf16 %v2915_v58, %v2914_v48  ;;  %v1726_v58 = vld [vmem:[%s4938_s23 + $0xc3] sm:$0xff] }
  0xb7   : > { %v2553_v10 = vpack.c.bf16 %v2535_v1, %v2534_v62  ;;  %v2916_v62 = vld [vmem:[%s4938_s23 + $0xb5] sm:$0xff]  ;;  %v2917_v1 = vld [vmem:[%s4938_s23 + $0xbd] sm:$0xff] }
  0xbd   : > { %4256 = vmatmul.mubr.msk.bf16.gmra.mrb[12].mxu1 %vm235_vm2, %v5296_v60  ;;  %4424 = vmatmul.mubr.msk.bf16.gmra.mrb[28].mxu0 %vm235_vm2, %v5172_v0  ;;  %v2899_v0 = vld [vmem:[%s4938_s23 + $0x2d] sm:$0xff] }
  0xbe   : > { %4259 = vmatprep.mubr.msk.bf16.mxu1 %vm235_vm2, %v5298_v61  ;;  %4427 = vmatprep.mubr.msk.bf16.mxu0 %vm235_vm2, %v5186_v12  ;;  %v2934_v13 = vpack.c.bf16 %v2899_v0, %v2898_v7  ;;  %v930_v12 = vld [vmem:[%s4938_s23 + $0xb2] sm:$0xff]  ;;  %v2943_v7 = vpack.c.bf16 %v2917_v1, %v2916_v62  ;;  %v2944_v0 = vpack.c.bf16 %v2919_v4, %v2918_v2  ;;  %v1729_v1 = vld [vmem:[%s4938_s23 + $0xdb] sm:$0xff]  ;;  %v3316_v2 = vld [vmem:[%s4938_s23 + $0xc6] sm:$0xff] }
  0xbf   : > { %v5334_v30 = vpack.c.bf16 %v931_v14, %v930_v12  ;;  %v2923_v12 = vld [vmem:[%s4938_s23 + $0xed] sm:$0xff] }
  0xc0   : > { %v1728_v62 = vld [vmem:[%s4938_s23 + $0xd3] sm:$0xff] }
  0xc1   : > { %v3317_v4 = vld [vmem:[%s4938_s23 + $0xce] sm:$0xff] }
  0xc5   : > { %4260 = vmatmul.mubr.msk.bf16.gmra.mrb[16].mxu1 %vm235_vm2, %v5316_v9  ;;  %4428 = vmatmul.mubr.msk.bf16.gmra.mrb[32].mxu0 %vm235_vm2, %v2553_v10  ;;  %v2921_v10 = vld [vmem:[%s4938_s23 + $0xdd] sm:$0xff] }
  0xc6   : > { %4263 = vmatprep.mubr.msk.bf16.mxu1 %vm235_vm2, %v5318_v11  ;;  %4433 = vmatprep.mubr.msk.bf16.mxu0 %vm235_vm2, %v2934_v13  ;;  %v2922_v13 = vld [vmem:[%s4938_s23 + $0xe5] sm:$0xff] }
  0xc7   : > { %v2946_v15 = vpack.c.bf16 %v2923_v12, %v2922_v13  ;;  %v1730_v13 = vld [vmem:[%s4938_s23 + $0xe3] sm:$0xff]  ;;  %v1731_v12 = vld [vmem:[%s4938_s23 + $0xeb] sm:$0xff] }
  0xcd   : > { %4264 = vmatmul.mubr.msk.bf16.gmra.mrb[20].mxu1 %vm235_vm2, %v5334_v30  ;;  %4434 = vmatmul.mubr.msk.bf16.vlgmr.msra.gmra.mrb[0].mxu0 %vm235_vm2, %v2935_v25 }
  0xce   : > { %4267 = vmatprep.mubr.msk.bf16.mxu1 %vm235_vm2, %v5336_v5  ;;  %4470 = vmatpush3.bf16.msra.mxu0 %v5202_v24  ;;  %v938_v24 = vld [vmem:[%s4938_s23 + $0xf2] sm:$0xff] }
  0xcf   : > { %4437 = vmatprep.mubr.msk.bf16.mxu0 %vm235_vm2, %v2936_v26  ;;  %v5371_v18 = vpack.c.bf16 %v939_v40, %v938_v24  ;;  %v2950_v26 = vpack.c.bf16 %v2931_v23, %v2930_v22  ;;  %v1734_v22 = vld [vmem:[%s4938_s23 + $0x103] sm:$0xff]  ;;  %v1735_v23 = vld [vmem:[%s4938_s23 + $0x10b] sm:$0xff] }
  0xd5   : > { %4268 = vmatmul.mubr.msk.bf16.gmra.mrb[24].mxu1 %vm235_vm2, %v5353_v45  ;;  %4438 = vmatmul.mubr.msk.bf16.gmra.mrb[4].mxu0 %vm235_vm2, %v2937_v38  ;;  %v3304_v38 = vld [vmem:[%s4938_s23 + $0x66] sm:$0xff] }
  0xd6   : > { %4271 = vmatprep.mubr.msk.bf16.mxu1 %vm235_vm2, %v5355_v55  ;;  %4441 = vmatprep.mubr.msk.bf16.mxu0 %vm235_vm2, %v2938_v39  ;;  %v3305_v39 = vld [vmem:[%s4938_s23 + $0x6e] sm:$0xff] }
  0xd7   : > { %v3336_v40 = vpack.c.bf16 %v3305_v39, %v3304_v38  ;;  %v1757_v38 = vpack.c.bf16 %v1739_v28, %v1738_v44 }
  0xdd   : > { %4272 = vmatmul.mubr.msk.bf16.gmra.mrb[28].mxu1 %vm235_vm2, %v5371_v18  ;;  %4442 = vmatmul.mubr.msk.bf16.gmra.mrb[8].mxu0 %vm235_vm2, %v2939_v47  ;;  %v1724_v47 = vld [vmem:[%s4938_s23 + $0xb3] sm:$0xff] }
  0xde   : > { %4275 = vmatprep.mubr.msk.bf16.mxu1 %vm235_vm2, %v5373_v49  ;;  %4445 = vmatprep.mubr.msk.bf16.mxu0 %vm235_vm2, %v2940_v20  ;;  %v1725_v20 = vld [vmem:[%s4938_s23 + $0xbb] sm:$0xff] }
  0xdf   : > { %v1750_v37 = vpack.c.bf16 %v1725_v20, %v1724_v47 }
  0xe5   : > { %4276 = vmatmul.mubr.msk.bf16.gmra.mrb[32].mxu1 %vm235_vm2, %v5387_v59  ;;  %4446 = vmatmul.mubr.msk.bf16.gmra.mrb[12].mxu0 %vm235_vm2, %v2941_v50  ;;  %v3314_v50 = vld [vmem:[%s4938_s23 + $0xb6] sm:$0xff] }
  0xe6   : > { %4281 = vmatprep.mubr.msk.bf16.mxu1 %vm235_vm2, %v5246_v29  ;;  %4449 = vmatprep.mubr.msk.bf16.mxu0 %vm235_vm2, %v2942_v63  ;;  %v2920_v29 = vld [vmem:[%s4938_s23 + $0xd5] sm:$0xff]  ;;  %v3315_v63 = vld [vmem:[%s4938_s23 + $0xbe] sm:$0xff] }
  0xe7   : > { %v2945_v14 = vpack.c.bf16 %v2921_v10, %v2920_v29  ;;  %v1752_v29 = vpack.c.bf16 %v1729_v1, %v1728_v62  ;;  %v3342_v10 = vpack.c.bf16 %v3317_v4, %v3316_v2 }
  0xed   : > { %4282 = vmatmul.mubr.msk.bf16.vlgmr.msra.gmra.mrb[0].mxu1 %vm235_vm2, %v5248_v46  ;;  %4450 = vmatmul.mubr.msk.bf16.gmra.mrb[16].mxu0 %vm235_vm2, %v2943_v7  ;;  %v2925_v46 = vld [vmem:[%s4938_s23 + $0xfd] sm:$0xff] }
  0xee   : > { %4508 = vmatpush3.bf16.msra.mxu1 %v4929_v8  ;;  %4285 = vmatprep.mubr.msk.bf16.mxu1 %vm235_vm2, %v5264_v51  ;;  %v2924_v8 = vld [vmem:[%s4938_s23 + $0xf5] sm:$0xff]  ;;  %v2926_v51 = vld [vmem:[%s4938_s23 + $0x105] sm:$0xff] }
  0xef   : > { %4453 = vmatprep.mubr.msk.bf16.mxu0 %vm235_vm2, %v2944_v0  ;;  %v2947_v17 = vpack.c.bf16 %v2925_v46, %v2924_v8  ;;  %v2948_v19 = vpack.c.bf16 %v2927_v16, %v2926_v51  ;;  %v3341_v0 = vpack.c.bf16 %v3315_v63, %v3314_v50  ;;  %v1732_v8 = vld [vmem:[%s4938_s23 + $0xf3] sm:$0xff]  ;;  %v1733_v46 = vld [vmem:[%s4938_s23 + $0xfb] sm:$0xff]  ;;  %v3320_v51 = vld [vmem:[%s4938_s23 + $0xe6] sm:$0xff] }
  0xf0   : > { %v3321_v16 = vld [vmem:[%s4938_s23 + $0xee] sm:$0xff] }
  0xf5   : > { %4286 = vmatmul.mubr.msk.bf16.gmra.mrb[4].mxu1 %vm235_vm2, %v5266_v21  ;;  %4454 = vmatmul.mubr.msk.bf16.gmra.mrb[20].mxu0 %vm235_vm2, %v2945_v14  ;;  %v2928_v21 = vld [vmem:[%s4938_s23 + $0x115] sm:$0xff] }
  0xf6   : > { %4289 = vmatprep.mubr.msk.bf16.mxu1 %vm235_vm2, %v5280_v54  ;;  %4457 = vmatprep.mubr.msk.bf16.mxu0 %vm235_vm2, %v2946_v15  ;;  %v2929_v54 = vld [vmem:[%s4938_s23 + $0x11d] sm:$0xff] }
  0xf7   : > { %v2949_v25 = vpack.c.bf16 %v2929_v54, %v2928_v21  ;;  %v3318_v14 = vld [vmem:[%s4938_s23 + $0xd6] sm:$0xff]  ;;  %v3319_v15 = vld [vmem:[%s4938_s23 + $0xde] sm:$0xff]  ;;  %v1754_v21 = vpack.c.bf16 %v1733_v46, %v1732_v8  ;;  %v3344_v54 = vpack.c.bf16 %v3321_v16, %v3320_v51 }
  0xfd   : > { %4290 = vmatmul.mubr.msk.bf16.gmra.mrb[8].mxu1 %vm235_vm2, %v5282_v56  ;;  %4458 = vmatmul.mubr.msk.bf16.gmra.mrb[24].mxu0 %vm235_vm2, %v2947_v17  ;;  %v2932_v56 = vld [vmem:[%s4938_s23 + $0x135] sm:$0xff]  ;;  %v1753_v17 = vpack.c.bf16 %v1731_v12, %v1730_v13 }
  0xfe   : > { %4293 = vmatprep.mubr.msk.bf16.mxu1 %vm235_vm2, %v5296_v60  ;;  %4461 = vmatprep.mubr.msk.bf16.mxu0 %vm235_vm2, %v2948_v19  ;;  %v2933_v60 = vld [vmem:[%s4938_s23 + $0x13d] sm:$0xff]  ;;  %v3343_v19 = vpack.c.bf16 %v3319_v15, %v3318_v14 }
  0xff   : > { %v2951_v33 = vpack.c.bf16 %v2933_v60, %v2932_v56  ;;  %v1736_v56 = vld [vmem:[%s4938_s23 + $0x113] sm:$0xff]  ;;  %v1737_v60 = vld [vmem:[%s4938_s23 + $0x11b] sm:$0xff] }
 0x105   : > { %4294 = vmatmul.mubr.msk.bf16.gmra.mrb[12].mxu1 %vm235_vm2, %v5298_v61  ;;  %4462 = vmatmul.mubr.msk.bf16.gmra.mrb[28].mxu0 %vm235_vm2, %v2949_v25  ;;  %v3298_v61 = vld [vmem:[%s4938_s23 + $0x36] sm:$0xff] }
 0x106   : > { %4297 = vmatprep.mubr.msk.bf16.mxu1 %vm235_vm2, %v5316_v9  ;;  %4465 = vmatprep.mubr.msk.bf16.mxu0 %vm235_vm2, %v2950_v26  ;;  %v3299_v9 = vld [vmem:[%s4938_s23 + $0x3e] sm:$0xff]  ;;  %v3322_v25 = vld [vmem:[%s4938_s23 + $0xf6] sm:$0xff] }
 0x107   : > { %v3333_v31 = vpack.c.bf16 %v3299_v9, %v3298_v61  ;;  %v3323_v26 = vld [vmem:[%s4938_s23 + $0xfe] sm:$0xff]  ;;  %v1756_v61 = vpack.c.bf16 %v1737_v60, %v1736_v56  ;;  %v3346_v9 = vpack.c.bf16 %v3325_v32, %v3324_v27 }
 0x10d   : > { %4298 = vmatmul.mubr.msk.bf16.gmra.mrb[16].mxu1 %vm235_vm2, %v5318_v11  ;;  %4466 = vmatmul.mubr.msk.bf16.gmra.mrb[32].mxu0 %vm235_vm2, %v2951_v33  ;;  %v3302_v11 = vld [vmem:[%s4938_s23 + $0x56] sm:$0xff]  ;;  %v1755_v33 = vpack.c.bf16 %v1735_v23, %v1734_v22 }
 0x10e   : > { %4301 = vmatprep.mubr.msk.bf16.mxu1 %vm235_vm2, %v5334_v30  ;;  %4471 = vmatprep.mubr.msk.bf16.mxu0 %vm235_vm2, %v3332_v34  ;;  %v3303_v30 = vld [vmem:[%s4938_s23 + $0x5e] sm:$0xff]  ;;  %v3345_v34 = vpack.c.bf16 %v3323_v26, %v3322_v25 }
 0x10f   : > { %v3335_v24 = vpack.c.bf16 %v3303_v30, %v3302_v11  ;;  %v3328_v11 = vld [vmem:[%s4938_s23 + $0x126] sm:$0xff]  ;;  %v3329_v30 = vld [vmem:[%s4938_s23 + $0x12e] sm:$0xff] }
 0x115   : > { %4302 = vmatmul.mubr.msk.bf16.gmra.mrb[20].mxu1 %vm235_vm2, %v5336_v5  ;;  %4472 = vmatmul.mubr.msk.bf16.vlgmr.msra.gmra.mrb[0].mxu0 %vm235_vm2, %v3333_v31  ;;  %v3306_v5 = vld [vmem:[%s4938_s23 + $0x76] sm:$0xff] }
 0x116   : > { %4305 = vmatprep.mubr.msk.bf16.mxu1 %vm235_vm2, %v5353_v45  ;;  %4475 = vmatprep.mubr.msk.bf16.mxu0 %vm235_vm2, %v3334_v36  ;;  %v3307_v45 = vld [vmem:[%s4938_s23 + $0x7e] sm:$0xff]  ;;  %v3326_v31 = vld [vmem:[%s4938_s23 + $0x116] sm:$0xff] }
 0x117   : > { %v3337_v42 = vpack.c.bf16 %v3307_v45, %v3306_v5  ;;  %v3327_v36 = vld [vmem:[%s4938_s23 + $0x11e] sm:$0xff] }
 0x118   : > { %v3347_v39 = vpack.c.bf16 %v3327_v36, %v3326_v31  ;;  %v3331_v5 = vld [vmem:[%s4938_s23 + $0x13e] sm:$0xff] }
 0x11d   : > { %4306 = vmatmul.mubr.msk.bf16.gmra.mrb[24].mxu1 %vm235_vm2, %v5355_v55  ;;  %4476 = vmatmul.mubr.msk.bf16.gmra.mrb[4].mxu0 %vm235_vm2, %v3335_v24  ;;  %v1340_v55 = vld [vmem:[%s4938_s23 + $0x122] sm:$0xff]  ;;  %v3348_v24 = vpack.c.bf16 %v3329_v30, %v3328_v11 }
 0x11e   : > { %4309 = vmatprep.mubr.msk.bf16.mxu1 %vm235_vm2, %v5371_v18  ;;  %4479 = vmatprep.mubr.msk.bf16.mxu0 %vm235_vm2, %v3336_v40  ;;  %v3311_v18 = vld [vmem:[%s4938_s23 + $0x9e] sm:$0xff]  ;;  %v1359_v52 = vpack.c.bf16 %v1341_v43, %v1340_v55  ;;  %v3330_v40 = vld [vmem:[%s4938_s23 + $0x136] sm:$0xff] }
 0x11f   : > { %v3339_v53 = vpack.c.bf16 %v3311_v18, %v3310_v6  ;;  %v3349_v45 = vpack.c.bf16 %v3331_v5, %v3330_v40 }
 0x125   : > { %4310 = vmatmul.mubr.msk.bf16.gmra.mrb[28].mxu1 %vm235_vm2, %v5373_v49  ;;  %4480 = vmatmul.mubr.msk.bf16.gmra.mrb[8].mxu0 %vm235_vm2, %v3337_v42  ;;  %v3312_v49 = vld [vmem:[%s4938_s23 + $0xa6] sm:$0xff] }
 0x126   : > { %4313 = vmatprep.mubr.msk.bf16.mxu1 %vm235_vm2, %v5387_v59  ;;  %4483 = vmatprep.mubr.msk.bf16.mxu0 %vm235_vm2, %v3338_v3  ;;  %v3340_v48 = vpack.c.bf16 %v3313_v35, %v3312_v49  ;;  %v1727_v59 = vld [vmem:[%s4938_s23 + $0xcb] sm:$0xff] }
 0x127   : > { %v1751_v7 = vpack.c.bf16 %v1727_v59, %v1726_v58 }
 0x12d   : > { %4314 = vmatmul.mubr.msk.bf16.gmra.mrb[32].mxu1 %vm235_vm2, %v1359_v52  ;;  %4484 = vmatmul.mubr.msk.bf16.gmra.mrb[12].mxu0 %vm235_vm2, %v3339_v53 }
 0x12e   : > { %4339 = vmatprep.mubr.msk.bf16.mxu1 %vm235_vm2, %v1750_v37  ;;  %4487 = vmatprep.mubr.msk.bf16.mxu0 %vm235_vm2, %v3340_v48 }
 0x135   : > { %4340 = vmatmul.mubr.msk.bf16.vlgmr.msra.gmra.mrb[20].mxu1 %vm235_vm2, %v1751_v7  ;;  %4488 = vmatmul.mubr.msk.bf16.gmra.mrb[16].mxu0 %vm235_vm2, %v3341_v0 }
 0x136   : > { %4343 = vmatprep.mubr.msk.bf16.mxu1 %vm235_vm2, %v1752_v29  ;;  %4491 = vmatprep.mubr.msk.bf16.mxu0 %vm235_vm2, %v3342_v10 }
 0x13d   : > { %4344 = vmatmul.mubr.msk.bf16.gmra.mrb[24].mxu1 %vm235_vm2, %v1753_v17  ;;  %4492 = vmatmul.mubr.msk.bf16.gmra.mrb[20].mxu0 %vm235_vm2, %v3343_v19 }
 0x13e   : > { %4347 = vmatprep.mubr.msk.bf16.mxu1 %vm235_vm2, %v1754_v21  ;;  %4495 = vmatprep.mubr.msk.bf16.mxu0 %vm235_vm2, %v3344_v54 }
 0x145   : > { %4348 = vmatmul.mubr.msk.bf16.gmra.mrb[28].mxu1 %vm235_vm2, %v1755_v33  ;;  %4496 = vmatmul.mubr.msk.bf16.gmra.mrb[24].mxu0 %vm235_vm2, %v3345_v34 }
 0x146   : > { %4351 = vmatprep.mubr.msk.bf16.mxu1 %vm235_vm2, %v1756_v61  ;;  %4499 = vmatprep.mubr.msk.bf16.mxu0 %vm235_vm2, %v3346_v9 }
 0x14d   : > { %4352 = vmatmul.mubr.msk.bf16.gmra.mrb[32].mxu1 %vm235_vm2, %v1757_v38  ;;  %4500 = vmatmul.mubr.msk.bf16.gmra.mrb[28].mxu0 %vm235_vm2, %v3347_v39 }
 0x14e   : > { %4503 = vmatprep.mubr.msk.bf16.mxu0 %vm235_vm2, %v3348_v24 }
 0x155   : > { %4504 = vmatmul.mubr.msk.bf16.gmra.mrb[32].mxu0 %vm235_vm2, %v3349_v45 }
 0x1c0   : > { %v4283_v41 = vpop.f32.mrb[0].mxu1 }
 0x1c1   : > { %v1453_v57 = vpop.f32.mrb[1].mxu1 }
 0x1c2   : > { %v4284_v42 = vpop.f32.mrb[2].mxu1 }
 0x1c3   : > { %v1456_v3 = vpop.f32.mrb[3].mxu1 }
 0x1c8   : > { %v4287_v55 = vpop.f32.mrb[4].mxu1 }
 0x1c9   : > { %v1469_v43 = vpop.f32.mrb[5].mxu1 }
 0x1ca   : > { %v4288_v6 = vpop.f32.mrb[6].mxu1 }
 0x1cb   : > { %v1472_v18 = vpop.f32.mrb[7].mxu1 }
 0x1d0   : > { %v4291_v47 = vpop.f32.mrb[8].mxu1 }
 0x1d1   : > { %v1485_v20 = vpop.f32.mrb[9].mxu1 }
 0x1d2   : > { %v4292_v49 = vpop.f32.mrb[10].mxu1 }
 0x1d3   : > { %v1488_v35 = vpop.f32.mrb[11].mxu1 }
 0x1d8   : > { %v4295_v52 = vpop.f32.mrb[12].mxu1 }
 0x1d9   : > { %v1501_v53 = vpop.f32.mrb[13].mxu1 }
 0x1da   : > { %v5536_v37 = vpop.f32.mrb[14].mxu1 }
 0x1db   : > { %v5538_v48 = vpop.f32.mrb[15].mxu1 }
 0x1e0   : > { %v5542_v58 = vpop.f32.mrb[16].mxu1 }
 0x1e1   : > { %v5544_v59 = vpop.f32.mrb[17].mxu1 }
 0x1e2   : > { %v5546_v50 = vpop.f32.mrb[18].mxu1 }
 0x1e3   : > { %v5548_v63 = vpop.f32.mrb[19].mxu1 }
 0x1e8   : > { %v4473_v62 = vpop.f32.mrb[0].mxu0 }
 0x1e9   : > { %v4511_v1 = vadd.f32 %v4473_v62, %v4283_v41  ;;  %v3443_v2 = vpop.f32.mrb[1].mxu0 }
 0x1ea   : > { %v4514_v4 = vadd.f32 %v3443_v2, %v1453_v57  ;;  %v4474_v7 = vpop.f32.mrb[2].mxu0 }
 0x1eb   : > { %3660 = vst [vmem:[#allocation2 + $0x10] sm:$0xff] %v4511_v1  ;;  %v4517_v0 = vadd.f32 %v4474_v7, %v4284_v42  ;;  %v3446_v29 = vpop.f32.mrb[3].mxu0 }
 0x1ec   : > { %3696 = vst [vmem:[%s5553_s12] sm:$0xff] %v4514_v4  ;;  %v4520_v10 = vadd.f32 %v3446_v29, %v1456_v3 }
 0x1ed   : > { %3661 = vst [vmem:[#allocation2 + $0x18] sm:$0xff] %v4517_v0 }
 0x1ee   : > { %3697 = vst [vmem:[%s5553_s12 + $0x8] sm:$0xff] %v4520_v10 }
 0x1f0   : > { %v4477_v13 = vpop.f32.mrb[4].mxu0 }
 0x1f1   : > { %v4523_v12 = vadd.f32 %v4477_v13, %v4287_v55  ;;  %v3459_v14 = vpop.f32.mrb[5].mxu0 }
 0x1f2   : > { %v4526_v15 = vadd.f32 %v3459_v14, %v1469_v43  ;;  %v4478_v8 = vpop.f32.mrb[6].mxu0 }
 0x1f3   : > { %3664 = vst [vmem:[#allocation2 + $0x30] sm:$0xff] %v4523_v12  ;;  %v4529_v46 = vadd.f32 %v4478_v8, %v4288_v6  ;;  %v3462_v51 = vpop.f32.mrb[7].mxu0 }
 0x1f4   : > { %v3698_v16 = vld [vmem:[#allocation2 + $0x12] sm:$0xff]  ;;  %3662 = vst [vmem:[#allocation2 + $0x20] sm:$0xff] %v4526_v15  ;;  %v4532_v17 = vadd.f32 %v3462_v51, %v1472_v18 }
 0x1f5   : > { %3700 = vst [vmem:[%s5553_s12 + $0x10] sm:$0xff] %v3698_v16  ;;  %3665 = vst [vmem:[#allocation2 + $0x38] sm:$0xff] %v4529_v46 }
 0x1f6   : > { %3663 = vst [vmem:[#allocation2 + $0x28] sm:$0xff] %v4532_v17 }
 0x1f8   : > { %v4481_v19 = vpop.f32.mrb[8].mxu0 }
 0x1f9   : > { %v4535_v21 = vadd.f32 %v4481_v19, %v4291_v47  ;;  %v3475_v54 = vpop.f32.mrb[9].mxu0 }
 0x1fa   : > { %v4538_v22 = vadd.f32 %v3475_v54, %v1485_v20  ;;  %v4482_v23 = vpop.f32.mrb[10].mxu0 }
 0x1fb   : > { %v3699_v25 = vld [vmem:[#allocation2 + $0x1a] sm:$0xff]  ;;  %3713 = vst [vmem:[%s5553_s12 + $0x48] sm:$0xff] %v4535_v21  ;;  %v4541_v26 = vadd.f32 %v4482_v23, %v4292_v49  ;;  %v3478_v56 = vpop.f32.mrb[11].mxu0 }
 0x1fc   : > { %3701 = vst [vmem:[%s5553_s12 + $0x18] sm:$0xff] %v3699_v25  ;;  %v3706_v60 = vld [vmem:[#allocation2 + $0x36] sm:$0xff]  ;;  %3666 = vst [vmem:[#allocation2 + $0x40] sm:$0xff] %v4538_v22  ;;  %v4544_v27 = vadd.f32 %v3478_v56, %v1488_v35 }
 0x1fd   : > { %3708 = vst [vmem:[%s5553_s12 + $0x30] sm:$0xff] %v3706_v60  ;;  %v3702_v32 = vld [vmem:[#allocation2 + $0x24] sm:$0xff]  ;;  %v3703_v33 = vld [vmem:[#allocation2 + $0x2c] sm:$0xff]  ;;  %3669 = vst [vmem:[#allocation2 + $0x58] sm:$0xff] %v4541_v26 }
 0x1fe   : > { %3704 = vst [vmem:[%s5553_s12 + $0x20] sm:$0xff] %v3702_v32  ;;  %3705 = vst [vmem:[%s5553_s12 + $0x28] sm:$0xff] %v3703_v33 }
 0x1ff   : > { %3712 = vst [vmem:[%s5553_s12 + $0x40] sm:$0xff] %v4544_v27 }
 0x200   : > { %v4485_v34 = vpop.f32.mrb[12].mxu0 }
 0x201   : > { %v4547_v61 = vadd.f32 %v4485_v34, %v4295_v52  ;;  %v3491_v9 = vpop.f32.mrb[13].mxu0 }
 0x202   : > { %v4550_v44 = vadd.f32 %v3491_v9, %v1501_v53  ;;  %v4486_v28 = vpop.f32.mrb[14].mxu0 }
 0x203   : > { %v3707_v31 = vld [vmem:[#allocation2 + $0x3e] sm:$0xff]  ;;  %3672 = vst [vmem:[#allocation2 + $0x70] sm:$0xff] %v4547_v61  ;;  %v4553_v36 = vadd.f32 %v4486_v28, %v5536_v37  ;;  %v3494_v11 = vpop.f32.mrb[15].mxu0 }
 0x204   : > { %3709 = vst [vmem:[%s5553_s12 + $0x38] sm:$0xff] %v3707_v31  ;;  %3670 = vst [vmem:[#allocation2 + $0x60] sm:$0xff] %v4550_v44  ;;  %v4556_v30 = vadd.f32 %v3494_v11, %v5538_v48 }
 0x205   : > { %3673 = vst [vmem:[#allocation2 + $0x78] sm:$0xff] %v4553_v36 }
 0x206   : > { %3671 = vst [vmem:[#allocation2 + $0x68] sm:$0xff] %v4556_v30 }
 0x208   : > { %v4341_v38 = vpop.f32.mrb[20].mxu1  ;;  %v4489_v39 = vpop.f32.mrb[16].mxu0 }
 0x209   : > { %v1931_v24 = vpop.f32.mrb[21].mxu1  ;;  %v4559_v40 = vadd.f32 %v4489_v39, %v5542_v58  ;;  %v3507_v5 = vpop.f32.mrb[17].mxu0 }
 0x20a   : > { %v4342_v45 = vpop.f32.mrb[22].mxu1  ;;  %v4562_v41 = vadd.f32 %v3507_v5, %v5544_v59  ;;  %v4490_v57 = vpop.f32.mrb[18].mxu0 }
 0x20b   : > { %v1934_v42 = vpop.f32.mrb[23].mxu1  ;;  %v3714_v3 = vld [vmem:[#allocation2 + $0x5a] sm:$0xff]  ;;  %3728 = vst [vmem:[%s5553_s12 + $0x80] sm:$0xff] %v4559_v40  ;;  %v4565_v55 = vadd.f32 %v4490_v57, %v5546_v50  ;;  %v3510_v43 = vpop.f32.mrb[19].mxu0 }
 0x20c   : > { %3716 = vst [vmem:[%s5553_s12 + $0x50] sm:$0xff] %v3714_v3  ;;  %v3719_v6 = vld [vmem:[#allocation2 + $0x74] sm:$0xff]  ;;  %3674 = vst [vmem:[#allocation2 + $0x80] sm:$0xff] %v4562_v41  ;;  %v4568_v18 = vadd.f32 %v3510_v43, %v5548_v63 }
 0x20d   : > { %3721 = vst [vmem:[%s5553_s12 + $0x68] sm:$0xff] %v3719_v6  ;;  %v3715_v47 = vld [vmem:[#allocation2 + $0x62] sm:$0xff]  ;;  %v3718_v20 = vld [vmem:[#allocation2 + $0x6c] sm:$0xff]  ;;  %3729 = vst [vmem:[%s5553_s12 + $0x88] sm:$0xff] %v4565_v55 }
 0x20e   : > { %3717 = vst [vmem:[%s5553_s12 + $0x58] sm:$0xff] %v3715_v47  ;;  %3720 = vst [vmem:[%s5553_s12 + $0x60] sm:$0xff] %v3718_v20 }
 0x20f   : > { %3675 = vst [vmem:[#allocation2 + $0x88] sm:$0xff] %v4568_v18 }
 0x210   : > { %v4345_v49 = vpop.f32.mrb[24].mxu1  ;;  %v4493_v35 = vpop.f32.mrb[20].mxu0 }
 0x211   : > { %v1947_v52 = vpop.f32.mrb[25].mxu1  ;;  %v4571_v53 = vadd.f32 %v4493_v35, %v4341_v38  ;;  %v3523_v37 = vpop.f32.mrb[21].mxu0 }
 0x212   : > { %v4346_v48 = vpop.f32.mrb[26].mxu1  ;;  %v4574_v58 = vadd.f32 %v3523_v37, %v1931_v24  ;;  %v4494_v59 = vpop.f32.mrb[22].mxu0 }
 0x213   : > { %v1950_v50 = vpop.f32.mrb[27].mxu1  ;;  %v3722_v62 = vld [vmem:[#allocation2 + $0x7e] sm:$0xff]  ;;  %3680 = vst [vmem:[#allocation2 + $0xb0] sm:$0xff] %v4571_v53  ;;  %v4577_v63 = vadd.f32 %v4494_v59, %v4342_v45  ;;  %v3526_v1 = vpop.f32.mrb[23].mxu0 }
 0x214   : > { %3724 = vst [vmem:[%s5553_s12 + $0x70] sm:$0xff] %v3722_v62  ;;  %3678 = vst [vmem:[#allocation2 + $0xa0] sm:$0xff] %v4574_v58  ;;  %v4580_v2 = vadd.f32 %v3526_v1, %v1934_v42 }
 0x215   : > { %3681 = vst [vmem:[#allocation2 + $0xb8] sm:$0xff] %v4577_v63 }
 0x216   : > { %v3723_v4 = vld [vmem:[#allocation2 + $0x86] sm:$0xff]  ;;  %3679 = vst [vmem:[#allocation2 + $0xa8] sm:$0xff] %v4580_v2 }
 0x217   : > { %3725 = vst [vmem:[%s5553_s12 + $0x78] sm:$0xff] %v3723_v4 }
 0x218   : > { %v4349_v7 = vpop.f32.mrb[28].mxu1  ;;  %v4497_v0 = vpop.f32.mrb[24].mxu0 }
 0x219   : > { %v1963_v29 = vpop.f32.mrb[29].mxu1  ;;  %v4583_v10 = vadd.f32 %v4497_v0, %v4345_v49  ;;  %v3539_v13 = vpop.f32.mrb[25].mxu0 }
 0x21a   : > { %v4350_v12 = vpop.f32.mrb[30].mxu1  ;;  %v4586_v14 = vadd.f32 %v3539_v13, %v1947_v52  ;;  %v4498_v15 = vpop.f32.mrb[26].mxu0 }
 0x21b   : > { %v1966_v8 = vpop.f32.mrb[31].mxu1  ;;  %3684 = vst [vmem:[#allocation2 + $0xd0] sm:$0xff] %v4583_v10  ;;  %v4589_v46 = vadd.f32 %v4498_v15, %v4346_v48  ;;  %v3542_v51 = vpop.f32.mrb[27].mxu0 }
 0x21c   : > { %v3734_v16 = vld [vmem:[#allocation2 + $0xb4] sm:$0xff]  ;;  %3682 = vst [vmem:[#allocation2 + $0xc0] sm:$0xff] %v4586_v14  ;;  %v4592_v17 = vadd.f32 %v3542_v51, %v1950_v50 }
 0x21d   : > { %3736 = vst [vmem:[%s5553_s12 + $0xa0] sm:$0xff] %v3734_v16  ;;  %v3730_v19 = vld [vmem:[#allocation2 + $0xa2] sm:$0xff]  ;;  %v3731_v21 = vld [vmem:[#allocation2 + $0xaa] sm:$0xff]  ;;  %3744 = vst [vmem:[%s5553_s12 + $0xc0] sm:$0xff] %v4589_v46 }
 0x21e   : > { %3732 = vst [vmem:[%s5553_s12 + $0x90] sm:$0xff] %v3730_v19  ;;  %3733 = vst [vmem:[%s5553_s12 + $0x98] sm:$0xff] %v3731_v21 }
 0x21f   : > { %3683 = vst [vmem:[#allocation2 + $0xc8] sm:$0xff] %v4592_v17 }
 0x220   : > { %v4353_v54 = vpop.f32.mrb[32].mxu1  ;;  %v4501_v22 = vpop.f32.mrb[28].mxu0 }
 0x221   : > { %v1979_v23 = vpop.f32.mrb[33].mxu1  ;;  %v4595_v25 = vadd.f32 %v4501_v22, %v4349_v7  ;;  %v3555_v26 = vpop.f32.mrb[29].mxu0 }
 0x222   : > { %v4354_v56 = vpop.f32.mrb[34].mxu1  ;;  %v4598_v60 = vadd.f32 %v3555_v26, %v1963_v29  ;;  %v4502_v27 = vpop.f32.mrb[30].mxu0 }
 0x223   : > { %v1982_v32 = vpop.f32.mrb[35].mxu1  ;;  %v3735_v33 = vld [vmem:[#allocation2 + $0xbc] sm:$0xff]  ;;  %3688 = vst [vmem:[#allocation2 + $0xf0] sm:$0xff] %v4595_v25  ;;  %v4601_v34 = vadd.f32 %v4502_v27, %v4350_v12  ;;  %v3558_v61 = vpop.f32.mrb[31].mxu0 }
 0x224   : > { %3737 = vst [vmem:[%s5553_s12 + $0xa8] sm:$0xff] %v3735_v33  ;;  %3745 = vst [vmem:[%s5553_s12 + $0xc8] sm:$0xff] %v4598_v60  ;;  %v4604_v9 = vadd.f32 %v3558_v61, %v1966_v8 }
 0x225   : > { %3689 = vst [vmem:[#allocation2 + $0xf8] sm:$0xff] %v4601_v34 }
 0x226   : > { %v3738_v44 = vld [vmem:[#allocation2 + $0xc6] sm:$0xff]  ;;  %v3739_v28 = vld [vmem:[#allocation2 + $0xce] sm:$0xff]  ;;  %3687 = vst [vmem:[#allocation2 + $0xe8] sm:$0xff] %v4604_v9 }
 0x227   : > { %3740 = vst [vmem:[%s5553_s12 + $0xb0] sm:$0xff] %v3738_v44  ;;  %3741 = vst [vmem:[%s5553_s12 + $0xb8] sm:$0xff] %v3739_v28 }
 0x228   : > { %v4505_v31 = vpop.f32.mrb[32].mxu0 }
 0x229   : > { %v4607_v36 = vadd.f32 %v4505_v31, %v4353_v54  ;;  %v3571_v11 = vpop.f32.mrb[33].mxu0 }
 0x22a   : > { %v4610_v30 = vadd.f32 %v3571_v11, %v1979_v23  ;;  %v4506_v38 = vpop.f32.mrb[34].mxu0 }
 0x22b   : > { %3692 = vst [vmem:[#allocation2 + $0x110] sm:$0xff] %v4607_v36  ;;  %v4613_v39 = vadd.f32 %v4506_v38, %v4354_v56  ;;  %v3574_v24 = vpop.f32.mrb[35].mxu0 }
 0x22c   : > { %v3747_v40 = vld [vmem:[#allocation2 + $0xf2] sm:$0xff]  ;;  %3690 = vst [vmem:[#allocation2 + $0x100] sm:$0xff] %v4610_v30  ;;  %v4616_v5 = vadd.f32 %v3574_v24, %v1982_v32 }
 0x22d   : > { %3749 = vst [vmem:[%s5553_s12 + $0xd8] sm:$0xff] %v3747_v40  ;;  %v3746_v45 = vld [vmem:[#allocation2 + $0xea] sm:$0xff]  ;;  %3693 = vst [vmem:[#allocation2 + $0x118] sm:$0xff] %v4613_v39 }
 0x22e   : > { %3748 = vst [vmem:[%s5553_s12 + $0xd0] sm:$0xff] %v3746_v45  ;;  %3691 = vst [vmem:[#allocation2 + $0x108] sm:$0xff] %v4616_v5 }
 0x233   : > { %v3750_v41 = vld [vmem:[#allocation2 + $0xfc] sm:$0xff] }
 0x234   : > { %3752 = vst [vmem:[%s5553_s12 + $0xe0] sm:$0xff] %v3750_v41  ;;  %v3755_v57 = vld [vmem:[#allocation2 + $0x116] sm:$0xff] }
 0x235   : > { %3757 = vst [vmem:[%s5553_s12 + $0xf8] sm:$0xff] %v3755_v57  ;;  %v3751_v42 = vld [vmem:[#allocation2 + $0x104] sm:$0xff]  ;;  %v3754_v3 = vld [vmem:[#allocation2 + $0x10e] sm:$0xff] }
 0x236   : > { %3753 = vst [vmem:[%s5553_s12 + $0xe8] sm:$0xff] %v3751_v42  ;;  %3756 = vst [vmem:[%s5553_s12 + $0xf0] sm:$0xff] %v3754_v3 }
 0x237 PF: > { %s12_s9 = sadd.s32 1, %s4885_s9  }
 0x238   : > { %p9_p5 = scmp.ge.s32.totalorder %s12_s9, 4  }
 0x23a   :  { %11 = sbr.rel (!%p9_p5) target bundleno = 1 (0x1), region = 66 }

// kernel: densenet_forward.11
= control target key start
LH: loop header
LB: loop body
LE: loop exit
PB: predicated region body
PF: predicated region fallthrough
CT: control target
= control target key end

     0   :  { %s6416_s24 = smov 0   ;;  %s6418_s25 = smov 0   ;;  %s7285_s0 = inlined_call_operand.vmem [shape: f32[512,128], index: 0, kind: input, shape index: {}, may-alias: {0,7}]   ;;  %s7286_s1 = inlined_call_operand.vmem [shape: f32[2,1,128], index: 1, kind: input, shape index: {}]   ;;  %s7287_s2 = inlined_call_operand.vmem [shape: f32[2,1,128], index: 2, kind: input, shape index: {}]   ;;  %s7288_s3 = inlined_call_operand.vmem [shape: bf16[256,128], index: 3, kind: input, shape index: {}]   ;;  %s7289_s4 = inlined_call_operand.vmem [shape: f32[2,1,128], index: 4, kind: input, shape index: {}]   ;;  %s7290_s5 = inlined_call_operand.vmem [shape: f32[2,1,128], index: 5, kind: input, shape index: {}]   ;;  %s7291_s6 = inlined_call_operand.vmem [shape: bf16[18,128,128], index: 6, kind: input, shape index: {}]   ;;  %s7292_s7 = inlined_call_operand.vmem [shape: f32[512,128], index: 7, kind: output, shape index: {}, may-alias: {0,7}]  }
   0x1   :  { %s6420_s26 = smov 0   ;;  %s6422_s27 = smov 0  }
   0x2   :  { %s6424_s28 = smov 0  }
   0x3 LB: > { %s26_s29 = sadd.s32 1, %s6365_s26  ;;  %s29_s30 = sadd.s32 1, %s6369_s27  ;;  %s6373_s28 = sphi %s6424_s28, %s17_s28   ;;  %s6369_s27 = sphi %s6422_s27, %s7301_s27   ;;  %s6365_s26 = sphi %s6420_s26, %s7300_s26   ;;  %s6361_s25 = sphi %s6418_s25, %s7299_s25   ;;  %s6357_s24 = sphi %s6416_s24, %s7298_s24  }
   0x4   : > { %p27_p0 = scmp.ge.s32.totalorder %s26_s29, 2  ;;  %p4855_p1 = scmp.ge.s32.totalorder %s6373_s28, 1 }
   0x5   : > { %p305_p2 = scmp.lt.s32.totalorder %s6373_s28, 5 }
   0x6   : > { %s7303_s29 = smov (%p27_p0, %s26_s29), 0  ;;  %s7305_s30 = smov (!%p27_p0, %s29_s30), %s6369_s27 }
   0x7   : > { %p306_p3 = pnand %p4855_p1, %p305_p2  ;;  %p31_p4 = scmp.ge.s32.totalorder %s7305_s30, 2 }
   0x8   : > { %s4856_s8 = sshll.u32 (!%p306_p3), %s6361_s25, 5  ;;  %p366_p5 = scmp.lt.s32.totalorder (!%p306_p3), %s6357_s24, 1 }
   0x9   : > { %s7307_s30 = smov (%p31_p4, %s7305_s30), 0  ;;  %309 = sbr.rel (%p306_p3) target bundleno = 903 (0x387), region = 48 }
   0xa   : > { %7293 = sst [smem:[#allocation4_spill]] %s7307_s30  ;;  %p361_p6 = scmp.lt.s32.totalorder (!%p306_p3), %s4856_s8, 63 }
   0xb   : > { %s4858_s9 = sshll.u32 (!%p306_p3), %s6357_s24, 4  ;;  %s384_s12 = smul.u32 (!%p306_p3), 9, %s6357_s24 }
   0xc   : > { %p373_p7 = scmp.lt.s32.totalorder (!%p306_p3), %s4858_s9, 31  ;;  %p4864_p9 = scmp.ne.s32.totalorder (!%p306_p3), %s6357_s24, 0 }
   0xd   : > { %p385_p8 = scmp.lt.s32.totalorder (!%p306_p3), %s384_s12, 17 }
  0x10   : > { %s6451_s10 = scalar_select %p366_p5, %s6357_s24, 1 }
  0x11   : > { %s7309_s8 = smov (!%p361_p6, %s4856_s8), 63  ;;  %s7311_s9 = smov (!%p373_p7, %s4858_s9), 31 }
  0x12   : > { %s4857_s17 = sshll.u32 %s7309_s8, 3  ;;  %s383_s11 = scalar_lea.vmem %s7290_s5, %s6451_s10  ;;  %v6375_v0 = vmov (!%p4864_p9), 0.0  }
  0x13   : > { %s6464_s20 = scalar_lea.vmem %s7285_s0, %s4857_s17  ;;  %s4859_s13 = sshll.u32 %s7311_s9, 2  ;;  %466 = vst [vmem:[#allocation2] sm:$0xff] (!%p4864_p9), %v6375_v0  ;;  %467 = vst [vmem:[#allocation2 + $0x8] sm:$0xff] (!%p4864_p9), %v6375_v0 }
  0x14   : > { %s6478_s8 = scalar_lea.vmem %s7292_s7, %s4857_s17  ;;  %s6483_s19 = scalar_lea.vmem %s7288_s3, %s4859_s13  ;;  %468 = vst [vmem:[#allocation2 + $0x10] sm:$0xff] (!%p4864_p9), %v6375_v0  ;;  %469 = vst [vmem:[#allocation2 + $0x18] sm:$0xff] (!%p4864_p9), %v6375_v0  ;;  %v402_v1 = vld [vmem:[%s6464_s20] sm:$0xff] (!%p4864_p9)  ;;  %v403_v2 = vld [vmem:[%s6464_s20 + $0x8] sm:$0xff] (!%p4864_p9) }
  0x15   : > { %s7313_s12 = smov (!%p385_p8, %s384_s12), 17  ;;  %401 = sbr.rel (%p4864_p9) target bundleno = 57 (0x39), region = 52 }
  0x16   : > { %s5079_s21 = sshll.u32 %s7313_s12, 6  ;;  %470 = vst [vmem:[#allocation2 + $0x20] sm:$0xff] (!%p4864_p9), %v6375_v0  ;;  %471 = vst [vmem:[#allocation2 + $0x28] sm:$0xff] (!%p4864_p9), %v6375_v0  ;;  %v404_v3 = vld [vmem:[%s6464_s20 + $0x10] sm:$0xff] (!%p4864_p9)  ;;  %v405_v4 = vld [vmem:[%s6464_s20 + $0x18] sm:$0xff] (!%p4864_p9) }
  0x17   : > { %s6488_s30 = scalar_lea.vmem %s7291_s6, %s5079_s21  ;;  %472 = vst [vmem:[#allocation2 + $0x30] sm:$0xff] (!%p4864_p9), %v6375_v0  ;;  %473 = vst [vmem:[#allocation2 + $0x38] sm:$0xff] (!%p4864_p9), %v6375_v0  ;;  %v406_v5 = vld [vmem:[%s6464_s20 + $0x20] sm:$0xff] (!%p4864_p9)  ;;  %v407_v6 = vld [vmem:[%s6464_s20 + $0x28] sm:$0xff] (!%p4864_p9) }
  0x18   : > { %474 = vst [vmem:[#allocation2 + $0x40] sm:$0xff] (!%p4864_p9), %v6375_v0  ;;  %475 = vst [vmem:[#allocation2 + $0x48] sm:$0xff] (!%p4864_p9), %v6375_v0  ;;  %v408_v7 = vld [vmem:[%s6464_s20 + $0x30] sm:$0xff] (!%p4864_p9)  ;;  %v409_v8 = vld [vmem:[%s6464_s20 + $0x38] sm:$0xff] (!%p4864_p9) }
  0x19   : > { %476 = vst [vmem:[#allocation2 + $0x50] sm:$0xff] (!%p4864_p9), %v6375_v0  ;;  %477 = vst [vmem:[#allocation2 + $0x58] sm:$0xff] (!%p4864_p9), %v6375_v0  ;;  %v410_v9 = vld [vmem:[%s6464_s20 + $0x40] sm:$0xff] (!%p4864_p9)  ;;  %v411_v10 = vld [vmem:[%s6464_s20 + $0x48] sm:$0xff] (!%p4864_p9) }
  0x1a   : > { %478 = vst [vmem:[#allocation2 + $0x60] sm:$0xff] (!%p4864_p9), %v6375_v0  ;;  %479 = vst [vmem:[#allocation2 + $0x68] sm:$0xff] (!%p4864_p9), %v6375_v0  ;;  %v412_v11 = vld [vmem:[%s6464_s20 + $0x50] sm:$0xff] (!%p4864_p9)  ;;  %v413_v12 = vld [vmem:[%s6464_s20 + $0x58] sm:$0xff] (!%p4864_p9) }
  0x1b   : > { %480 = vst [vmem:[#allocation2 + $0x70] sm:$0xff] (!%p4864_p9), %v6375_v0  ;;  %481 = vst [vmem:[#allocation2 + $0x78] sm:$0xff] (!%p4864_p9), %v6375_v0  ;;  %v414_v13 = vld [vmem:[%s6464_s20 + $0x60] sm:$0xff] (!%p4864_p9)  ;;  %v415_v14 = vld [vmem:[%s6464_s20 + $0x68] sm:$0xff] (!%p4864_p9) }
  0x1c   : > { %482 = vst [vmem:[#allocation2 + $0x80] sm:$0xff] %v6375_v0  ;;  %483 = vst [vmem:[#allocation2 + $0x88] sm:$0xff] %v6375_v0  ;;  %v416_v15 = vld [vmem:[%s6464_s20 + $0x70] sm:$0xff]  ;;  %v417_v16 = vld [vmem:[%s6464_s20 + $0x78] sm:$0xff] }
  0x1d   : > { %484 = vst [vmem:[#allocation2 + $0x90] sm:$0xff] %v6375_v0  ;;  %485 = vst [vmem:[#allocation2 + $0x98] sm:$0xff] %v6375_v0  ;;  %v418_v17 = vld [vmem:[%s6464_s20 + $0x80] sm:$0xff]  ;;  %v419_v18 = vld [vmem:[%s6464_s20 + $0x88] sm:$0xff] }
  0x1e   : > { %486 = vst [vmem:[#allocation2 + $0xa0] sm:$0xff] %v6375_v0  ;;  %487 = vst [vmem:[#allocation2 + $0xa8] sm:$0xff] %v6375_v0  ;;  %v420_v19 = vld [vmem:[%s6464_s20 + $0x90] sm:$0xff]  ;;  %v421_v20 = vld [vmem:[%s6464_s20 + $0x98] sm:$0xff] }
  0x1f   : > { %488 = vst [vmem:[#allocation2 + $0xb0] sm:$0xff] %v6375_v0  ;;  %489 = vst [vmem:[#allocation2 + $0xb8] sm:$0xff] %v6375_v0  ;;  %v422_v21 = vld [vmem:[%s6464_s20 + $0xa0] sm:$0xff]  ;;  %v423_v22 = vld [vmem:[%s6464_s20 + $0xa8] sm:$0xff] }
  0x20   : > { %490 = vst [vmem:[#allocation2 + $0xc0] sm:$0xff] %v6375_v0  ;;  %491 = vst [vmem:[#allocation2 + $0xc8] sm:$0xff] %v6375_v0  ;;  %v424_v23 = vld [vmem:[%s6464_s20 + $0xb0] sm:$0xff]  ;;  %v425_v24 = vld [vmem:[%s6464_s20 + $0xb8] sm:$0xff] }
  0x21   : > { %492 = vst [vmem:[#allocation2 + $0xd0] sm:$0xff] %v6375_v0  ;;  %493 = vst [vmem:[#allocation2 + $0xd8] sm:$0xff] %v6375_v0  ;;  %v426_v25 = vld [vmem:[%s6464_s20 + $0xc0] sm:$0xff]  ;;  %v427_v26 = vld [vmem:[%s6464_s20 + $0xc8] sm:$0xff] }
  0x22   : > { %494 = vst [vmem:[#allocation2 + $0xe0] sm:$0xff] %v6375_v0  ;;  %495 = vst [vmem:[#allocation2 + $0xe8] sm:$0xff] %v6375_v0  ;;  %v428_v27 = vld [vmem:[%s6464_s20 + $0xd0] sm:$0xff]  ;;  %v429_v28 = vld [vmem:[%s6464_s20 + $0xd8] sm:$0xff] }
  0x23   : > { %496 = vst [vmem:[#allocation2 + $0xf0] sm:$0xff] %v6375_v0  ;;  %497 = vst [vmem:[#allocation2 + $0xf8] sm:$0xff] %v6375_v0  ;;  %v430_v29 = vld [vmem:[%s6464_s20 + $0xe0] sm:$0xff]  ;;  %v431_v30 = vld [vmem:[%s6464_s20 + $0xe8] sm:$0xff] }
  0x24   : > { %498 = vst [vmem:[#allocation2 + $0x100] sm:$0xff] %v6375_v0  ;;  %499 = vst [vmem:[#allocation2 + $0x108] sm:$0xff] %v6375_v0  ;;  %v432_v31 = vld [vmem:[%s6464_s20 + $0xf0] sm:$0xff]  ;;  %v433_v32 = vld [vmem:[%s6464_s20 + $0xf8] sm:$0xff] }
  0x25   : > { %500 = vst [vmem:[#allocation2 + $0x110] sm:$0xff] %v6375_v0  ;;  %501 = vst [vmem:[#allocation2 + $0x118] sm:$0xff] %v6375_v0 }
  0x26   : > { %502 = vst [vmem:[#allocation2 + $0x120] sm:$0xff] %v6375_v0  ;;  %503 = vst [vmem:[#allocation2 + $0x128] sm:$0xff] %v6375_v0 }
  0x27   : > { %504 = vst [vmem:[#allocation2 + $0x130] sm:$0xff] %v6375_v0  ;;  %505 = vst [vmem:[#allocation2 + $0x138] sm:$0xff] %v6375_v0 }
  0x28   : > { %506 = vst [vmem:[#allocation2 + $0x140] sm:$0xff] %v6375_v0  ;;  %434 = vst [vmem:[%s6478_s8] sm:$0xff] %v402_v1 }
  0x29   : > { %435 = vst [vmem:[%s6478_s8 + $0x8] sm:$0xff] %v403_v2  ;;  %436 = vst [vmem:[%s6478_s8 + $0x10] sm:$0xff] %v404_v3 }
  0x2a   : > { %437 = vst [vmem:[%s6478_s8 + $0x18] sm:$0xff] %v405_v4  ;;  %438 = vst [vmem:[%s6478_s8 + $0x20] sm:$0xff] %v406_v5 }
  0x2b   : > { %439 = vst [vmem:[%s6478_s8 + $0x28] sm:$0xff] %v407_v6  ;;  %440 = vst [vmem:[%s6478_s8 + $0x30] sm:$0xff] %v408_v7 }
  0x2c   : > { %441 = vst [vmem:[%s6478_s8 + $0x38] sm:$0xff] %v409_v8  ;;  %442 = vst [vmem:[%s6478_s8 + $0x40] sm:$0xff] %v410_v9 }
  0x2d   : > { %443 = vst [vmem:[%s6478_s8 + $0x48] sm:$0xff] %v411_v10  ;;  %444 = vst [vmem:[%s6478_s8 + $0x50] sm:$0xff] %v412_v11 }
  0x2e   : > { %445 = vst [vmem:[%s6478_s8 + $0x58] sm:$0xff] %v413_v12  ;;  %446 = vst [vmem:[%s6478_s8 + $0x60] sm:$0xff] %v414_v13 }
  0x2f   : > { %447 = vst [vmem:[%s6478_s8 + $0x68] sm:$0xff] %v415_v14  ;;  %448 = vst [vmem:[%s6478_s8 + $0x70] sm:$0xff] %v416_v15 }
  0x30   : > { %449 = vst [vmem:[%s6478_s8 + $0x78] sm:$0xff] %v417_v16  ;;  %450 = vst [vmem:[%s6478_s8 + $0x80] sm:$0xff] %v418_v17 }
  0x31   : > { %451 = vst [vmem:[%s6478_s8 + $0x88] sm:$0xff] %v419_v18  ;;  %452 = vst [vmem:[%s6478_s8 + $0x90] sm:$0xff] %v420_v19 }
  0x32   : > { %453 = vst [vmem:[%s6478_s8 + $0x98] sm:$0xff] %v421_v20  ;;  %454 = vst [vmem:[%s6478_s8 + $0xa0] sm:$0xff] %v422_v21 }
  0x33   : > { %455 = vst [vmem:[%s6478_s8 + $0xa8] sm:$0xff] %v423_v22  ;;  %456 = vst [vmem:[%s6478_s8 + $0xb0] sm:$0xff] %v424_v23 }
  0x34   : > { %457 = vst [vmem:[%s6478_s8 + $0xb8] sm:$0xff] %v425_v24  ;;  %458 = vst [vmem:[%s6478_s8 + $0xc0] sm:$0xff] %v426_v25 }
  0x35   : > { %459 = vst [vmem:[%s6478_s8 + $0xc8] sm:$0xff] %v427_v26  ;;  %460 = vst [vmem:[%s6478_s8 + $0xd0] sm:$0xff] %v428_v27 }
  0x36   : > { %461 = vst [vmem:[%s6478_s8 + $0xd8] sm:$0xff] %v429_v28  ;;  %462 = vst [vmem:[%s6478_s8 + $0xe0] sm:$0xff] %v430_v29 }
  0x37   : > { %463 = vst [vmem:[%s6478_s8 + $0xe8] sm:$0xff] %v431_v30  ;;  %464 = vst [vmem:[%s6478_s8 + $0xf0] sm:$0xff] %v432_v31 }
  0x38   : > { %465 = vst [vmem:[%s6478_s8 + $0xf8] sm:$0xff] %v433_v32 }
  0x39 PF: > { %v6255_v33 = vld [vmem:[%s6483_s19] sm:$0xff]   ;;  %v6256_v34 = vld [vmem:[%s6483_s19 + $0x8] sm:$0xff]   ;;  %v6257_v35 = vld [vmem:[%s6483_s19 + $0x10] sm:$0xff]   ;;  %s7294_s13 = scalar_lea.vmem %s7286_s1, %s6451_s10  ;;  %s7295_s20 = scalar_lea.vmem %s7287_s2, %s6451_s10 }
  0x3a   : > { %5338 = vmatprep.subr.bf16.mxu0 %v6255_v33  ;;  %v6258_v36 = vld [vmem:[%s6483_s19 + $0x18] sm:$0xff]   ;;  %v507_v37 = vld [vmem:[%s6478_s8] sm:$0xff]  ;;  %v508_v38 = vld [vmem:[%s6478_s8 + $0x8] sm:$0xff]  ;;  %s7296_s12 = scalar_lea.vmem %s7289_s4, %s6451_s10 }
  0x3b   : > { %5339 = vmatpush3.bf16.msra.mxu0 %v6255_v33  ;;  %v6566_v39 = vld [vmem:[%s7294_s13] ss:$0 sm:$0xff]  ;;  %v509_v43 = vld [vmem:[%s6478_s8 + $0x10] sm:$0xff]  ;;  %v510_v44 = vld [vmem:[%s6478_s8 + $0x18] sm:$0xff] }
  0x3c   : > { %5340 = vmatprep.subr.bf16.mxu0 %v6256_v34  ;;  %v546_v40 = vmul.f32 %v6566_v39, %v507_v37  ;;  %v547_v41 = vmul.f32 %v6566_v39, %v508_v38  ;;  %v6575_v42 = vld [vmem:[%s7295_s20] ss:$0 sm:$0xff]  ;;  %v548_v45 = vmul.f32 %v6566_v39, %v509_v43  ;;  %v549_v46 = vmul.f32 %v6566_v39, %v510_v44  ;;  %v512_v48 = vld [vmem:[%s6478_s8 + $0x28] sm:$0xff]  ;;  %v513_v49 = vld [vmem:[%s6478_s8 + $0x30] sm:$0xff] }
  0x3d   : > { %v511_v47 = vld [vmem:[%s6478_s8 + $0x20] sm:$0xff]  ;;  %v551_v53 = vmul.f32 %v6566_v39, %v512_v48  ;;  %v514_v54 = vld [vmem:[%s6478_s8 + $0x38] sm:$0xff]  ;;  %v552_v58 = vmul.f32 %v6566_v39, %v513_v49  ;;  %v516_v63 = vld [vmem:[%s6478_s8 + $0x48] sm:$0xff] }
  0x3e   : > { %v585_v50 = vadd.f32 %v6575_v42, %v546_v40  ;;  %v586_v51 = vadd.f32 %v6575_v42, %v547_v41  ;;  %v550_v52 = vmul.f32 %v6566_v39, %v511_v47  ;;  %v6259_v55 = vld [vmem:[%s6483_s19 + $0x20] sm:$0xff]   ;;  %v6591_v56 = vadd.f32 %v6575_v42, %v548_v45  ;;  %v517_v2 = vld [vmem:[%s6478_s8 + $0x50] sm:$0xff]  ;;  %v518_v3 = vld [vmem:[%s6478_s8 + $0x58] sm:$0xff] }
  0x3f   : > { %5341 = vmatpush3.bf16.msra.mxu0 %v6256_v34  ;;  %v6594_v57 = vadd.f32 %v6575_v42, %v549_v46  ;;  %v515_v59 = vld [vmem:[%s6478_s8 + $0x40] sm:$0xff]  ;;  %v553_v62 = vmul.f32 %v6566_v39, %v514_v54  ;;  %v6604_v1 = vadd.f32 %v6575_v42, %v551_v53  ;;  %v6260_v7 = vld [vmem:[%s6483_s19 + $0x28] sm:$0xff]   ;;  %v6614_v10 = vadd.f32 %v6575_v42, %v552_v58  ;;  %v521_v13 = vld [vmem:[%s6478_s8 + $0x70] sm:$0xff] }
  0x40   : > { %5342 = vmatprep.subr.bf16.mxu0 %v6257_v35  ;;  %v617_v60 = vmax.f32 %v585_v50, 0.0  ;;  %v618_v61 = vmax.f32 %v586_v51, 0.0  ;;  %v6601_v0 = vadd.f32 %v6575_v42, %v550_v52  ;;  %v554_v5 = vmul.f32 %v6566_v39, %v515_v59  ;;  %v519_v6 = vld [vmem:[%s6478_s8 + $0x60] sm:$0xff]  ;;  %v520_v12 = vld [vmem:[%s6478_s8 + $0x68] sm:$0xff]  ;;  %v522_v18 = vld [vmem:[%s6478_s8 + $0x78] sm:$0xff] }
  0x41   : > { %v619_v8 = vmax.f32 %v6591_v56, 0.0  ;;  %v620_v9 = vmax.f32 %v6594_v57, 0.0  ;;  %v555_v11 = vmul.f32 %v6566_v39, %v516_v63  ;;  %v6620_v14 = vadd.f32 %v6575_v42, %v553_v62  ;;  %v6261_v19 = vld [vmem:[%s6483_s19 + $0x30] sm:$0xff]   ;;  %v523_v24 = vld [vmem:[%s6478_s8 + $0x80] sm:$0xff]  ;;  %v524_v25 = vld [vmem:[%s6478_s8 + $0x88] sm:$0xff] }
  0x42   : > { %v649_v4 = vpack.c.bf16 %v618_v61, %v617_v60  ;;  %v6623_v15 = vadd.f32 %v6575_v42, %v554_v5  ;;  %v556_v16 = vmul.f32 %v6566_v39, %v517_v2  ;;  %v557_v17 = vmul.f32 %v6566_v39, %v518_v3  ;;  %v525_v30 = vld [vmem:[%s6478_s8 + $0x90] sm:$0xff]  ;;  %v526_v31 = vld [vmem:[%s6478_s8 + $0x98] sm:$0xff]  ;;  %v6264_v43 = vld [vmem:[%s6488_s30 + $0x100] sm:$0xff]  }
  0x43   : > { %5343 = vmatpush3.bf16.msra.mxu0 %v6257_v35  ;;  %v621_v20 = vmax.f32 %v6601_v0, 0.0  ;;  %v622_v21 = vmax.f32 %v6604_v1, 0.0  ;;  %v6632_v22 = vadd.f32 %v6575_v42, %v555_v11  ;;  %v558_v23 = vmul.f32 %v6566_v39, %v519_v6  ;;  %v527_v35 = vld [vmem:[%s6478_s8 + $0xa0] sm:$0xff]  ;;  %v529_v41 = vld [vmem:[%s6478_s8 + $0xb0] sm:$0xff]  ;;  %v6262_v44 = vld [vmem:[%s6483_s19 + $0x38] sm:$0xff]   ;;  %5594 = vmatprep.subr.bf16.mxu1 %v6264_v43 }
  0x44   : > { %5344 = vmatprep.subr.bf16.mxu0 %v6258_v36  ;;  %5354 = vmatprep.mubr.bf16.mxu0 %v649_v4  ;;  %v6638_v26 = vadd.f32 %v6575_v42, %v556_v16  ;;  %v6641_v27 = vadd.f32 %v6575_v42, %v557_v17  ;;  %v559_v28 = vmul.f32 %v6566_v39, %v520_v12  ;;  %v623_v32 = vmax.f32 %v6614_v10, 0.0  ;;  %v530_v47 = vld [vmem:[%s6478_s8 + $0xb8] sm:$0xff]  ;;  %v6266_v52 = vld [vmem:[%s6488_s30 + $0x108] sm:$0xff]   ;;  %v531_v59 = vld [vmem:[%s6478_s8 + $0xc0] sm:$0xff] }
  0x45   : > { %v560_v29 = vmul.f32 %v6566_v39, %v521_v13  ;;  %v6649_v33 = vadd.f32 %v6575_v42, %v558_v23  ;;  %v561_v34 = vmul.f32 %v6566_v39, %v522_v18  ;;  %v624_v37 = vmax.f32 %v6620_v14, 0.0  ;;  %5595 = vmatpush3.bf16.msra.mxu1 %v6264_v43  ;;  %v532_v2 = vld [vmem:[%s6478_s8 + $0xc8] sm:$0xff]  ;;  %v6268_v3 = vld [vmem:[%s6488_s30 + $0x110] sm:$0xff]   ;;  %v534_v11 = vld [vmem:[%s6478_s8 + $0xd8] sm:$0xff] }
  0x46   : > { %v625_v38 = vmax.f32 %v6623_v15, 0.0  ;;  %v562_v40 = vmul.f32 %v6566_v39, %v523_v24  ;;  %v626_v45 = vmax.f32 %v6632_v22, 0.0  ;;  %v627_v46 = vmax.f32 %v6638_v26, 0.0  ;;  %5596 = vmatprep.subr.bf16.mxu1 %v6266_v52  ;;  %v535_v18 = vld [vmem:[%s6478_s8 + $0xe0] sm:$0xff]  ;;  %v536_v23 = vld [vmem:[%s6478_s8 + $0xe8] sm:$0xff]  ;;  %v538_v57 = vld [vmem:[%s6478_s8 + $0xf8] sm:$0xff] }
  0x47   : > { %5345 = vmatpush3.bf16.msra.mxu0 %v6258_v36  ;;  %v528_v36 = vld [vmem:[%s6478_s8 + $0xa8] sm:$0xff]  ;;  %v628_v48 = vmax.f32 %v6641_v27, 0.0  ;;  %v6665_v49 = vadd.f32 %v6575_v42, %v559_v28  ;;  %v6668_v50 = vadd.f32 %v6575_v42, %v560_v29  ;;  %v563_v51 = vmul.f32 %v6566_v39, %v524_v25  ;;  %v6263_v24 = vld [vmem:[%s6488_s30] sm:$0xff]  }
  0x48   : > { %5346 = vmatprep.subr.bf16.mxu0 %v6259_v55  ;;  %v629_v53 = vmax.f32 %v6649_v33, 0.0  ;;  %v6674_v54 = vadd.f32 %v6575_v42, %v561_v34  ;;  %v565_v58 = vmul.f32 %v6566_v39, %v526_v31  ;;  %v6680_v60 = vadd.f32 %v6575_v42, %v562_v40  ;;  %v6270_v33 = vld [vmem:[%s6488_s30 + $0x118] sm:$0xff]  }
  0x49   : > { %v6683_v61 = vadd.f32 %v6575_v42, %v563_v51  ;;  %v566_v62 = vmul.f32 %v6566_v39, %v527_v35  ;;  %v567_v63 = vmul.f32 %v6566_v39, %v528_v36  ;;  %v568_v6 = vmul.f32 %v6566_v39, %v529_v41  ;;  %5597 = vmatpush3.bf16.msra.mxu1 %v6266_v52  ;;  %v6265_v41 = vld [vmem:[%s6488_s30 + $0x8] sm:$0xff]  }
  0x4a   : > { %v6693_v5 = vadd.f32 %v6575_v42, %v565_v58  ;;  %v630_v12 = vmax.f32 %v6665_v49, 0.0  ;;  %v569_v17 = vmul.f32 %v6566_v39, %v530_v47  ;;  %v631_v25 = vmax.f32 %v6668_v50, 0.0  ;;  %5598 = vmatprep.subr.bf16.mxu1 %v6268_v3  ;;  %v6276_v49 = vld [vmem:[%s6488_s30 + $0x130] sm:$0xff]  }
  0x4b   : > { %5347 = vmatpush3.bf16.msra.mxu0 %v6259_v55  ;;  %v564_v55 = vmul.f32 %v6566_v39, %v525_v30  ;;  %v6700_v13 = vadd.f32 %v6575_v42, %v566_v62  ;;  %v6703_v16 = vadd.f32 %v6575_v42, %v567_v63  ;;  %v632_v28 = vmax.f32 %v6674_v54, 0.0  ;;  %v537_v30 = vld [vmem:[%s6478_s8 + $0xf0] sm:$0xff]  ;;  %v6277_v54 = vld [vmem:[%s6488_s30 + $0x38] sm:$0xff]  }
  0x4c   : > { %5348 = vmatprep.subr.bf16.mxu0 %v6260_v7  ;;  %v6716_v29 = vadd.f32 %v6575_v42, %v568_v6  ;;  %v633_v31 = vmax.f32 %v6680_v60, 0.0  ;;  %v634_v34 = vmax.f32 %v6683_v61, 0.0  ;;  %v6722_v35 = vadd.f32 %v6575_v42, %v569_v17  ;;  %v6275_v50 = vld [vmem:[%s6488_s30 + $0x30] sm:$0xff]  }
  0x4d   : > { %v6690_v4 = vadd.f32 %v6575_v42, %v564_v55  ;;  %v570_v56 = vmul.f32 %v6566_v39, %v531_v59  ;;  %v636_v36 = vmax.f32 %v6693_v5, 0.0  ;;  %v571_v40 = vmul.f32 %v6566_v39, %v532_v2  ;;  %5599 = vmatpush3.bf16.msra.mxu1 %v6268_v3  ;;  %v6267_v2 = vld [vmem:[%s6488_s30 + $0x10] sm:$0xff]  }
  0x4e   : > { %v637_v43 = vmax.f32 %v6700_v13, 0.0  ;;  %v638_v47 = vmax.f32 %v6703_v16, 0.0  ;;  %v573_v52 = vmul.f32 %v6566_v39, %v534_v11  ;;  %v639_v0 = vmax.f32 %v6716_v29, 0.0  ;;  %5600 = vmatprep.subr.bf16.mxu1 %v6270_v33 }
  0x4f   : > { %5349 = vmatpush3.bf16.msra.mxu0 %v6260_v7  ;;  %v533_v7 = vld [vmem:[%s6478_s8 + $0xd0] sm:$0xff]  ;;  %v640_v1 = vmax.f32 %v6722_v35, 0.0  ;;  %v576_v59 = vmul.f32 %v6566_v39, %v537_v30  ;;  %v610_v60 = vadd.f32 %v6575_v42, %v571_v40  ;;  %v577_v63 = vmul.f32 %v6566_v39, %v538_v57  ;;  %v6784_v30 = vld [vmem:[%s6488_s30 + $0x140] sm:$0xff]  }
  0x50   : > { %5350 = vmatprep.subr.bf16.mxu0 %v6261_v19  ;;  %v572_v51 = vmul.f32 %v6566_v39, %v533_v7  ;;  %v612_v58 = vadd.f32 %v6575_v42, %v573_v52  ;;  %v655_v10 = vpack.c.bf16 %v630_v12, %v629_v53  ;;  %v656_v14 = vpack.c.bf16 %v632_v28, %v631_v25  ;;  %v6278_v53 = vld [vmem:[%s6488_s30 + $0x138] sm:$0xff]   ;;  %v1032_v12 = vld [vmem:[#allocation2] sm:$0xff]  ;;  %v1033_v25 = vld [vmem:[#allocation2 + $0x8] sm:$0xff] }
  0x51   : > { %v615_v5 = vadd.f32 %v6575_v42, %v576_v59  ;;  %v616_v11 = vadd.f32 %v6575_v42, %v577_v63  ;;  %v657_v15 = vpack.c.bf16 %v634_v34, %v633_v31  ;;  %v659_v26 = vpack.c.bf16 %v638_v47, %v637_v43  ;;  %5601 = vmatpush3.bf16.msra.mxu1 %v6270_v33  ;;  %v6788_v31 = vld [vmem:[%s6488_s30 + $0x40] sm:$0xff]  }
  0x52   : > { %v611_v55 = vadd.f32 %v6575_v42, %v572_v51  ;;  %v660_v27 = vpack.c.bf16 %v640_v1, %v639_v0  ;;  %v1068_v28 = vpack.c.bf16 %v1033_v25, %v1032_v12  ;;  %v6796_v34 = vld [vmem:[%s7296_s12] ss:$0 sm:$0xff] }
  0x53   : > { %5351 = vmatpush3.bf16.msra.mxu0 %v6261_v19  ;;  %v650_v19 = vpack.c.bf16 %v620_v9, %v619_v8  ;;  %v651_v8 = vpack.c.bf16 %v622_v21, %v621_v20  ;;  %v635_v9 = vmax.f32 %v6690_v4, 0.0  ;;  %v574_v20 = vmul.f32 %v6566_v39, %v535_v18 }
  0x54   : > { %5352 = vmatprep.subr.bf16.mxu0 %v6262_v44  ;;  %v575_v21 = vmul.f32 %v6566_v39, %v536_v23  ;;  %v643_v3 = vmax.f32 %v611_v55, 0.0  ;;  %v644_v4 = vmax.f32 %v612_v58, 0.0  ;;  %v647_v17 = vmax.f32 %v615_v5, 0.0 }
  0x55   : > { %v613_v61 = vadd.f32 %v6575_v42, %v574_v20  ;;  %v652_v39 = vpack.c.bf16 %v624_v37, %v623_v32  ;;  %v642_v18 = vmax.f32 %v610_v60, 0.0  ;;  %v658_v22 = vpack.c.bf16 %v636_v36, %v635_v9  ;;  %v6269_v37 = vld [vmem:[%s6488_s30 + $0x18] sm:$0xff]  }
  0x56   : > { %v614_v62 = vadd.f32 %v6575_v42, %v575_v21  ;;  %v662_v16 = vpack.c.bf16 %v644_v4, %v643_v3 }
  0x57   : > { %5353 = vmatpush3.bf16.msra.mxu0 %v6262_v44  ;;  %v609_v44 = vadd.f32 %v6575_v42, %v570_v56  ;;  %v645_v6 = vmax.f32 %v613_v61, 0.0  ;;  %v654_v42 = vpack.c.bf16 %v628_v48, %v627_v46  ;;  %v6274_v46 = vld [vmem:[%s6488_s30 + $0x128] sm:$0xff]   ;;  %v6803_v56 = vld [vmem:[%s383_s11] ss:$0 sm:$0xff] }
  0x58   : > { %5386 = vmatprep.subr.bf16.mxu0 %v6263_v24  ;;  %v646_v7 = vmax.f32 %v614_v62, 0.0  ;;  %v6273_v48 = vld [vmem:[%s6488_s30 + $0x28] sm:$0xff]  }
  0x59   : > { %v641_v13 = vmax.f32 %v609_v44, 0.0 }
  0x5a   : > { %5355 = vmatmul.mubr.bf16.vlgmr.msra.gmra.mrb[0].mxu0 %v650_v19  ;;  %v663_v23 = vpack.c.bf16 %v646_v7, %v645_v6  ;;  %v648_v19 = vmax.f32 %v616_v11, 0.0 }
  0x5b   : > { %5358 = vmatprep.mubr.bf16.mxu0 %v651_v8  ;;  %5387 = vmatpush3.bf16.msra.mxu0 %v6263_v24  ;;  %v653_v24 = vpack.c.bf16 %v626_v45, %v625_v38  ;;  %v661_v32 = vpack.c.bf16 %v642_v18, %v641_v13  ;;  %v6272_v38 = vld [vmem:[%s6488_s30 + $0x120] sm:$0xff]  }
  0x5c   : > { %5388 = vmatprep.subr.bf16.mxu0 %v6265_v41  ;;  %v664_v29 = vpack.c.bf16 %v648_v19, %v647_v17  ;;  %v6271_v45 = vld [vmem:[%s6488_s30 + $0x20] sm:$0xff]   ;;  %5602 = vmatprep.subr.bf16.mxu1 %v6272_v38  ;;  %v6280_v17 = vld [vmem:[%s6488_s30 + $0x148] sm:$0xff]  }
  0x5d   : > { %5603 = vmatpush3.bf16.msra.mxu1 %v6272_v38 }
  0x5e   : > { %5604 = vmatprep.subr.bf16.mxu1 %v6274_v46 }
  0x5f   : > { %5389 = vmatpush3.bf16.msra.mxu0 %v6265_v41 }
  0x60   : > { %5390 = vmatprep.subr.bf16.mxu0 %v6267_v2 }
  0x61   : > { %5605 = vmatpush3.bf16.msra.mxu1 %v6274_v46  ;;  %v6285_v46 = vld [vmem:[%s6488_s30 + $0x48] sm:$0xff]  }
  0x62   : > { %5359 = vmatmul.mubr.bf16.gmra.mrb[4].mxu0 %v652_v39  ;;  %5606 = vmatprep.subr.bf16.mxu1 %v6276_v49 }
  0x63   : > { %5362 = vmatprep.mubr.bf16.mxu0 %v653_v24  ;;  %5391 = vmatpush3.bf16.msra.mxu0 %v6267_v2 }
  0x64   : > { %5392 = vmatprep.subr.bf16.mxu0 %v6269_v37 }
  0x65   : > { %5607 = vmatpush3.bf16.msra.mxu1 %v6276_v49 }
  0x66   : > { %5608 = vmatprep.subr.bf16.mxu1 %v6278_v53 }
  0x67   : > { %5393 = vmatpush3.bf16.msra.mxu0 %v6269_v37 }
  0x68   : > { %5394 = vmatprep.subr.bf16.mxu0 %v6271_v45 }
  0x69   : > { %5609 = vmatpush3.bf16.msra.mxu1 %v6278_v53 }
  0x6a   : > { %5363 = vmatmul.mubr.bf16.gmra.mrb[8].mxu0 %v654_v42  ;;  %5646 = vmatprep.subr.bf16.mxu1 %v6784_v30 }
  0x6b   : > { %5366 = vmatprep.mubr.bf16.mxu0 %v655_v10  ;;  %5395 = vmatpush3.bf16.msra.mxu0 %v6271_v45 }
  0x6c   : > { %5396 = vmatprep.subr.bf16.mxu0 %v6273_v48 }
  0x6f   : > { %5397 = vmatpush3.bf16.msra.mxu0 %v6273_v48 }
  0x70   : > { %5398 = vmatprep.subr.bf16.mxu0 %v6275_v50 }
  0x72   : > { %5367 = vmatmul.mubr.bf16.gmra.mrb[12].mxu0 %v656_v14 }
  0x73   : > { %5370 = vmatprep.mubr.bf16.mxu0 %v657_v15  ;;  %5399 = vmatpush3.bf16.msra.mxu0 %v6275_v50 }
  0x74   : > { %5400 = vmatprep.subr.bf16.mxu0 %v6277_v54 }
  0x77   : > { %5401 = vmatpush3.bf16.msra.mxu0 %v6277_v54  ;;  %v6281_v54 = vld [vmem:[%s6488_s30 + $0x150] sm:$0xff]  }
  0x78   : > { %5438 = vmatprep.subr.bf16.mxu0 %v6788_v31 }
  0x7a   : > { %5371 = vmatmul.mubr.bf16.gmra.mrb[16].mxu0 %v658_v22 }
  0x7b   : > { %5374 = vmatprep.mubr.bf16.mxu0 %v659_v26 }
  0x82   : > { %5375 = vmatmul.mubr.bf16.gmra.mrb[20].mxu0 %v660_v27 }
  0x83   : > { %5378 = vmatprep.mubr.bf16.mxu0 %v661_v32 }
  0x8a   : > { %5379 = vmatmul.mubr.bf16.gmra.mrb[24].mxu0 %v662_v16 }
  0x8b   : > { %5382 = vmatprep.mubr.bf16.mxu0 %v663_v23 }
  0x92   : > { %5383 = vmatmul.mubr.bf16.gmra.mrb[28].mxu0 %v664_v29 }
  0x93   : > { %5402 = vmatprep.mubr.bf16.mxu0 %v1068_v28 }
 0x12d   : > { %v5356_v35 = vpop.f32.mrb[0].mxu0 }
 0x12e   : > { %v899_v57 = vmul.f32 %v5356_v35, %v6796_v34  ;;  %v763_v8 = vpop.f32.mrb[1].mxu0 }
 0x12f   : > { %v897_v9 = vmul.f32 %v6796_v34, %v763_v8  ;;  %v5357_v36 = vpop.f32.mrb[2].mxu0  ;;  %v6287_v8 = vld [vmem:[%s6488_s30 + $0x50] sm:$0xff]  }
 0x130   : > { %v938_v40 = vadd.f32 %v6803_v56, %v899_v57  ;;  %v900_v41 = vmul.f32 %v5357_v36, %v6796_v34  ;;  %v766_v43 = vpop.f32.mrb[3].mxu0 }
 0x131   : > { %v936_v47 = vadd.f32 %v6803_v56, %v897_v9  ;;  %v898_v51 = vmul.f32 %v6796_v34, %v766_v43 }
 0x132   : > { %v970_v52 = vmax.f32 %v938_v40, 0.0  ;;  %v939_v0 = vadd.f32 %v6803_v56, %v900_v41 }
 0x133   : > { %v968_v1 = vmax.f32 %v936_v47, 0.0  ;;  %v937_v20 = vadd.f32 %v6803_v56, %v898_v51 }
 0x134   : > { %1002 = vst [vmem:[#allocation2 + $0x25] sm:$0xff] %v970_v52  ;;  %v971_v21 = vmax.f32 %v939_v0, 0.0 }
 0x135   : > { %1000 = vst [vmem:[#allocation2 + $0x13] sm:$0xff] %v968_v1  ;;  %v969_v44 = vmax.f32 %v937_v20, 0.0  ;;  %v5360_v55 = vpop.f32.mrb[4].mxu0 }
 0x136   : > { %1003 = vst [vmem:[#allocation2 + $0x2d] sm:$0xff] %v971_v21  ;;  %v903_v58 = vmul.f32 %v5360_v55, %v6796_v34  ;;  %v779_v59 = vpop.f32.mrb[5].mxu0 }
 0x137   : > { %1001 = vst [vmem:[#allocation2 + $0x1b] sm:$0xff] %v969_v44  ;;  %v901_v60 = vmul.f32 %v6796_v34, %v779_v59  ;;  %v5361_v61 = vpop.f32.mrb[6].mxu0  ;;  %v2611_v62 = vpack.c.bf16 %v969_v44, %v968_v1 }
 0x138   : > { %v6816_v63 = vadd.f32 %v6803_v56, %v903_v58  ;;  %v904_v2 = vmul.f32 %v5361_v61, %v6796_v34  ;;  %v782_v3 = vpop.f32.mrb[7].mxu0 }
 0x139   : > { %v940_v4 = vadd.f32 %v6803_v56, %v901_v60  ;;  %v902_v5 = vmul.f32 %v6796_v34, %v782_v3  ;;  %5610 = vmatprep.mubr.bf16.mxu1 %v2611_v62  ;;  %v6282_v62 = vld [vmem:[%s6488_s30 + $0x158] sm:$0xff]  }
 0x13a   : > { %v974_v6 = vmax.f32 %v6816_v63, 0.0  ;;  %v6823_v7 = vadd.f32 %v6803_v56, %v904_v2 }
 0x13b   : > { %v972_v11 = vmax.f32 %v940_v4, 0.0  ;;  %v941_v13 = vadd.f32 %v6803_v56, %v902_v5  ;;  %v2577_v19 = vld [vmem:[#allocation2 + $0x23] sm:$0xff]  ;;  %v6288_v5 = vld [vmem:[%s6488_s30 + $0x58] sm:$0xff]  }
 0x13c   : > { %1006 = vst [vmem:[#allocation2 + $0x49] sm:$0xff] %v974_v6  ;;  %v975_v16 = vmax.f32 %v6823_v7, 0.0  ;;  %v1034_v10 = vld [vmem:[#allocation2 + $0x10] sm:$0xff] }
 0x13d   : > { %1004 = vst [vmem:[#allocation2 + $0x37] sm:$0xff] %v972_v11  ;;  %v973_v39 = vmax.f32 %v941_v13, 0.0  ;;  %v5364_v18 = vpop.f32.mrb[8].mxu0  ;;  %v1037_v23 = vld [vmem:[#allocation2 + $0x28] sm:$0xff]  ;;  %v6305_v7 = vld [vmem:[%s6488_s30 + $0x1b0] sm:$0xff]  }
 0x13e   : > { %v2578_v24 = vld [vmem:[#allocation2 + $0x2b] sm:$0xff]  ;;  %1007 = vst [vmem:[#allocation2 + $0x51] sm:$0xff] %v975_v16  ;;  %v907_v29 = vmul.f32 %v5364_v18, %v6796_v34  ;;  %v795_v42 = vpop.f32.mrb[9].mxu0  ;;  %v1035_v14 = vld [vmem:[#allocation2 + $0x18] sm:$0xff]  ;;  %v1036_v15 = vld [vmem:[#allocation2 + $0x20] sm:$0xff] }
 0x13f   : > { %v2612_v22 = vpack.c.bf16 %v2578_v24, %v2577_v19  ;;  %1005 = vst [vmem:[#allocation2 + $0x3f] sm:$0xff] %v973_v39  ;;  %v905_v26 = vmul.f32 %v6796_v34, %v795_v42  ;;  %v5365_v27 = vpop.f32.mrb[10].mxu0  ;;  %v1069_v32 = vpack.c.bf16 %v1035_v14, %v1034_v10  ;;  %v1070_v33 = vpack.c.bf16 %v1037_v23, %v1036_v15  ;;  %v6283_v19 = vld [vmem:[%s6488_s30 + $0x160] sm:$0xff]  }
 0x140   : > { %v946_v37 = vadd.f32 %v6803_v56, %v907_v29  ;;  %v908_v38 = vmul.f32 %v5365_v27, %v6796_v34  ;;  %v798_v45 = vpop.f32.mrb[11].mxu0  ;;  %v6290_v10 = vld [vmem:[%s6488_s30 + $0x60] sm:$0xff]  }
 0x141   : > { %5611 = vmatmul.mubr.bf16.vlgmr.msra.gmra.mrb[0].mxu1 %v2612_v22  ;;  %v944_v48 = vadd.f32 %v6803_v56, %v905_v26  ;;  %v906_v49 = vmul.f32 %v6796_v34, %v798_v45  ;;  %5403 = vmatmul.mubr.bf16.vlgmr.msra.gmra.mrb[32].mxu0 %v1069_v32 }
 0x142   : > { %5647 = vmatpush3.bf16.msra.mxu1 %v6784_v30  ;;  %v978_v50 = vmax.f32 %v946_v37, 0.0  ;;  %v947_v53 = vadd.f32 %v6803_v56, %v908_v38  ;;  %5406 = vmatprep.mubr.bf16.mxu0 %v1070_v33 }
 0x143   : > { %5648 = vmatprep.subr.bf16.mxu1 %v6280_v17  ;;  %v976_v12 = vmax.f32 %v944_v48, 0.0  ;;  %v6843_v25 = vadd.f32 %v6803_v56, %v906_v49  ;;  %5439 = vmatpush3.bf16.msra.mxu0 %v6788_v31  ;;  %v1041_v57 = vld [vmem:[#allocation2 + $0x48] sm:$0xff] }
 0x144   : > { %1010 = vst [vmem:[#allocation2 + $0x6d] sm:$0xff] %v978_v50  ;;  %v979_v28 = vmax.f32 %v947_v53, 0.0  ;;  %v1038_v35 = vld [vmem:[#allocation2 + $0x30] sm:$0xff]  ;;  %5440 = vmatprep.subr.bf16.mxu0 %v6285_v46  ;;  %v6286_v53 = vld [vmem:[%s6488_s30 + $0x168] sm:$0xff]  }
 0x145   : > { %1008 = vst [vmem:[#allocation2 + $0x5b] sm:$0xff] %v976_v12  ;;  %v977_v30 = vmax.f32 %v6843_v25, 0.0  ;;  %v5368_v9 = vpop.f32.mrb[12].mxu0  ;;  %v2579_v36 = vld [vmem:[#allocation2 + $0x33] sm:$0xff]  ;;  %v2582_v40 = vld [vmem:[#allocation2 + $0x4b] sm:$0xff] }
 0x146   : > { %5649 = vmatpush3.bf16.msra.mxu1 %v6280_v17  ;;  %v2583_v41 = vld [vmem:[#allocation2 + $0x53] sm:$0xff]  ;;  %1011 = vst [vmem:[#allocation2 + $0x75] sm:$0xff] %v979_v28  ;;  %v911_v43 = vmul.f32 %v5368_v9, %v6796_v34  ;;  %v811_v47 = vpop.f32.mrb[13].mxu0  ;;  %v2580_v31 = vld [vmem:[#allocation2 + $0x3b] sm:$0xff]  ;;  %v2581_v55 = vld [vmem:[#allocation2 + $0x43] sm:$0xff] }
 0x147   : > { %v1039_v51 = vld [vmem:[#allocation2 + $0x38] sm:$0xff]  ;;  %v1040_v52 = vld [vmem:[#allocation2 + $0x40] sm:$0xff]  ;;  %5650 = vmatprep.subr.bf16.mxu1 %v6281_v54  ;;  %1009 = vst [vmem:[#allocation2 + $0x63] sm:$0xff] %v977_v30  ;;  %v909_v0 = vmul.f32 %v6796_v34, %v811_v47  ;;  %v5369_v1 = vpop.f32.mrb[14].mxu0  ;;  %v2613_v21 = vpack.c.bf16 %v2580_v31, %v2579_v36  ;;  %5441 = vmatpush3.bf16.msra.mxu0 %v6285_v46  ;;  %v1042_v22 = vld [vmem:[#allocation2 + $0x50] sm:$0xff] }
 0x148   : > { %v1071_v20 = vpack.c.bf16 %v1039_v51, %v1038_v35  ;;  %v1072_v44 = vpack.c.bf16 %v1041_v57, %v1040_v52  ;;  %v950_v58 = vadd.f32 %v6803_v56, %v911_v43  ;;  %v912_v59 = vmul.f32 %v5369_v1, %v6796_v34  ;;  %v814_v60 = vpop.f32.mrb[15].mxu0  ;;  %5442 = vmatprep.subr.bf16.mxu0 %v6287_v8  ;;  %v6291_v28 = vld [vmem:[%s6488_s30 + $0x68] sm:$0xff]   ;;  %v6293_v9 = vld [vmem:[%s6488_s30 + $0x70] sm:$0xff]  }
 0x149   : > { %v2614_v61 = vpack.c.bf16 %v2582_v40, %v2581_v55  ;;  %v948_v2 = vadd.f32 %v6803_v56, %v909_v0  ;;  %v910_v3 = vmul.f32 %v6796_v34, %v814_v60  ;;  %5614 = vmatprep.mubr.bf16.mxu1 %v2613_v21  ;;  %v2615_v4 = vpack.c.bf16 %v976_v12, %v2583_v41 }
 0x14a   : > { %5407 = vmatmul.mubr.bf16.gmra.mrb[36].mxu0 %v1071_v20  ;;  %v982_v11 = vmax.f32 %v950_v58, 0.0  ;;  %v951_v13 = vadd.f32 %v6803_v56, %v912_v59  ;;  %5651 = vmatpush3.bf16.msra.mxu1 %v6281_v54 }
 0x14b   : > { %5410 = vmatprep.mubr.bf16.mxu0 %v1072_v44  ;;  %5615 = vmatmul.mubr.bf16.gmra.mrb[4].mxu1 %v2614_v61  ;;  %v980_v17 = vmax.f32 %v948_v2, 0.0  ;;  %v949_v39 = vadd.f32 %v6803_v56, %v910_v3  ;;  %v2586_v42 = vld [vmem:[#allocation2 + $0x6b] sm:$0xff] }
 0x14c   : > { %5618 = vmatprep.mubr.bf16.mxu1 %v2615_v4  ;;  %1014 = vst [vmem:[#allocation2 + $0x91] sm:$0xff] %v982_v11  ;;  %v983_v18 = vmax.f32 %v951_v13, 0.0  ;;  %v1043_v23 = vld [vmem:[#allocation2 + $0x58] sm:$0xff]  ;;  %5652 = vmatprep.subr.bf16.mxu1 %v6282_v62  ;;  %v2616_v50 = vpack.c.bf16 %v2586_v42, %v977_v30  ;;  %v6289_v30 = vld [vmem:[%s6488_s30 + $0x170] sm:$0xff]  }
 0x14d   : > { %5443 = vmatpush3.bf16.msra.mxu0 %v6287_v8  ;;  %1012 = vst [vmem:[#allocation2 + $0x7f] sm:$0xff] %v980_v17  ;;  %v981_v24 = vmax.f32 %v949_v39, 0.0  ;;  %v5372_v29 = vpop.f32.mrb[16].mxu0  ;;  %v1073_v38 = vpack.c.bf16 %v1043_v23, %v1042_v22  ;;  %v2587_v40 = vld [vmem:[#allocation2 + $0x73] sm:$0xff] }
 0x14e   : > { %5444 = vmatprep.subr.bf16.mxu0 %v6288_v5  ;;  %1015 = vst [vmem:[#allocation2 + $0x99] sm:$0xff] %v983_v18  ;;  %v915_v14 = vmul.f32 %v5372_v29, %v6796_v34  ;;  %v827_v15 = vpop.f32.mrb[17].mxu0  ;;  %v1044_v26 = vld [vmem:[#allocation2 + $0x60] sm:$0xff]  ;;  %v1045_v27 = vld [vmem:[#allocation2 + $0x68] sm:$0xff]  ;;  %v6863_v32 = vpack.c.bf16 %v983_v18, %v982_v11  ;;  %5653 = vmatpush3.bf16.msra.mxu1 %v6282_v62  ;;  %v1046_v52 = vld [vmem:[#allocation2 + $0x70] sm:$0xff] }
 0x14f   : > { %1013 = vst [vmem:[#allocation2 + $0x87] sm:$0xff] %v981_v24  ;;  %v913_v33 = vmul.f32 %v6796_v34, %v827_v15  ;;  %v5373_v37 = vpop.f32.mrb[18].mxu0  ;;  %v1074_v45 = vpack.c.bf16 %v1045_v27, %v1044_v26  ;;  %5654 = vmatprep.subr.bf16.mxu1 %v6283_v19  ;;  %v6292_v17 = vld [vmem:[%s6488_s30 + $0x178] sm:$0xff]   ;;  %v6897_v26 = vld [vmem:[%s6488_s30 + $0x180] sm:$0xff]  }
 0x150   : > { %v954_v46 = vadd.f32 %v6803_v56, %v915_v14  ;;  %v916_v48 = vmul.f32 %v5373_v37, %v6796_v34  ;;  %v830_v49 = vpop.f32.mrb[19].mxu0  ;;  %v1374_v63 = vld [vmem:[#allocation2 + $0x59] sm:$0xff] }
 0x151   : > { %5445 = vmatpush3.bf16.msra.mxu0 %v6288_v5  ;;  %v952_v54 = vadd.f32 %v6803_v56, %v913_v33  ;;  %v914_v12 = vmul.f32 %v6796_v34, %v830_v49 }
 0x152   : > { %5411 = vmatmul.mubr.bf16.gmra.mrb[40].mxu0 %v1073_v38  ;;  %5446 = vmatprep.subr.bf16.mxu0 %v6290_v10  ;;  %v986_v35 = vmax.f32 %v954_v46, 0.0  ;;  %v955_v57 = vadd.f32 %v6803_v56, %v916_v48  ;;  %v6900_v38 = vld [vmem:[%s6488_s30 + $0x80] sm:$0xff]  }
 0x153   : > { %5414 = vmatprep.mubr.bf16.mxu0 %v1074_v45  ;;  %5619 = vmatmul.mubr.bf16.gmra.mrb[8].mxu1 %v2616_v50  ;;  %v984_v8 = vmax.f32 %v952_v54, 0.0  ;;  %v953_v25 = vadd.f32 %v6803_v56, %v914_v12  ;;  %v1050_v15 = vld [vmem:[#allocation2 + $0x90] sm:$0xff] }
 0x154   : > { %5655 = vmatpush3.bf16.msra.mxu1 %v6283_v19  ;;  %1018 = vst [vmem:[#allocation2 + $0xb5] sm:$0xff] %v986_v35  ;;  %v987_v36 = vmax.f32 %v955_v57, 0.0  ;;  %v2588_v41 = vld [vmem:[#allocation2 + $0x7b] sm:$0xff] }
 0x155   : > { %v1047_v43 = vld [vmem:[#allocation2 + $0x78] sm:$0xff]  ;;  %5656 = vmatprep.subr.bf16.mxu1 %v6286_v53  ;;  %5447 = vmatpush3.bf16.msra.mxu0 %v6290_v10  ;;  %1016 = vst [vmem:[#allocation2 + $0xa3] sm:$0xff] %v984_v8  ;;  %v985_v47 = vmax.f32 %v953_v25, 0.0  ;;  %v5376_v51 = vpop.f32.mrb[20].mxu0  ;;  %v2617_v31 = vpack.c.bf16 %v2588_v41, %v2587_v40 }
 0x156   : > { %v2591_v0 = vld [vmem:[#allocation2 + $0x93] sm:$0xff]  ;;  %v2592_v1 = vld [vmem:[#allocation2 + $0x9b] sm:$0xff]  ;;  %5448 = vmatprep.subr.bf16.mxu0 %v6291_v28  ;;  %1019 = vst [vmem:[#allocation2 + $0xbd] sm:$0xff] %v987_v36  ;;  %v919_v20 = vmul.f32 %v5376_v51, %v6796_v34  ;;  %v843_v21 = vpop.f32.mrb[21].mxu0  ;;  %v1075_v44 = vpack.c.bf16 %v1047_v43, %v1046_v52  ;;  %v1049_v58 = vld [vmem:[#allocation2 + $0x88] sm:$0xff] }
 0x157   : > { %v1048_v55 = vld [vmem:[#allocation2 + $0x80] sm:$0xff]  ;;  %1017 = vst [vmem:[#allocation2 + $0xab] sm:$0xff] %v985_v47  ;;  %v917_v60 = vmul.f32 %v6796_v34, %v843_v21  ;;  %v5377_v61 = vpop.f32.mrb[22].mxu0  ;;  %5622 = vmatprep.mubr.bf16.mxu1 %v2617_v31  ;;  %v2590_v2 = vld [vmem:[#allocation2 + $0x8b] sm:$0xff]  ;;  %v2620_v3 = vpack.c.bf16 %v985_v47, %v984_v8  ;;  %v2619_v23 = vpack.c.bf16 %v2592_v1, %v2591_v0  ;;  %v6294_v19 = vld [vmem:[%s6488_s30 + $0x78] sm:$0xff]  }
 0x158   : > { %v2589_v59 = vld [vmem:[#allocation2 + $0x83] sm:$0xff]  ;;  %v1076_v62 = vpack.c.bf16 %v1049_v58, %v1048_v55  ;;  %5657 = vmatpush3.bf16.msra.mxu1 %v6286_v53  ;;  %v6881_v4 = vadd.f32 %v6803_v56, %v919_v20  ;;  %v920_v5 = vmul.f32 %v5377_v61, %v6796_v34  ;;  %v846_v11 = vpop.f32.mrb[23].mxu0  ;;  %v1051_v22 = vld [vmem:[#allocation2 + $0x98] sm:$0xff] }
 0x159   : > { %v2618_v13 = vpack.c.bf16 %v2590_v2, %v2589_v59  ;;  %5658 = vmatprep.subr.bf16.mxu1 %v6289_v30  ;;  %5449 = vmatpush3.bf16.msra.mxu0 %v6291_v28  ;;  %v956_v39 = vadd.f32 %v6803_v56, %v917_v60  ;;  %v918_v18 = vmul.f32 %v6796_v34, %v846_v11 }
 0x15a   : > { %5415 = vmatmul.mubr.bf16.gmra.mrb[44].mxu0 %v1075_v44  ;;  %5450 = vmatprep.subr.bf16.mxu0 %v6293_v9  ;;  %v990_v24 = vmax.f32 %v6881_v4, 0.0  ;;  %v6890_v29 = vadd.f32 %v6803_v56, %v920_v5  ;;  %v1077_v12 = vpack.c.bf16 %v1051_v22, %v1050_v15 }
 0x15b   : > { %5418 = vmatprep.mubr.bf16.mxu0 %v1076_v62  ;;  %5623 = vmatmul.mubr.bf16.gmra.mrb[12].mxu1 %v2618_v13  ;;  %v988_v42 = vmax.f32 %v956_v39, 0.0  ;;  %v957_v10 = vadd.f32 %v6803_v56, %v918_v18  ;;  %v2595_v37 = vld [vmem:[#allocation2 + $0xb3] sm:$0xff] }
 0x15c   : > { %5626 = vmatprep.mubr.bf16.mxu1 %v2619_v23  ;;  %5659 = vmatpush3.bf16.msra.mxu1 %v6289_v30  ;;  %1022 = vst [vmem:[#allocation2 + $0xd9] sm:$0xff] %v990_v24  ;;  %v991_v14 = vmax.f32 %v6890_v29, 0.0  ;;  %v1052_v48 = vld [vmem:[#allocation2 + $0xa0] sm:$0xff] }
 0x15d   : > { %5660 = vmatprep.subr.bf16.mxu1 %v6292_v17  ;;  %5451 = vmatpush3.bf16.msra.mxu0 %v6293_v9  ;;  %1020 = vst [vmem:[#allocation2 + $0xc7] sm:$0xff] %v988_v42  ;;  %v989_v27 = vmax.f32 %v957_v10, 0.0  ;;  %v5380_v33 = vpop.f32.mrb[24].mxu0  ;;  %v2596_v50 = vld [vmem:[#allocation2 + $0xbb] sm:$0xff] }
 0x15e   : > { %5452 = vmatprep.subr.bf16.mxu0 %v6294_v19  ;;  %1023 = vst [vmem:[#allocation2 + $0xe1] sm:$0xff] %v991_v14  ;;  %v923_v45 = vmul.f32 %v5380_v33, %v6796_v34  ;;  %v859_v46 = vpop.f32.mrb[25].mxu0  ;;  %v1053_v49 = vld [vmem:[#allocation2 + $0xa8] sm:$0xff]  ;;  %v2621_v9 = vpack.c.bf16 %v2596_v50, %v2595_v37  ;;  %v1054_v51 = vld [vmem:[#allocation2 + $0xb0] sm:$0xff]  ;;  %v1055_v31 = vld [vmem:[#allocation2 + $0xb8] sm:$0xff] }
 0x15f   : > { %1021 = vst [vmem:[#allocation2 + $0xcf] sm:$0xff] %v989_v27  ;;  %v921_v53 = vmul.f32 %v6796_v34, %v859_v46  ;;  %v5381_v54 = vpop.f32.mrb[26].mxu0  ;;  %v1078_v28 = vpack.c.bf16 %v1053_v49, %v1052_v48  ;;  %v1079_v2 = vpack.c.bf16 %v1055_v31, %v1054_v51 }
 0x160   : > { %5661 = vmatpush3.bf16.msra.mxu1 %v6292_v17  ;;  %v962_v35 = vadd.f32 %v6803_v56, %v923_v45  ;;  %v924_v57 = vmul.f32 %v5381_v54, %v6796_v34  ;;  %v862_v8 = vpop.f32.mrb[27].mxu0 }
 0x161   : > { %5453 = vmatpush3.bf16.msra.mxu0 %v6294_v19  ;;  %5698 = vmatprep.subr.bf16.mxu1 %v6897_v26  ;;  %v6910_v25 = vadd.f32 %v6803_v56, %v921_v53  ;;  %v922_v30 = vmul.f32 %v6796_v34, %v862_v8 }
 0x162   : > { %5419 = vmatmul.mubr.bf16.gmra.mrb[48].mxu0 %v1077_v12  ;;  %5490 = vmatprep.subr.bf16.mxu0 %v6900_v38  ;;  %v994_v36 = vmax.f32 %v962_v35, 0.0  ;;  %v963_v40 = vadd.f32 %v6803_v56, %v924_v57 }
 0x163   : > { %5422 = vmatprep.mubr.bf16.mxu0 %v1078_v28  ;;  %5627 = vmatmul.mubr.bf16.gmra.mrb[16].mxu1 %v2620_v3  ;;  %v992_v41 = vmax.f32 %v6910_v25, 0.0  ;;  %v961_v43 = vadd.f32 %v6803_v56, %v922_v30 }
 0x164   : > { %5630 = vmatprep.mubr.bf16.mxu1 %v2621_v9  ;;  %1026 = vst [vmem:[#allocation2 + $0xfd] sm:$0xff] %v994_v36  ;;  %v995_v47 = vmax.f32 %v963_v40, 0.0  ;;  %v1056_v1 = vld [vmem:[#allocation2 + $0xc0] sm:$0xff] }
 0x165   : > { %1024 = vst [vmem:[#allocation2 + $0xeb] sm:$0xff] %v992_v41  ;;  %v993_v52 = vmax.f32 %v961_v43, 0.0  ;;  %v5384_v0 = vpop.f32.mrb[28].mxu0  ;;  %v2597_v20 = vld [vmem:[#allocation2 + $0xc3] sm:$0xff]  ;;  %v2600_v21 = vld [vmem:[#allocation2 + $0xdb] sm:$0xff] }
 0x166   : > { %1027 = vst [vmem:[#allocation2 + $0x105] sm:$0xff] %v995_v47  ;;  %v927_v44 = vmul.f32 %v5384_v0, %v6796_v34  ;;  %v875_v55 = vpop.f32.mrb[29].mxu0  ;;  %v1057_v58 = vld [vmem:[#allocation2 + $0xc8] sm:$0xff]  ;;  %v2599_v60 = vld [vmem:[#allocation2 + $0xd3] sm:$0xff]  ;;  %v1060_v49 = vld [vmem:[#allocation2 + $0xe0] sm:$0xff] }
 0x167   : > { %v2598_v59 = vld [vmem:[#allocation2 + $0xcb] sm:$0xff]  ;;  %1025 = vst [vmem:[#allocation2 + $0xf3] sm:$0xff] %v993_v52  ;;  %v925_v61 = vmul.f32 %v6796_v34, %v875_v55  ;;  %v5385_v62 = vpop.f32.mrb[30].mxu0  ;;  %v1080_v3 = vpack.c.bf16 %v1057_v58, %v1056_v1  ;;  %v2623_v23 = vpack.c.bf16 %v2600_v21, %v2599_v60  ;;  %v2601_v45 = vld [vmem:[#allocation2 + $0xe3] sm:$0xff]  ;;  %v2979_v1 = vld [vmem:[#allocation2 + $0x14] sm:$0xff] }
 0x168   : > { %v2622_v5 = vpack.c.bf16 %v2598_v59, %v2597_v20  ;;  %v966_v11 = vadd.f32 %v6803_v56, %v927_v44  ;;  %v928_v13 = vmul.f32 %v5385_v62, %v6796_v34  ;;  %v878_v17 = vpop.f32.mrb[31].mxu0  ;;  %v1058_v27 = vld [vmem:[#allocation2 + $0xd0] sm:$0xff]  ;;  %v2624_v53 = vpack.c.bf16 %v992_v41, %v2601_v45  ;;  %v1363_v41 = vld [vmem:[#allocation2 + $0x1] sm:$0xff]  ;;  %v1366_v59 = vld [vmem:[#allocation2 + $0x19] sm:$0xff] }
 0x169   : > { %v964_v39 = vadd.f32 %v6803_v56, %v925_v61  ;;  %v926_v18 = vmul.f32 %v6796_v34, %v878_v17  ;;  %v1059_v34 = vld [vmem:[#allocation2 + $0xd8] sm:$0xff]  ;;  %v1364_v47 = vld [vmem:[#allocation2 + $0x9] sm:$0xff]  ;;  %v1367_v60 = vld [vmem:[#allocation2 + $0x21] sm:$0xff] }
 0x16a   : > { %5423 = vmatmul.mubr.bf16.gmra.mrb[52].mxu0 %v1079_v2  ;;  %v998_v19 = vmax.f32 %v966_v11, 0.0  ;;  %v967_v42 = vadd.f32 %v6803_v56, %v928_v13  ;;  %v1081_v48 = vpack.c.bf16 %v1059_v34, %v1058_v27  ;;  %v2980_v20 = vld [vmem:[#allocation2 + $0x1c] sm:$0xff]  ;;  %v1399_v21 = vpack.c.bf16 %v1364_v47, %v1363_v41  ;;  %v1368_v61 = vld [vmem:[#allocation2 + $0x29] sm:$0xff]  ;;  %v1365_v2 = vld [vmem:[#allocation2 + $0x11] sm:$0xff] }
 0x16b   : > { %5426 = vmatprep.mubr.bf16.mxu0 %v1080_v3  ;;  %5631 = vmatmul.mubr.bf16.gmra.mrb[20].mxu1 %v2622_v5  ;;  %v996_v10 = vmax.f32 %v964_v39, 0.0  ;;  %v965_v15 = vadd.f32 %v6803_v56, %v926_v18  ;;  %v2604_v46 = vld [vmem:[#allocation2 + $0xfb] sm:$0xff]  ;;  %v3015_v58 = vpack.c.bf16 %v2980_v20, %v2979_v1  ;;  %v2982_v62 = vld [vmem:[#allocation2 + $0x2c] sm:$0xff]  ;;  %v1400_v5 = vpack.c.bf16 %v1366_v59, %v1365_v2  ;;  %v2981_v11 = vld [vmem:[#allocation2 + $0x24] sm:$0xff] }
 0x16c   : > { %5634 = vmatprep.mubr.bf16.mxu1 %v2623_v23  ;;  %1030 = vst [vmem:[#allocation2 + $0x121] sm:$0xff] %v998_v19  ;;  %v999_v22 = vmax.f32 %v967_v42, 0.0  ;;  %v1061_v37 = vld [vmem:[#allocation2 + $0xe8] sm:$0xff]  ;;  %v2625_v54 = vpack.c.bf16 %v2604_v46, %v993_v52  ;;  %v2984_v3 = vld [vmem:[#allocation2 + $0x3c] sm:$0xff]  ;;  %v1401_v13 = vpack.c.bf16 %v1368_v61, %v1367_v60  ;;  %v6925_v17 = vpack.c.bf16 %v2982_v62, %v2981_v11  ;;  %v2983_v39 = vld [vmem:[#allocation2 + $0x34] sm:$0xff] }
 0x16d   : > { %1028 = vst [vmem:[#allocation2 + $0x10f] sm:$0xff] %v996_v10  ;;  %v997_v33 = vmax.f32 %v965_v15, 0.0  ;;  %v1082_v50 = vpack.c.bf16 %v1061_v37, %v1060_v49  ;;  %v1064_v30 = vld [vmem:[#allocation2 + $0x100] sm:$0xff]  ;;  %v6296_v18 = vld [vmem:[%s6488_s30 + $0x188] sm:$0xff]   ;;  %v6928_v23 = vpack.c.bf16 %v2984_v3, %v2983_v39  ;;  %v6297_v10 = vld [vmem:[%s6488_s30 + $0x190] sm:$0xff]  }
 0x16e   : > { %1031 = vst [vmem:[#allocation2 + $0x129] sm:$0xff] %v999_v22  ;;  %v1062_v56 = vld [vmem:[#allocation2 + $0xf0] sm:$0xff]  ;;  %v1063_v12 = vld [vmem:[#allocation2 + $0xf8] sm:$0xff]  ;;  %v2605_v9 = vld [vmem:[#allocation2 + $0x103] sm:$0xff] }
 0x16f   : > { %1029 = vst [vmem:[#allocation2 + $0x117] sm:$0xff] %v997_v33  ;;  %v1083_v25 = vpack.c.bf16 %v1063_v12, %v1062_v56  ;;  %v6301_v19 = vld [vmem:[%s6488_s30 + $0x88] sm:$0xff]   ;;  %v1370_v42 = vld [vmem:[#allocation2 + $0x39] sm:$0xff]  ;;  %v6303_v15 = vld [vmem:[%s6488_s30 + $0x90] sm:$0xff]  }
 0x170   : > { %v1371_v22 = vld [vmem:[#allocation2 + $0x41] sm:$0xff]  ;;  %v2986_v33 = vld [vmem:[#allocation2 + $0x4c] sm:$0xff]  ;;  %v6310_v59 = vld [vmem:[%s6488_s30 + $0xb8] sm:$0xff]  }
 0x171   : > { %v2985_v27 = vld [vmem:[#allocation2 + $0x44] sm:$0xff]  ;;  %v1369_v37 = vld [vmem:[#allocation2 + $0x31] sm:$0xff]  ;;  %v2988_v45 = vld [vmem:[#allocation2 + $0x5c] sm:$0xff] }
 0x172   : > { %5427 = vmatmul.mubr.bf16.gmra.mrb[56].mxu0 %v1081_v48  ;;  %v1402_v34 = vpack.c.bf16 %v1370_v42, %v1369_v37  ;;  %v6939_v46 = vpack.c.bf16 %v2986_v33, %v2985_v27  ;;  %v2987_v48 = vld [vmem:[#allocation2 + $0x54] sm:$0xff]  ;;  %v1376_v56 = vld [vmem:[#allocation2 + $0x69] sm:$0xff]  ;;  %v6970_v61 = vld [vmem:[%s6488_s30 + $0x1c0] sm:$0xff]  }
 0x173   : > { %5430 = vmatprep.mubr.bf16.mxu0 %v1082_v50  ;;  %5635 = vmatmul.mubr.bf16.gmra.mrb[24].mxu1 %v2624_v53  ;;  %v6942_v49 = vpack.c.bf16 %v2988_v45, %v2987_v48  ;;  %v6304_v50 = vld [vmem:[%s6488_s30 + $0x98] sm:$0xff]   ;;  %v6306_v53 = vld [vmem:[%s6488_s30 + $0xa0] sm:$0xff]   ;;  %v6309_v41 = vld [vmem:[%s6488_s30 + $0xb0] sm:$0xff]  }
 0x174   : > { %5638 = vmatprep.mubr.bf16.mxu1 %v2625_v54  ;;  %v1065_v28 = vld [vmem:[#allocation2 + $0x108] sm:$0xff]  ;;  %v6973_v3 = vld [vmem:[%s6488_s30 + $0xc0] sm:$0xff]   ;;  %v1385_v42 = vld [vmem:[#allocation2 + $0xb1] sm:$0xff] }
 0x175   : > { %v2606_v35 = vld [vmem:[#allocation2 + $0x10b] sm:$0xff]  ;;  %v1084_v36 = vpack.c.bf16 %v1065_v28, %v1064_v30  ;;  %v2609_v52 = vld [vmem:[#allocation2 + $0x123] sm:$0xff]  ;;  %v2991_v30 = vld [vmem:[#allocation2 + $0x74] sm:$0xff] }
 0x176   : > { %v2607_v57 = vld [vmem:[#allocation2 + $0x113] sm:$0xff]  ;;  %v2608_v8 = vld [vmem:[#allocation2 + $0x11b] sm:$0xff]  ;;  %v2626_v40 = vpack.c.bf16 %v2606_v35, %v2605_v9  ;;  %v2610_v0 = vld [vmem:[#allocation2 + $0x12b] sm:$0xff]  ;;  %v1404_v35 = vpack.c.bf16 %v1374_v63, %v975_v16 }
 0x177   : > { %v2627_v43 = vpack.c.bf16 %v2608_v8, %v2607_v57  ;;  %v1066_v51 = vld [vmem:[#allocation2 + $0x110] sm:$0xff]  ;;  %v1067_v31 = vld [vmem:[#allocation2 + $0x118] sm:$0xff]  ;;  %v2628_v55 = vpack.c.bf16 %v2610_v0, %v2609_v52  ;;  %v1375_v54 = vld [vmem:[#allocation2 + $0x61] sm:$0xff] }
 0x178   : > { %v1085_v44 = vpack.c.bf16 %v1067_v31, %v1066_v51  ;;  %v2989_v12 = vld [vmem:[#allocation2 + $0x64] sm:$0xff]  ;;  %v2992_v28 = vld [vmem:[#allocation2 + $0x7c] sm:$0xff]  ;;  %v2990_v57 = vld [vmem:[#allocation2 + $0x6c] sm:$0xff]  ;;  %v1405_v8 = vpack.c.bf16 %v1376_v56, %v1375_v54 }
 0x179   : > { %v6302_v9 = vld [vmem:[%s6488_s30 + $0x1a8] sm:$0xff]   ;;  %v1378_v16 = vld [vmem:[#allocation2 + $0x79] sm:$0xff]  ;;  %v1377_v52 = vld [vmem:[#allocation2 + $0x71] sm:$0xff] }
 0x17a   : > { %5431 = vmatmul.mubr.bf16.gmra.mrb[60].mxu0 %v1083_v25  ;;  %v6951_v25 = vpack.c.bf16 %v2990_v57, %v2989_v12  ;;  %v1380_v47 = vld [vmem:[#allocation2 + $0x89] sm:$0xff]  ;;  %v2996_v0 = vld [vmem:[#allocation2 + $0x9c] sm:$0xff]  ;;  %v1406_v1 = vpack.c.bf16 %v1378_v16, %v1377_v52  ;;  %v3003_v27 = vld [vmem:[#allocation2 + $0xd4] sm:$0xff] }
 0x17b   : > { %5434 = vmatprep.mubr.bf16.mxu0 %v1084_v36  ;;  %5639 = vmatmul.mubr.bf16.gmra.mrb[28].mxu1 %v2626_v40  ;;  %v6954_v36 = vpack.c.bf16 %v2992_v28, %v2991_v30  ;;  %v6307_v40 = vld [vmem:[%s6488_s30 + $0xa8] sm:$0xff]   ;;  %v3000_v11 = vld [vmem:[#allocation2 + $0xbc] sm:$0xff]  ;;  %v1393_v57 = vld [vmem:[#allocation2 + $0xf1] sm:$0xff] }
 0x17c   : > { %5642 = vmatprep.mubr.bf16.mxu1 %v2627_v43  ;;  %v1379_v43 = vld [vmem:[#allocation2 + $0x81] sm:$0xff]  ;;  %v2994_v31 = vld [vmem:[#allocation2 + $0x8c] sm:$0xff]  ;;  %v3011_v4 = vld [vmem:[#allocation2 + $0x114] sm:$0xff] }
 0x17d   : > { %v2993_v51 = vld [vmem:[#allocation2 + $0x84] sm:$0xff]  ;;  %v1407_v20 = vpack.c.bf16 %v1380_v47, %v1379_v43  ;;  %v2998_v2 = vld [vmem:[#allocation2 + $0xac] sm:$0xff]  ;;  %v3004_v33 = vld [vmem:[#allocation2 + $0xdc] sm:$0xff] }
 0x17e   : > { %v1384_v60 = vld [vmem:[#allocation2 + $0xa9] sm:$0xff]  ;;  %v1387_v45 = vld [vmem:[#allocation2 + $0xc1] sm:$0xff]  ;;  %v6986_v48 = vpack.c.bf16 %v3004_v33, %v3003_v27 }
 0x17f   : > { %v2997_v62 = vld [vmem:[#allocation2 + $0xa4] sm:$0xff]  ;;  %v3006_v63 = vld [vmem:[#allocation2 + $0xec] sm:$0xff] }
 0x180   : > { %v3005_v56 = vld [vmem:[#allocation2 + $0xe4] sm:$0xff] }
 0x181   : > { %v6994_v28 = vpack.c.bf16 %v3006_v63, %v3005_v56  ;;  %v1396_v30 = vld [vmem:[#allocation2 + $0x109] sm:$0xff]  ;;  %v6315_v33 = vld [vmem:[%s6488_s30 + $0x1e0] sm:$0xff]  }
 0x182   : > { %5435 = vmatmul.mubr.bf16.gmra.mrb[64].mxu0 %v1085_v44  ;;  %v2995_v44 = vld [vmem:[#allocation2 + $0x94] sm:$0xff]  ;;  %v3009_v29 = vld [vmem:[#allocation2 + $0x104] sm:$0xff] }
 0x183   : > { %5643 = vmatmul.mubr.bf16.gmra.mrb[32].mxu1 %v2628_v55  ;;  %5454 = vmatprep.mubr.bf16.mxu0 %v1399_v21  ;;  %v6961_v21 = vpack.c.bf16 %v2994_v31, %v2993_v51  ;;  %v6308_v55 = vld [vmem:[%s6488_s30 + $0x1b8] sm:$0xff]   ;;  %v1768_v47 = vld [vmem:[#allocation2 + $0xa] sm:$0xff] }
 0x184   : > { %5662 = vmatprep.mubr.bf16.mxu1 %v3015_v58  ;;  %v6964_v58 = vpack.c.bf16 %v2996_v0, %v2995_v44  ;;  %v1397_v51 = vld [vmem:[#allocation2 + $0x111] sm:$0xff]  ;;  %v1398_v31 = vld [vmem:[#allocation2 + $0x119] sm:$0xff]  ;;  %v3013_v52 = vld [vmem:[#allocation2 + $0x124] sm:$0xff] }
 0x185   : > { %v3014_v0 = vld [vmem:[#allocation2 + $0x12c] sm:$0xff]  ;;  %v1782_v63 = vld [vmem:[#allocation2 + $0x7a] sm:$0xff] }
 0x186   : > { %v7006_v44 = vpack.c.bf16 %v3014_v0, %v3013_v52  ;;  %v6325_v56 = vld [vmem:[%s6488_s30 + $0xf0] sm:$0xff]   ;;  %v1795_v0 = vld [vmem:[#allocation2 + $0xe2] sm:$0xff] }
 0x187   : > { %v1796_v52 = vld [vmem:[#allocation2 + $0xea] sm:$0xff] }
 0x18a   : > { %5455 = vmatmul.mubr.bf16.vlgmr.msra.gmra.mrb[32].mxu0 %v1400_v5  ;;  %v2999_v5 = vld [vmem:[#allocation2 + $0xb4] sm:$0xff] }
 0x18b   : > { %5458 = vmatprep.mubr.bf16.mxu0 %v1401_v13  ;;  %5663 = vmatmul.mubr.bf16.vlgmr.msra.gmra.mrb[0].mxu1 %v6925_v17  ;;  %v1383_v13 = vld [vmem:[#allocation2 + $0xa1] sm:$0xff] }
 0x18c   : > { %5699 = vmatpush3.bf16.msra.mxu1 %v6897_v26  ;;  %5666 = vmatprep.mubr.bf16.mxu1 %v6928_v23  ;;  %v1403_v26 = vpack.c.bf16 %v974_v6, %v1371_v22  ;;  %v6299_v6 = vld [vmem:[%s6488_s30 + $0x1a0] sm:$0xff]   ;;  %v1409_v39 = vpack.c.bf16 %v1384_v60, %v1383_v13  ;;  %v3002_v22 = vld [vmem:[#allocation2 + $0xcc] sm:$0xff] }
 0x18d   : > { %5700 = vmatprep.subr.bf16.mxu1 %v6296_v18  ;;  %5491 = vmatpush3.bf16.msra.mxu0 %v6900_v38  ;;  %v6298_v38 = vld [vmem:[%s6488_s30 + $0x198] sm:$0xff]   ;;  %v1772_v60 = vld [vmem:[#allocation2 + $0x2a] sm:$0xff] }
 0x18e   : > { %5492 = vmatprep.subr.bf16.mxu0 %v6301_v19  ;;  %v6317_v13 = vld [vmem:[%s6488_s30 + $0xc8] sm:$0xff]  }
 0x190   : > { %5701 = vmatpush3.bf16.msra.mxu1 %v6296_v18  ;;  %v6975_v18 = vpack.c.bf16 %v2998_v2, %v2997_v62  ;;  %v1769_v62 = vld [vmem:[#allocation2 + $0x12] sm:$0xff] }
 0x191   : > { %5702 = vmatprep.subr.bf16.mxu1 %v6297_v10  ;;  %5493 = vmatpush3.bf16.msra.mxu0 %v6301_v19  ;;  %v6979_v19 = vpack.c.bf16 %v3000_v11, %v2999_v5  ;;  %v6312_v11 = vld [vmem:[%s6488_s30 + $0x1c8] sm:$0xff]  }
 0x192   : > { %5459 = vmatmul.mubr.bf16.gmra.mrb[36].mxu0 %v1402_v34  ;;  %5494 = vmatprep.subr.bf16.mxu0 %v6303_v15  ;;  %v3001_v34 = vld [vmem:[#allocation2 + $0xc4] sm:$0xff] }
 0x193   : > { %5462 = vmatprep.mubr.bf16.mxu0 %v1403_v26  ;;  %5667 = vmatmul.mubr.bf16.gmra.mrb[4].mxu1 %v6939_v46 }
 0x194   : > { %5670 = vmatprep.mubr.bf16.mxu1 %v6942_v49  ;;  %5703 = vmatpush3.bf16.msra.mxu1 %v6297_v10  ;;  %v1386_v10 = vld [vmem:[#allocation2 + $0xb9] sm:$0xff] }
 0x195   : > { %5704 = vmatprep.subr.bf16.mxu1 %v6298_v38  ;;  %5495 = vmatpush3.bf16.msra.mxu0 %v6303_v15  ;;  %v1388_v15 = vld [vmem:[#allocation2 + $0xc9] sm:$0xff]  ;;  %v1410_v37 = vpack.c.bf16 %v1386_v10, %v1385_v42 }
 0x196   : > { %5496 = vmatprep.subr.bf16.mxu0 %v6304_v50  ;;  %v1411_v26 = vpack.c.bf16 %v1388_v15, %v1387_v45  ;;  %v1775_v42 = vld [vmem:[#allocation2 + $0x42] sm:$0xff]  ;;  %v1776_v10 = vld [vmem:[#allocation2 + $0x4a] sm:$0xff] }
 0x197   : > { %v6319_v15 = vld [vmem:[%s6488_s30 + $0xd0] sm:$0xff]  }
 0x198   : > { %5705 = vmatpush3.bf16.msra.mxu1 %v6298_v38  ;;  %v1389_v38 = vld [vmem:[#allocation2 + $0xd1] sm:$0xff] }
 0x199   : > { %5706 = vmatprep.subr.bf16.mxu1 %v6299_v6  ;;  %5497 = vmatpush3.bf16.msra.mxu0 %v6304_v50  ;;  %v1392_v50 = vld [vmem:[#allocation2 + $0xe9] sm:$0xff]  ;;  %v1412_v54 = vpack.c.bf16 %v990_v24, %v1389_v38  ;;  %v3012_v24 = vld [vmem:[#allocation2 + $0x11c] sm:$0xff] }
 0x19a   : > { %5463 = vmatmul.mubr.bf16.gmra.mrb[40].mxu0 %v1404_v35  ;;  %5498 = vmatprep.subr.bf16.mxu0 %v6306_v53  ;;  %v1413_v12 = vpack.c.bf16 %v1392_v50, %v991_v14  ;;  %v7002_v43 = vpack.c.bf16 %v3012_v24, %v3011_v4  ;;  %v1780_v45 = vld [vmem:[#allocation2 + $0x6a] sm:$0xff]  ;;  %v7059_v4 = vld [vmem:[%s6488_s30 + $0x200] sm:$0xff]  }
 0x19b   : > { %5466 = vmatprep.mubr.bf16.mxu0 %v1405_v8  ;;  %5671 = vmatmul.mubr.bf16.gmra.mrb[8].mxu1 %v6951_v25  ;;  %v1394_v8 = vld [vmem:[#allocation2 + $0xf9] sm:$0xff]  ;;  %v1788_v24 = vld [vmem:[#allocation2 + $0xaa] sm:$0xff] }
 0x19c   : > { %5674 = vmatprep.mubr.bf16.mxu1 %v6954_v36  ;;  %5707 = vmatpush3.bf16.msra.mxu1 %v6299_v6  ;;  %v3007_v6 = vld [vmem:[#allocation2 + $0xf4] sm:$0xff] }
 0x19d   : > { %5708 = vmatprep.subr.bf16.mxu1 %v6302_v9  ;;  %5499 = vmatpush3.bf16.msra.mxu0 %v6306_v53  ;;  %v3008_v53 = vld [vmem:[#allocation2 + $0xfc] sm:$0xff] }
 0x19e   : > { %5500 = vmatprep.subr.bf16.mxu0 %v6307_v40  ;;  %v6996_v35 = vpack.c.bf16 %v3008_v53, %v3007_v6  ;;  %v6321_v6 = vld [vmem:[%s6488_s30 + $0x1f0] sm:$0xff]   ;;  %v1783_v53 = vld [vmem:[#allocation2 + $0x82] sm:$0xff] }
 0x1a0   : > { %5709 = vmatpush3.bf16.msra.mxu1 %v6302_v9  ;;  %v3010_v9 = vld [vmem:[#allocation2 + $0x10c] sm:$0xff] }
 0x1a1   : > { %5710 = vmatprep.subr.bf16.mxu1 %v6305_v7  ;;  %5501 = vmatpush3.bf16.msra.mxu0 %v6307_v40  ;;  %v1414_v40 = vpack.c.bf16 %v1394_v8, %v1393_v57  ;;  %v7000_v16 = vpack.c.bf16 %v3010_v9, %v3009_v29  ;;  %v1786_v9 = vld [vmem:[#allocation2 + $0x9a] sm:$0xff] }
 0x1a2   : > { %5467 = vmatmul.mubr.bf16.gmra.mrb[44].mxu0 %v1406_v1  ;;  %5502 = vmatprep.subr.bf16.mxu0 %v6309_v41 }
 0x1a3   : > { %5470 = vmatprep.mubr.bf16.mxu0 %v1407_v20  ;;  %5675 = vmatmul.mubr.bf16.gmra.mrb[12].mxu1 %v6961_v21  ;;  %v1416_v20 = vpack.c.bf16 %v1398_v31, %v1397_v51  ;;  %v1793_v31 = vld [vmem:[#allocation2 + $0xd2] sm:$0xff] }
 0x1a4   : > { %5678 = vmatprep.mubr.bf16.mxu1 %v6964_v58  ;;  %5711 = vmatpush3.bf16.msra.mxu1 %v6305_v7  ;;  %v1395_v7 = vld [vmem:[#allocation2 + $0x101] sm:$0xff] }
 0x1a5   : > { %5712 = vmatprep.subr.bf16.mxu1 %v6308_v55  ;;  %5503 = vmatpush3.bf16.msra.mxu0 %v6309_v41  ;;  %v1415_v14 = vpack.c.bf16 %v1396_v30, %v1395_v7  ;;  %v1767_v41 = vld [vmem:[#allocation2 + $0x2] sm:$0xff]  ;;  %v1785_v30 = vld [vmem:[#allocation2 + $0x92] sm:$0xff] }
 0x1a6   : > { %5504 = vmatprep.subr.bf16.mxu0 %v6310_v59  ;;  %v1803_v1 = vpack.c.bf16 %v1768_v47, %v1767_v41  ;;  %v1787_v7 = vld [vmem:[#allocation2 + $0xa2] sm:$0xff] }
 0x1a7   : > { %v7063_v29 = vpack.c.bf16 %v1788_v24, %v1787_v7  ;;  %v1791_v47 = vld [vmem:[#allocation2 + $0xc2] sm:$0xff]  ;;  %v3808_v7 = vld [vmem:[#allocation2 + $0xcd] sm:$0xff] }
 0x1a8   : > { %5713 = vmatpush3.bf16.msra.mxu1 %v6308_v55  ;;  %v1770_v55 = vld [vmem:[#allocation2 + $0x1a] sm:$0xff] }
 0x1a9   : > { %5505 = vmatpush3.bf16.msra.mxu0 %v6310_v59  ;;  %5750 = vmatprep.subr.bf16.mxu1 %v6970_v61  ;;  %v1771_v59 = vld [vmem:[#allocation2 + $0x22] sm:$0xff]  ;;  %v7010_v2 = vpack.c.bf16 %v1770_v55, %v1769_v62  ;;  %v1800_v55 = vld [vmem:[#allocation2 + $0x10a] sm:$0xff]  ;;  %v3417_v62 = vld [vmem:[#allocation2 + $0x134] sm:$0xff] }
 0x1aa   : > { %5471 = vmatmul.mubr.bf16.gmra.mrb[48].mxu0 %v6863_v32  ;;  %5542 = vmatprep.subr.bf16.mxu0 %v6973_v3  ;;  %v6984_v32 = vpack.c.bf16 %v3002_v22, %v3001_v34  ;;  %v7012_v5 = vpack.c.bf16 %v1772_v60, %v1771_v59  ;;  %v1773_v22 = vld [vmem:[#allocation2 + $0x32] sm:$0xff]  ;;  %v6322_v34 = vld [vmem:[%s6488_s30 + $0xe0] sm:$0xff]  }
 0x1ab   : > { %5474 = vmatprep.mubr.bf16.mxu0 %v1409_v39  ;;  %5679 = vmatmul.mubr.bf16.gmra.mrb[16].mxu1 %v6975_v18  ;;  %v6313_v39 = vld [vmem:[%s6488_s30 + $0x1d0] sm:$0xff]   ;;  %v1799_v59 = vld [vmem:[#allocation2 + $0x102] sm:$0xff] }
 0x1ac   : > { %5682 = vmatprep.mubr.bf16.mxu1 %v6979_v19  ;;  %v7088_v60 = vpack.c.bf16 %v1800_v55, %v1799_v59  ;;  %v3815_v55 = vld [vmem:[#allocation2 + $0x105] sm:$0xff]  ;;  %v3817_v59 = vld [vmem:[#allocation2 + $0x115] sm:$0xff] }
 0x1b2   : > { %5475 = vmatmul.mubr.bf16.gmra.mrb[52].mxu0 %v1410_v37  ;;  %v1779_v37 = vld [vmem:[#allocation2 + $0x62] sm:$0xff] }
 0x1b3   : > { %5478 = vmatprep.mubr.bf16.mxu0 %v1411_v26  ;;  %5683 = vmatmul.mubr.bf16.gmra.mrb[20].mxu1 %v6984_v32  ;;  %v1777_v26 = vld [vmem:[#allocation2 + $0x52] sm:$0xff]  ;;  %v7038_v50 = vpack.c.bf16 %v1780_v45, %v1779_v37  ;;  %v3795_v37 = vld [vmem:[#allocation2 + $0x65] sm:$0xff] }
 0x1b4   : > { %5686 = vmatprep.mubr.bf16.mxu1 %v6986_v48  ;;  %v3793_v45 = vld [vmem:[#allocation2 + $0x55] sm:$0xff] }
 0x1ba   : > { %5479 = vmatmul.mubr.bf16.gmra.mrb[56].mxu0 %v1412_v54  ;;  %v1784_v54 = vld [vmem:[#allocation2 + $0x8a] sm:$0xff] }
 0x1bb   : > { %5482 = vmatprep.mubr.bf16.mxu0 %v1413_v12  ;;  %5687 = vmatmul.mubr.bf16.gmra.mrb[24].mxu1 %v6994_v28  ;;  %v1781_v12 = vld [vmem:[#allocation2 + $0x72] sm:$0xff]  ;;  %v7050_v8 = vpack.c.bf16 %v1784_v54, %v1783_v53 }
 0x1bc   : > { %5690 = vmatprep.mubr.bf16.mxu1 %v6996_v35  ;;  %v7048_v57 = vpack.c.bf16 %v1782_v63, %v1781_v12  ;;  %v3799_v63 = vld [vmem:[#allocation2 + $0x85] sm:$0xff]  ;;  %v3797_v53 = vld [vmem:[#allocation2 + $0x75] sm:$0xff]  ;;  %v3802_v12 = vld [vmem:[#allocation2 + $0x9d] sm:$0xff] }
 0x1c2   : > { %5483 = vmatmul.mubr.bf16.gmra.mrb[60].mxu0 %v1414_v40  ;;  %v7061_v40 = vpack.c.bf16 %v1786_v9, %v1785_v30  ;;  %v3801_v30 = vld [vmem:[#allocation2 + $0x95] sm:$0xff] }
 0x1c3   : > { %5486 = vmatprep.mubr.bf16.mxu0 %v1415_v14  ;;  %5691 = vmatmul.mubr.bf16.gmra.mrb[28].mxu1 %v7000_v16  ;;  %v1792_v14 = vld [vmem:[#allocation2 + $0xca] sm:$0xff]  ;;  %v3830_v9 = vpack.c.bf16 %v3802_v12, %v3801_v30  ;;  %v4209_v12 = vld [vmem:[#allocation2 + $0xb6] sm:$0xff] }
 0x1c4   : > { %5694 = vmatprep.mubr.bf16.mxu1 %v7002_v43  ;;  %v7072_v51 = vpack.c.bf16 %v1792_v14, %v1791_v47  ;;  %v3810_v47 = vld [vmem:[#allocation2 + $0xdd] sm:$0xff] }
 0x1ca   : > { %5487 = vmatmul.mubr.bf16.gmra.mrb[64].mxu0 %v1416_v20  ;;  %v1797_v20 = vld [vmem:[#allocation2 + $0xf2] sm:$0xff] }
 0x1cb   : > { %5695 = vmatmul.mubr.bf16.gmra.mrb[32].mxu1 %v7006_v44  ;;  %5506 = vmatprep.mubr.bf16.mxu0 %v1803_v1  ;;  %v7080_v1 = vpack.c.bf16 %v1796_v52, %v1795_v0  ;;  %v3813_v0 = vld [vmem:[#allocation2 + $0xf5] sm:$0xff] }
 0x1cc   : > { %5714 = vmatprep.mubr.bf16.mxu1 %v6925_v17  ;;  %v1774_v17 = vld [vmem:[#allocation2 + $0x3a] sm:$0xff] }
 0x1cd   : > { %v7024_v27 = vpack.c.bf16 %v1774_v17, %v1773_v22  ;;  %v3788_v17 = vld [vmem:[#allocation2 + $0x2d] sm:$0xff]  ;;  %v3789_v22 = vld [vmem:[#allocation2 + $0x35] sm:$0xff] }
 0x1d2   : > { %5507 = vmatmul.mubr.bf16.vlgmr.msra.gmra.mrb[32].mxu0 %v7010_v2 }
 0x1d3   : > { %5510 = vmatprep.mubr.bf16.mxu0 %v7012_v5  ;;  %5715 = vmatmul.mubr.bf16.vlgmr.msra.gmra.mrb[0].mxu1 %v6928_v23  ;;  %v7026_v23 = vpack.c.bf16 %v1776_v10, %v1775_v42  ;;  %v3787_v42 = vld [vmem:[#allocation2 + $0x25] sm:$0xff] }
 0x1d4   : > { %5751 = vmatpush3.bf16.msra.mxu1 %v6970_v61  ;;  %5718 = vmatprep.mubr.bf16.mxu1 %v6939_v46  ;;  %v6314_v61 = vld [vmem:[%s6488_s30 + $0x1d8] sm:$0xff]   ;;  %v3823_v10 = vpack.c.bf16 %v3788_v17, %v3787_v42  ;;  %v2206_v17 = vld [vmem:[#allocation2 + $0x12a] sm:$0xff] }
 0x1d5   : > { %5752 = vmatprep.subr.bf16.mxu1 %v6312_v11  ;;  %5543 = vmatpush3.bf16.msra.mxu0 %v6973_v3  ;;  %v6320_v46 = vld [vmem:[%s6488_s30 + $0xd8] sm:$0xff]  }
 0x1d6   : > { %5544 = vmatprep.subr.bf16.mxu0 %v6317_v13  ;;  %v1778_v3 = vld [vmem:[#allocation2 + $0x5a] sm:$0xff] }
 0x1d7   : > { %v7036_v38 = vpack.c.bf16 %v1778_v3, %v1777_v26  ;;  %v3796_v26 = vld [vmem:[#allocation2 + $0x6d] sm:$0xff] }
 0x1d8   : > { %5753 = vmatpush3.bf16.msra.mxu1 %v6312_v11  ;;  %v1801_v11 = vld [vmem:[#allocation2 + $0x112] sm:$0xff] }
 0x1d9   : > { %5754 = vmatprep.subr.bf16.mxu1 %v6313_v39  ;;  %5545 = vmatpush3.bf16.msra.mxu0 %v6317_v13 }
 0x1da   : > { %5511 = vmatmul.mubr.bf16.gmra.mrb[36].mxu0 %v7024_v27  ;;  %5546 = vmatprep.subr.bf16.mxu0 %v6319_v15 }
 0x1db   : > { %5514 = vmatprep.mubr.bf16.mxu0 %v7026_v23  ;;  %5719 = vmatmul.mubr.bf16.gmra.mrb[4].mxu1 %v6942_v49  ;;  %v6318_v49 = vld [vmem:[%s6488_s30 + $0x1e8] sm:$0xff]  }
 0x1dc   : > { %5722 = vmatprep.mubr.bf16.mxu1 %v6951_v25  ;;  %5755 = vmatpush3.bf16.msra.mxu1 %v6313_v39  ;;  %v6323_v25 = vld [vmem:[%s6488_s30 + $0xe8] sm:$0xff]  }
 0x1dd   : > { %5756 = vmatprep.subr.bf16.mxu1 %v6314_v61  ;;  %5547 = vmatpush3.bf16.msra.mxu0 %v6319_v15  ;;  %v3792_v15 = vld [vmem:[#allocation2 + $0x4d] sm:$0xff] }
 0x1de   : > { %5548 = vmatprep.subr.bf16.mxu0 %v6320_v46 }
 0x1e0   : > { %5757 = vmatpush3.bf16.msra.mxu1 %v6314_v61 }
 0x1e1   : > { %5758 = vmatprep.subr.bf16.mxu1 %v6315_v33  ;;  %5549 = vmatpush3.bf16.msra.mxu0 %v6320_v46  ;;  %v6328_v46 = vld [vmem:[%s6488_s30 + $0x208] sm:$0xff]  }
 0x1e2   : > { %5515 = vmatmul.mubr.bf16.gmra.mrb[40].mxu0 %v7036_v38  ;;  %5550 = vmatprep.subr.bf16.mxu0 %v6322_v34 }
 0x1e3   : > { %5518 = vmatprep.mubr.bf16.mxu0 %v7038_v50  ;;  %5723 = vmatmul.mubr.bf16.gmra.mrb[8].mxu1 %v6954_v36  ;;  %v6324_v36 = vld [vmem:[%s6488_s30 + $0x1f8] sm:$0xff]  }
 0x1e4   : > { %5726 = vmatprep.mubr.bf16.mxu1 %v6961_v21  ;;  %5759 = vmatpush3.bf16.msra.mxu1 %v6315_v33  ;;  %v6326_v21 = vld [vmem:[%s6488_s30 + $0xf8] sm:$0xff]  }
 0x1e5   : > { %5760 = vmatprep.subr.bf16.mxu1 %v6318_v49  ;;  %5551 = vmatpush3.bf16.msra.mxu0 %v6322_v34  ;;  %v3794_v33 = vld [vmem:[#allocation2 + $0x5d] sm:$0xff] }
 0x1e6   : > { %5552 = vmatprep.subr.bf16.mxu0 %v6323_v25  ;;  %v3826_v34 = vpack.c.bf16 %v3794_v33, %v3793_v45  ;;  %v4200_v33 = vld [vmem:[#allocation2 + $0x6e] sm:$0xff] }
 0x1e8   : > { %5761 = vmatpush3.bf16.msra.mxu1 %v6318_v49  ;;  %v6330_v49 = vld [vmem:[%s6488_s30 + $0x218] sm:$0xff]  }
 0x1e9   : > { %5762 = vmatprep.subr.bf16.mxu1 %v6321_v6  ;;  %5553 = vmatpush3.bf16.msra.mxu0 %v6323_v25  ;;  %v3798_v25 = vld [vmem:[#allocation2 + $0x7d] sm:$0xff] }
 0x1ea   : > { %5519 = vmatmul.mubr.bf16.gmra.mrb[44].mxu0 %v7048_v57  ;;  %5554 = vmatprep.subr.bf16.mxu0 %v6325_v56  ;;  %v3828_v54 = vpack.c.bf16 %v3798_v25, %v3797_v53  ;;  %v4207_v53 = vld [vmem:[#allocation2 + $0xa6] sm:$0xff] }
 0x1eb   : > { %5522 = vmatprep.mubr.bf16.mxu0 %v7050_v8  ;;  %5727 = vmatmul.mubr.bf16.gmra.mrb[12].mxu1 %v6964_v58  ;;  %v1789_v58 = vld [vmem:[#allocation2 + $0xb2] sm:$0xff] }
 0x1ec   : > { %5730 = vmatprep.mubr.bf16.mxu1 %v6975_v18  ;;  %5763 = vmatpush3.bf16.msra.mxu1 %v6321_v6  ;;  %v1790_v18 = vld [vmem:[#allocation2 + $0xba] sm:$0xff]  ;;  %v3800_v6 = vld [vmem:[#allocation2 + $0x8d] sm:$0xff] }
 0x1ed   : > { %5764 = vmatprep.subr.bf16.mxu1 %v6324_v36  ;;  %5555 = vmatpush3.bf16.msra.mxu0 %v6325_v56  ;;  %v7070_v41 = vpack.c.bf16 %v1790_v18, %v1789_v58  ;;  %v6332_v56 = vld [vmem:[%s6488_s30 + $0x228] sm:$0xff]  }
 0x1ee   : > { %5556 = vmatprep.subr.bf16.mxu0 %v6326_v21  ;;  %v3807_v18 = vld [vmem:[#allocation2 + $0xc5] sm:$0xff] }
 0x1ef   : > { %v3833_v14 = vpack.c.bf16 %v3808_v7, %v3807_v18 }
 0x1f0   : > { %5765 = vmatpush3.bf16.msra.mxu1 %v6324_v36  ;;  %v3803_v36 = vld [vmem:[#allocation2 + $0xa5] sm:$0xff] }
 0x1f1   : > { %5557 = vmatpush3.bf16.msra.mxu0 %v6326_v21  ;;  %5802 = vmatprep.subr.bf16.mxu1 %v7059_v4  ;;  %v3804_v21 = vld [vmem:[#allocation2 + $0xad] sm:$0xff] }
 0x1f2   : > { %5523 = vmatmul.mubr.bf16.gmra.mrb[48].mxu0 %v7061_v40  ;;  %v3831_v24 = vpack.c.bf16 %v3804_v21, %v3803_v36  ;;  %v4210_v36 = vld [vmem:[#allocation2 + $0xbe] sm:$0xff]  ;;  %v4212_v21 = vld [vmem:[#allocation2 + $0xce] sm:$0xff] }
 0x1f3   : > { %5526 = vmatprep.mubr.bf16.mxu0 %v7063_v29  ;;  %5731 = vmatmul.mubr.bf16.gmra.mrb[16].mxu1 %v6979_v19  ;;  %v1794_v19 = vld [vmem:[#allocation2 + $0xda] sm:$0xff]  ;;  %v4236_v30 = vpack.c.bf16 %v4210_v36, %v4209_v12 }
 0x1f4   : > { %5734 = vmatprep.mubr.bf16.mxu1 %v6984_v32  ;;  %v7078_v32 = vpack.c.bf16 %v1794_v19, %v1793_v31  ;;  %v3811_v19 = vld [vmem:[#allocation2 + $0xe5] sm:$0xff] }
 0x1fa   : > { %5527 = vmatmul.mubr.bf16.gmra.mrb[52].mxu0 %v7070_v41 }
 0x1fb   : > { %5530 = vmatprep.mubr.bf16.mxu0 %v7072_v51  ;;  %5735 = vmatmul.mubr.bf16.gmra.mrb[20].mxu1 %v6986_v48  ;;  %v1798_v48 = vld [vmem:[#allocation2 + $0xfa] sm:$0xff] }
 0x1fc   : > { %5738 = vmatprep.mubr.bf16.mxu1 %v6994_v28  ;;  %v7086_v28 = vpack.c.bf16 %v1798_v48, %v1797_v20  ;;  %v3814_v20 = vld [vmem:[#allocation2 + $0xfd] sm:$0xff] }
 0x1fd   : > { %v3836_v48 = vpack.c.bf16 %v3814_v20, %v3813_v0  ;;  %v4222_v0 = vld [vmem:[#allocation2 + $0x11e] sm:$0xff]  ;;  %v4223_v20 = vld [vmem:[#allocation2 + $0x126] sm:$0xff] }
 0x202   : > { %5531 = vmatmul.mubr.bf16.gmra.mrb[56].mxu0 %v7078_v32 }
 0x203   : > { %5534 = vmatprep.mubr.bf16.mxu0 %v7080_v1  ;;  %5739 = vmatmul.mubr.bf16.gmra.mrb[24].mxu1 %v6996_v35  ;;  %v3418_v35 = vld [vmem:[#allocation2 + $0x13c] sm:$0xff] }
 0x204   : > { %5742 = vmatprep.mubr.bf16.mxu1 %v7000_v16  ;;  %v1802_v16 = vld [vmem:[#allocation2 + $0x11a] sm:$0xff]  ;;  %v3436_v13 = vpack.c.bf16 %v3418_v35, %v3417_v62  ;;  %v3820_v35 = vld [vmem:[#allocation2 + $0x12d] sm:$0xff] }
 0x205   : > { %v7094_v39 = vpack.c.bf16 %v1802_v16, %v1801_v11  ;;  %v3818_v62 = vld [vmem:[#allocation2 + $0x11d] sm:$0xff]  ;;  %v3821_v16 = vld [vmem:[#allocation2 + $0x135] sm:$0xff] }
 0x206   : > { %v3838_v11 = vpack.c.bf16 %v3818_v62, %v3817_v59  ;;  %v4226_v59 = vld [vmem:[#allocation2 + $0x13e] sm:$0xff] }
 0x20a   : > { %5535 = vmatmul.mubr.bf16.gmra.mrb[60].mxu0 %v7086_v28 }
 0x20b   : > { %5538 = vmatprep.mubr.bf16.mxu0 %v7088_v60  ;;  %5743 = vmatmul.mubr.bf16.gmra.mrb[28].mxu1 %v7002_v43  ;;  %v3790_v43 = vld [vmem:[#allocation2 + $0x3d] sm:$0xff] }
 0x20c   : > { %5746 = vmatprep.mubr.bf16.mxu1 %v7006_v44  ;;  %v3791_v44 = vld [vmem:[#allocation2 + $0x45] sm:$0xff]  ;;  %v3824_v61 = vpack.c.bf16 %v3790_v43, %v3789_v22 }
 0x20d   : > { %v3825_v3 = vpack.c.bf16 %v3792_v15, %v3791_v44  ;;  %v4194_v15 = vld [vmem:[#allocation2 + $0x3e] sm:$0xff]  ;;  %v4195_v22 = vld [vmem:[#allocation2 + $0x46] sm:$0xff] }
 0x212   : > { %5539 = vmatmul.mubr.bf16.gmra.mrb[64].mxu0 %v7094_v39 }
 0x213   : > { %5558 = vmatprep.mubr.bf16.mxu0 %v7010_v2  ;;  %5747 = vmatmul.mubr.bf16.gmra.mrb[32].mxu1 %v3436_v13  ;;  %v6329_v2 = vld [vmem:[%s6488_s30 + $0x210] sm:$0xff]   ;;  %v3822_v13 = vld [vmem:[#allocation2 + $0x13d] sm:$0xff] }
 0x214   : > { %5766 = vmatprep.mubr.bf16.mxu1 %v3823_v10  ;;  %v3840_v42 = vpack.c.bf16 %v3822_v13, %v3821_v16  ;;  %v4192_v10 = vld [vmem:[#allocation2 + $0x2e] sm:$0xff] }
 0x21a   : > { %5559 = vmatmul.mubr.bf16.vlgmr.msra.gmra.mrb[32].mxu0 %v7012_v5  ;;  %v3827_v5 = vpack.c.bf16 %v3796_v26, %v3795_v37  ;;  %v4197_v37 = vld [vmem:[#allocation2 + $0x56] sm:$0xff]  ;;  %v4202_v26 = vld [vmem:[#allocation2 + $0x7e] sm:$0xff] }
 0x21b   : > { %5562 = vmatprep.mubr.bf16.mxu0 %v7024_v27  ;;  %5767 = vmatmul.mubr.bf16.vlgmr.msra.gmra.mrb[0].mxu1 %v3824_v61  ;;  %v6331_v27 = vld [vmem:[%s6488_s30 + $0x220] sm:$0xff]   ;;  %v4193_v61 = vld [vmem:[#allocation2 + $0x36] sm:$0xff] }
 0x21c   : > { %5803 = vmatpush3.bf16.msra.mxu1 %v7059_v4  ;;  %5770 = vmatprep.mubr.bf16.mxu1 %v3825_v3  ;;  %v6334_v4 = vld [vmem:[%s6488_s30 + $0x238] sm:$0xff]  }
 0x21d   : > { %5804 = vmatprep.subr.bf16.mxu1 %v6328_v46  ;;  %v4198_v3 = vld [vmem:[#allocation2 + $0x5e] sm:$0xff] }
 0x21e   : > { %v4230_v45 = vpack.c.bf16 %v4198_v3, %v4197_v37 }
 0x220   : > { %5805 = vmatpush3.bf16.msra.mxu1 %v6328_v46  ;;  %v4228_v46 = vpack.c.bf16 %v4194_v15, %v4193_v61 }
 0x221   : > { %5806 = vmatprep.subr.bf16.mxu1 %v6329_v2 }
 0x222   : > { %5563 = vmatmul.mubr.bf16.gmra.mrb[36].mxu0 %v7026_v23  ;;  %v3829_v23 = vpack.c.bf16 %v3800_v6, %v3799_v63  ;;  %v4206_v6 = vld [vmem:[#allocation2 + $0x9e] sm:$0xff] }
 0x223   : > { %5566 = vmatprep.mubr.bf16.mxu0 %v7036_v38  ;;  %5771 = vmatmul.mubr.bf16.gmra.mrb[4].mxu1 %v3826_v34  ;;  %v6333_v38 = vld [vmem:[%s6488_s30 + $0x230] sm:$0xff]  }
 0x224   : > { %5774 = vmatprep.mubr.bf16.mxu1 %v3827_v5  ;;  %5807 = vmatpush3.bf16.msra.mxu1 %v6329_v2  ;;  %v4199_v2 = vld [vmem:[#allocation2 + $0x66] sm:$0xff]  ;;  %v4204_v5 = vld [vmem:[#allocation2 + $0x8e] sm:$0xff] }
 0x225   : > { %5808 = vmatprep.subr.bf16.mxu1 %v6330_v49  ;;  %v4231_v34 = vpack.c.bf16 %v4200_v33, %v4199_v2 }
 0x228   : > { %5809 = vmatpush3.bf16.msra.mxu1 %v6330_v49  ;;  %v4203_v49 = vld [vmem:[#allocation2 + $0x86] sm:$0xff] }
 0x229   : > { %5810 = vmatprep.subr.bf16.mxu1 %v6331_v27  ;;  %v4233_v63 = vpack.c.bf16 %v4204_v5, %v4203_v49 }
 0x22a   : > { %5567 = vmatmul.mubr.bf16.gmra.mrb[40].mxu0 %v7038_v50  ;;  %v3805_v50 = vld [vmem:[#allocation2 + $0xb5] sm:$0xff] }
 0x22b   : > { %5570 = vmatprep.mubr.bf16.mxu0 %v7048_v57  ;;  %5775 = vmatmul.mubr.bf16.gmra.mrb[8].mxu1 %v3828_v54  ;;  %v3806_v57 = vld [vmem:[#allocation2 + $0xbd] sm:$0xff]  ;;  %v4208_v54 = vld [vmem:[#allocation2 + $0xae] sm:$0xff] }
 0x22c   : > { %5778 = vmatprep.mubr.bf16.mxu1 %v3829_v23  ;;  %5811 = vmatpush3.bf16.msra.mxu1 %v6331_v27  ;;  %v3832_v58 = vpack.c.bf16 %v3806_v57, %v3805_v50  ;;  %v4201_v27 = vld [vmem:[#allocation2 + $0x76] sm:$0xff]  ;;  %v4214_v50 = vld [vmem:[#allocation2 + $0xde] sm:$0xff]  ;;  %v4216_v57 = vld [vmem:[#allocation2 + $0xee] sm:$0xff] }
 0x22d   : > { %5812 = vmatprep.subr.bf16.mxu1 %v6332_v56  ;;  %v4232_v25 = vpack.c.bf16 %v4202_v26, %v4201_v27 }
 0x230   : > { %5813 = vmatpush3.bf16.msra.mxu1 %v6332_v56  ;;  %v4205_v56 = vld [vmem:[#allocation2 + $0x96] sm:$0xff] }
 0x231   : > { %5814 = vmatprep.subr.bf16.mxu1 %v6333_v38  ;;  %v4234_v23 = vpack.c.bf16 %v4206_v6, %v4205_v56 }
 0x232   : > { %5571 = vmatmul.mubr.bf16.gmra.mrb[44].mxu0 %v7050_v8  ;;  %v3809_v8 = vld [vmem:[#allocation2 + $0xd5] sm:$0xff] }
 0x233   : > { %5574 = vmatprep.mubr.bf16.mxu0 %v7061_v40  ;;  %5779 = vmatmul.mubr.bf16.gmra.mrb[12].mxu1 %v3830_v9  ;;  %v3812_v40 = vld [vmem:[#allocation2 + $0xed] sm:$0xff]  ;;  %v3834_v31 = vpack.c.bf16 %v3810_v47, %v3809_v8  ;;  %v4218_v8 = vld [vmem:[#allocation2 + $0xfe] sm:$0xff] }
 0x234   : > { %5782 = vmatprep.mubr.bf16.mxu1 %v3831_v24  ;;  %5815 = vmatpush3.bf16.msra.mxu1 %v6333_v38  ;;  %v3835_v52 = vpack.c.bf16 %v3812_v40, %v3811_v19  ;;  %v4235_v38 = vpack.c.bf16 %v4208_v54, %v4207_v53  ;;  %v4211_v9 = vld [vmem:[#allocation2 + $0xc6] sm:$0xff]  ;;  %v4213_v24 = vld [vmem:[#allocation2 + $0xd6] sm:$0xff]  ;;  %v4220_v47 = vld [vmem:[#allocation2 + $0x10e] sm:$0xff] }
 0x235   : > { %5816 = vmatprep.subr.bf16.mxu1 %v6334_v4  ;;  %v4238_v7 = vpack.c.bf16 %v4214_v50, %v4213_v24  ;;  %v4596_v50 = vld [vmem:[%s6478_s8 + $0x8] sm:$0xff] }
 0x238   : > { %5817 = vmatpush3.bf16.msra.mxu1 %v6334_v4  ;;  %v4237_v4 = vpack.c.bf16 %v4212_v21, %v4211_v9  ;;  %v4595_v21 = vld [vmem:[%s6478_s8] sm:$0xff] }
 0x23a   : > { %5575 = vmatmul.mubr.bf16.gmra.mrb[48].mxu0 %v7063_v29  ;;  %v3816_v29 = vld [vmem:[#allocation2 + $0x10d] sm:$0xff] }
 0x23b   : > { %5578 = vmatprep.mubr.bf16.mxu0 %v7070_v41  ;;  %5783 = vmatmul.mubr.bf16.gmra.mrb[16].mxu1 %v3832_v58  ;;  %v3837_v41 = vpack.c.bf16 %v3816_v29, %v3815_v55  ;;  %v4215_v58 = vld [vmem:[#allocation2 + $0xe6] sm:$0xff]  ;;  %v4224_v29 = vld [vmem:[#allocation2 + $0x12e] sm:$0xff] }
 0x23c   : > { %5786 = vmatprep.mubr.bf16.mxu1 %v3833_v14  ;;  %v4239_v18 = vpack.c.bf16 %v4216_v57, %v4215_v58  ;;  %v4217_v14 = vld [vmem:[#allocation2 + $0xf6] sm:$0xff]  ;;  %v4243_v55 = vpack.c.bf16 %v4224_v29, %v4223_v20 }
 0x23d   : > { %v4240_v40 = vpack.c.bf16 %v4218_v8, %v4217_v14 }
 0x242   : > { %5579 = vmatmul.mubr.bf16.gmra.mrb[52].mxu0 %v7072_v51  ;;  %v3819_v51 = vld [vmem:[#allocation2 + $0x125] sm:$0xff] }
 0x243   : > { %5582 = vmatprep.mubr.bf16.mxu0 %v7078_v32  ;;  %5787 = vmatmul.mubr.bf16.gmra.mrb[20].mxu1 %v3834_v31  ;;  %v3839_v32 = vpack.c.bf16 %v3820_v35, %v3819_v51  ;;  %v4219_v31 = vld [vmem:[#allocation2 + $0x106] sm:$0xff] }
 0x244   : > { %5790 = vmatprep.mubr.bf16.mxu1 %v3835_v52  ;;  %v4241_v19 = vpack.c.bf16 %v4220_v47, %v4219_v31  ;;  %v4221_v52 = vld [vmem:[#allocation2 + $0x116] sm:$0xff] }
 0x245   : > { %v4603_v47 = vld [vmem:[%s6478_s8 + $0x10] sm:$0xff] }
 0x24a   : > { %5583 = vmatmul.mubr.bf16.gmra.mrb[56].mxu0 %v7080_v1  ;;  %v2205_v1 = vld [vmem:[#allocation2 + $0x122] sm:$0xff] }
 0x24b   : > { %5586 = vmatprep.mubr.bf16.mxu0 %v7086_v28  ;;  %5791 = vmatmul.mubr.bf16.gmra.mrb[24].mxu1 %v3836_v48  ;;  %v4191_v28 = vld [vmem:[#allocation2 + $0x26] sm:$0xff]  ;;  %v2224_v43 = vpack.c.bf16 %v2206_v17, %v2205_v1  ;;  %v4242_v48 = vpack.c.bf16 %v4222_v0, %v4221_v52 }
 0x24c   : > { %5794 = vmatprep.mubr.bf16.mxu1 %v3837_v41  ;;  %v4227_v44 = vpack.c.bf16 %v4192_v10, %v4191_v28  ;;  %v4225_v41 = vld [vmem:[#allocation2 + $0x136] sm:$0xff] }
 0x24d   : > { %v4244_v62 = vpack.c.bf16 %v4226_v59, %v4225_v41  ;;  %v4604_v41 = vld [vmem:[%s6478_s8 + $0x18] sm:$0xff] }
 0x252   : > { %5587 = vmatmul.mubr.bf16.gmra.mrb[60].mxu0 %v7088_v60  ;;  %v4196_v60 = vld [vmem:[#allocation2 + $0x4e] sm:$0xff] }
 0x253   : > { %5590 = vmatprep.mubr.bf16.mxu0 %v7094_v39  ;;  %5795 = vmatmul.mubr.bf16.gmra.mrb[28].mxu1 %v3838_v11  ;;  %v4229_v39 = vpack.c.bf16 %v4196_v60, %v4195_v22 }
 0x254   : > { %5798 = vmatprep.mubr.bf16.mxu1 %v3839_v32 }
 0x25a   : > { %5591 = vmatmul.mubr.bf16.gmra.mrb[64].mxu0 %v2224_v43 }
 0x25b   : > { %5799 = vmatmul.mubr.bf16.gmra.mrb[32].mxu1 %v3840_v42 }
 0x25c   : > { %5818 = vmatprep.mubr.bf16.mxu1 %v4227_v44 }
 0x263   : > { %5819 = vmatmul.mubr.bf16.vlgmr.msra.gmra.mrb[0].mxu1 %v4228_v46 }
 0x264   : > { %5822 = vmatprep.mubr.bf16.mxu1 %v4229_v39 }
 0x26b   : > { %5823 = vmatmul.mubr.bf16.gmra.mrb[4].mxu1 %v4230_v45 }
 0x26c   : > { %5826 = vmatprep.mubr.bf16.mxu1 %v4231_v34 }
 0x273   : > { %5827 = vmatmul.mubr.bf16.gmra.mrb[8].mxu1 %v4232_v25 }
 0x274   : > { %5830 = vmatprep.mubr.bf16.mxu1 %v4233_v63 }
 0x27b   : > { %5831 = vmatmul.mubr.bf16.gmra.mrb[12].mxu1 %v4234_v23 }
 0x27c   : > { %5834 = vmatprep.mubr.bf16.mxu1 %v4235_v38 }
 0x283   : > { %5835 = vmatmul.mubr.bf16.gmra.mrb[16].mxu1 %v4236_v30 }
 0x284   : > { %5838 = vmatprep.mubr.bf16.mxu1 %v4237_v4 }
 0x28b   : > { %5839 = vmatmul.mubr.bf16.gmra.mrb[20].mxu1 %v4238_v7 }
 0x28c   : > { %5842 = vmatprep.mubr.bf16.mxu1 %v4239_v18 }
 0x293   : > { %5843 = vmatmul.mubr.bf16.gmra.mrb[24].mxu1 %v4240_v40 }
 0x294   : > { %5846 = vmatprep.mubr.bf16.mxu1 %v4241_v19 }
 0x29b   : > { %5847 = vmatmul.mubr.bf16.gmra.mrb[28].mxu1 %v4242_v48 }
 0x29c   : > { %5850 = vmatprep.mubr.bf16.mxu1 %v4243_v55  ;;  %v4628_v55 = vld [vmem:[%s6478_s8 + $0x48] sm:$0xff] }
 0x2a3   : > { %5851 = vmatmul.mubr.bf16.gmra.mrb[32].mxu1 %v4244_v62 }
 0x2ed   : > { %v5560_v51 = vpop.f32.mrb[32].mxu0 }
 0x2ee   : > { %v2324_v35 = vpop.f32.mrb[33].mxu0 }
 0x2ef   : > { %v5561_v11 = vpop.f32.mrb[34].mxu0 }
 0x2f0   : > { %v2327_v32 = vpop.f32.mrb[35].mxu0 }
 0x2f5   : > { %v5564_v16 = vpop.f32.mrb[36].mxu0 }
 0x2f6   : > { %v2340_v13 = vpop.f32.mrb[37].mxu0 }
 0x2f7   : > { %v5565_v1 = vpop.f32.mrb[38].mxu0 }
 0x2f8   : > { %v2343_v17 = vpop.f32.mrb[39].mxu0 }
 0x2fd   : > { %v7122_v42 = vpop.f32.mrb[40].mxu0 }
 0x2fe   : > { %v7124_v28 = vpop.f32.mrb[41].mxu0 }
 0x2ff   : > { %v7126_v10 = vpop.f32.mrb[42].mxu0 }
 0x300   : > { %v7128_v43 = vpop.f32.mrb[43].mxu0 }
 0x305   : > { %v7130_v44 = vpop.f32.mrb[44].mxu0 }
 0x306   : > { %v7132_v15 = vpop.f32.mrb[45].mxu0 }
 0x307   : > { %v7134_v22 = vpop.f32.mrb[46].mxu0 }
 0x308   : > { %v7136_v60 = vpop.f32.mrb[47].mxu0 }
 0x30d   : > { %v7138_v61 = vpop.f32.mrb[48].mxu0 }
 0x30e   : > { %v7140_v46 = vpop.f32.mrb[49].mxu0 }
 0x30f   : > { %v7142_v39 = vpop.f32.mrb[50].mxu0 }
 0x310   : > { %v7144_v3 = vpop.f32.mrb[51].mxu0 }
 0x315   : > { %v7146_v2 = vpop.f32.mrb[52].mxu0 }
 0x316   : > { %v7148_v33 = vpop.f32.mrb[53].mxu0 }
 0x317   : > { %v7150_v37 = vpop.f32.mrb[54].mxu0 }
 0x318   : > { %v7152_v45 = vpop.f32.mrb[55].mxu0 }
 0x31d   : > { %v7154_v34 = vpop.f32.mrb[56].mxu0 }
 0x31e   : > { %v7156_v26 = vpop.f32.mrb[57].mxu0 }
 0x31f   : > { %v7158_v49 = vpop.f32.mrb[58].mxu0 }
 0x320   : > { %v7160_v5 = vpop.f32.mrb[59].mxu0 }
 0x325   : > { %v7162_v27 = vpop.f32.mrb[60].mxu0 }
 0x326   : > { %v7164_v25 = vpop.f32.mrb[61].mxu0 }
 0x327   : > { %v7166_v63 = vpop.f32.mrb[62].mxu0 }
 0x328   : > { %v7168_v6 = vpop.f32.mrb[63].mxu0 }
 0x32d   : > { %v7170_v53 = vpop.f32.mrb[64].mxu0 }
 0x32e   : > { %v7172_v54 = vpop.f32.mrb[65].mxu0 }
 0x32f   : > { %v7174_v56 = vpop.f32.mrb[66].mxu0 }
 0x330   : > { %v7176_v23 = vpop.f32.mrb[67].mxu0 }
 0x336   : > { %v5820_v38 = vpop.f32.mrb[0].mxu1 }
 0x337   : > { %v5856_v12 = vadd.f32 %v5820_v38, %v5560_v51  ;;  %v4344_v36 = vpop.f32.mrb[1].mxu1  ;;  %v4619_v51 = vld [vmem:[%s6478_s8 + $0x30] sm:$0xff] }
 0x338   : > { %v5859_v30 = vadd.f32 %v4344_v36, %v2324_v35  ;;  %v5821_v9 = vpop.f32.mrb[2].mxu1  ;;  %v4611_v35 = vld [vmem:[%s6478_s8 + $0x20] sm:$0xff] }
 0x339   : > { %4561 = vst [vmem:[#allocation3 + $0x10] sm:$0xff] %v5856_v12  ;;  %v5862_v4 = vadd.f32 %v5821_v9, %v5561_v11  ;;  %v4347_v24 = vpop.f32.mrb[3].mxu1  ;;  %v4627_v12 = vld [vmem:[%s6478_s8 + $0x40] sm:$0xff] }
 0x33a   : > { %v4599_v57 = vadd.f32 %v5859_v30, %v4595_v21  ;;  %v5865_v7 = vadd.f32 %v4347_v24, %v2327_v32 }
 0x33b   : > { %4562 = vst [vmem:[#allocation3 + $0x18] sm:$0xff] %v5862_v4 }
 0x33c   : > { %4601 = vst [vmem:[%s6478_s8] sm:$0xff] %v4599_v57  ;;  %v4600_v58 = vadd.f32 %v5865_v7, %v4596_v50  ;;  %v4620_v57 = vld [vmem:[%s6478_s8 + $0x38] sm:$0xff] }
 0x33e   : > { %4602 = vst [vmem:[%s6478_s8 + $0x8] sm:$0xff] %v4600_v58  ;;  %v5824_v18 = vpop.f32.mrb[4].mxu1 }
 0x33f   : > { %v5868_v14 = vadd.f32 %v5824_v18, %v5564_v16  ;;  %v4360_v8 = vpop.f32.mrb[5].mxu1 }
 0x340   : > { %v5871_v40 = vadd.f32 %v4360_v8, %v2340_v13  ;;  %v5825_v31 = vpop.f32.mrb[6].mxu1  ;;  %v4612_v13 = vld [vmem:[%s6478_s8 + $0x28] sm:$0xff] }
 0x341   : > { %4565 = vst [vmem:[#allocation3 + $0x30] sm:$0xff] %v5868_v14  ;;  %v5874_v19 = vadd.f32 %v5825_v31, %v5565_v1  ;;  %v4363_v52 = vpop.f32.mrb[7].mxu1 }
 0x342   : > { %v4605_v0 = vld [vmem:[#allocation3 + $0x12] sm:$0xff]  ;;  %4563 = vst [vmem:[#allocation3 + $0x20] sm:$0xff] %v5871_v40  ;;  %v5877_v20 = vadd.f32 %v4363_v52, %v2343_v17 }
 0x343   : > { %v4607_v29 = vadd.f32 %v4605_v0, %v4603_v47  ;;  %4566 = vst [vmem:[#allocation3 + $0x38] sm:$0xff] %v5874_v19  ;;  %v4659_v19 = vld [vmem:[%s6478_s8 + $0x80] sm:$0xff] }
 0x344   : > { %4564 = vst [vmem:[#allocation3 + $0x28] sm:$0xff] %v5877_v20  ;;  %v4644_v20 = vld [vmem:[%s6478_s8 + $0x68] sm:$0xff] }
 0x345   : > { %4609 = vst [vmem:[%s6478_s8 + $0x10] sm:$0xff] %v4607_v29 }
 0x346   : > { %v5828_v48 = vpop.f32.mrb[8].mxu1 }
 0x347   : > { %v5880_v59 = vadd.f32 %v5828_v48, %v7122_v42  ;;  %v4376_v62 = vpop.f32.mrb[9].mxu1  ;;  %v4660_v48 = vld [vmem:[%s6478_s8 + $0x88] sm:$0xff] }
 0x348   : > { %v5883_v11 = vadd.f32 %v4376_v62, %v7124_v28  ;;  %v5829_v32 = vpop.f32.mrb[10].mxu1 }
 0x349   : > { %v4606_v16 = vld [vmem:[#allocation3 + $0x1a] sm:$0xff]  ;;  %v4632_v1 = vadd.f32 %v5880_v59, %v4628_v55  ;;  %v5886_v17 = vadd.f32 %v5829_v32, %v7126_v10  ;;  %v4379_v38 = vpop.f32.mrb[11].mxu1 }
 0x34a   : > { %v4608_v36 = vadd.f32 %v4606_v16, %v4604_v41  ;;  %v4621_v42 = vld [vmem:[#allocation3 + $0x36] sm:$0xff]  ;;  %4567 = vst [vmem:[#allocation3 + $0x40] sm:$0xff] %v5883_v11  ;;  %v5889_v21 = vadd.f32 %v4379_v38, %v7128_v43  ;;  %v4651_v38 = vld [vmem:[%s6478_s8 + $0x70] sm:$0xff] }
 0x34b   : > { %v4623_v28 = vadd.f32 %v4621_v42, %v4619_v51  ;;  %v4613_v30 = vld [vmem:[#allocation3 + $0x24] sm:$0xff]  ;;  %v4614_v9 = vld [vmem:[#allocation3 + $0x2c] sm:$0xff]  ;;  %4634 = vst [vmem:[%s6478_s8 + $0x48] sm:$0xff] %v4632_v1  ;;  %4570 = vst [vmem:[#allocation3 + $0x58] sm:$0xff] %v5886_v17 }
 0x34c   : > { %4610 = vst [vmem:[%s6478_s8 + $0x18] sm:$0xff] %v4608_v36  ;;  %v4615_v4 = vadd.f32 %v4613_v30, %v4611_v35  ;;  %v4616_v10 = vadd.f32 %v4614_v9, %v4612_v13  ;;  %v4631_v24 = vadd.f32 %v5889_v21, %v4627_v12  ;;  %v4636_v41 = vld [vmem:[%s6478_s8 + $0x58] sm:$0xff]  ;;  %v4643_v59 = vld [vmem:[%s6478_s8 + $0x60] sm:$0xff] }
 0x34d   : > { %4625 = vst [vmem:[%s6478_s8 + $0x30] sm:$0xff] %v4623_v28  ;;  %v4652_v28 = vld [vmem:[%s6478_s8 + $0x78] sm:$0xff] }
 0x34e   : > { %4617 = vst [vmem:[%s6478_s8 + $0x20] sm:$0xff] %v4615_v4  ;;  %4618 = vst [vmem:[%s6478_s8 + $0x28] sm:$0xff] %v4616_v10  ;;  %v5832_v50 = vpop.f32.mrb[12].mxu1 }
 0x34f   : > { %4633 = vst [vmem:[%s6478_s8 + $0x40] sm:$0xff] %v4631_v24  ;;  %v5892_v7 = vadd.f32 %v5832_v50, %v7130_v44  ;;  %v4392_v43 = vpop.f32.mrb[13].mxu1 }
 0x350   : > { %v5895_v58 = vadd.f32 %v4392_v43, %v7132_v15  ;;  %v5833_v18 = vpop.f32.mrb[14].mxu1  ;;  %v4635_v15 = vld [vmem:[%s6478_s8 + $0x50] sm:$0xff] }
 0x351   : > { %v4622_v14 = vld [vmem:[#allocation3 + $0x3e] sm:$0xff]  ;;  %4573 = vst [vmem:[#allocation3 + $0x70] sm:$0xff] %v5892_v7  ;;  %v5898_v8 = vadd.f32 %v5833_v18, %v7134_v22  ;;  %v4395_v47 = vpop.f32.mrb[15].mxu1  ;;  %v4667_v18 = vld [vmem:[%s6478_s8 + $0x90] sm:$0xff] }
 0x352   : > { %v4624_v40 = vadd.f32 %v4622_v14, %v4620_v57  ;;  %4571 = vst [vmem:[#allocation3 + $0x60] sm:$0xff] %v5895_v58  ;;  %v5901_v31 = vadd.f32 %v4395_v47, %v7136_v60  ;;  %v4675_v7 = vld [vmem:[%s6478_s8 + $0xa0] sm:$0xff]  ;;  %v4668_v14 = vld [vmem:[%s6478_s8 + $0x98] sm:$0xff] }
 0x353   : > { %4574 = vst [vmem:[#allocation3 + $0x78] sm:$0xff] %v5898_v8  ;;  %v4691_v58 = vld [vmem:[%s6478_s8 + $0xc0] sm:$0xff] }
 0x354   : > { %4626 = vst [vmem:[%s6478_s8 + $0x38] sm:$0xff] %v4624_v40  ;;  %4572 = vst [vmem:[#allocation3 + $0x68] sm:$0xff] %v5901_v31 }
 0x356   : > { %v5836_v44 = vpop.f32.mrb[16].mxu1 }
 0x357   : > { %v5904_v52 = vadd.f32 %v5836_v44, %v7138_v61  ;;  %v4408_v0 = vpop.f32.mrb[17].mxu1 }
 0x358   : > { %v5907_v22 = vadd.f32 %v4408_v0, %v7140_v46  ;;  %v5837_v29 = vpop.f32.mrb[18].mxu1 }
 0x359   : > { %v4637_v55 = vld [vmem:[#allocation3 + $0x5a] sm:$0xff]  ;;  %v4663_v60 = vadd.f32 %v5904_v52, %v4659_v19  ;;  %v5910_v62 = vadd.f32 %v5837_v29, %v7142_v39  ;;  %v4411_v51 = vpop.f32.mrb[19].mxu1 }
 0x35a   : > { %v4639_v35 = vadd.f32 %v4637_v55, %v4635_v15  ;;  %v4646_v61 = vld [vmem:[#allocation3 + $0x74] sm:$0xff]  ;;  %4575 = vst [vmem:[#allocation3 + $0x80] sm:$0xff] %v5907_v22  ;;  %v5913_v46 = vadd.f32 %v4411_v51, %v7144_v3  ;;  %v4676_v52 = vld [vmem:[%s6478_s8 + $0xa8] sm:$0xff]  ;;  %v4683_v55 = vld [vmem:[%s6478_s8 + $0xb0] sm:$0xff] }
 0x35b   : > { %v4648_v11 = vadd.f32 %v4646_v61, %v4644_v20  ;;  %v4638_v32 = vld [vmem:[#allocation3 + $0x62] sm:$0xff]  ;;  %v4645_v16 = vld [vmem:[#allocation3 + $0x6c] sm:$0xff]  ;;  %4665 = vst [vmem:[%s6478_s8 + $0x80] sm:$0xff] %v4663_v60  ;;  %v4664_v13 = vadd.f32 %v5910_v62, %v4660_v48 }
 0x35c   : > { %4641 = vst [vmem:[%s6478_s8 + $0x50] sm:$0xff] %v4639_v35  ;;  %v4640_v1 = vadd.f32 %v4638_v32, %v4636_v41  ;;  %v4647_v17 = vadd.f32 %v4645_v16, %v4643_v59  ;;  %4576 = vst [vmem:[#allocation3 + $0x88] sm:$0xff] %v5913_v46  ;;  %v4684_v41 = vld [vmem:[%s6478_s8 + $0xb8] sm:$0xff] }
 0x35d   : > { %4650 = vst [vmem:[%s6478_s8 + $0x68] sm:$0xff] %v4648_v11  ;;  %4666 = vst [vmem:[%s6478_s8 + $0x88] sm:$0xff] %v4664_v13  ;;  %v4700_v16 = vld [vmem:[%s6478_s8 + $0xd8] sm:$0xff] }
 0x35e   : > { %4642 = vst [vmem:[%s6478_s8 + $0x58] sm:$0xff] %v4640_v1  ;;  %4649 = vst [vmem:[%s6478_s8 + $0x60] sm:$0xff] %v4647_v17  ;;  %v5840_v39 = vpop.f32.mrb[20].mxu1  ;;  %v4699_v1 = vld [vmem:[%s6478_s8 + $0xd0] sm:$0xff] }
 0x35f   : > { %v5916_v12 = vadd.f32 %v5840_v39, %v7146_v2  ;;  %v4424_v3 = vpop.f32.mrb[21].mxu1 }
 0x360   : > { %v5919_v36 = vadd.f32 %v4424_v3, %v7148_v33  ;;  %v5841_v42 = vpop.f32.mrb[22].mxu1 }
 0x361   : > { %v4653_v21 = vld [vmem:[#allocation3 + $0x7e] sm:$0xff]  ;;  %4581 = vst [vmem:[#allocation3 + $0xb0] sm:$0xff] %v5916_v12  ;;  %v5922_v30 = vadd.f32 %v5841_v42, %v7150_v37  ;;  %v4427_v9 = vpop.f32.mrb[23].mxu1  ;;  %v4716_v42 = vld [vmem:[%s6478_s8 + $0xf8] sm:$0xff] }
 0x362   : > { %v4655_v4 = vadd.f32 %v4653_v21, %v4651_v38  ;;  %4579 = vst [vmem:[#allocation3 + $0xa0] sm:$0xff] %v5919_v36  ;;  %v5925_v10 = vadd.f32 %v4427_v9, %v7152_v45  ;;  %v4708_v21 = vld [vmem:[%s6478_s8 + $0xe8] sm:$0xff] }
 0x363   : > { %v4654_v2 = vld [vmem:[#allocation3 + $0x86] sm:$0xff]  ;;  %4582 = vst [vmem:[#allocation3 + $0xb8] sm:$0xff] %v5922_v30 }
 0x364   : > { %4657 = vst [vmem:[%s6478_s8 + $0x70] sm:$0xff] %v4655_v4  ;;  %v4656_v24 = vadd.f32 %v4654_v2, %v4652_v28  ;;  %4580 = vst [vmem:[#allocation3 + $0xa8] sm:$0xff] %v5925_v10  ;;  %v4715_v28 = vld [vmem:[%s6478_s8 + $0xf0] sm:$0xff] }
 0x366   : > { %4658 = vst [vmem:[%s6478_s8 + $0x78] sm:$0xff] %v4656_v24  ;;  %v5844_v33 = vpop.f32.mrb[24].mxu1 }
 0x367   : > { %v5928_v50 = vadd.f32 %v5844_v33, %v7154_v34  ;;  %v4440_v57 = vpop.f32.mrb[25].mxu1 }
 0x368   : > { %v5931_v37 = vadd.f32 %v4440_v57, %v7156_v26  ;;  %v5845_v43 = vpop.f32.mrb[26].mxu1 }
 0x369   : > { %4585 = vst [vmem:[#allocation3 + $0xd0] sm:$0xff] %v5928_v50  ;;  %v5934_v45 = vadd.f32 %v5845_v43, %v7158_v49  ;;  %v4443_v8 = vpop.f32.mrb[27].mxu1 }
 0x36a   : > { %v4677_v47 = vld [vmem:[#allocation3 + $0xb4] sm:$0xff]  ;;  %4583 = vst [vmem:[#allocation3 + $0xc0] sm:$0xff] %v5931_v37  ;;  %v5937_v34 = vadd.f32 %v4443_v8, %v7160_v5  ;;  %v4692_v5 = vld [vmem:[%s6478_s8 + $0xc8] sm:$0xff] }
 0x36b   : > { %v4679_v40 = vadd.f32 %v4677_v47, %v4675_v7  ;;  %v4669_v26 = vld [vmem:[#allocation3 + $0xa2] sm:$0xff]  ;;  %v4670_v31 = vld [vmem:[#allocation3 + $0xaa] sm:$0xff]  ;;  %v4695_v44 = vadd.f32 %v5934_v45, %v4691_v58 }
 0x36c   : > { %v4671_v19 = vadd.f32 %v4669_v26, %v4667_v18  ;;  %v4672_v15 = vadd.f32 %v4670_v31, %v4668_v14  ;;  %4584 = vst [vmem:[#allocation3 + $0xc8] sm:$0xff] %v5937_v34 }
 0x36d   : > { %4681 = vst [vmem:[%s6478_s8 + $0xa0] sm:$0xff] %v4679_v40  ;;  %4697 = vst [vmem:[%s6478_s8 + $0xc0] sm:$0xff] %v4695_v44 }
 0x36e   : > { %4673 = vst [vmem:[%s6478_s8 + $0x90] sm:$0xff] %v4671_v19  ;;  %4674 = vst [vmem:[%s6478_s8 + $0x98] sm:$0xff] %v4672_v15  ;;  %v5848_v49 = vpop.f32.mrb[28].mxu1 }
 0x36f   : > { %v5940_v0 = vadd.f32 %v5848_v49, %v7162_v27  ;;  %v4456_v20 = vpop.f32.mrb[29].mxu1 }
 0x370   : > { %v5943_v22 = vadd.f32 %v4456_v20, %v7164_v25  ;;  %v5849_v29 = vpop.f32.mrb[30].mxu1 }
 0x371   : > { %v4678_v48 = vld [vmem:[#allocation3 + $0xbc] sm:$0xff]  ;;  %4589 = vst [vmem:[#allocation3 + $0xf0] sm:$0xff] %v5940_v0  ;;  %v5946_v59 = vadd.f32 %v5849_v29, %v7166_v63  ;;  %v4459_v60 = vpop.f32.mrb[31].mxu1 }
 0x372   : > { %v4680_v62 = vadd.f32 %v4678_v48, %v4676_v52  ;;  %v4696_v51 = vadd.f32 %v5943_v22, %v4692_v5  ;;  %v5949_v27 = vadd.f32 %v4459_v60, %v7168_v6 }
 0x373   : > { %v4685_v35 = vld [vmem:[#allocation3 + $0xc6] sm:$0xff]  ;;  %v4686_v61 = vld [vmem:[#allocation3 + $0xce] sm:$0xff]  ;;  %4590 = vst [vmem:[#allocation3 + $0xf8] sm:$0xff] %v5946_v59 }
 0x374   : > { %4682 = vst [vmem:[%s6478_s8 + $0xa8] sm:$0xff] %v4680_v62  ;;  %v4687_v25 = vadd.f32 %v4685_v35, %v4683_v55  ;;  %v4688_v46 = vadd.f32 %v4686_v61, %v4684_v41  ;;  %4698 = vst [vmem:[%s6478_s8 + $0xc8] sm:$0xff] %v4696_v51 }
 0x375   : > { %4588 = vst [vmem:[#allocation3 + $0xe8] sm:$0xff] %v5949_v27 }
 0x376   : > { %4689 = vst [vmem:[%s6478_s8 + $0xb0] sm:$0xff] %v4687_v25  ;;  %4690 = vst [vmem:[%s6478_s8 + $0xb8] sm:$0xff] %v4688_v46  ;;  %v5852_v11 = vpop.f32.mrb[32].mxu1 }
 0x377   : > { %v5952_v63 = vadd.f32 %v5852_v11, %v7170_v53  ;;  %v4472_v32 = vpop.f32.mrb[33].mxu1 }
 0x378   : > { %v5955_v6 = vadd.f32 %v4472_v32, %v7172_v54  ;;  %v5853_v13 = vpop.f32.mrb[34].mxu1  ;;  %v4707_v54 = vld [vmem:[%s6478_s8 + $0xe0] sm:$0xff] }
 0x379   : > { %4593 = vst [vmem:[#allocation3 + $0x110] sm:$0xff] %v5952_v63  ;;  %v5958_v17 = vadd.f32 %v5853_v13, %v7174_v56  ;;  %v4475_v39 = vpop.f32.mrb[35].mxu1 }
 0x37a   : > { %v4702_v38 = vld [vmem:[#allocation3 + $0xf2] sm:$0xff]  ;;  %4591 = vst [vmem:[#allocation3 + $0x100] sm:$0xff] %v5955_v6  ;;  %v5961_v53 = vadd.f32 %v4475_v39, %v7176_v23 }
 0x37b   : > { %v4704_v12 = vadd.f32 %v4702_v38, %v4700_v16  ;;  %4594 = vst [vmem:[#allocation3 + $0x118] sm:$0xff] %v5958_v17 }
 0x37c   : > { %v4701_v3 = vld [vmem:[#allocation3 + $0xea] sm:$0xff]  ;;  %4592 = vst [vmem:[#allocation3 + $0x108] sm:$0xff] %v5961_v53 }
 0x37d   : > { %v4703_v36 = vadd.f32 %v4701_v3, %v4699_v1  ;;  %4706 = vst [vmem:[%s6478_s8 + $0xd8] sm:$0xff] %v4704_v12 }
 0x37f   : > { %4705 = vst [vmem:[%s6478_s8 + $0xd0] sm:$0xff] %v4703_v36 }
 0x381   : > { %v4709_v56 = vld [vmem:[#allocation3 + $0xfc] sm:$0xff] }
 0x382   : > { %v4711_v30 = vadd.f32 %v4709_v56, %v4707_v54  ;;  %v4718_v9 = vld [vmem:[#allocation3 + $0x116] sm:$0xff] }
 0x383   : > { %v4720_v4 = vadd.f32 %v4718_v9, %v4716_v42  ;;  %v4710_v23 = vld [vmem:[#allocation3 + $0x104] sm:$0xff]  ;;  %v4717_v10 = vld [vmem:[#allocation3 + $0x10e] sm:$0xff] }
 0x384   : > { %4713 = vst [vmem:[%s6478_s8 + $0xe0] sm:$0xff] %v4711_v30  ;;  %v4712_v2 = vadd.f32 %v4710_v23, %v4708_v21  ;;  %v4719_v24 = vadd.f32 %v4717_v10, %v4715_v28 }
 0x385   : > { %4722 = vst [vmem:[%s6478_s8 + $0xf8] sm:$0xff] %v4720_v4 }
 0x386   : > { %4714 = vst [vmem:[%s6478_s8 + $0xe8] sm:$0xff] %v4712_v2  ;;  %4721 = vst [vmem:[%s6478_s8 + $0xf0] sm:$0xff] %v4719_v24 }
 0x387 PF: > { %s17_s28 = sadd.s32 1, %s6373_s28   ;;  %s7297_s10 = sld [smem:[#allocation4_spill]] }
 0x388   : > { %p14_p10 = scmp.ge.s32.totalorder %s17_s28, 6   ;;  %s7298_s24 = smov %s6365_s26 }
 0x389   : > { %s7299_s25 = smov %s6369_s27  ;;  %s7300_s26 = smov %s7303_s29 }
 0x38a   :  { %16 = sbr.rel (!%p14_p10) target bundleno = 3 (0x3), region = 108 }
 0x38d   : > { %s7301_s27 = smov %s7297_s10 }

// kernel: densenet_forward.13
= control target key start
LH: loop header
LB: loop body
LE: loop exit
PB: predicated region body
PF: predicated region fallthrough
CT: control target
= control target key end

     0   :  { %s3456_s24 = smov 0   ;;  %s3458_s25 = smov 0   ;;  %s3939_s0 = inlined_call_operand.vmem [shape: f32[128,128], index: 0, kind: input, shape index: {}, may-alias: {0,7}]   ;;  %s3940_s1 = inlined_call_operand.vmem [shape: f32[2,1,128], index: 1, kind: input, shape index: {}]   ;;  %s3941_s2 = inlined_call_operand.vmem [shape: f32[2,1,128], index: 2, kind: input, shape index: {}]   ;;  %s3942_s3 = inlined_call_operand.vmem [shape: bf16[256,128], index: 3, kind: input, shape index: {}]   ;;  %s3943_s4 = inlined_call_operand.vmem [shape: f32[2,1,128], index: 4, kind: input, shape index: {}]   ;;  %s3944_s5 = inlined_call_operand.vmem [shape: f32[2,1,128], index: 5, kind: input, shape index: {}]   ;;  %s3945_s6 = inlined_call_operand.vmem [shape: bf16[18,128,128], index: 6, kind: input, shape index: {}]   ;;  %s3946_s7 = inlined_call_operand.vmem [shape: f32[128,128], index: 7, kind: output, shape index: {}, may-alias: {0,7}]  }
   0x1   :  { %s3460_s26 = smov 0   ;;  %s3462_s27 = smov 0  }
   0x2   :  { %s3464_s28 = smov 0  }
   0x3 LB: > { %s26_s29 = sadd.s32 1, %s3403_s26  ;;  %s29_s30 = sadd.s32 1, %s3407_s27  ;;  %s3411_s28 = sphi %s3464_s28, %s17_s28   ;;  %s3407_s27 = sphi %s3462_s27, %s3955_s27   ;;  %s3403_s26 = sphi %s3460_s26, %s3954_s26   ;;  %s3399_s25 = sphi %s3458_s25, %s3953_s25   ;;  %s3395_s24 = sphi %s3456_s24, %s3952_s24  }
   0x4   : > { %p27_p0 = scmp.ge.s32.totalorder %s26_s29, 2  ;;  %p2446_p1 = scmp.ge.s32.totalorder %s3411_s28, 1 }
   0x5   : > { %p305_p2 = scmp.lt.s32.totalorder %s3411_s28, 5 }
   0x6   : > { %s3957_s29 = smov (%p27_p0, %s26_s29), 0  ;;  %s3959_s30 = smov (!%p27_p0, %s29_s30), %s3407_s27 }
   0x7   : > { %p306_p3 = pnand %p2446_p1, %p305_p2  ;;  %p31_p4 = scmp.ge.s32.totalorder %s3959_s30, 2 }
   0x8   : > { %s2447_s8 = sshll.u32 (!%p306_p3), %s3399_s25, 3  ;;  %p366_p5 = scmp.lt.s32.totalorder (!%p306_p3), %s3395_s24, 1 }
   0x9   : > { %s3961_s30 = smov (%p31_p4, %s3959_s30), 0  ;;  %309 = sbr.rel (%p306_p3) target bundleno = 715 (0x2cb), region = 48 }
   0xa   : > { %3947 = sst [smem:[#allocation4_spill]] %s3961_s30  ;;  %p361_p6 = scmp.lt.s32.totalorder (!%p306_p3), %s2447_s8, 15 }
   0xb   : > { %s2449_s9 = sshll.u32 (!%p306_p3), %s3395_s24, 4  ;;  %s384_s12 = smul.u32 (!%p306_p3), 9, %s3395_s24 }
   0xc   : > { %p373_p7 = scmp.lt.s32.totalorder (!%p306_p3), %s2449_s9, 31  ;;  %p2455_p9 = scmp.ne.s32.totalorder (!%p306_p3), %s3395_s24, 0 }
   0xd   : > { %p385_p8 = scmp.lt.s32.totalorder (!%p306_p3), %s384_s12, 17 }
  0x10   : > { %s3491_s10 = scalar_select %p366_p5, %s3395_s24, 1 }
  0x11   : > { %s3963_s8 = smov (!%p361_p6, %s2447_s8), 15  ;;  %s3965_s9 = smov (!%p373_p7, %s2449_s9), 31 }
  0x12   : > { %s2448_s17 = sshll.u32 %s3963_s8, 3  ;;  %s383_s11 = scalar_lea.vmem %s3944_s5, %s3491_s10  ;;  %v3413_v6 = vmov (!%p2455_p9), 0.0  }
  0x13   : > { %s3504_s20 = scalar_lea.vmem %s3939_s0, %s2448_s17  ;;  %s2450_s13 = sshll.u32 %s3965_s9, 2  ;;  %418 = vst [vmem:[#allocation2] sm:$0xff] (!%p2455_p9), %v3413_v6  ;;  %419 = vst [vmem:[#allocation2 + $0x8] sm:$0xff] (!%p2455_p9), %v3413_v6 }
  0x14   : > { %s3518_s8 = scalar_lea.vmem %s3946_s7, %s2448_s17  ;;  %s3523_s19 = scalar_lea.vmem %s3942_s3, %s2450_s13  ;;  %v402_v0 = vld [vmem:[%s3504_s20] sm:$0xff] (!%p2455_p9)  ;;  %v403_v1 = vld [vmem:[%s3504_s20 + $0x8] sm:$0xff] (!%p2455_p9)  ;;  %v404_v2 = vld [vmem:[%s3504_s20 + $0x10] sm:$0xff] (!%p2455_p9)  ;;  %420 = vst [vmem:[#allocation2 + $0x10] sm:$0xff] (!%p2455_p9), %v3413_v6 }
  0x15   : > { %s3967_s12 = smov (!%p385_p8, %s384_s12), 17  ;;  %401 = sbr.rel (%p2455_p9) target bundleno = 32 (0x20), region = 52 }
  0x16   : > { %s2670_s21 = sshll.u32 %s3967_s12, 6  ;;  %v405_v3 = vld [vmem:[%s3504_s20 + $0x18] sm:$0xff] (!%p2455_p9)  ;;  %v406_v4 = vld [vmem:[%s3504_s20 + $0x20] sm:$0xff] (!%p2455_p9)  ;;  %v407_v5 = vld [vmem:[%s3504_s20 + $0x28] sm:$0xff] (!%p2455_p9)  ;;  %421 = vst [vmem:[#allocation2 + $0x18] sm:$0xff] (!%p2455_p9), %v3413_v6 }
  0x17   : > { %s3528_s30 = scalar_lea.vmem %s3945_s6, %s2670_s21  ;;  %422 = vst [vmem:[#allocation2 + $0x20] sm:$0xff] (!%p2455_p9), %v3413_v6  ;;  %423 = vst [vmem:[#allocation2 + $0x28] sm:$0xff] (!%p2455_p9), %v3413_v6  ;;  %v408_v7 = vld [vmem:[%s3504_s20 + $0x30] sm:$0xff] (!%p2455_p9)  ;;  %v409_v8 = vld [vmem:[%s3504_s20 + $0x38] sm:$0xff] (!%p2455_p9) }
  0x18   : > { %424 = vst [vmem:[#allocation2 + $0x30] sm:$0xff] (!%p2455_p9), %v3413_v6  ;;  %425 = vst [vmem:[#allocation2 + $0x38] sm:$0xff] (!%p2455_p9), %v3413_v6 }
  0x19   : > { %426 = vst [vmem:[#allocation2 + $0x40] sm:$0xff] (!%p2455_p9), %v3413_v6  ;;  %427 = vst [vmem:[#allocation2 + $0x48] sm:$0xff] (!%p2455_p9), %v3413_v6 }
  0x1a   : > { %428 = vst [vmem:[#allocation2 + $0x50] sm:$0xff] (!%p2455_p9), %v3413_v6  ;;  %429 = vst [vmem:[#allocation2 + $0x58] sm:$0xff] (!%p2455_p9), %v3413_v6 }
  0x1b   : > { %430 = vst [vmem:[#allocation2 + $0x60] sm:$0xff] (!%p2455_p9), %v3413_v6  ;;  %410 = vst [vmem:[%s3518_s8] sm:$0xff] (!%p2455_p9), %v402_v0 }
  0x1c   : > { %411 = vst [vmem:[%s3518_s8 + $0x8] sm:$0xff] %v403_v1  ;;  %412 = vst [vmem:[%s3518_s8 + $0x10] sm:$0xff] %v404_v2 }
  0x1d   : > { %413 = vst [vmem:[%s3518_s8 + $0x18] sm:$0xff] %v405_v3  ;;  %414 = vst [vmem:[%s3518_s8 + $0x20] sm:$0xff] %v406_v4 }
  0x1e   : > { %415 = vst [vmem:[%s3518_s8 + $0x28] sm:$0xff] %v407_v5  ;;  %416 = vst [vmem:[%s3518_s8 + $0x30] sm:$0xff] %v408_v7 }
  0x1f   : > { %417 = vst [vmem:[%s3518_s8 + $0x38] sm:$0xff] %v409_v8 }
  0x20 PF: > { %v3293_v9 = vld [vmem:[%s3523_s19] sm:$0xff]   ;;  %v3294_v10 = vld [vmem:[%s3523_s19 + $0x8] sm:$0xff]   ;;  %v3414_v11 = vmov 0.0   ;;  %v3295_v12 = vld [vmem:[%s3523_s19 + $0x10] sm:$0xff]   ;;  %s3948_s13 = scalar_lea.vmem %s3940_s1, %s3491_s10  ;;  %s3949_s20 = scalar_lea.vmem %s3941_s2, %s3491_s10  ;;  %vm3415_vm0 = vmmov 0  }
  0x21   : > { %2968 = vmatprep.subr.bf16.mxu1 %v3414_v11  ;;  %2800 = vmatprep.subr.bf16.mxu0 %v3293_v9  ;;  %v3296_v13 = vld [vmem:[%s3523_s19 + $0x18] sm:$0xff]   ;;  %v2456_v16 = vld [vmem:[%s3948_s13] ss:$0 sm:$0xff]  ;;  %v3298_v44 = vld [vmem:[%s3523_s19 + $0x28] sm:$0xff]   ;;  %s3950_s12 = scalar_lea.vmem %s3943_s4, %s3491_s10 }
  0x22   : > { %2801 = vmatpush3.bf16.msra.mxu0 %v3293_v9  ;;  %v2457_v19 = vld [vmem:[%s3949_s20] ss:$0 sm:$0xff]  ;;  %v3304_v47 = vld [vmem:[%s3528_s30 + $0x108] sm:$0xff]   ;;  %v3299_v52 = vld [vmem:[%s3523_s19 + $0x30] sm:$0xff]   ;;  %2984 = vmatprep.mubr.msk.bf16.mxu1 %vm3415_vm0, %v3414_v11 }
  0x23   : > { %2802 = vmatprep.subr.bf16.mxu0 %v3294_v10  ;;  %v3297_v32 = vld [vmem:[%s3523_s19 + $0x20] sm:$0xff]   ;;  %v3306_v54 = vld [vmem:[%s3528_s30 + $0x110] sm:$0xff]   ;;  %v3300_v55 = vld [vmem:[%s3523_s19 + $0x38] sm:$0xff]  }
  0x24   : > { %v434_v21 = vld [vmem:[%s3518_s8 + $0x18] sm:$0xff]  ;;  %v435_v24 = vld [vmem:[%s3518_s8 + $0x20] sm:$0xff]  ;;  %v3303_v59 = vld [vmem:[%s3528_s30 + $0x8] sm:$0xff]  }
  0x25   : > { %v449_v23 = vmul.f32 %v2456_v16, %v434_v21  ;;  %v436_v25 = vld [vmem:[%s3518_s8 + $0x28] sm:$0xff]  ;;  %v437_v26 = vld [vmem:[%s3518_s8 + $0x30] sm:$0xff]  ;;  %v450_v29 = vmul.f32 %v2456_v16, %v435_v24  ;;  %v3302_v41 = vld [vmem:[%s3528_s30 + $0x100] sm:$0xff]  }
  0x26   : > { %2803 = vmatpush3.bf16.msra.mxu0 %v3294_v10  ;;  %v431_v14 = vld [vmem:[%s3518_s8] sm:$0xff]  ;;  %v451_v30 = vmul.f32 %v2456_v16, %v436_v25  ;;  %v438_v31 = vld [vmem:[%s3518_s8 + $0x38] sm:$0xff]  ;;  %v452_v35 = vmul.f32 %v2456_v16, %v437_v26  ;;  %2969 = vmatpush3.bf16.msra.mxu1 %v3302_v41  ;;  %v3305_v60 = vld [vmem:[%s3528_s30 + $0x10] sm:$0xff]  }
  0x27   : > { %2804 = vmatprep.subr.bf16.mxu0 %v3295_v12  ;;  %v432_v15 = vld [vmem:[%s3518_s8 + $0x8] sm:$0xff]  ;;  %v446_v17 = vmul.f32 %v2456_v16, %v431_v14  ;;  %v433_v20 = vld [vmem:[%s3518_s8 + $0x10] sm:$0xff]  ;;  %v464_v34 = vadd.f32 %v2457_v19, %v449_v23  ;;  %v453_v36 = vmul.f32 %v2456_v16, %v438_v31  ;;  %v465_v39 = vadd.f32 %v2457_v19, %v450_v29  ;;  %v3301_v56 = vld [vmem:[%s3528_s30] sm:$0xff]  }
  0x28   : > { %v447_v18 = vmul.f32 %v2456_v16, %v432_v15  ;;  %v448_v22 = vmul.f32 %v2456_v16, %v433_v20  ;;  %v466_v40 = vadd.f32 %v2457_v19, %v451_v30  ;;  %v467_v42 = vadd.f32 %v2457_v19, %v452_v35  ;;  %2970 = vmatprep.subr.bf16.mxu1 %v3414_v11  ;;  %v3307_v62 = vld [vmem:[%s3528_s30 + $0x18] sm:$0xff]   ;;  %v3309_v0 = vld [vmem:[%s3528_s30 + $0x20] sm:$0xff]   ;;  %v3311_v2 = vld [vmem:[%s3528_s30 + $0x28] sm:$0xff]  }
  0x29   : > { %v461_v27 = vadd.f32 %v2457_v19, %v446_v17  ;;  %v468_v43 = vadd.f32 %v2457_v19, %v453_v36  ;;  %v472_v48 = vmax.f32 %v464_v34, 0.0  ;;  %v473_v49 = vmax.f32 %v465_v39, 0.0  ;;  %v3308_v63 = vld [vmem:[%s3528_s30 + $0x118] sm:$0xff]   ;;  %v3310_v1 = vld [vmem:[%s3528_s30 + $0x120] sm:$0xff]   ;;  %v3312_v3 = vld [vmem:[%s3528_s30 + $0x128] sm:$0xff]  }
  0x2a   : > { %2805 = vmatpush3.bf16.msra.mxu0 %v3295_v12  ;;  %v462_v28 = vadd.f32 %v2457_v19, %v447_v18  ;;  %v463_v33 = vadd.f32 %v2457_v19, %v448_v22  ;;  %v474_v50 = vmax.f32 %v466_v40, 0.0  ;;  %v475_v51 = vmax.f32 %v467_v42, 0.0  ;;  %2971 = vmatpush3.bf16.msra.mxu1 %v3304_v47  ;;  %v3313_v4 = vld [vmem:[%s3528_s30 + $0x30] sm:$0xff]   ;;  %v3315_v6 = vld [vmem:[%s3528_s30 + $0x38] sm:$0xff]   ;;  %v2466_v8 = vld [vmem:[%s3950_s12] ss:$0 sm:$0xff] }
  0x2b   : > { %2806 = vmatprep.subr.bf16.mxu0 %v3296_v13  ;;  %v469_v37 = vmax.f32 %v461_v27, 0.0  ;;  %v476_v53 = vmax.f32 %v468_v43, 0.0  ;;  %2972 = vmatprep.subr.bf16.mxu1 %v3414_v11  ;;  %v3314_v5 = vld [vmem:[%s3528_s30 + $0x130] sm:$0xff]   ;;  %v3316_v7 = vld [vmem:[%s3528_s30 + $0x138] sm:$0xff]   ;;  %v2467_v10 = vld [vmem:[%s383_s11] ss:$0 sm:$0xff] }
  0x2c   : > { %v470_v38 = vmax.f32 %v462_v28, 0.0  ;;  %v471_v46 = vmax.f32 %v463_v33, 0.0  ;;  %v479_v58 = vpack.c.bf16 %v474_v50, %v473_v49  ;;  %v656_v39 = vld [vmem:[#allocation2] sm:$0xff]  ;;  %v3321_v50 = vld [vmem:[%s3528_s30 + $0x48] sm:$0xff]  }
  0x2d   : > { %v480_v61 = vpack.c.bf16 %v476_v53, %v475_v51  ;;  %v3318_v51 = vld [vmem:[%s3528_s30 + $0x148] sm:$0xff]  }
  0x2e   : > { %2807 = vmatpush3.bf16.msra.mxu0 %v3296_v13  ;;  %v477_v45 = vpack.c.bf16 %v470_v38, %v469_v37  ;;  %2973 = vmatpush3.bf16.msra.mxu1 %v3306_v54  ;;  %v478_v57 = vpack.c.bf16 %v472_v48, %v471_v46  ;;  %v3317_v48 = vld [vmem:[%s3528_s30 + $0x140] sm:$0xff]  }
  0x2f   : > { %2808 = vmatprep.subr.bf16.mxu0 %v3297_v32  ;;  %2974 = vmatprep.subr.bf16.mxu1 %v3414_v11 }
  0x30   : > { %2816 = vmatprep.mubr.bf16.mxu0 %v477_v45 }
  0x32   : > { %2809 = vmatpush3.bf16.msra.mxu0 %v3297_v32  ;;  %2975 = vmatpush3.bf16.msra.mxu1 %v3308_v63 }
  0x33   : > { %2810 = vmatprep.subr.bf16.mxu0 %v3298_v44  ;;  %2976 = vmatprep.subr.bf16.mxu1 %v3414_v11 }
  0x36   : > { %2811 = vmatpush3.bf16.msra.mxu0 %v3298_v44  ;;  %2977 = vmatpush3.bf16.msra.mxu1 %v3310_v1  ;;  %v3319_v44 = vld [vmem:[%s3528_s30 + $0x40] sm:$0xff]  }
  0x37   : > { %2812 = vmatprep.subr.bf16.mxu0 %v3299_v52  ;;  %2978 = vmatprep.subr.bf16.mxu1 %v3414_v11  ;;  %v3326_v1 = vld [vmem:[%s3528_s30 + $0x60] sm:$0xff]  }
  0x3a   : > { %2813 = vmatpush3.bf16.msra.mxu0 %v3299_v52  ;;  %2979 = vmatpush3.bf16.msra.mxu1 %v3312_v3  ;;  %v3325_v3 = vld [vmem:[%s3528_s30 + $0x160] sm:$0xff]  }
  0x3b   : > { %2814 = vmatprep.subr.bf16.mxu0 %v3300_v55  ;;  %2980 = vmatprep.subr.bf16.mxu1 %v3414_v11 }
  0x3e   : > { %2815 = vmatpush3.bf16.msra.mxu0 %v3300_v55  ;;  %2981 = vmatpush3.bf16.msra.mxu1 %v3314_v5  ;;  %v3328_v5 = vld [vmem:[%s3528_s30 + $0x68] sm:$0xff]  }
  0x3f   : > { %2824 = vmatprep.subr.bf16.mxu0 %v3414_v11  ;;  %2982 = vmatprep.subr.bf16.mxu1 %v3414_v11 }
  0x41   : > { %2817 = vmatmul.mubr.bf16.vlgmr.msra.gmra.mrb[0].mxu0 %v478_v57 }
  0x42   : > { %2820 = vmatprep.mubr.bf16.mxu0 %v479_v58  ;;  %2825 = vmatpush3.bf16.msra.mxu0 %v3301_v56  ;;  %v3322_v56 = vld [vmem:[%s3528_s30 + $0x50] sm:$0xff]  }
  0x43   : > { %2826 = vmatprep.subr.bf16.mxu0 %v3414_v11  ;;  %2983 = vmatpush3.bf16.msra.mxu1 %v3316_v7  ;;  %v3320_v58 = vld [vmem:[%s3528_s30 + $0x150] sm:$0xff]   ;;  %v3327_v7 = vld [vmem:[%s3528_s30 + $0x168] sm:$0xff]  }
  0x44   : > { %3004 = vmatprep.subr.bf16.mxu1 %v3414_v11 }
  0x46   : > { %2827 = vmatpush3.bf16.msra.mxu0 %v3303_v59 }
  0x47   : > { %2828 = vmatprep.subr.bf16.mxu0 %v3414_v11 }
  0x49   : > { %2821 = vmatmul.mubr.bf16.gmra.mrb[4].mxu0 %v480_v61 }
  0x4a   : > { %2829 = vmatpush3.bf16.msra.mxu0 %v3305_v60  ;;  %2840 = vmatprep.mubr.msk.bf16.mxu0 %vm3415_vm0, %v3414_v11  ;;  %v3324_v60 = vld [vmem:[%s3528_s30 + $0x58] sm:$0xff]  }
  0x4b   : > { %2830 = vmatprep.subr.bf16.mxu0 %v3414_v11 }
  0x4e   : > { %2831 = vmatpush3.bf16.msra.mxu0 %v3307_v62  ;;  %v3323_v62 = vld [vmem:[%s3528_s30 + $0x158] sm:$0xff]  }
  0x4f   : > { %2832 = vmatprep.subr.bf16.mxu0 %v3414_v11 }
  0x52   : > { %2833 = vmatpush3.bf16.msra.mxu0 %v3309_v0 }
  0x53   : > { %2834 = vmatprep.subr.bf16.mxu0 %v3414_v11 }
  0x56   : > { %2835 = vmatpush3.bf16.msra.mxu0 %v3311_v2 }
  0x57   : > { %2836 = vmatprep.subr.bf16.mxu0 %v3414_v11 }
  0x5a   : > { %2837 = vmatpush3.bf16.msra.mxu0 %v3313_v4 }
  0x5b   : > { %2838 = vmatprep.subr.bf16.mxu0 %v3414_v11 }
  0x5e   : > { %2839 = vmatpush3.bf16.msra.mxu0 %v3315_v6 }
  0x5f   : > { %2860 = vmatprep.subr.bf16.mxu0 %v3414_v11 }
 0x114   : > { %v2818_v9 = vpop.f32.mrb[0].mxu0 }
 0x115   : > { %v619_v12 = vmul.f32 %v2818_v9, %v2466_v8  ;;  %v579_v13 = vpop.f32.mrb[1].mxu0 }
 0x116   : > { %v617_v14 = vmul.f32 %v2466_v8, %v579_v13  ;;  %v2819_v15 = vpop.f32.mrb[2].mxu0 }
 0x117   : > { %v634_v16 = vadd.f32 %v2467_v10, %v619_v12  ;;  %v620_v17 = vmul.f32 %v2819_v15, %v2466_v8  ;;  %v582_v18 = vpop.f32.mrb[3].mxu0 }
 0x118   : > { %v632_v19 = vadd.f32 %v2467_v10, %v617_v14  ;;  %v618_v20 = vmul.f32 %v2466_v8, %v582_v18  ;;  %v3329_v14 = vld [vmem:[%s3528_s30 + $0x170] sm:$0xff]  }
 0x119   : > { %v642_v21 = vmax.f32 %v634_v16, 0.0  ;;  %v3621_v22 = vadd.f32 %v2467_v10, %v620_v17  ;;  %v3331_v16 = vld [vmem:[%s3528_s30 + $0x78] sm:$0xff]  }
 0x11a   : > { %v640_v23 = vmax.f32 %v632_v19, 0.0  ;;  %v3623_v24 = vadd.f32 %v2467_v10, %v618_v20  ;;  %v3332_v19 = vld [vmem:[%s3528_s30 + $0x178] sm:$0xff]  }
 0x11b   : > { %650 = vst [vmem:[#allocation2 + $0x1f] sm:$0xff] %v642_v21  ;;  %v643_v25 = vmax.f32 %v3621_v22, 0.0 }
 0x11c   : > { %648 = vst [vmem:[#allocation2 + $0xb] sm:$0xff] %v640_v23  ;;  %v641_v26 = vmax.f32 %v3623_v24, 0.0  ;;  %v2822_v27 = vpop.f32.mrb[4].mxu0 }
 0x11d   : > { %651 = vst [vmem:[#allocation2 + $0x29] sm:$0xff] %v643_v25  ;;  %v623_v28 = vmul.f32 %v2822_v27, %v2466_v8  ;;  %v595_v29 = vpop.f32.mrb[5].mxu0 }
 0x11e   : > { %649 = vst [vmem:[#allocation2 + $0x15] sm:$0xff] %v641_v26  ;;  %v621_v30 = vmul.f32 %v2466_v8, %v595_v29  ;;  %v2823_v31 = vpop.f32.mrb[6].mxu0 }
 0x11f   : > { %v638_v32 = vadd.f32 %v2467_v10, %v623_v28  ;;  %v624_v33 = vmul.f32 %v2823_v31, %v2466_v8  ;;  %v598_v34 = vpop.f32.mrb[7].mxu0  ;;  %v818_v28 = vld [vmem:[#allocation2 + $0x1] sm:$0xff] }
 0x120   : > { %v636_v35 = vadd.f32 %v2467_v10, %v621_v30  ;;  %v622_v36 = vmul.f32 %v2466_v8, %v598_v34  ;;  %v3330_v8 = vld [vmem:[%s3528_s30 + $0x70] sm:$0xff]   ;;  %v3335_v31 = vld [vmem:[%s3528_s30 + $0x80] sm:$0xff]  }
 0x121   : > { %v646_v37 = vmax.f32 %v638_v32, 0.0  ;;  %v639_v38 = vadd.f32 %v2467_v10, %v624_v33  ;;  %v3333_v34 = vld [vmem:[%s3528_s30 + $0x180] sm:$0xff]  }
 0x122   : > { %v644_v40 = vmax.f32 %v636_v35, 0.0  ;;  %v3631_v41 = vadd.f32 %v2467_v10, %v622_v36  ;;  %v660_v63 = vld [vmem:[#allocation2 + $0x20] sm:$0xff]  ;;  %v3337_v36 = vld [vmem:[%s3528_s30 + $0x88] sm:$0xff]  }
 0x123   : > { %654 = vst [vmem:[#allocation2 + $0x47] sm:$0xff] %v646_v37  ;;  %v647_v42 = vmax.f32 %v639_v38, 0.0  ;;  %v657_v43 = vld [vmem:[#allocation2 + $0x8] sm:$0xff] }
 0x124   : > { %652 = vst [vmem:[#allocation2 + $0x33] sm:$0xff] %v644_v40  ;;  %v645_v45 = vmax.f32 %v3631_v41, 0.0  ;;  %v666_v46 = vpack.c.bf16 %v657_v43, %v656_v39  ;;  %v1370_v55 = vld [vmem:[#allocation2 + $0x23] sm:$0xff]  ;;  %v1371_v0 = vld [vmem:[#allocation2 + $0x2b] sm:$0xff] }
 0x125   : > { %655 = vst [vmem:[#allocation2 + $0x51] sm:$0xff] %v647_v42  ;;  %v1368_v47 = vld [vmem:[#allocation2 + $0x13] sm:$0xff]  ;;  %v1369_v54 = vld [vmem:[#allocation2 + $0x1b] sm:$0xff]  ;;  %v661_v61 = vld [vmem:[#allocation2 + $0x28] sm:$0xff]  ;;  %v1379_v4 = vpack.c.bf16 %v644_v40, %v1371_v0 }
 0x126   : > { %653 = vst [vmem:[#allocation2 + $0x3d] sm:$0xff] %v645_v45  ;;  %2841 = vmatmul.mubr.bf16.vlgmr.msra.gmra.mrb[8].mxu0 %v666_v46  ;;  %v1377_v49 = vpack.c.bf16 %v1368_v47, %v640_v23  ;;  %v658_v52 = vld [vmem:[#allocation2 + $0x10] sm:$0xff]  ;;  %v659_v53 = vld [vmem:[#allocation2 + $0x18] sm:$0xff]  ;;  %v1378_v59 = vpack.c.bf16 %v1370_v55, %v1369_v54  ;;  %v668_v2 = vpack.c.bf16 %v661_v61, %v660_v63  ;;  %v3334_v37 = vld [vmem:[%s3528_s30 + $0x188] sm:$0xff]  }
 0x127   : > { %2844 = vmatprep.mubr.msk.bf16.mxu0 %vm3415_vm0, %v3414_v11  ;;  %2861 = vmatpush3.bf16.msra.mxu0 %v3319_v44  ;;  %v667_v57 = vpack.c.bf16 %v659_v53, %v658_v52  ;;  %v819_v29 = vld [vmem:[#allocation2 + $0x9] sm:$0xff]  ;;  %v3688_v30 = vld [vmem:[#allocation2 + $0x14] sm:$0xff]  ;;  %v3701_v40 = vld [vmem:[#allocation2 + $0x1c] sm:$0xff] }
 0x128   : > { %2985 = vmatmul.mubr.bf16.vlgmr.msra.gmra.mrb[0].mxu1 %v1377_v49  ;;  %2862 = vmatprep.subr.bf16.mxu0 %v3414_v11  ;;  %v828_v32 = vpack.c.bf16 %v819_v29, %v818_v28  ;;  %v1550_v33 = vld [vmem:[#allocation2 + $0xc] sm:$0xff]  ;;  %v821_v39 = vld [vmem:[#allocation2 + $0x19] sm:$0xff]  ;;  %v3703_v42 = vld [vmem:[#allocation2 + $0x24] sm:$0xff] }
 0x129   : > { %3005 = vmatpush3.bf16.msra.mxu1 %v3317_v48  ;;  %2988 = vmatprep.mubr.msk.bf16.mxu1 %vm3415_vm0, %v3414_v11  ;;  %v1560_v35 = vpack.c.bf16 %v3688_v30, %v1550_v33  ;;  %v820_v38 = vld [vmem:[#allocation2 + $0x11] sm:$0xff]  ;;  %v1561_v47 = vpack.c.bf16 %v3703_v42, %v3701_v40  ;;  %v822_v49 = vld [vmem:[#allocation2 + $0x21] sm:$0xff] }
 0x12a   : > { %3006 = vmatprep.subr.bf16.mxu1 %v3414_v11  ;;  %v665_v18 = vld [vmem:[#allocation2 + $0x48] sm:$0xff]  ;;  %v3338_v43 = vld [vmem:[%s3528_s30 + $0x90] sm:$0xff]   ;;  %v829_v44 = vpack.c.bf16 %v821_v39, %v820_v38  ;;  %v3340_v48 = vld [vmem:[%s3528_s30 + $0x98] sm:$0xff]   ;;  %v830_v54 = vpack.c.bf16 %v643_v25, %v822_v49 }
 0x12b   : > { %2863 = vmatpush3.bf16.msra.mxu0 %v3321_v50  ;;  %v662_v9 = vld [vmem:[#allocation2 + $0x30] sm:$0xff]  ;;  %v3339_v50 = vld [vmem:[%s3528_s30 + $0x198] sm:$0xff]   ;;  %v3342_v53 = vld [vmem:[%s3528_s30 + $0xa0] sm:$0xff]  }
 0x12c   : > { %2864 = vmatprep.subr.bf16.mxu0 %v3414_v11  ;;  %v1375_v20 = vld [vmem:[#allocation2 + $0x4b] sm:$0xff]  ;;  %v1376_v21 = vld [vmem:[#allocation2 + $0x53] sm:$0xff]  ;;  %v3341_v55 = vld [vmem:[%s3528_s30 + $0x1a0] sm:$0xff]  }
 0x12d   : > { %3007 = vmatpush3.bf16.msra.mxu1 %v3318_v51  ;;  %v663_v6 = vld [vmem:[#allocation2 + $0x38] sm:$0xff]  ;;  %v1374_v12 = vld [vmem:[#allocation2 + $0x43] sm:$0xff]  ;;  %v1381_v27 = vpack.c.bf16 %v1376_v21, %v1375_v20  ;;  %v3336_v46 = vld [vmem:[%s3528_s30 + $0x190] sm:$0xff]  }
 0x12e   : > { %2845 = vmatmul.mubr.bf16.gmra.mrb[12].mxu0 %v667_v57  ;;  %3008 = vmatprep.subr.bf16.mxu1 %v3414_v11  ;;  %v1373_v10 = vld [vmem:[#allocation2 + $0x3b] sm:$0xff]  ;;  %v669_v13 = vpack.c.bf16 %v663_v6, %v662_v9  ;;  %v3719_v51 = vld [vmem:[#allocation2 + $0x2c] sm:$0xff] }
 0x12f   : > { %2848 = vmatprep.mubr.msk.bf16.mxu0 %vm3415_vm0, %v3414_v11  ;;  %2865 = vmatpush3.bf16.msra.mxu0 %v3322_v56  ;;  %v1380_v15 = vpack.c.bf16 %v1374_v12, %v1373_v10  ;;  %v664_v17 = vld [vmem:[#allocation2 + $0x40] sm:$0xff]  ;;  %v3721_v52 = vld [vmem:[#allocation2 + $0x34] sm:$0xff]  ;;  %v3344_v57 = vld [vmem:[%s3528_s30 + $0xa8] sm:$0xff]  }
 0x130   : > { %2989 = vmatmul.mubr.bf16.gmra.mrb[4].mxu1 %v1378_v59  ;;  %2866 = vmatprep.subr.bf16.mxu0 %v3414_v11  ;;  %v670_v23 = vpack.c.bf16 %v665_v18, %v664_v17  ;;  %v1562_v56 = vpack.c.bf16 %v3721_v52, %v3719_v51  ;;  %v824_v22 = vld [vmem:[#allocation2 + $0x31] sm:$0xff]  ;;  %v825_v25 = vld [vmem:[#allocation2 + $0x39] sm:$0xff]  ;;  %v1001_v9 = vld [vmem:[#allocation2 + $0x2] sm:$0xff] }
 0x131   : > { %3009 = vmatpush3.bf16.msra.mxu1 %v3320_v58  ;;  %2992 = vmatprep.mubr.msk.bf16.mxu1 %vm3415_vm0, %v3414_v11  ;;  %v3343_v58 = vld [vmem:[%s3528_s30 + $0x1a8] sm:$0xff]   ;;  %v3739_v59 = vld [vmem:[#allocation2 + $0x3c] sm:$0xff]  ;;  %v3346_v61 = vld [vmem:[%s3528_s30 + $0xb0] sm:$0xff]  }
 0x132   : > { %3010 = vmatprep.subr.bf16.mxu1 %v3414_v11  ;;  %v3345_v63 = vld [vmem:[%s3528_s30 + $0x1b0] sm:$0xff]   ;;  %v3351_v12 = vld [vmem:[%s3528_s30 + $0xc0] sm:$0xff]   ;;  %v3350_v17 = vld [vmem:[%s3528_s30 + $0x1c8] sm:$0xff]  }
 0x133   : > { %2867 = vmatpush3.bf16.msra.mxu0 %v3324_v60  ;;  %v3741_v60 = vld [vmem:[#allocation2 + $0x44] sm:$0xff]  ;;  %v3759_v6 = vld [vmem:[#allocation2 + $0x54] sm:$0xff] }
 0x134   : > { %2868 = vmatprep.subr.bf16.mxu0 %v3414_v11  ;;  %v1563_v0 = vpack.c.bf16 %v3741_v60, %v3739_v59  ;;  %v3767_v10 = vld [vmem:[#allocation2 + $0xa] sm:$0xff]  ;;  %v3781_v18 = vld [vmem:[#allocation2 + $0x12] sm:$0xff]  ;;  %v3800_v29 = vld [vmem:[#allocation2 + $0x22] sm:$0xff] }
 0x135   : > { %3011 = vmatpush3.bf16.msra.mxu1 %v3323_v62  ;;  %v831_v62 = vpack.c.bf16 %v825_v25, %v824_v22  ;;  %v3354_v20 = vld [vmem:[%s3528_s30 + $0xd0] sm:$0xff]   ;;  %v3356_v28 = vld [vmem:[%s3528_s30 + $0xd8] sm:$0xff]   ;;  %v3359_v38 = vld [vmem:[%s3528_s30 + $0x1e8] sm:$0xff]  }
 0x136   : > { %2849 = vmatmul.mubr.bf16.gmra.mrb[16].mxu0 %v668_v2  ;;  %3012 = vmatprep.subr.bf16.mxu1 %v3414_v11  ;;  %v826_v2 = vld [vmem:[#allocation2 + $0x41] sm:$0xff]  ;;  %v1007_v39 = vld [vmem:[#allocation2 + $0x32] sm:$0xff] }
 0x137   : > { %2852 = vmatprep.mubr.msk.bf16.mxu0 %vm3415_vm0, %v3414_v11  ;;  %2869 = vmatpush3.bf16.msra.mxu0 %v3326_v1  ;;  %v3347_v1 = vld [vmem:[%s3528_s30 + $0xb8] sm:$0xff]   ;;  %v1919_v22 = vld [vmem:[#allocation2 + $0x2d] sm:$0xff]  ;;  %v1918_v24 = vld [vmem:[#allocation2 + $0x25] sm:$0xff] }
 0x138   : > { %2993 = vmatmul.mubr.bf16.gmra.mrb[8].mxu1 %v1379_v4  ;;  %2870 = vmatprep.subr.bf16.mxu0 %v3414_v11  ;;  %v3348_v4 = vld [vmem:[%s3528_s30 + $0x1b8] sm:$0xff]   ;;  %v3371_v41 = vld [vmem:[%s3528_s30 + $0x230] sm:$0xff]  }
 0x139   : > { %3013 = vmatpush3.bf16.msra.mxu1 %v3325_v3  ;;  %2996 = vmatprep.mubr.msk.bf16.mxu1 %vm3415_vm0, %v3414_v11  ;;  %v827_v3 = vld [vmem:[#allocation2 + $0x49] sm:$0xff]  ;;  %v3364_v49 = vld [vmem:[%s3528_s30 + $0x1f8] sm:$0xff]  }
 0x13a   : > { %3014 = vmatprep.subr.bf16.mxu1 %v3414_v11 }
 0x13b   : > { %2871 = vmatpush3.bf16.msra.mxu0 %v3328_v5  ;;  %v3757_v5 = vld [vmem:[#allocation2 + $0x4c] sm:$0xff] }
 0x13c   : > { %2872 = vmatprep.subr.bf16.mxu0 %v3414_v11 }
 0x13d   : > { %3015 = vmatpush3.bf16.msra.mxu1 %v3327_v7  ;;  %v832_v7 = vpack.c.bf16 %v827_v3, %v826_v2  ;;  %v1923_v2 = vld [vmem:[#allocation2 + $0x4d] sm:$0xff] }
 0x13e   : > { %2853 = vmatmul.mubr.bf16.gmra.mrb[20].mxu0 %v669_v13  ;;  %3016 = vmatprep.subr.bf16.mxu1 %v3414_v11  ;;  %v1011_v13 = vpack.c.bf16 %v3767_v10, %v1001_v9 }
 0x13f   : > { %2856 = vmatprep.mubr.msk.bf16.mxu0 %vm3415_vm0, %v3414_v11  ;;  %2873 = vmatpush3.bf16.msra.mxu0 %v3330_v8  ;;  %v1564_v8 = vpack.c.bf16 %v3759_v6, %v3757_v5 }
 0x140   : > { %2997 = vmatmul.mubr.bf16.gmra.mrb[12].mxu1 %v1380_v15  ;;  %2874 = vmatprep.subr.bf16.mxu0 %v3414_v11  ;;  %v1743_v15 = vpack.c.bf16 %v3701_v40, %v3688_v30  ;;  %v3802_v30 = vld [vmem:[#allocation2 + $0x2a] sm:$0xff] }
 0x141   : > { %3017 = vmatpush3.bf16.msra.mxu1 %v3329_v14  ;;  %3000 = vmatprep.mubr.msk.bf16.mxu1 %vm3415_vm0, %v3414_v11  ;;  %v3349_v14 = vld [vmem:[%s3528_s30 + $0x1c0] sm:$0xff]   ;;  %v1013_v33 = vpack.c.bf16 %v3802_v30, %v3800_v29  ;;  %v3362_v40 = vld [vmem:[%s3528_s30 + $0xf0] sm:$0xff]  }
 0x142   : > { %3018 = vmatprep.subr.bf16.mxu1 %v3414_v11 }
 0x143   : > { %2875 = vmatpush3.bf16.msra.mxu0 %v3331_v16  ;;  %v3353_v16 = vld [vmem:[%s3528_s30 + $0xc8] sm:$0xff]  }
 0x144   : > { %2896 = vmatprep.subr.bf16.mxu0 %v3414_v11 }
 0x145   : > { %3019 = vmatpush3.bf16.msra.mxu1 %v3332_v19  ;;  %v3783_v19 = vld [vmem:[#allocation2 + $0x1a] sm:$0xff] }
 0x146   : > { %2857 = vmatmul.mubr.bf16.gmra.mrb[24].mxu0 %v670_v23  ;;  %3040 = vmatprep.subr.bf16.mxu1 %v3414_v11  ;;  %v1012_v21 = vpack.c.bf16 %v3783_v19, %v3781_v18  ;;  %v3352_v23 = vld [vmem:[%s3528_s30 + $0x1d0] sm:$0xff]   ;;  %v1195_v25 = vpack.c.bf16 %v3800_v29, %v3783_v19 }
 0x147   : > { %2876 = vmatprep.mubr.msk.bf16.mxu0 %vm3415_vm0, %v3414_v11 }
 0x148   : > { %3001 = vmatmul.mubr.bf16.gmra.mrb[16].mxu1 %v1381_v27  ;;  %v1744_v27 = vpack.c.bf16 %v3719_v51, %v3703_v42 }
 0x149   : > { %3020 = vmatprep.mubr.msk.bf16.mxu1 %vm3415_vm0, %v3414_v11 }
 0x14e   : > { %2877 = vmatmul.mubr.bf16.vlgmr.msra.gmra.mrb[28].mxu0 %v828_v32  ;;  %v3358_v32 = vld [vmem:[%s3528_s30 + $0xe0] sm:$0xff]  }
 0x14f   : > { %2880 = vmatprep.mubr.msk.bf16.mxu0 %vm3415_vm0, %v3414_v11  ;;  %2897 = vmatpush3.bf16.msra.mxu0 %v3335_v31  ;;  %v3355_v31 = vld [vmem:[%s3528_s30 + $0x1d8] sm:$0xff]  }
 0x150   : > { %3021 = vmatmul.mubr.bf16.vlgmr.msra.gmra.mrb[20].mxu1 %v1560_v35  ;;  %2898 = vmatprep.subr.bf16.mxu0 %v3414_v11  ;;  %v1745_v35 = vpack.c.bf16 %v3739_v59, %v3721_v52  ;;  %v3368_v59 = vld [vmem:[%s3528_s30 + $0x218] sm:$0xff]  }
 0x151   : > { %3041 = vmatpush3.bf16.msra.mxu1 %v3333_v34  ;;  %3024 = vmatprep.mubr.msk.bf16.mxu1 %vm3415_vm0, %v3414_v11  ;;  %v3357_v34 = vld [vmem:[%s3528_s30 + $0x1e0] sm:$0xff]  }
 0x152   : > { %3042 = vmatprep.subr.bf16.mxu1 %v3414_v11 }
 0x153   : > { %2899 = vmatpush3.bf16.msra.mxu0 %v3337_v36  ;;  %v3360_v36 = vld [vmem:[%s3528_s30 + $0xe8] sm:$0xff]  }
 0x154   : > { %2900 = vmatprep.subr.bf16.mxu0 %v3414_v11 }
 0x155   : > { %3043 = vmatpush3.bf16.msra.mxu1 %v3334_v37  ;;  %v3820_v37 = vld [vmem:[#allocation2 + $0x3a] sm:$0xff] }
 0x156   : > { %2881 = vmatmul.mubr.bf16.gmra.mrb[12].mxu0 %v829_v44  ;;  %3044 = vmatprep.subr.bf16.mxu1 %v3414_v11  ;;  %v1014_v42 = vpack.c.bf16 %v3820_v37, %v1007_v39  ;;  %v1746_v44 = vpack.c.bf16 %v3757_v5, %v3741_v60  ;;  %v1920_v60 = vld [vmem:[#allocation2 + $0x35] sm:$0xff] }
 0x157   : > { %2884 = vmatprep.mubr.msk.bf16.mxu0 %vm3415_vm0, %v3414_v11  ;;  %2901 = vmatpush3.bf16.msra.mxu0 %v3338_v43  ;;  %v3361_v43 = vld [vmem:[%s3528_s30 + $0x1f0] sm:$0xff]   ;;  %v3372_v5 = vld [vmem:[%s3528_s30 + $0x238] sm:$0xff]  }
 0x158   : > { %3025 = vmatmul.mubr.bf16.gmra.mrb[4].mxu1 %v1561_v47  ;;  %2902 = vmatprep.subr.bf16.mxu0 %v3414_v11  ;;  %v1009_v47 = vld [vmem:[#allocation2 + $0x42] sm:$0xff] }
 0x159   : > { %3045 = vmatpush3.bf16.msra.mxu1 %v3336_v46  ;;  %3028 = vmatprep.mubr.msk.bf16.mxu1 %vm3415_vm0, %v3414_v11  ;;  %v3363_v46 = vld [vmem:[%s3528_s30 + $0xf8] sm:$0xff]   ;;  %v1197_v3 = vpack.c.bf16 %v1009_v47, %v3820_v37 }
 0x15a   : > { %3046 = vmatprep.subr.bf16.mxu1 %v3414_v11 }
 0x15b   : > { %2903 = vmatpush3.bf16.msra.mxu0 %v3340_v48  ;;  %v3837_v48 = vld [vmem:[#allocation2 + $0x4a] sm:$0xff] }
 0x15c   : > { %2904 = vmatprep.subr.bf16.mxu0 %v3414_v11  ;;  %v1015_v51 = vpack.c.bf16 %v3837_v48, %v1009_v47 }
 0x15d   : > { %3047 = vmatpush3.bf16.msra.mxu1 %v3339_v50  ;;  %v1742_v50 = vld [vmem:[#allocation2 + $0x5c] sm:$0xff] }
 0x15e   : > { %2885 = vmatmul.mubr.bf16.gmra.mrb[32].mxu0 %v830_v54  ;;  %3048 = vmatprep.subr.bf16.mxu1 %v3414_v11  ;;  %v1747_v52 = vpack.c.bf16 %v1742_v50, %v3759_v6  ;;  %v1194_v54 = vpack.c.bf16 %v3781_v18, %v3767_v10  ;;  %v1924_v6 = vld [vmem:[#allocation2 + $0x55] sm:$0xff]  ;;  %v2104_v18 = vld [vmem:[#allocation2 + $0x3e] sm:$0xff] }
 0x15f   : > { %2888 = vmatprep.mubr.msk.bf16.mxu0 %vm3415_vm0, %v3414_v11  ;;  %2905 = vmatpush3.bf16.msra.mxu0 %v3342_v53  ;;  %v1917_v53 = vld [vmem:[#allocation2 + $0x1d] sm:$0xff] }
 0x160   : > { %3029 = vmatmul.mubr.bf16.gmra.mrb[24].mxu1 %v1562_v56  ;;  %2906 = vmatprep.subr.bf16.mxu0 %v3414_v11  ;;  %v1926_v56 = vpack.c.bf16 %v1917_v53, %v641_v26  ;;  %v3367_v26 = vld [vmem:[%s3528_s30 + $0x210] sm:$0xff]  }
 0x161   : > { %3049 = vmatpush3.bf16.msra.mxu1 %v3341_v55  ;;  %3032 = vmatprep.mubr.msk.bf16.mxu1 %vm3415_vm0, %v3414_v11  ;;  %v3365_v55 = vld [vmem:[%s3528_s30 + $0x200] sm:$0xff]   ;;  %v2099_v10 = vld [vmem:[#allocation2 + $0x16] sm:$0xff] }
 0x162   : > { %3050 = vmatprep.subr.bf16.mxu1 %v3414_v11 }
 0x163   : > { %2907 = vmatpush3.bf16.msra.mxu0 %v3344_v57  ;;  %v3366_v57 = vld [vmem:[%s3528_s30 + $0x208] sm:$0xff]  }
 0x164   : > { %2908 = vmatprep.subr.bf16.mxu0 %v3414_v11 }
 0x165   : > { %3051 = vmatpush3.bf16.msra.mxu1 %v3343_v58  ;;  %v1927_v58 = vpack.c.bf16 %v1919_v22, %v1918_v24 }
 0x166   : > { %2889 = vmatmul.mubr.bf16.gmra.mrb[20].mxu0 %v831_v62  ;;  %3052 = vmatprep.subr.bf16.mxu1 %v3414_v11  ;;  %v3369_v62 = vld [vmem:[%s3528_s30 + $0x220] sm:$0xff]  }
 0x167   : > { %2892 = vmatprep.mubr.msk.bf16.mxu0 %vm3415_vm0, %v3414_v11  ;;  %2909 = vmatpush3.bf16.msra.mxu0 %v3346_v61  ;;  %v1196_v61 = vpack.c.bf16 %v1007_v39, %v3802_v30 }
 0x168   : > { %3033 = vmatmul.mubr.bf16.gmra.mrb[12].mxu1 %v1563_v0  ;;  %2910 = vmatprep.subr.bf16.mxu0 %v3414_v11  ;;  %v3370_v0 = vld [vmem:[%s3528_s30 + $0x228] sm:$0xff]  }
 0x169   : > { %3053 = vmatpush3.bf16.msra.mxu1 %v3345_v63  ;;  %3036 = vmatprep.mubr.msk.bf16.mxu1 %vm3415_vm0, %v3414_v11  ;;  %v1928_v63 = vpack.c.bf16 %v645_v45, %v1920_v60 }
 0x16a   : > { %3054 = vmatprep.subr.bf16.mxu1 %v3414_v11 }
 0x16b   : > { %2911 = vmatpush3.bf16.msra.mxu0 %v3347_v1  ;;  %v1922_v1 = vld [vmem:[#allocation2 + $0x45] sm:$0xff] }
 0x16c   : > { %2932 = vmatprep.subr.bf16.mxu0 %v3414_v11  ;;  %v1929_v45 = vpack.c.bf16 %v1923_v2, %v1922_v1 }
 0x16d   : > { %3055 = vmatpush3.bf16.msra.mxu1 %v3348_v4  ;;  %v1193_v4 = vld [vmem:[#allocation2 + $0x52] sm:$0xff] }
 0x16e   : > { %2893 = vmatmul.mubr.bf16.gmra.mrb[24].mxu0 %v832_v7  ;;  %3076 = vmatprep.subr.bf16.mxu1 %v3414_v11  ;;  %v1925_v7 = vld [vmem:[#allocation2 + $0x5d] sm:$0xff] }
 0x16f   : > { %2912 = vmatprep.mubr.msk.bf16.mxu0 %vm3415_vm0, %v3414_v11  ;;  %v1930_v9 = vpack.c.bf16 %v1925_v7, %v1924_v6 }
 0x170   : > { %3037 = vmatmul.mubr.bf16.gmra.mrb[16].mxu1 %v1564_v8  ;;  %v1198_v8 = vpack.c.bf16 %v1193_v4, %v3837_v48 }
 0x171   : > { %3056 = vmatprep.mubr.msk.bf16.mxu1 %vm3415_vm0, %v3414_v11 }
 0x176   : > { %2913 = vmatmul.mubr.bf16.vlgmr.msra.gmra.mrb[36].mxu0 %v1011_v13 }
 0x177   : > { %2916 = vmatprep.mubr.msk.bf16.mxu0 %vm3415_vm0, %v3414_v11  ;;  %2933 = vmatpush3.bf16.msra.mxu0 %v3351_v12  ;;  %v2100_v12 = vld [vmem:[#allocation2 + $0x1e] sm:$0xff] }
 0x178   : > { %3057 = vmatmul.mubr.bf16.vlgmr.msra.gmra.mrb[28].mxu1 %v1743_v15  ;;  %2934 = vmatprep.subr.bf16.mxu0 %v3414_v11  ;;  %v2109_v13 = vpack.c.bf16 %v2100_v12, %v2099_v10  ;;  %v2101_v15 = vld [vmem:[#allocation2 + $0x26] sm:$0xff] }
 0x179   : > { %3077 = vmatpush3.bf16.msra.mxu1 %v3349_v14  ;;  %3060 = vmatprep.mubr.msk.bf16.mxu1 %vm3415_vm0, %v3414_v11  ;;  %v2102_v14 = vld [vmem:[#allocation2 + $0x2e] sm:$0xff] }
 0x17a   : > { %3078 = vmatprep.subr.bf16.mxu1 %v3414_v11 }
 0x17b   : > { %2935 = vmatpush3.bf16.msra.mxu0 %v3353_v16  ;;  %v2110_v16 = vpack.c.bf16 %v2102_v14, %v2101_v15 }
 0x17c   : > { %2936 = vmatprep.subr.bf16.mxu0 %v3414_v11 }
 0x17d   : > { %3079 = vmatpush3.bf16.msra.mxu1 %v3350_v17  ;;  %v2103_v17 = vld [vmem:[#allocation2 + $0x36] sm:$0xff] }
 0x17e   : > { %2917 = vmatmul.mubr.bf16.gmra.mrb[12].mxu0 %v1012_v21  ;;  %3080 = vmatprep.subr.bf16.mxu1 %v3414_v11  ;;  %v2111_v19 = vpack.c.bf16 %v2104_v18, %v2103_v17  ;;  %v2106_v21 = vld [vmem:[#allocation2 + $0x4e] sm:$0xff] }
 0x17f   : > { %2920 = vmatprep.mubr.msk.bf16.mxu0 %vm3415_vm0, %v3414_v11  ;;  %2937 = vmatpush3.bf16.msra.mxu0 %v3354_v20  ;;  %v2105_v20 = vld [vmem:[#allocation2 + $0x46] sm:$0xff] }
 0x180   : > { %3061 = vmatmul.mubr.bf16.gmra.mrb[4].mxu1 %v1744_v27  ;;  %2938 = vmatprep.subr.bf16.mxu0 %v3414_v11  ;;  %v2107_v27 = vld [vmem:[#allocation2 + $0x56] sm:$0xff] }
 0x181   : > { %3081 = vmatpush3.bf16.msra.mxu1 %v3352_v23  ;;  %3064 = vmatprep.mubr.msk.bf16.mxu1 %vm3415_vm0, %v3414_v11  ;;  %v2112_v23 = vpack.c.bf16 %v2106_v21, %v2105_v20 }
 0x182   : > { %3082 = vmatprep.subr.bf16.mxu1 %v3414_v11 }
 0x183   : > { %2939 = vmatpush3.bf16.msra.mxu0 %v3356_v28  ;;  %v2108_v28 = vld [vmem:[#allocation2 + $0x5e] sm:$0xff] }
 0x184   : > { %2940 = vmatprep.subr.bf16.mxu0 %v3414_v11  ;;  %v2113_v29 = vpack.c.bf16 %v2108_v28, %v2107_v27 }
 0x185   : > { %3083 = vmatpush3.bf16.msra.mxu1 %v3355_v31 }
 0x186   : > { %2921 = vmatmul.mubr.bf16.gmra.mrb[40].mxu0 %v1013_v33  ;;  %3084 = vmatprep.subr.bf16.mxu1 %v3414_v11 }
 0x187   : > { %2924 = vmatprep.mubr.msk.bf16.mxu0 %vm3415_vm0, %v3414_v11  ;;  %2941 = vmatpush3.bf16.msra.mxu0 %v3358_v32 }
 0x188   : > { %3065 = vmatmul.mubr.bf16.gmra.mrb[32].mxu1 %v1745_v35  ;;  %2942 = vmatprep.subr.bf16.mxu0 %v3414_v11 }
 0x189   : > { %3085 = vmatpush3.bf16.msra.mxu1 %v3357_v34  ;;  %3068 = vmatprep.mubr.msk.bf16.mxu1 %vm3415_vm0, %v3414_v11 }
 0x18a   : > { %3086 = vmatprep.subr.bf16.mxu1 %v3414_v11 }
 0x18b   : > { %2943 = vmatpush3.bf16.msra.mxu0 %v3360_v36 }
 0x18c   : > { %2944 = vmatprep.subr.bf16.mxu0 %v3414_v11 }
 0x18d   : > { %3087 = vmatpush3.bf16.msra.mxu1 %v3359_v38 }
 0x18e   : > { %2925 = vmatmul.mubr.bf16.gmra.mrb[20].mxu0 %v1014_v42  ;;  %3088 = vmatprep.subr.bf16.mxu1 %v3414_v11 }
 0x18f   : > { %2928 = vmatprep.mubr.msk.bf16.mxu0 %vm3415_vm0, %v3414_v11  ;;  %2945 = vmatpush3.bf16.msra.mxu0 %v3362_v40 }
 0x190   : > { %3069 = vmatmul.mubr.bf16.gmra.mrb[12].mxu1 %v1746_v44  ;;  %2946 = vmatprep.subr.bf16.mxu0 %v3414_v11 }
 0x191   : > { %3089 = vmatpush3.bf16.msra.mxu1 %v3361_v43  ;;  %3072 = vmatprep.mubr.msk.bf16.mxu1 %vm3415_vm0, %v3414_v11 }
 0x192   : > { %3090 = vmatprep.subr.bf16.mxu1 %v3414_v11 }
 0x193   : > { %2947 = vmatpush3.bf16.msra.mxu0 %v3363_v46 }
 0x195   : > { %3091 = vmatpush3.bf16.msra.mxu1 %v3364_v49 }
 0x196   : > { %2929 = vmatmul.mubr.bf16.gmra.mrb[24].mxu0 %v1015_v51  ;;  %3112 = vmatprep.subr.bf16.mxu1 %v3414_v11 }
 0x197   : > { %2948 = vmatprep.mubr.msk.bf16.mxu0 %vm3415_vm0, %v3414_v11 }
 0x198   : > { %3073 = vmatmul.mubr.bf16.gmra.mrb[16].mxu1 %v1747_v52 }
 0x199   : > { %3092 = vmatprep.mubr.msk.bf16.mxu1 %vm3415_vm0, %v3414_v11 }
 0x19e   : > { %2949 = vmatmul.mubr.bf16.vlgmr.msra.gmra.mrb[44].mxu0 %v1194_v54 }
 0x19f   : > { %2952 = vmatprep.mubr.msk.bf16.mxu0 %vm3415_vm0, %v3414_v11 }
 0x1a0   : > { %3093 = vmatmul.mubr.bf16.vlgmr.msra.gmra.mrb[36].mxu1 %v1926_v56 }
 0x1a1   : > { %3113 = vmatpush3.bf16.msra.mxu1 %v3365_v55  ;;  %3096 = vmatprep.mubr.msk.bf16.mxu1 %vm3415_vm0, %v3414_v11 }
 0x1a2   : > { %3114 = vmatprep.subr.bf16.mxu1 %v3414_v11 }
 0x1a5   : > { %3115 = vmatpush3.bf16.msra.mxu1 %v3366_v57 }
 0x1a6   : > { %2953 = vmatmul.mubr.bf16.gmra.mrb[12].mxu0 %v1195_v25  ;;  %3116 = vmatprep.subr.bf16.mxu1 %v3414_v11 }
 0x1a7   : > { %2956 = vmatprep.mubr.msk.bf16.mxu0 %vm3415_vm0, %v3414_v11 }
 0x1a8   : > { %3097 = vmatmul.mubr.bf16.gmra.mrb[4].mxu1 %v1927_v58 }
 0x1a9   : > { %3117 = vmatpush3.bf16.msra.mxu1 %v3367_v26  ;;  %3100 = vmatprep.mubr.msk.bf16.mxu1 %vm3415_vm0, %v3414_v11 }
 0x1aa   : > { %3118 = vmatprep.subr.bf16.mxu1 %v3414_v11 }
 0x1ad   : > { %3119 = vmatpush3.bf16.msra.mxu1 %v3368_v59 }
 0x1ae   : > { %2957 = vmatmul.mubr.bf16.gmra.mrb[48].mxu0 %v1196_v61  ;;  %3120 = vmatprep.subr.bf16.mxu1 %v3414_v11 }
 0x1af   : > { %2960 = vmatprep.mubr.msk.bf16.mxu0 %vm3415_vm0, %v3414_v11 }
 0x1b0   : > { %3101 = vmatmul.mubr.bf16.gmra.mrb[40].mxu1 %v1928_v63 }
 0x1b1   : > { %3121 = vmatpush3.bf16.msra.mxu1 %v3369_v62  ;;  %3104 = vmatprep.mubr.msk.bf16.mxu1 %vm3415_vm0, %v3414_v11 }
 0x1b2   : > { %3122 = vmatprep.subr.bf16.mxu1 %v3414_v11 }
 0x1b5   : > { %3123 = vmatpush3.bf16.msra.mxu1 %v3370_v0 }
 0x1b6   : > { %2961 = vmatmul.mubr.bf16.gmra.mrb[20].mxu0 %v1197_v3  ;;  %3124 = vmatprep.subr.bf16.mxu1 %v3414_v11 }
 0x1b7   : > { %2964 = vmatprep.mubr.msk.bf16.mxu0 %vm3415_vm0, %v3414_v11 }
 0x1b8   : > { %3105 = vmatmul.mubr.bf16.gmra.mrb[12].mxu1 %v1929_v45 }
 0x1b9   : > { %3125 = vmatpush3.bf16.msra.mxu1 %v3371_v41  ;;  %3108 = vmatprep.mubr.msk.bf16.mxu1 %vm3415_vm0, %v3414_v11 }
 0x1ba   : > { %3126 = vmatprep.subr.bf16.mxu1 %v3414_v11 }
 0x1bd   : > { %3127 = vmatpush3.bf16.msra.mxu1 %v3372_v5 }
 0x1be   : > { %2965 = vmatmul.mubr.bf16.gmra.mrb[24].mxu0 %v1198_v8 }
 0x1c0   : > { %3109 = vmatmul.mubr.bf16.gmra.mrb[16].mxu1 %v1930_v9 }
 0x1c1   : > { %3128 = vmatprep.mubr.msk.bf16.mxu1 %vm3415_vm0, %v3414_v11 }
 0x1c8   : > { %3129 = vmatmul.mubr.bf16.vlgmr.msra.gmra.mrb[44].mxu1 %v2109_v13 }
 0x1c9   : > { %3132 = vmatprep.mubr.msk.bf16.mxu1 %vm3415_vm0, %v3414_v11 }
 0x1d0   : > { %3133 = vmatmul.mubr.bf16.gmra.mrb[4].mxu1 %v2110_v16 }
 0x1d1   : > { %3136 = vmatprep.mubr.msk.bf16.mxu1 %vm3415_vm0, %v3414_v11 }
 0x1d8   : > { %3137 = vmatmul.mubr.bf16.gmra.mrb[48].mxu1 %v2111_v19 }
 0x1d9   : > { %3140 = vmatprep.mubr.msk.bf16.mxu1 %vm3415_vm0, %v3414_v11 }
 0x1e0   : > { %3141 = vmatmul.mubr.bf16.gmra.mrb[12].mxu1 %v2112_v23 }
 0x1e1   : > { %3144 = vmatprep.mubr.msk.bf16.mxu1 %vm3415_vm0, %v3414_v11 }
 0x1e8   : > { %3145 = vmatmul.mubr.bf16.gmra.mrb[16].mxu1 %v2113_v29 }
 0x1f9   : > { %v769_v30 = vpop.f32.mrb[8].mxu0 }
 0x1fa   : > { %v2842_v31 = vpop.f32.mrb[9].mxu0 }
 0x1fb   : > { %v772_v32 = vpop.f32.mrb[10].mxu0  ;;  %v1481_v33 = vpop.f32.mrb[0].mxu1 }
 0x1fc   : > { %v2843_v34 = vpop.f32.mrb[11].mxu0  ;;  %v2986_v35 = vpop.f32.mrb[1].mxu1 }
 0x1fd   : > { %v1484_v36 = vpop.f32.mrb[2].mxu1 }
 0x1fe   : > { %v2987_v37 = vpop.f32.mrb[3].mxu1 }
 0x209   : > { %v785_v38 = vpop.f32.mrb[16].mxu0 }
 0x20a   : > { %v2850_v39 = vpop.f32.mrb[17].mxu0 }
 0x20b   : > { %v788_v40 = vpop.f32.mrb[18].mxu0  ;;  %v3902_v42 = vpop.f32.mrb[8].mxu1 }
 0x20c   : > { %v2851_v43 = vpop.f32.mrb[19].mxu0  ;;  %v2994_v44 = vpop.f32.mrb[9].mxu1 }
 0x20d   : > { %v3904_v11 = vpop.f32.mrb[10].mxu1 }
 0x20e   : > { %v2995_v46 = vpop.f32.mrb[11].mxu1 }
 0x221   : > { %v932_v47 = vpop.f32.mrb[28].mxu0 }
 0x222   : > { %v981_v48 = vadd.f32 %v932_v47, %v769_v30  ;;  %v2878_v49 = vpop.f32.mrb[29].mxu0 }
 0x223   : > { %v935_v50 = vpop.f32.mrb[30].mxu0  ;;  %v1664_v51 = vpop.f32.mrb[20].mxu1 }
 0x224   : > { %v982_v52 = vadd.f32 %v935_v50, %v772_v32  ;;  %v2879_v53 = vpop.f32.mrb[31].mxu0  ;;  %v3022_v54 = vpop.f32.mrb[21].mxu1 }
 0x225   : > { %v1667_v55 = vpop.f32.mrb[22].mxu1 }
 0x226   : > { %v3023_v56 = vpop.f32.mrb[23].mxu1 }
 0x231   : > { %v948_v57 = vpop.f32.mrb[32].mxu0 }
 0x232   : > { %v985_v22 = vadd.f32 %v948_v57, %v785_v38  ;;  %v2886_v25 = vpop.f32.mrb[33].mxu0 }
 0x233   : > { %v951_v24 = vpop.f32.mrb[34].mxu0  ;;  %v1680_v26 = vpop.f32.mrb[24].mxu1 }
 0x234   : > { %v986_v58 = vadd.f32 %v951_v24, %v788_v40  ;;  %v2887_v59 = vpop.f32.mrb[35].mxu0  ;;  %v3030_v60 = vpop.f32.mrb[25].mxu1 }
 0x235   : > { %v1683_v61 = vpop.f32.mrb[26].mxu1 }
 0x236   : > { %v3031_v62 = vpop.f32.mrb[27].mxu1 }
 0x249   : > { %v1115_v63 = vpop.f32.mrb[36].mxu0 }
 0x24a   : > { %v1164_v0 = vadd.f32 %v1115_v63, %v981_v48  ;;  %v2914_v1 = vpop.f32.mrb[37].mxu0 }
 0x24b   : > { %v1118_v2 = vpop.f32.mrb[38].mxu0  ;;  %v1847_v3 = vpop.f32.mrb[28].mxu1 }
 0x24c   : > { %v1165_v41 = vadd.f32 %v1118_v2, %v982_v52  ;;  %v2915_v45 = vpop.f32.mrb[39].mxu0  ;;  %v3058_v4 = vpop.f32.mrb[29].mxu1 }
 0x24d   : > { %v1850_v5 = vpop.f32.mrb[30].mxu1 }
 0x24e   : > { %v3059_v6 = vpop.f32.mrb[31].mxu1 }
 0x259   : > { %v1131_v7 = vpop.f32.mrb[40].mxu0 }
 0x25a   : > { %v1168_v8 = vadd.f32 %v1131_v7, %v985_v22  ;;  %v2922_v9 = vpop.f32.mrb[41].mxu0 }
 0x25b   : > { %v1134_v10 = vpop.f32.mrb[42].mxu0  ;;  %v1863_v12 = vpop.f32.mrb[32].mxu1 }
 0x25c   : > { %v1169_v13 = vadd.f32 %v1134_v10, %v986_v58  ;;  %v2923_v14 = vpop.f32.mrb[43].mxu0  ;;  %v3066_v15 = vpop.f32.mrb[33].mxu1 }
 0x25d   : > { %v1866_v16 = vpop.f32.mrb[34].mxu1 }
 0x25e   : > { %v3067_v17 = vpop.f32.mrb[35].mxu1 }
 0x271   : > { %v1298_v18 = vpop.f32.mrb[44].mxu0 }
 0x272   : > { %v1347_v19 = vadd.f32 %v1298_v18, %v1164_v0  ;;  %v2950_v20 = vpop.f32.mrb[45].mxu0 }
 0x273   : > { %v1301_v21 = vpop.f32.mrb[46].mxu0  ;;  %v2030_v23 = vpop.f32.mrb[36].mxu1 }
 0x274   : > { %v1530_v27 = vadd.f32 %v1481_v33, %v1347_v19  ;;  %v1348_v28 = vadd.f32 %v1301_v21, %v1165_v41  ;;  %v2951_v29 = vpop.f32.mrb[47].mxu0  ;;  %v3094_v30 = vpop.f32.mrb[37].mxu1  ;;  %v2290_v21 = vld [vmem:[%s3518_s8 + $0x10] sm:$0xff] }
 0x275   : > { %v2033_v31 = vpop.f32.mrb[38].mxu1 }
 0x276   : > { %v1531_v32 = vadd.f32 %v1484_v36, %v1348_v28  ;;  %v1713_v34 = vadd.f32 %v1664_v51, %v1530_v27  ;;  %v3095_v35 = vpop.f32.mrb[39].mxu1  ;;  %v2298_v27 = vld [vmem:[%s3518_s8 + $0x20] sm:$0xff] }
 0x277   : > { %v2294_v35 = vld [vmem:[%s3518_s8 + $0x18] sm:$0xff] }
 0x278   : > { %v1896_v37 = vadd.f32 %v1847_v3, %v1713_v34  ;;  %v1714_v38 = vadd.f32 %v1667_v55, %v1531_v32 }
 0x279   : > { %v1306_v39 = vpop.f32.mrb[12].mxu0 }
 0x27a   : > { %v2079_v40 = vadd.f32 %v2030_v23, %v1896_v37  ;;  %v1897_v43 = vadd.f32 %v1850_v5, %v1714_v38  ;;  %v2954_v44 = vpop.f32.mrb[13].mxu0  ;;  %v2282_v5 = vld [vmem:[%s3518_s8] sm:$0xff] }
 0x27b   : > { %v1309_v46 = vpop.f32.mrb[14].mxu0 }
 0x27c   : > { %v2080_v47 = vadd.f32 %v2033_v31, %v1897_v43  ;;  %v2955_v48 = vpop.f32.mrb[15].mxu0 }
 0x281   : > { %v1314_v49 = vpop.f32.mrb[48].mxu0 }
 0x282   : > { %v1351_v50 = vadd.f32 %v1314_v49, %v1168_v8  ;;  %v2958_v52 = vpop.f32.mrb[49].mxu0 }
 0x283   : > { %v1317_v33 = vpop.f32.mrb[50].mxu0  ;;  %v2046_v53 = vpop.f32.mrb[40].mxu1  ;;  %v2302_v52 = vld [vmem:[%s3518_s8 + $0x28] sm:$0xff] }
 0x284   : > { %v1534_v54 = vadd.f32 %v3902_v42, %v1351_v50  ;;  %v1352_v56 = vadd.f32 %v1317_v33, %v1169_v13  ;;  %v2959_v36 = vpop.f32.mrb[51].mxu0  ;;  %v3102_v51 = vpop.f32.mrb[41].mxu1 }
 0x285   : > { %v2049_v57 = vpop.f32.mrb[42].mxu1  ;;  %v2306_v51 = vld [vmem:[%s3518_s8 + $0x30] sm:$0xff] }
 0x286   : > { %v1535_v55 = vadd.f32 %v3904_v11, %v1352_v56  ;;  %v1717_v22 = vadd.f32 %v1680_v26, %v1534_v54  ;;  %v3103_v25 = vpop.f32.mrb[43].mxu1 }
 0x288   : > { %v1900_v24 = vadd.f32 %v1863_v12, %v1717_v22  ;;  %v1718_v58 = vadd.f32 %v1683_v61, %v1535_v55  ;;  %v2310_v55 = vld [vmem:[%s3518_s8 + $0x38] sm:$0xff] }
 0x289   : > { %v1322_v59 = vpop.f32.mrb[20].mxu0 }
 0x28a   : > { %v2083_v60 = vadd.f32 %v2046_v53, %v1900_v24  ;;  %v1901_v62 = vadd.f32 %v1866_v16, %v1718_v58  ;;  %v2962_v63 = vpop.f32.mrb[21].mxu0  ;;  %v2286_v16 = vld [vmem:[%s3518_s8 + $0x8] sm:$0xff] }
 0x28b   : > { %v1325_v0 = vpop.f32.mrb[22].mxu0 }
 0x28c   : > { %v2084_v1 = vadd.f32 %v2049_v57, %v1901_v62  ;;  %v2963_v2 = vpop.f32.mrb[23].mxu0 }
 0x291   : > { %v1330_v42 = vpop.f32.mrb[24].mxu0 }
 0x292   : > { %v2966_v3 = vpop.f32.mrb[25].mxu0 }
 0x293   : > { %v1333_v41 = vpop.f32.mrb[26].mxu0 }
 0x294   : > { %v2967_v45 = vpop.f32.mrb[27].mxu0 }
 0x29b   : > { %v2213_v4 = vpop.f32.mrb[44].mxu1 }
 0x29c   : > { %v2262_v11 = vadd.f32 %v2213_v4, %v2079_v40  ;;  %v3130_v26 = vpop.f32.mrb[45].mxu1 }
 0x29d   : > { %v2216_v6 = vpop.f32.mrb[46].mxu1 }
 0x29e   : > { %v2284_v7 = vadd.f32 %v2282_v5, %v2262_v11  ;;  %v2263_v61 = vadd.f32 %v2216_v6, %v2080_v47  ;;  %v3131_v8 = vpop.f32.mrb[47].mxu1 }
 0x2a0   : > { %2285 = vst [vmem:[%s3518_s8] sm:$0xff] %v2284_v7  ;;  %2273 = vst [vmem:[#allocation3 + $0x8] sm:$0xff] %v2263_v61 }
 0x2a3   : > { %v2221_v9 = vpop.f32.mrb[4].mxu1 }
 0x2a4   : > { %v3150_v10 = vadd.f32 %v2221_v9, %v1306_v39  ;;  %v3134_v12 = vpop.f32.mrb[5].mxu1 }
 0x2a5   : > { %v2224_v13 = vpop.f32.mrb[6].mxu1 }
 0x2a6   : > { %2274 = vst [vmem:[#allocation3 + $0x10] sm:$0xff] %v3150_v10  ;;  %v3153_v14 = vadd.f32 %v2224_v13, %v1309_v46  ;;  %v3135_v15 = vpop.f32.mrb[7].mxu1 }
 0x2a8   : > { %2275 = vst [vmem:[#allocation3 + $0x18] sm:$0xff] %v3153_v14 }
 0x2ab   : > { %v2229_v17 = vpop.f32.mrb[48].mxu1 }
 0x2ac   : > { %v2266_v18 = vadd.f32 %v2229_v17, %v2083_v60  ;;  %v3138_v19 = vpop.f32.mrb[49].mxu1 }
 0x2ad   : > { %v2287_v20 = vld [vmem:[#allocation3 + $0xa] sm:$0xff]  ;;  %v2232_v23 = vpop.f32.mrb[50].mxu1 }
 0x2ae   : > { %v2288_v28 = vadd.f32 %v2287_v20, %v2286_v16  ;;  %2276 = vst [vmem:[#allocation3 + $0x20] sm:$0xff] %v2266_v18  ;;  %v2267_v29 = vadd.f32 %v2232_v23, %v2084_v1  ;;  %v3139_v30 = vpop.f32.mrb[51].mxu1 }
 0x2af   : > { %v2291_v31 = vld [vmem:[#allocation3 + $0x14] sm:$0xff] }
 0x2b0   : > { %2289 = vst [vmem:[%s3518_s8 + $0x8] sm:$0xff] %v2288_v28  ;;  %v2292_v32 = vadd.f32 %v2291_v31, %v2290_v21  ;;  %v2300_v34 = vadd.f32 %v2298_v27, %v2267_v29 }
 0x2b2   : > { %2293 = vst [vmem:[%s3518_s8 + $0x10] sm:$0xff] %v2292_v32  ;;  %2301 = vst [vmem:[%s3518_s8 + $0x20] sm:$0xff] %v2300_v34 }
 0x2b3   : > { %v2237_v37 = vpop.f32.mrb[12].mxu1 }
 0x2b4   : > { %v3156_v38 = vadd.f32 %v2237_v37, %v1322_v59  ;;  %v3142_v39 = vpop.f32.mrb[13].mxu1 }
 0x2b5   : > { %v2295_v40 = vld [vmem:[#allocation3 + $0x1e] sm:$0xff]  ;;  %v2240_v43 = vpop.f32.mrb[14].mxu1 }
 0x2b6   : > { %v2296_v44 = vadd.f32 %v2295_v40, %v2294_v35  ;;  %2278 = vst [vmem:[#allocation3 + $0x30] sm:$0xff] %v3156_v38  ;;  %v3159_v46 = vadd.f32 %v2240_v43, %v1325_v0  ;;  %v3143_v47 = vpop.f32.mrb[15].mxu1 }
 0x2b8   : > { %2297 = vst [vmem:[%s3518_s8 + $0x18] sm:$0xff] %v2296_v44  ;;  %2279 = vst [vmem:[#allocation3 + $0x38] sm:$0xff] %v3159_v46 }
 0x2bb   : > { %v2245_v48 = vpop.f32.mrb[16].mxu1 }
 0x2bc   : > { %v3162_v49 = vadd.f32 %v2245_v48, %v1330_v42  ;;  %v3146_v50 = vpop.f32.mrb[17].mxu1 }
 0x2bd   : > { %v2248_v33 = vpop.f32.mrb[18].mxu1 }
 0x2be   : > { %2280 = vst [vmem:[#allocation3 + $0x40] sm:$0xff] %v3162_v49  ;;  %v3165_v53 = vadd.f32 %v2248_v33, %v1333_v41  ;;  %v3147_v54 = vpop.f32.mrb[19].mxu1 }
 0x2bf   : > { %v2303_v56 = vld [vmem:[#allocation3 + $0x32] sm:$0xff] }
 0x2c0   : > { %v2304_v36 = vadd.f32 %v2303_v56, %v2302_v52  ;;  %2281 = vst [vmem:[#allocation3 + $0x48] sm:$0xff] %v3165_v53 }
 0x2c2   : > { %2305 = vst [vmem:[%s3518_s8 + $0x28] sm:$0xff] %v2304_v36 }
 0x2c5   : > { %v2307_v57 = vld [vmem:[#allocation3 + $0x3c] sm:$0xff] }
 0x2c6   : > { %v2308_v22 = vadd.f32 %v2307_v57, %v2306_v51 }
 0x2c7   : > { %v2311_v25 = vld [vmem:[#allocation3 + $0x46] sm:$0xff] }
 0x2c8   : > { %2309 = vst [vmem:[%s3518_s8 + $0x30] sm:$0xff] %v2308_v22  ;;  %v2312_v24 = vadd.f32 %v2311_v25, %v2310_v55 }
 0x2ca   : > { %2313 = vst [vmem:[%s3518_s8 + $0x38] sm:$0xff] %v2312_v24 }
 0x2cb PF: > { %s17_s28 = sadd.s32 1, %s3411_s28   ;;  %s3951_s10 = sld [smem:[#allocation4_spill]] }
 0x2cc   : > { %p14_p10 = scmp.ge.s32.totalorder %s17_s28, 6   ;;  %s3952_s24 = smov %s3403_s26 }
 0x2cd   : > { %s3953_s25 = smov %s3407_s27  ;;  %s3954_s26 = smov %s3957_s29 }
 0x2ce   :  { %16 = sbr.rel (!%p14_p10) target bundleno = 3 (0x3), region = 108 }
 0x2d1   : > { %s3955_s27 = smov %s3951_s10 }

// kernel: densenet_forward.16
= control target key start
LH: loop header
LB: loop body
LE: loop exit
PB: predicated region body
PF: predicated region fallthrough
CT: control target
= control target key end

     0   :  { %s491_s15 = smov 0   ;;  %s545_s0 = inlined_call_operand.vmem [shape: f32[32,128], index: 0, kind: input, shape index: {}]   ;;  %s546_s1 = inlined_call_operand.vmem [shape: f32[1,128], index: 1, kind: input, shape index: {}]   ;;  %s547_s2 = inlined_call_operand.vmem [shape: f32[1,128], index: 2, kind: input, shape index: {}]   ;;  %s548_s3 = inlined_call_operand.vmem [shape: bf16[128,128], index: 3, kind: input, shape index: {}]   ;;  %s549_s4 = inlined_call_operand.vmem [shape: f32[32,128], index: 4, kind: output, shape index: {}]  }
   0x1 LB: > { %s388_s16 = sadd.s32 4294967295, %s462_s15   ;;  %p392_p0 = scmp.ge.s32.totalorder %s462_s15, 1  ;;  %s462_s15 = sphi %s491_s15, %s14_s15  }
   0x2   : > { %p163_p1 = scmp.lt.s32.totalorder %s462_s15, 3 }
   0x4   : > { %p164_p2 = pnand %p392_p0, %p163_p1 }
   0x5   : > { %v448_v0 = vld [vmem:[%s548_s3] sm:$0xff] (!%p164_p2)   ;;  %v464_v1 = vmov (!%p164_p2), 0.0   ;;  %v449_v2 = vld [vmem:[%s548_s3 + $0x8] sm:$0xff] (!%p164_p2)   ;;  %vm465_vm0 = vmmov (!%p164_p2), 0   ;;  %s393_s21 = sshll.u32 (!%p164_p2), %s388_s16, 1  ;;  %v450_v3 = vld [vmem:[%s548_s3 + $0x10] sm:$0xff] (!%p164_p2)  }
   0x6   : > { %167 = sbr.rel (%p164_p2) target bundleno = 253 (0xfd), region = 36  ;;  %418 = vmatprep.subr.bf16.mxu0 (!%p164_p2), %v464_v1  ;;  %434 = vmatprep.mubr.msk.bf16.mxu0 (!%p164_p2), %vm465_vm0, %v464_v1  ;;  %p190_p3 = scmp.lt.s32.totalorder (!%p164_p2), %s393_s21, 3  ;;  %v451_v4 = vld [vmem:[%s548_s3 + $0x18] sm:$0xff] (!%p164_p2)   ;;  %v452_v5 = vld [vmem:[%s548_s3 + $0x20] sm:$0xff] (!%p164_p2)   ;;  %v453_v11 = vld [vmem:[%s548_s3 + $0x28] sm:$0xff] (!%p164_p2)  }
   0x7   : > { %419 = vmatpush3.bf16.msra.mxu0 (!%p164_p2), %v448_v0  ;;  %v397_v8 = vld [vmem:[%s546_s1] ss:$0 sm:$0xff] (!%p164_p2)  ;;  %v454_v15 = vld [vmem:[%s548_s3 + $0x30] sm:$0xff] (!%p164_p2)   ;;  %v455_v18 = vld [vmem:[%s548_s3 + $0x38] sm:$0xff] (!%p164_p2)  }
   0x8   : > { %420 = vmatprep.subr.bf16.mxu0 (!%p164_p2), %v464_v1  ;;  %v398_v12 = vld [vmem:[%s547_s2] ss:$0 sm:$0xff] (!%p164_p2) }
   0xb   : > { %421 = vmatpush3.bf16.msra.mxu0 (!%p164_p2), %v449_v2 }
   0xc   : > { %422 = vmatprep.subr.bf16.mxu0 (!%p164_p2), %v464_v1 }
   0xd   : > { %s551_s21 = smov (!%p190_p3, %s393_s21), 3 }
   0xe   : > { %s394_s24 = sshll.u32 %s551_s21, 3 }
   0xf   : > { %423 = vmatpush3.bf16.msra.mxu0 %v450_v3  ;;  %s193_s29 = scalar_lea.vmem %s545_s0, %s394_s24  ;;  %s199_s19 = scalar_lea.vmem %s549_s4, %s394_s24 }
  0x10   : > { %424 = vmatprep.subr.bf16.mxu0 %v464_v1  ;;  %v202_v6 = vld [vmem:[%s193_s29] sm:$0xff]  ;;  %v203_v7 = vld [vmem:[%s193_s29 + $0x8] sm:$0xff] }
  0x11   : > { %v211_v9 = vmul.f32 %v397_v8, %v202_v6  ;;  %v212_v10 = vmul.f32 %v397_v8, %v203_v7 }
  0x13   : > { %425 = vmatpush3.bf16.msra.mxu0 %v451_v4  ;;  %v220_v13 = vadd.f32 %v398_v12, %v211_v9  ;;  %v221_v14 = vadd.f32 %v398_v12, %v212_v10 }
  0x14   : > { %426 = vmatprep.subr.bf16.mxu0 %v464_v1 }
  0x15   : > { %v222_v16 = vmax.f32 %v220_v13, 0.0  ;;  %v223_v17 = vmax.f32 %v221_v14, 0.0 }
  0x17   : > { %427 = vmatpush3.bf16.msra.mxu0 %v452_v5  ;;  %v224_v19 = vpack.c.bf16 %v223_v17, %v222_v16 }
  0x18   : > { %428 = vmatprep.subr.bf16.mxu0 %v464_v1 }
  0x1b   : > { %429 = vmatpush3.bf16.msra.mxu0 %v453_v11 }
  0x1c   : > { %430 = vmatprep.subr.bf16.mxu0 %v464_v1 }
  0x1f   : > { %431 = vmatpush3.bf16.msra.mxu0 %v454_v15 }
  0x20   : > { %432 = vmatprep.subr.bf16.mxu0 %v464_v1 }
  0x23   : > { %433 = vmatpush3.bf16.msra.mxu0 %v455_v18 }
  0x26   : > { %435 = vmatmul.mubr.bf16.vlgmr.msra.gmra.mrb[0].mxu0 %v224_v19 }
  0xf9   : > { %v323_v20 = vpop.f32.mrb[0].mxu0 }
  0xfa   : > { %330 = vst [vmem:[%s199_s19] sm:$0xff] %v323_v20  ;;  %v436_v21 = vpop.f32.mrb[1].mxu0 }
  0xfb   : > { %v326_v22 = vpop.f32.mrb[2].mxu0 }
  0xfc   : > { %331 = vst [vmem:[%s199_s19 + $0x8] sm:$0xff] %v326_v22  ;;  %v437_v23 = vpop.f32.mrb[3].mxu0 }
  0xfd PF: > { %s14_s15 = sadd.s32 1, %s462_s15  }
  0xfe   : > { %p11_p4 = scmp.ge.s32.totalorder %s14_s15, 4  }
 0x100   :  { %13 = sbr.rel (!%p11_p4) target bundleno = 1 (0x1), region = 66 }

// kernel: densenet_forward.15
= control target key start
LH: loop header
LB: loop body
LE: loop exit
PB: predicated region body
PF: predicated region fallthrough
CT: control target
= control target key end

     0   :  { %s2614_s24 = smov 0   ;;  %s2616_s25 = smov 0   ;;  %s2818_s0 = inlined_call_operand.vmem [shape: f32[32,128], index: 0, kind: input, shape index: {}, may-alias: {0,7}]   ;;  %s2819_s1 = inlined_call_operand.vmem [shape: f32[2,1,128], index: 1, kind: input, shape index: {}]   ;;  %s2820_s2 = inlined_call_operand.vmem [shape: f32[2,1,128], index: 2, kind: input, shape index: {}]   ;;  %s2821_s3 = inlined_call_operand.vmem [shape: bf16[256,128], index: 3, kind: input, shape index: {}]   ;;  %s2822_s4 = inlined_call_operand.vmem [shape: f32[2,1,128], index: 4, kind: input, shape index: {}]   ;;  %s2823_s5 = inlined_call_operand.vmem [shape: f32[2,1,128], index: 5, kind: input, shape index: {}]   ;;  %s2824_s6 = inlined_call_operand.vmem [shape: bf16[18,128,128], index: 6, kind: input, shape index: {}]   ;;  %s2825_s7 = inlined_call_operand.vmem [shape: f32[32,128], index: 7, kind: output, shape index: {}, may-alias: {0,7}]  }
   0x1   :  { %s2618_s26 = smov 0   ;;  %s2620_s27 = smov 0  }
   0x2   :  { %s2622_s28 = smov 0  }
   0x3 LB: > { %s26_s29 = sadd.s32 1, %s2561_s26  ;;  %s29_s30 = sadd.s32 1, %s2565_s27  ;;  %s2569_s28 = sphi %s2622_s28, %s17_s28   ;;  %s2565_s27 = sphi %s2620_s27, %s2835_s27   ;;  %s2561_s26 = sphi %s2618_s26, %s2834_s26   ;;  %s2557_s25 = sphi %s2616_s25, %s2833_s25   ;;  %s2553_s24 = sphi %s2614_s24, %s2832_s24  }
   0x4   : > { %p27_p0 = scmp.ge.s32.totalorder %s26_s29, 2  ;;  %p1847_p1 = scmp.ge.s32.totalorder %s2569_s28, 1 }
   0x5   : > { %p305_p2 = scmp.lt.s32.totalorder %s2569_s28, 5 }
   0x6   : > { %s2837_s29 = smov (%p27_p0, %s26_s29), 0  ;;  %s2839_s30 = smov (!%p27_p0, %s29_s30), %s2565_s27 }
   0x7   : > { %2826 = sst [smem:[#allocation4_spill]] %s2837_s29  ;;  %p306_p3 = pnand %p1847_p1, %p305_p2 }
   0x8   : > { %p31_p4 = scmp.ge.s32.totalorder %s2839_s30, 2  ;;  %s1848_s8 = sshll.u32 (!%p306_p3), %s2557_s25, 1 }
   0x9   : > { %309 = sbr.rel (%p306_p3) target bundleno = 651 (0x28b), region = 48  ;;  %p366_p5 = scmp.lt.s32.totalorder (!%p306_p3), %s2553_s24, 1 }
   0xa   : > { %s2841_s30 = smov (%p31_p4, %s2839_s30), 0  ;;  %p361_p6 = scmp.lt.s32.totalorder (!%p306_p3), %s1848_s8, 3 }
   0xb   : > { %2827 = sst [smem:[#allocation5_spill]] %s2841_s30  ;;  %s1850_s9 = sshll.u32 (!%p306_p3), %s2553_s24, 4 }
   0xc   : > { %p373_p7 = scmp.lt.s32.totalorder (!%p306_p3), %s1850_s9, 31  ;;  %s384_s12 = smul.u32 (!%p306_p3), 9, %s2553_s24 }
   0xd   : > { %p1856_p9 = scmp.ne.s32.totalorder (!%p306_p3), %s2553_s24, 0 }
   0xe   : > { %p385_p8 = scmp.lt.s32.totalorder (!%p306_p3), %s384_s12, 17 }
  0x10   : > { %s2649_s10 = scalar_select %p366_p5, %s2553_s24, 1 }
  0x11   : > { %s2843_s8 = smov (!%p361_p6, %s1848_s8), 3  ;;  %s2845_s9 = smov (!%p373_p7, %s1850_s9), 31 }
  0x12   : > { %s1849_s17 = sshll.u32 %s2843_s8, 3  ;;  %s380_s23 = scalar_lea.vmem %s2822_s4, %s2649_s10  ;;  %v2571_v2 = vmov (!%p1856_p9), 0.0  }
  0x13   : > { %s364_s20 = scalar_lea.vmem %s2818_s0, %s1849_s17  ;;  %s383_s11 = scalar_lea.vmem %s2823_s5, %s2649_s10  ;;  %406 = vst [vmem:[#allocation2] sm:$0xff] (!%p1856_p9), %v2571_v2  ;;  %407 = vst [vmem:[#allocation2 + $0x8] sm:$0xff] (!%p1856_p9), %v2571_v2 }
  0x14   : > { %s1851_s13 = sshll.u32 %s2845_s9, 2  ;;  %s2674_s8 = scalar_lea.vmem %s2825_s7, %s1849_s17  ;;  %v402_v0 = vld [vmem:[%s364_s20] sm:$0xff] (!%p1856_p9)  ;;  %v403_v1 = vld [vmem:[%s364_s20 + $0x8] sm:$0xff] (!%p1856_p9)  ;;  %408 = vst [vmem:[#allocation2 + $0x10] sm:$0xff] (!%p1856_p9), %v2571_v2  ;;  %409 = vst [vmem:[#allocation2 + $0x18] sm:$0xff] (!%p1856_p9), %v2571_v2 }
  0x15   : > { %s2679_s18 = scalar_lea.vmem %s2821_s3, %s1851_s13  ;;  %s2847_s12 = smov (!%p385_p8, %s384_s12), 17  ;;  %404 = vst [vmem:[%s2674_s8] sm:$0xff] (!%p1856_p9), %v402_v0  ;;  %410 = vst [vmem:[#allocation2 + $0x20] sm:$0xff] (!%p1856_p9), %v2571_v2 }
  0x16   : > { %s2071_s19 = sshll.u32 %s2847_s12, 6  ;;  %401 = sbr.rel (%p1856_p9) target bundleno = 29 (0x1d), region = 52  ;;  %405 = vst [vmem:[%s2674_s8 + $0x8] sm:$0xff] (!%p1856_p9), %v403_v1 }
  0x17   : > { %s2684_s30 = scalar_lea.vmem %s2824_s6, %s2071_s19 }
  0x1d PF: > { %v2451_v3 = vld [vmem:[%s2679_s18] sm:$0xff]   ;;  %v2572_v4 = vmov 0.0   ;;  %v2452_v5 = vld [vmem:[%s2679_s18 + $0x8] sm:$0xff]   ;;  %vm2573_vm0 = vmmov 0   ;;  %v2453_v6 = vld [vmem:[%s2679_s18 + $0x10] sm:$0xff]   ;;  %s2828_s9 = scalar_lea.vmem %s2819_s1, %s2649_s10  ;;  %s2829_s17 = scalar_lea.vmem %s2820_s2, %s2649_s10 }
  0x1e   : > { %2171 = vmatprep.subr.bf16.mxu0 %v2572_v4  ;;  %2187 = vmatprep.mubr.msk.bf16.mxu0 %vm2573_vm0, %v2572_v4  ;;  %v411_v7 = vld [vmem:[%s2674_s8] sm:$0xff]  ;;  %v412_v8 = vld [vmem:[%s2674_s8 + $0x8] sm:$0xff]  ;;  %v2454_v13 = vld [vmem:[%s2679_s18 + $0x18] sm:$0xff]  }
  0x1f   : > { %2172 = vmatpush3.bf16.msra.mxu0 %v2451_v3  ;;  %v1857_v9 = vld [vmem:[%s2828_s9] ss:$0 sm:$0xff]  ;;  %v2462_v18 = vld [vmem:[%s2684_s30 + $0x108] sm:$0xff]   ;;  %v2464_v19 = vld [vmem:[%s2684_s30 + $0x110] sm:$0xff]  }
  0x20   : > { %2173 = vmatprep.subr.bf16.mxu0 %v2572_v4  ;;  %v420_v10 = vmul.f32 %v1857_v9, %v411_v7  ;;  %v421_v11 = vmul.f32 %v1857_v9, %v412_v8  ;;  %v1858_v12 = vld [vmem:[%s2829_s17] ss:$0 sm:$0xff]  ;;  %v2456_v20 = vld [vmem:[%s2679_s18 + $0x28] sm:$0xff]   ;;  %v2466_v23 = vld [vmem:[%s2684_s30 + $0x118] sm:$0xff]  }
  0x21   : > { %v2460_v14 = vld [vmem:[%s2684_s30 + $0x100] sm:$0xff]   ;;  %v2457_v24 = vld [vmem:[%s2679_s18 + $0x30] sm:$0xff]   ;;  %v2458_v25 = vld [vmem:[%s2679_s18 + $0x38] sm:$0xff]  }
  0x22   : > { %v429_v15 = vadd.f32 %v1858_v12, %v420_v10  ;;  %v2455_v16 = vld [vmem:[%s2679_s18 + $0x20] sm:$0xff]   ;;  %v430_v17 = vadd.f32 %v1858_v12, %v421_v11  ;;  %2271 = vmatprep.subr.bf16.mxu1 %v2460_v14  ;;  %v2461_v28 = vld [vmem:[%s2684_s30 + $0x8] sm:$0xff]   ;;  %v2463_v29 = vld [vmem:[%s2684_s30 + $0x10] sm:$0xff]  }
  0x23   : > { %2174 = vmatpush3.bf16.msra.mxu0 %v2452_v5  ;;  %2272 = vmatpush3.bf16.msra.mxu1 %v2460_v14  ;;  %v2459_v26 = vld [vmem:[%s2684_s30] sm:$0xff]   ;;  %v2465_v30 = vld [vmem:[%s2684_s30 + $0x18] sm:$0xff]   ;;  %v2469_v33 = vld [vmem:[%s2684_s30 + $0x28] sm:$0xff]  }
  0x24   : > { %2175 = vmatprep.subr.bf16.mxu0 %v2572_v4  ;;  %2273 = vmatprep.subr.bf16.mxu1 %v2462_v18  ;;  %v431_v21 = vmax.f32 %v429_v15, 0.0  ;;  %v432_v22 = vmax.f32 %v430_v17, 0.0  ;;  %v2467_v31 = vld [vmem:[%s2684_s30 + $0x20] sm:$0xff]   ;;  %v2470_v34 = vld [vmem:[%s2684_s30 + $0x128] sm:$0xff]   ;;  %v2471_v35 = vld [vmem:[%s2684_s30 + $0x30] sm:$0xff]  }
  0x25   : > { %v2468_v32 = vld [vmem:[%s2684_s30 + $0x120] sm:$0xff]   ;;  %v2472_v36 = vld [vmem:[%s2684_s30 + $0x130] sm:$0xff]   ;;  %v2473_v37 = vld [vmem:[%s2684_s30 + $0x38] sm:$0xff]  }
  0x26   : > { %v433_v27 = vpack.c.bf16 %v432_v22, %v431_v21  ;;  %v2474_v38 = vld [vmem:[%s2684_s30 + $0x138] sm:$0xff]   ;;  %v2475_v39 = vld [vmem:[%s2684_s30 + $0x40] sm:$0xff]   ;;  %v2477_v1 = vld [vmem:[%s2684_s30 + $0x48] sm:$0xff]  }
  0x27   : > { %2176 = vmatpush3.bf16.msra.mxu0 %v2453_v6  ;;  %2274 = vmatpush3.bf16.msra.mxu1 %v2462_v18  ;;  %v2476_v40 = vld [vmem:[%s2684_s30 + $0x140] sm:$0xff]   ;;  %v2478_v3 = vld [vmem:[%s2684_s30 + $0x148] sm:$0xff]   ;;  %v2479_v5 = vld [vmem:[%s2684_s30 + $0x50] sm:$0xff]  }
  0x28   : > { %2177 = vmatprep.subr.bf16.mxu0 %v2572_v4  ;;  %2275 = vmatprep.subr.bf16.mxu1 %v2464_v19  ;;  %v1867_v41 = vld [vmem:[%s380_s23] ss:$0 sm:$0xff]  ;;  %v2480_v6 = vld [vmem:[%s2684_s30 + $0x150] sm:$0xff]   ;;  %v2481_v7 = vld [vmem:[%s2684_s30 + $0x58] sm:$0xff]  }
  0x29   : > { %v1868_v43 = vld [vmem:[%s383_s11] ss:$0 sm:$0xff]  ;;  %v2482_v8 = vld [vmem:[%s2684_s30 + $0x158] sm:$0xff]   ;;  %v2485_v11 = vld [vmem:[%s2684_s30 + $0x68] sm:$0xff]  }
  0x2a   : > { %v2483_v9 = vld [vmem:[%s2684_s30 + $0x60] sm:$0xff]   ;;  %v2486_v12 = vld [vmem:[%s2684_s30 + $0x168] sm:$0xff]   ;;  %v2488_v14 = vld [vmem:[%s2684_s30 + $0x170] sm:$0xff]  }
  0x2b   : > { %2178 = vmatpush3.bf16.msra.mxu0 %v2454_v13  ;;  %2276 = vmatpush3.bf16.msra.mxu1 %v2464_v19  ;;  %v2484_v10 = vld [vmem:[%s2684_s30 + $0x160] sm:$0xff]   ;;  %v2487_v13 = vld [vmem:[%s2684_s30 + $0x70] sm:$0xff]   ;;  %v2489_v15 = vld [vmem:[%s2684_s30 + $0x78] sm:$0xff]  }
  0x2c   : > { %2179 = vmatprep.subr.bf16.mxu0 %v2572_v4  ;;  %2277 = vmatprep.subr.bf16.mxu1 %v2466_v23  ;;  %v2491_v17 = vld [vmem:[%s2684_s30 + $0x80] sm:$0xff]  }
  0x2d   : > { %v2492_v21 = vld [vmem:[%s2684_s30 + $0x180] sm:$0xff]  }
  0x2f   : > { %2180 = vmatpush3.bf16.msra.mxu0 %v2455_v16  ;;  %2278 = vmatpush3.bf16.msra.mxu1 %v2466_v23  ;;  %v2490_v16 = vld [vmem:[%s2684_s30 + $0x178] sm:$0xff]  }
  0x30   : > { %2181 = vmatprep.subr.bf16.mxu0 %v2572_v4  ;;  %2279 = vmatprep.subr.bf16.mxu1 %v2468_v32 }
  0x33   : > { %2182 = vmatpush3.bf16.msra.mxu0 %v2456_v20  ;;  %2280 = vmatpush3.bf16.msra.mxu1 %v2468_v32  ;;  %v2496_v32 = vld [vmem:[%s2684_s30 + $0x190] sm:$0xff]  }
  0x34   : > { %2183 = vmatprep.subr.bf16.mxu0 %v2572_v4  ;;  %2281 = vmatprep.subr.bf16.mxu1 %v2470_v34 }
  0x37   : > { %2184 = vmatpush3.bf16.msra.mxu0 %v2457_v24  ;;  %2282 = vmatpush3.bf16.msra.mxu1 %v2470_v34  ;;  %v2498_v34 = vld [vmem:[%s2684_s30 + $0x198] sm:$0xff]  }
  0x38   : > { %2185 = vmatprep.subr.bf16.mxu0 %v2572_v4  ;;  %2283 = vmatprep.subr.bf16.mxu1 %v2472_v36 }
  0x3b   : > { %2186 = vmatpush3.bf16.msra.mxu0 %v2458_v25  ;;  %2284 = vmatpush3.bf16.msra.mxu1 %v2472_v36  ;;  %v2500_v36 = vld [vmem:[%s2684_s30 + $0x1a0] sm:$0xff]  }
  0x3c   : > { %2191 = vmatprep.subr.bf16.mxu0 %v2459_v26  ;;  %2285 = vmatprep.subr.bf16.mxu1 %v2474_v38 }
  0x3e   : > { %2188 = vmatmul.mubr.bf16.vlgmr.msra.gmra.mrb[0].mxu0 %v433_v27 }
  0x3f   : > { %2192 = vmatpush3.bf16.msra.mxu0 %v2459_v26  ;;  %2286 = vmatpush3.bf16.msra.mxu1 %v2474_v38  ;;  %v2493_v26 = vld [vmem:[%s2684_s30 + $0x88] sm:$0xff]  }
  0x40   : > { %2193 = vmatprep.subr.bf16.mxu0 %v2461_v28  ;;  %2291 = vmatprep.subr.bf16.mxu1 %v2476_v40  ;;  %v2502_v38 = vld [vmem:[%s2684_s30 + $0x1a8] sm:$0xff]  }
  0x43   : > { %2194 = vmatpush3.bf16.msra.mxu0 %v2461_v28 }
  0x44   : > { %2195 = vmatprep.subr.bf16.mxu0 %v2463_v29 }
  0x47   : > { %2196 = vmatpush3.bf16.msra.mxu0 %v2463_v29  ;;  %v2494_v29 = vld [vmem:[%s2684_s30 + $0x188] sm:$0xff]  }
  0x48   : > { %2197 = vmatprep.subr.bf16.mxu0 %v2465_v30 }
  0x4b   : > { %2198 = vmatpush3.bf16.msra.mxu0 %v2465_v30 }
  0x4c   : > { %2199 = vmatprep.subr.bf16.mxu0 %v2467_v31 }
  0x4f   : > { %2200 = vmatpush3.bf16.msra.mxu0 %v2467_v31  ;;  %v2495_v31 = vld [vmem:[%s2684_s30 + $0x90] sm:$0xff]  }
  0x50   : > { %2201 = vmatprep.subr.bf16.mxu0 %v2469_v33 }
  0x53   : > { %2202 = vmatpush3.bf16.msra.mxu0 %v2469_v33  ;;  %v2497_v33 = vld [vmem:[%s2684_s30 + $0x98] sm:$0xff]  }
  0x54   : > { %2203 = vmatprep.subr.bf16.mxu0 %v2471_v35 }
  0x57   : > { %2204 = vmatpush3.bf16.msra.mxu0 %v2471_v35  ;;  %v2499_v35 = vld [vmem:[%s2684_s30 + $0xa0] sm:$0xff]  }
  0x58   : > { %2205 = vmatprep.subr.bf16.mxu0 %v2473_v37 }
  0x5b   : > { %2206 = vmatpush3.bf16.msra.mxu0 %v2473_v37  ;;  %v2501_v37 = vld [vmem:[%s2684_s30 + $0xa8] sm:$0xff]  }
  0x5c   : > { %2211 = vmatprep.subr.bf16.mxu0 %v2475_v39 }
 0x111   : > { %v532_v42 = vpop.f32.mrb[0].mxu0 }
 0x112   : > { %v546_v44 = vmul.f32 %v1867_v41, %v532_v42  ;;  %v2189_v45 = vpop.f32.mrb[1].mxu0  ;;  %v2506_v42 = vld [vmem:[%s2684_s30 + $0x1b8] sm:$0xff]  }
 0x113   : > { %v535_v46 = vpop.f32.mrb[2].mxu0 }
 0x114   : > { %v555_v47 = vadd.f32 %v1868_v43, %v546_v44  ;;  %v547_v48 = vmul.f32 %v1867_v41, %v535_v46  ;;  %v2190_v49 = vpop.f32.mrb[3].mxu0  ;;  %v2505_v41 = vld [vmem:[%s2684_s30 + $0xb8] sm:$0xff]   ;;  %v2508_v46 = vld [vmem:[%s2684_s30 + $0x1c0] sm:$0xff]  }
 0x116   : > { %v557_v50 = vmax.f32 %v555_v47, 0.0  ;;  %v556_v51 = vadd.f32 %v1868_v43, %v547_v48  ;;  %v2507_v43 = vld [vmem:[%s2684_s30 + $0xc0] sm:$0xff]   ;;  %v2509_v48 = vld [vmem:[%s2684_s30 + $0xc8] sm:$0xff]  }
 0x118   : > { %559 = vst [vmem:[#allocation2 + $0x7] ss:$6 sps:$4 sm:$0xff] %v557_v50   ;;  %v558_v52 = vmax.f32 %v556_v51, 0.0 }
 0x11a   : > { %561 = vst [vmem:[#allocation2 + $0x13] ss:$6 sps:$4 sm:$0xff] %v558_v52  }
 0x11f   : > { %v563_v53 = vld [vmem:[#allocation2] sm:$0xff]  ;;  %v564_v54 = vld [vmem:[#allocation2 + $0x8] sm:$0xff] }
 0x120   : > { %v566_v55 = vpack.c.bf16 %v564_v54, %v563_v53  ;;  %v1064_v56 = vld [vmem:[#allocation2 + $0x7] sm:$0xff] }
 0x121   : > { %v683_v57 = vld [vmem:[#allocation2 + $0x1] sm:$0xff]  ;;  %v684_v58 = vld [vmem:[#allocation2 + $0x9] sm:$0xff]  ;;  %v1066_v61 = vld [vmem:[#allocation2 + $0x17] sm:$0xff] }
 0x122   : > { %v565_v59 = vld [vmem:[#allocation2 + $0x10] sm:$0xff]  ;;  %2207 = vmatprep.mubr.bf16.mxu0 %v566_v55  ;;  %v1068_v0 = vpack.c.bf16 %v1066_v61, %v1066_v61  ;;  %v686_v2 = vpack.c.bf16 %v684_v58, %v683_v57  ;;  %v810_v19 = vld [vmem:[#allocation2 + $0x2] sm:$0xff]  ;;  %v1193_v22 = vld [vmem:[#allocation2 + $0x18] sm:$0xff] }
 0x123   : > { %v1065_v60 = vld [vmem:[#allocation2 + $0xf] sm:$0xff]  ;;  %v567_v62 = vpack.c.bf16 %v565_v59, %v565_v59  ;;  %v1194_v4 = vpack.c.bf16 %v565_v59, %v564_v54  ;;  %v1195_v28 = vpack.c.bf16 %v1193_v22, %v1193_v22  ;;  %v1320_v47 = vld [vmem:[#allocation2 + $0x1c] sm:$0xff]  ;;  %v937_v50 = vld [vmem:[#allocation2 + $0x6] sm:$0xff] }
 0x124   : > { %v1067_v63 = vpack.c.bf16 %v1065_v60, %v1064_v56  ;;  %v685_v18 = vld [vmem:[#allocation2 + $0x11] sm:$0xff]  ;;  %v1322_v54 = vpack.c.bf16 %v1320_v47, %v1320_v47  ;;  %v2510_v55 = vld [vmem:[%s2684_s30 + $0x1c8] sm:$0xff]   ;;  %v2515_v61 = vld [vmem:[%s2684_s30 + $0xe0] sm:$0xff]  }
 0x125   : > { %2208 = vmatmul.mubr.bf16.vlgmr.msra.gmra.mrb[4].mxu0 %v567_v62  ;;  %v811_v20 = vld [vmem:[#allocation2 + $0xa] sm:$0xff]  ;;  %v687_v23 = vpack.c.bf16 %v685_v18, %v685_v18  ;;  %v1319_v25 = vld [vmem:[#allocation2 + $0x14] sm:$0xff]  ;;  %v2516_v62 = vld [vmem:[%s2684_s30 + $0x1e0] sm:$0xff]  }
 0x126   : > { %2287 = vmatprep.mubr.bf16.mxu1 %v1067_v63  ;;  %2212 = vmatpush3.bf16.msra.mxu0 %v2475_v39  ;;  %v1318_v24 = vld [vmem:[#allocation2 + $0xc] sm:$0xff]  ;;  %v813_v27 = vpack.c.bf16 %v811_v20, %v810_v19  ;;  %v1446_v52 = vld [vmem:[#allocation2 + $0x15] sm:$0xff]  ;;  %v1574_v18 = vld [vmem:[#allocation2 + $0x1e] sm:$0xff] }
 0x127   : > { %2227 = vmatprep.mubr.bf16.mxu0 %v686_v2  ;;  %2288 = vmatmul.mubr.bf16.vlgmr.msra.gmra.mrb[0].mxu1 %v1068_v0  ;;  %v1321_v30 = vpack.c.bf16 %v1319_v25, %v1318_v24  ;;  %v2503_v39 = vld [vmem:[%s2684_s30 + $0xb0] sm:$0xff]   ;;  %v2513_v59 = vld [vmem:[%s2684_s30 + $0xd8] sm:$0xff]   ;;  %v2517_v63 = vld [vmem:[%s2684_s30 + $0xe8] sm:$0xff]   ;;  %v1576_v19 = vpack.c.bf16 %v1574_v18, %v1574_v18 }
 0x128   : > { %2213 = vmatprep.subr.bf16.mxu0 %v2477_v1  ;;  %2292 = vmatpush3.bf16.msra.mxu1 %v2476_v40  ;;  %v2504_v40 = vld [vmem:[%s2684_s30 + $0x1b0] sm:$0xff]   ;;  %v2514_v60 = vld [vmem:[%s2684_s30 + $0x1d8] sm:$0xff]   ;;  %v2518_v0 = vld [vmem:[%s2684_s30 + $0x1e8] sm:$0xff]  }
 0x129   : > { %2307 = vmatprep.mubr.bf16.mxu1 %v1194_v4  ;;  %2293 = vmatprep.subr.bf16.mxu1 %v2478_v3  ;;  %v812_v44 = vld [vmem:[#allocation2 + $0x12] sm:$0xff] }
 0x12a   : > { %2214 = vmatpush3.bf16.msra.mxu0 %v2477_v1  ;;  %v2768_v45 = vld [vmem:[#allocation2 + $0xe] sm:$0xff]  ;;  %v814_v49 = vpack.c.bf16 %v812_v44, %v812_v44  ;;  %v2522_v4 = vld [vmem:[%s2684_s30 + $0x1f8] sm:$0xff]  }
 0x12b   : > { %2215 = vmatprep.subr.bf16.mxu0 %v2479_v5  ;;  %v1445_v51 = vld [vmem:[#allocation2 + $0xd] sm:$0xff]  ;;  %v940_v53 = vpack.c.bf16 %v2768_v45, %v937_v50 }
 0x12c   : > { %2294 = vmatpush3.bf16.msra.mxu1 %v2478_v3  ;;  %v1448_v56 = vpack.c.bf16 %v1446_v52, %v1445_v51  ;;  %v2511_v57 = vld [vmem:[%s2684_s30 + $0xd0] sm:$0xff]   ;;  %v2521_v3 = vld [vmem:[%s2684_s30 + $0xf8] sm:$0xff]  }
 0x12d   : > { %2295 = vmatprep.subr.bf16.mxu1 %v2480_v6  ;;  %v2512_v58 = vld [vmem:[%s2684_s30 + $0x1d0] sm:$0xff]  }
 0x12e   : > { %2216 = vmatpush3.bf16.msra.mxu0 %v2479_v5  ;;  %v2519_v1 = vld [vmem:[%s2684_s30 + $0xf0] sm:$0xff]  }
 0x12f   : > { %2217 = vmatprep.subr.bf16.mxu0 %v2481_v7  ;;  %v2520_v2 = vld [vmem:[%s2684_s30 + $0x1f0] sm:$0xff]  }
 0x130   : > { %2296 = vmatpush3.bf16.msra.mxu1 %v2480_v6  ;;  %v939_v5 = vld [vmem:[#allocation2 + $0x16] sm:$0xff] }
 0x131   : > { %2297 = vmatprep.subr.bf16.mxu1 %v2482_v8  ;;  %v1447_v6 = vld [vmem:[#allocation2 + $0x1d] sm:$0xff] }
 0x132   : > { %2218 = vmatpush3.bf16.msra.mxu0 %v2481_v7  ;;  %v2523_v7 = vld [vmem:[%s2684_s30 + $0x200] sm:$0xff]  }
 0x133   : > { %2219 = vmatprep.subr.bf16.mxu0 %v2483_v9 }
 0x134   : > { %2298 = vmatpush3.bf16.msra.mxu1 %v2482_v8  ;;  %v941_v8 = vpack.c.bf16 %v939_v5, %v939_v5 }
 0x135   : > { %2299 = vmatprep.subr.bf16.mxu1 %v2484_v10 }
 0x136   : > { %2220 = vmatpush3.bf16.msra.mxu0 %v2483_v9  ;;  %v1449_v9 = vpack.c.bf16 %v1447_v6, %v1447_v6 }
 0x137   : > { %2221 = vmatprep.subr.bf16.mxu0 %v2485_v11 }
 0x138   : > { %2300 = vmatpush3.bf16.msra.mxu1 %v2484_v10  ;;  %v2524_v10 = vld [vmem:[%s2684_s30 + $0x208] sm:$0xff]  }
 0x139   : > { %2301 = vmatprep.subr.bf16.mxu1 %v2486_v12 }
 0x13a   : > { %2222 = vmatpush3.bf16.msra.mxu0 %v2485_v11  ;;  %v1575_v11 = vpack.c.bf16 %v939_v5, %v2768_v45 }
 0x13b   : > { %2223 = vmatprep.subr.bf16.mxu0 %v2487_v13 }
 0x13c   : > { %2302 = vmatpush3.bf16.msra.mxu1 %v2486_v12  ;;  %v2525_v12 = vld [vmem:[%s2684_s30 + $0x210] sm:$0xff]  }
 0x13d   : > { %2303 = vmatprep.subr.bf16.mxu1 %v2488_v14 }
 0x13e   : > { %2224 = vmatpush3.bf16.msra.mxu0 %v2487_v13  ;;  %v2526_v13 = vld [vmem:[%s2684_s30 + $0x218] sm:$0xff]  }
 0x13f   : > { %2225 = vmatprep.subr.bf16.mxu0 %v2489_v15 }
 0x140   : > { %2304 = vmatpush3.bf16.msra.mxu1 %v2488_v14  ;;  %v2527_v14 = vld [vmem:[%s2684_s30 + $0x220] sm:$0xff]  }
 0x141   : > { %2305 = vmatprep.subr.bf16.mxu1 %v2490_v16 }
 0x142   : > { %2226 = vmatpush3.bf16.msra.mxu0 %v2489_v15  ;;  %v2528_v15 = vld [vmem:[%s2684_s30 + $0x228] sm:$0xff]  }
 0x143   : > { %2231 = vmatprep.subr.bf16.mxu0 %v2491_v17 }
 0x144   : > { %2306 = vmatpush3.bf16.msra.mxu1 %v2490_v16  ;;  %v2529_v16 = vld [vmem:[%s2684_s30 + $0x230] sm:$0xff]  }
 0x145   : > { %2228 = vmatmul.mubr.bf16.vlgmr.msra.gmra.mrb[4].mxu0 %v687_v23  ;;  %2311 = vmatprep.subr.bf16.mxu1 %v2492_v21 }
 0x146   : > { %2232 = vmatpush3.bf16.msra.mxu0 %v2491_v17  ;;  %2247 = vmatprep.mubr.bf16.mxu0 %v813_v27  ;;  %v2530_v17 = vld [vmem:[%s2684_s30 + $0x238] sm:$0xff]  }
 0x147   : > { %2308 = vmatmul.mubr.bf16.vlgmr.msra.gmra.mrb[0].mxu1 %v1195_v28  ;;  %2233 = vmatprep.subr.bf16.mxu0 %v2493_v26 }
 0x148   : > { %2312 = vmatpush3.bf16.msra.mxu1 %v2492_v21  ;;  %2327 = vmatprep.mubr.bf16.mxu1 %v1321_v30 }
 0x149   : > { %2313 = vmatprep.subr.bf16.mxu1 %v2494_v29 }
 0x14a   : > { %2234 = vmatpush3.bf16.msra.mxu0 %v2493_v26 }
 0x14b   : > { %2235 = vmatprep.subr.bf16.mxu0 %v2495_v31 }
 0x14c   : > { %2314 = vmatpush3.bf16.msra.mxu1 %v2494_v29 }
 0x14d   : > { %2315 = vmatprep.subr.bf16.mxu1 %v2496_v32 }
 0x14e   : > { %2236 = vmatpush3.bf16.msra.mxu0 %v2495_v31  ;;  %v1699_v31 = vld [vmem:[%s2674_s8] sm:$0xf] }
 0x14f   : > { %2237 = vmatprep.subr.bf16.mxu0 %v2497_v33 }
 0x150   : > { %2316 = vmatpush3.bf16.msra.mxu1 %v2496_v32 }
 0x151   : > { %2317 = vmatprep.subr.bf16.mxu1 %v2498_v34 }
 0x152   : > { %2238 = vmatpush3.bf16.msra.mxu0 %v2497_v33  ;;  %v1703_v33 = vld [vmem:[%s2674_s8 + $0x4] sm:$0xf] }
 0x153   : > { %2239 = vmatprep.subr.bf16.mxu0 %v2499_v35 }
 0x154   : > { %2318 = vmatpush3.bf16.msra.mxu1 %v2498_v34 }
 0x155   : > { %2319 = vmatprep.subr.bf16.mxu1 %v2500_v36 }
 0x156   : > { %2240 = vmatpush3.bf16.msra.mxu0 %v2499_v35 }
 0x157   : > { %2241 = vmatprep.subr.bf16.mxu0 %v2501_v37 }
 0x158   : > { %2320 = vmatpush3.bf16.msra.mxu1 %v2500_v36 }
 0x159   : > { %2321 = vmatprep.subr.bf16.mxu1 %v2502_v38 }
 0x15a   : > { %2242 = vmatpush3.bf16.msra.mxu0 %v2501_v37  ;;  %v1707_v37 = vld [vmem:[%s2674_s8 + $0x8] sm:$0xf] }
 0x15b   : > { %2243 = vmatprep.subr.bf16.mxu0 %v2503_v39 }
 0x15c   : > { %2322 = vmatpush3.bf16.msra.mxu1 %v2502_v38 }
 0x15d   : > { %2323 = vmatprep.subr.bf16.mxu1 %v2504_v40 }
 0x15e   : > { %2244 = vmatpush3.bf16.msra.mxu0 %v2503_v39 }
 0x15f   : > { %2245 = vmatprep.subr.bf16.mxu0 %v2505_v41 }
 0x160   : > { %2324 = vmatpush3.bf16.msra.mxu1 %v2504_v40 }
 0x161   : > { %2325 = vmatprep.subr.bf16.mxu1 %v2506_v42 }
 0x162   : > { %2246 = vmatpush3.bf16.msra.mxu0 %v2505_v41  ;;  %v1711_v41 = vld [vmem:[%s2674_s8 + $0xc] sm:$0xf] }
 0x163   : > { %2251 = vmatprep.subr.bf16.mxu0 %v2507_v43 }
 0x164   : > { %2326 = vmatpush3.bf16.msra.mxu1 %v2506_v42 }
 0x165   : > { %2248 = vmatmul.mubr.bf16.vlgmr.msra.gmra.mrb[4].mxu0 %v814_v49  ;;  %2331 = vmatprep.subr.bf16.mxu1 %v2508_v46 }
 0x166   : > { %2252 = vmatpush3.bf16.msra.mxu0 %v2507_v43  ;;  %2267 = vmatprep.mubr.bf16.mxu0 %v940_v53 }
 0x167   : > { %2328 = vmatmul.mubr.bf16.vlgmr.msra.gmra.mrb[0].mxu1 %v1322_v54  ;;  %2253 = vmatprep.subr.bf16.mxu0 %v2509_v48 }
 0x168   : > { %2332 = vmatpush3.bf16.msra.mxu1 %v2508_v46  ;;  %2347 = vmatprep.mubr.bf16.mxu1 %v1448_v56 }
 0x169   : > { %2333 = vmatprep.subr.bf16.mxu1 %v2510_v55 }
 0x16a   : > { %2254 = vmatpush3.bf16.msra.mxu0 %v2509_v48 }
 0x16b   : > { %2255 = vmatprep.subr.bf16.mxu0 %v2511_v57 }
 0x16c   : > { %2334 = vmatpush3.bf16.msra.mxu1 %v2510_v55 }
 0x16d   : > { %2335 = vmatprep.subr.bf16.mxu1 %v2512_v58 }
 0x16e   : > { %2256 = vmatpush3.bf16.msra.mxu0 %v2511_v57 }
 0x16f   : > { %2257 = vmatprep.subr.bf16.mxu0 %v2513_v59 }
 0x170   : > { %2336 = vmatpush3.bf16.msra.mxu1 %v2512_v58 }
 0x171   : > { %2337 = vmatprep.subr.bf16.mxu1 %v2514_v60 }
 0x172   : > { %2258 = vmatpush3.bf16.msra.mxu0 %v2513_v59 }
 0x173   : > { %2259 = vmatprep.subr.bf16.mxu0 %v2515_v61 }
 0x174   : > { %2338 = vmatpush3.bf16.msra.mxu1 %v2514_v60 }
 0x175   : > { %2339 = vmatprep.subr.bf16.mxu1 %v2516_v62 }
 0x176   : > { %2260 = vmatpush3.bf16.msra.mxu0 %v2515_v61 }
 0x177   : > { %2261 = vmatprep.subr.bf16.mxu0 %v2517_v63 }
 0x178   : > { %2340 = vmatpush3.bf16.msra.mxu1 %v2516_v62 }
 0x179   : > { %2341 = vmatprep.subr.bf16.mxu1 %v2518_v0 }
 0x17a   : > { %2262 = vmatpush3.bf16.msra.mxu0 %v2517_v63 }
 0x17b   : > { %2263 = vmatprep.subr.bf16.mxu0 %v2519_v1 }
 0x17c   : > { %2342 = vmatpush3.bf16.msra.mxu1 %v2518_v0 }
 0x17d   : > { %2343 = vmatprep.subr.bf16.mxu1 %v2520_v2 }
 0x17e   : > { %2264 = vmatpush3.bf16.msra.mxu0 %v2519_v1 }
 0x17f   : > { %2265 = vmatprep.subr.bf16.mxu0 %v2521_v3 }
 0x180   : > { %2344 = vmatpush3.bf16.msra.mxu1 %v2520_v2 }
 0x181   : > { %2345 = vmatprep.subr.bf16.mxu1 %v2522_v4 }
 0x182   : > { %2266 = vmatpush3.bf16.msra.mxu0 %v2521_v3 }
 0x184   : > { %2346 = vmatpush3.bf16.msra.mxu1 %v2522_v4 }
 0x185   : > { %2268 = vmatmul.mubr.bf16.vlgmr.msra.gmra.mrb[4].mxu0 %v941_v8  ;;  %2351 = vmatprep.subr.bf16.mxu1 %v2523_v7 }
 0x187   : > { %2348 = vmatmul.mubr.bf16.vlgmr.msra.gmra.mrb[0].mxu1 %v1449_v9 }
 0x188   : > { %2352 = vmatpush3.bf16.msra.mxu1 %v2523_v7  ;;  %2367 = vmatprep.mubr.bf16.mxu1 %v1575_v11 }
 0x189   : > { %2353 = vmatprep.subr.bf16.mxu1 %v2524_v10 }
 0x18c   : > { %2354 = vmatpush3.bf16.msra.mxu1 %v2524_v10 }
 0x18d   : > { %2355 = vmatprep.subr.bf16.mxu1 %v2525_v12 }
 0x190   : > { %2356 = vmatpush3.bf16.msra.mxu1 %v2525_v12 }
 0x191   : > { %2357 = vmatprep.subr.bf16.mxu1 %v2526_v13 }
 0x194   : > { %2358 = vmatpush3.bf16.msra.mxu1 %v2526_v13 }
 0x195   : > { %2359 = vmatprep.subr.bf16.mxu1 %v2527_v14 }
 0x198   : > { %2360 = vmatpush3.bf16.msra.mxu1 %v2527_v14 }
 0x199   : > { %2361 = vmatprep.subr.bf16.mxu1 %v2528_v15 }
 0x19c   : > { %2362 = vmatpush3.bf16.msra.mxu1 %v2528_v15 }
 0x19d   : > { %2363 = vmatprep.subr.bf16.mxu1 %v2529_v16 }
 0x1a0   : > { %2364 = vmatpush3.bf16.msra.mxu1 %v2529_v16 }
 0x1a1   : > { %2365 = vmatprep.subr.bf16.mxu1 %v2530_v17 }
 0x1a4   : > { %2366 = vmatpush3.bf16.msra.mxu1 %v2530_v17 }
 0x1a7   : > { %2368 = vmatmul.mubr.bf16.vlgmr.msra.gmra.mrb[0].mxu1 %v1576_v19 }
 0x258   : > { %v2269_v20 = vpop.f32.mrb[4].mxu0 }
 0x259   : > { %v1041_v21 = vpop.f32.mrb[5].mxu0 }
 0x25a   : > { %v2270_v22 = vpop.f32.mrb[6].mxu0 }
 0x25b   : > { %v1044_v23 = vpop.f32.mrb[7].mxu0 }
 0x27a   : > { %v2369_v24 = vpop.f32.mrb[0].mxu1 }
 0x27b   : > { %v2373_v25 = vadd.f32 %v2369_v24, %v2269_v20  ;;  %v1676_v26 = vpop.f32.mrb[1].mxu1 }
 0x27c   : > { %v2376_v27 = vadd.f32 %v1676_v26, %v1041_v21  ;;  %v2370_v28 = vpop.f32.mrb[2].mxu1 }
 0x27d   : > { %1698 = vst [vmem:[#allocation3 + $0x10] sm:$0xff] %v2373_v25  ;;  %v1679_v29 = vpop.f32.mrb[3].mxu1 }
 0x27e   : > { %1696 = vst [vmem:[#allocation3] sm:$0xff] %v2376_v27  ;;  %v2379_v30 = vadd.f32 %v1679_v29, %v1044_v23 }
 0x280   : > { %1697 = vst [vmem:[#allocation3 + $0x8] sm:$0xff] %v2379_v30 }
 0x284   : > { %v1712_v40 = vld [vmem:[#allocation3 + $0x12] sm:$0xf] }
 0x285   : > { %v1700_v32 = vld [vmem:[#allocation3] sm:$0xf]  ;;  %v1713_v42 = vadd.f32 %v1712_v40, %v1711_v41 }
 0x286   : > { %v1701_v34 = vadd.f32 %v1700_v32, %v1699_v31 }
 0x287   : > { %v1704_v35 = vld [vmem:[#allocation3 + $0x6] sm:$0xf]  ;;  %v1708_v38 = vld [vmem:[#allocation3 + $0xc] sm:$0xf]  ;;  %1714 = vst [vmem:[%s2674_s8 + $0xc] sm:$0xf] %v1713_v42 }
 0x288   : > { %1702 = vst [vmem:[%s2674_s8] sm:$0xf] %v1701_v34  ;;  %v1705_v36 = vadd.f32 %v1704_v35, %v1703_v33  ;;  %v1709_v39 = vadd.f32 %v1708_v38, %v1707_v37 }
 0x28a   : > { %1706 = vst [vmem:[%s2674_s8 + $0x4] sm:$0xf] %v1705_v36  ;;  %1710 = vst [vmem:[%s2674_s8 + $0x8] sm:$0xf] %v1709_v39 }
 0x28b PF: > { %s17_s28 = sadd.s32 1, %s2569_s28   ;;  %s2830_s10 = sld [smem:[#allocation4_spill]] }
 0x28c   : > { %p14_p10 = scmp.ge.s32.totalorder %s17_s28, 6   ;;  %s2831_s23 = sld [smem:[#allocation5_spill]] }
 0x28d   : > { %s2832_s24 = smov %s2561_s26  ;;  %s2833_s25 = smov %s2565_s27 }
 0x28e   :  { %16 = sbr.rel (!%p14_p10) target bundleno = 3 (0x3), region = 108 }
 0x291   : > { %s2834_s26 = smov %s2830_s10 }
 0x292   : > { %s2835_s27 = smov %s2831_s23 }

// kernel: densenet_forward.18
= control target key start
LH: loop header
LB: loop body
LE: loop exit
PB: predicated region body
PF: predicated region fallthrough
CT: control target
= control target key end

     0   :  { %v141_v0 = vmov 0.0   ;;  %vm142_vm0 = vmmov 0   ;;  %vm50_vm1 = vcmask 392192   ;;  %vm110_vm2 = vcmask 517120   ;;  %s199_s2 = inlined_call_operand.vmem [shape: f32[1,48], index: 2, kind: input, shape index: {}]   ;;  %s200_s3 = inlined_call_operand.vmem [shape: f32[1,48], index: 3, kind: input, shape index: {}]   ;;  %s201_s1 = inlined_call_operand.vmem [shape: bf16[48,64], index: 1, kind: input, shape index: {}]   ;;  %s202_s0 = inlined_call_operand.vmem [shape: f32[2,48], index: 0, kind: input, shape index: {}]   ;;  %s203_s4 = inlined_call_operand.vmem [shape: f32[1,64], index: 4, kind: input, shape index: {}]   ;;  %s204_s5 = inlined_call_operand.vmem [shape: f32[1,64], index: 5, kind: input, shape index: {}]   ;;  %s205_s6 = inlined_call_operand.vmem [shape: f32[2,64], index: 6, kind: output, shape index: {}]  }
   0x1   :  { %126 = vmatprep.subr.bf16.mxu0 %v141_v0  ;;  %v138_v1 = vld [vmem:[%s201_s1] sm:$0xff]   ;;  %132 = vmatprep.mubr.msk.bf16.mxu0 %vm142_vm0, %v141_v0  ;;  %v139_v2 = vld [vmem:[%s201_s1 + $0x8] sm:$0xff]   ;;  %v140_v3 = vld [vmem:[%s201_s1 + $0x10] sm:$0xff]  }
   0x2   :  { %127 = vmatpush3.bf16.msra.mxu0 %v138_v1  ;;  %v24_v4 = vld [vmem:[%s202_s0] sm:$0x3] }
   0x3   :  { %128 = vmatprep.subr.bf16.mxu0 %v141_v0  ;;  %v25_v5 = vpack.c.bf16 %v24_v4, %v24_v4  ;;  %v120_v6 = vld [vmem:[%s203_s4] ss:$0 sm:$0xff] }
   0x4   :  { %v121_v8 = vld [vmem:[%s204_s5] ss:$0 sm:$0xff] }
   0x6   :  { %129 = vmatpush3.bf16.msra.mxu0 %v139_v2 }
   0x7   :  { %130 = vmatprep.subr.bf16.mxu0 %v141_v0 }
   0xa   :  { %131 = vmatpush3.bf16.msra.mxu0 %v140_v3 }
   0xd   :  { %133 = vmatmul.mubr.msk.bf16.vlgmr.msra.gmra.mrb[0].mxu0 %vm50_vm1, %v25_v5 }
  0xe0   :  { %v88_v7 = vpop.f32.mrb[0].mxu0 }
  0xe1   :  { %v101_v9 = vmul.f32 %v120_v6, %v88_v7  ;;  %v134_v10 = vpop.f32.mrb[1].mxu0 }
  0xe2   :  { %v91_v11 = vpop.f32.mrb[2].mxu0 }
  0xe3   :  { %v109_v12 = vadd.f32 %v121_v8, %v101_v9  ;;  %v135_v13 = vpop.f32.mrb[3].mxu0 }
  0xe5   :  { %111 = vst.msk [vmem:[%s205_s6] sm:$0x3] %vm110_vm2, %v109_v12 }

// kernel: densenet_forward.17
= control target key start
LH: loop header
LB: loop body
LE: loop exit
PB: predicated region body
PF: predicated region fallthrough
CT: control target
= control target key end

     0   :  { %s2414_s24 = smov 0   ;;  %s2416_s25 = smov 0   ;;  %s2708_s0 = inlined_call_operand.vmem [shape: f32[16,128], index: 0, kind: input, shape index: {}, may-alias: {0,7}]   ;;  %s2709_s1 = inlined_call_operand.vmem [shape: f32[2,1,128], index: 1, kind: input, shape index: {}]   ;;  %s2710_s2 = inlined_call_operand.vmem [shape: f32[2,1,128], index: 2, kind: input, shape index: {}]   ;;  %s2711_s3 = inlined_call_operand.vmem [shape: bf16[256,128], index: 3, kind: input, shape index: {}]   ;;  %s2712_s4 = inlined_call_operand.vmem [shape: f32[2,1,128], index: 4, kind: input, shape index: {}]   ;;  %s2713_s5 = inlined_call_operand.vmem [shape: f32[2,1,128], index: 5, kind: input, shape index: {}]   ;;  %s2714_s6 = inlined_call_operand.vmem [shape: bf16[18,128,128], index: 6, kind: input, shape index: {}]   ;;  %s2715_s7 = inlined_call_operand.vmem [shape: f32[16,128], index: 7, kind: output, shape index: {}, may-alias: {0,7}]  }
   0x1   :  { %2716 = sst [smem:[#allocation6_spill]] %s2708_s0  ;;  %s2418_s26 = smov 0  }
   0x2   :  { %s2420_s27 = smov 0   ;;  %s2422_s28 = smov 0  }
   0x3 LB: > { %s26_s29 = sadd.s32 1, %s2361_s26  ;;  %s29_s30 = sadd.s32 1, %s2365_s27  ;;  %s2369_s28 = sphi %s2422_s28, %s17_s28   ;;  %s2365_s27 = sphi %s2420_s27, %s2727_s27   ;;  %s2361_s26 = sphi %s2418_s26, %s2726_s26   ;;  %s2357_s25 = sphi %s2416_s25, %s2725_s25   ;;  %s2353_s24 = sphi %s2414_s24, %s2724_s24  }
   0x4   : > { %p27_p0 = scmp.ge.s32.totalorder %s26_s29, 2  ;;  %p1664_p1 = scmp.ge.s32.totalorder %s2369_s28, 1 }
   0x5   : > { %p303_p2 = scmp.lt.s32.totalorder %s2369_s28, 5 }
   0x6   : > { %s2729_s29 = smov (%p27_p0, %s26_s29), 0  ;;  %s2731_s30 = smov (!%p27_p0, %s29_s30), %s2365_s27 }
   0x7   : > { %2717 = sst [smem:[#allocation4_spill]] %s2729_s29  ;;  %p304_p3 = pnand %p1664_p1, %p303_p2 }
   0x8   : > { %p31_p4 = scmp.ge.s32.totalorder %s2731_s30, 2  ;;  %p356_p5 = scmp.lt.s32.totalorder (!%p304_p3), %s2357_s25, 1 }
   0x9   : > { %307 = sbr.rel (%p304_p3) target bundleno = 644 (0x284), region = 48  ;;  %p360_p6 = scmp.lt.s32.totalorder (!%p304_p3), %s2353_s24, 1 }
   0xa   : > { %s2733_s30 = smov (%p31_p4, %s2731_s30), 0  ;;  %s1666_s8 = sshll.u32 (!%p304_p3), %s2353_s24, 4 }
   0xb   : > { %2718 = sst [smem:[#allocation5_spill]] %s2733_s30  ;;  %s378_s9 = smul.u32 (!%p304_p3), 9, %s2353_s24 }
   0xc   : > { %p367_p7 = scmp.lt.s32.totalorder (!%p304_p3), %s1666_s8, 31  ;;  %s2719_s0 = sld [smem:[#allocation6_spill]] (!%p304_p3) }
   0xd   : > { %p379_p8 = scmp.lt.s32.totalorder (!%p304_p3), %s378_s9, 17  ;;  %p1671_p9 = scmp.ne.s32.totalorder (!%p304_p3), %s2353_s24, 0 }
  0x10   : > { %s2735_s25 = smov (!%p356_p5, %s2357_s25), 1  ;;  %s2737_s8 = smov (!%p367_p7, %s1666_s8), 31 }
  0x11   : > { %s2450_s10 = scalar_select %p360_p6, %s2353_s24, 1 }
  0x12   : > { %s1665_s11 = sshll.u32 %s2735_s25, 3  ;;  %s1667_s12 = sshll.u32 %s2737_s8, 2  ;;  %v2371_v1 = vmov (!%p1671_p9), 0.0  }
  0x13   : > { %s359_s14 = scalar_lea.vmem %s2719_s0, %s1665_s11  ;;  %s365_s20 = scalar_lea.vmem %s2710_s2, %s2450_s10  ;;  %396 = vst [vmem:[#allocation2] sm:$0xff] (!%p1671_p9), %v2371_v1  ;;  %397 = vst [vmem:[#allocation2 + $0x8] sm:$0xff] (!%p1671_p9), %v2371_v1 }
  0x14   : > { %s377_s29 = scalar_lea.vmem %s2713_s5, %s2450_s10  ;;  %s2474_s15 = scalar_lea.vmem %s2715_s7, %s1665_s11  ;;  %v394_v0 = vld [vmem:[%s359_s14] sm:$0xff] (!%p1671_p9)  ;;  %398 = vst [vmem:[#allocation2 + $0x10] sm:$0xff] (!%p1671_p9), %v2371_v1 }
  0x15   : > { %s2479_s18 = scalar_lea.vmem %s2711_s3, %s1667_s12  ;;  %s2739_s9 = smov (!%p379_p8, %s378_s9), 17  ;;  %395 = vst [vmem:[%s2474_s15] sm:$0xff] (!%p1671_p9), %v394_v0 }
  0x16   : > { %s1886_s19 = sshll.u32 %s2739_s9, 6  ;;  %393 = sbr.rel (%p1671_p9) target bundleno = 29 (0x1d), region = 52 }
  0x17   : > { %s2484_s23 = scalar_lea.vmem %s2714_s6, %s1886_s19 }
  0x1d PF: > { %v2251_v2 = vld [vmem:[%s2479_s18] sm:$0xff]   ;;  %v2372_v3 = vmov 0.0   ;;  %v2252_v4 = vld [vmem:[%s2479_s18 + $0x8] sm:$0xff]   ;;  %vm2373_vm0 = vmmov 0   ;;  %v2253_v5 = vld [vmem:[%s2479_s18 + $0x10] sm:$0xff]   ;;  %s2720_s30 = scalar_lea.vmem %s2709_s1, %s2450_s10  ;;  %s2721_s17 = scalar_lea.vmem %s2712_s4, %s2450_s10 }
  0x1e   : > { %1977 = vmatprep.subr.bf16.mxu0 %v2372_v3  ;;  %2077 = vmatprep.subr.bf16.mxu1 %v2372_v3  ;;  %v2254_v6 = vld [vmem:[%s2479_s18 + $0x18] sm:$0xff]   ;;  %v399_v7 = vld [vmem:[%s2474_s15] sm:$0xff]  ;;  %v2262_v13 = vld [vmem:[%s2484_s23 + $0x108] sm:$0xff]  }
  0x1f   : > { %1978 = vmatpush3.bf16.msra.mxu0 %v2251_v2  ;;  %1993 = vmatprep.mubr.msk.bf16.mxu0 %vm2373_vm0, %v2372_v3  ;;  %v1672_v8 = vld [vmem:[%s2720_s30] ss:$0 sm:$0xff]  ;;  %v2256_v15 = vld [vmem:[%s2479_s18 + $0x28] sm:$0xff]   ;;  %v2264_v17 = vld [vmem:[%s2484_s23 + $0x110] sm:$0xff]  }
  0x20   : > { %1979 = vmatprep.subr.bf16.mxu0 %v2372_v3  ;;  %2093 = vmatprep.mubr.msk.bf16.mxu1 %vm2373_vm0, %v2372_v3  ;;  %v407_v9 = vmul.f32 %v1672_v8, %v399_v7  ;;  %v1673_v10 = vld [vmem:[%s365_s20] ss:$0 sm:$0xff]  ;;  %v2266_v18 = vld [vmem:[%s2484_s23 + $0x118] sm:$0xff]   ;;  %v2257_v19 = vld [vmem:[%s2479_s18 + $0x30] sm:$0xff]  }
  0x21   : > { %v2260_v11 = vld [vmem:[%s2484_s23 + $0x100] sm:$0xff]   ;;  %v2258_v20 = vld [vmem:[%s2479_s18 + $0x38] sm:$0xff]   ;;  %v2261_v23 = vld [vmem:[%s2484_s23 + $0x8] sm:$0xff]  }
  0x22   : > { %v415_v12 = vadd.f32 %v1673_v10, %v407_v9  ;;  %2078 = vmatpush3.bf16.msra.mxu1 %v2260_v11  ;;  %v2255_v14 = vld [vmem:[%s2479_s18 + $0x20] sm:$0xff]   ;;  %v2263_v24 = vld [vmem:[%s2484_s23 + $0x10] sm:$0xff]   ;;  %v2265_v25 = vld [vmem:[%s2484_s23 + $0x18] sm:$0xff]  }
  0x23   : > { %1980 = vmatpush3.bf16.msra.mxu0 %v2252_v4  ;;  %2079 = vmatprep.subr.bf16.mxu1 %v2372_v3  ;;  %v2259_v21 = vld [vmem:[%s2484_s23] sm:$0xff]   ;;  %v2269_v28 = vld [vmem:[%s2484_s23 + $0x28] sm:$0xff]   ;;  %v2271_v30 = vld [vmem:[%s2484_s23 + $0x30] sm:$0xff]  }
  0x24   : > { %1981 = vmatprep.subr.bf16.mxu0 %v2372_v3  ;;  %v416_v16 = vmax.f32 %v415_v12, 0.0  ;;  %v2267_v26 = vld [vmem:[%s2484_s23 + $0x20] sm:$0xff]   ;;  %v2270_v29 = vld [vmem:[%s2484_s23 + $0x128] sm:$0xff]   ;;  %v2272_v31 = vld [vmem:[%s2484_s23 + $0x130] sm:$0xff]  }
  0x25   : > { %v2268_v27 = vld [vmem:[%s2484_s23 + $0x120] sm:$0xff]   ;;  %v2273_v32 = vld [vmem:[%s2484_s23 + $0x38] sm:$0xff]   ;;  %v2277_v49 = vld [vmem:[%s2484_s23 + $0x48] sm:$0xff]  }
  0x26   : > { %2080 = vmatpush3.bf16.msra.mxu1 %v2262_v13  ;;  %v417_v22 = vpack.c.bf16 %v416_v16, %v416_v16  ;;  %v2274_v33 = vld [vmem:[%s2484_s23 + $0x138] sm:$0xff]   ;;  %v1682_v34 = vld [vmem:[%s2721_s17] ss:$0 sm:$0xff]  ;;  %v2278_v50 = vld [vmem:[%s2484_s23 + $0x148] sm:$0xff]  }
  0x27   : > { %1982 = vmatpush3.bf16.msra.mxu0 %v2253_v5  ;;  %2081 = vmatprep.subr.bf16.mxu1 %v2372_v3  ;;  %v1683_v36 = vld [vmem:[%s377_s29] ss:$0 sm:$0xff]  ;;  %v2279_v51 = vld [vmem:[%s2484_s23 + $0x50] sm:$0xff]   ;;  %v2281_v53 = vld [vmem:[%s2484_s23 + $0x58] sm:$0xff]  }
  0x28   : > { %1983 = vmatprep.subr.bf16.mxu0 %v2372_v3  ;;  %v2275_v43 = vld [vmem:[%s2484_s23 + $0x40] sm:$0xff]   ;;  %v2280_v52 = vld [vmem:[%s2484_s23 + $0x150] sm:$0xff]   ;;  %v2282_v54 = vld [vmem:[%s2484_s23 + $0x158] sm:$0xff]  }
  0x29   : > { %v2276_v46 = vld [vmem:[%s2484_s23 + $0x140] sm:$0xff]   ;;  %v2285_v57 = vld [vmem:[%s2484_s23 + $0x68] sm:$0xff]   ;;  %v2287_v59 = vld [vmem:[%s2484_s23 + $0x70] sm:$0xff]  }
  0x2a   : > { %2082 = vmatpush3.bf16.msra.mxu1 %v2264_v17  ;;  %v2283_v55 = vld [vmem:[%s2484_s23 + $0x60] sm:$0xff]   ;;  %v2286_v58 = vld [vmem:[%s2484_s23 + $0x168] sm:$0xff]   ;;  %v2288_v60 = vld [vmem:[%s2484_s23 + $0x170] sm:$0xff]  }
  0x2b   : > { %1984 = vmatpush3.bf16.msra.mxu0 %v2254_v6  ;;  %2083 = vmatprep.subr.bf16.mxu1 %v2372_v3  ;;  %v2284_v56 = vld [vmem:[%s2484_s23 + $0x160] sm:$0xff]   ;;  %v2289_v61 = vld [vmem:[%s2484_s23 + $0x78] sm:$0xff]   ;;  %v2293_v6 = vld [vmem:[%s2484_s23 + $0x88] sm:$0xff]  }
  0x2c   : > { %1985 = vmatprep.subr.bf16.mxu0 %v2372_v3  ;;  %v2290_v62 = vld [vmem:[%s2484_s23 + $0x178] sm:$0xff]   ;;  %v2291_v1 = vld [vmem:[%s2484_s23 + $0x80] sm:$0xff]   ;;  %v2294_v7 = vld [vmem:[%s2484_s23 + $0x188] sm:$0xff]  }
  0x2d   : > { %v2292_v2 = vld [vmem:[%s2484_s23 + $0x180] sm:$0xff]   ;;  %v2295_v8 = vld [vmem:[%s2484_s23 + $0x90] sm:$0xff]   ;;  %v2297_v10 = vld [vmem:[%s2484_s23 + $0x98] sm:$0xff]  }
  0x2e   : > { %2084 = vmatpush3.bf16.msra.mxu1 %v2266_v18  ;;  %v2296_v9 = vld [vmem:[%s2484_s23 + $0x190] sm:$0xff]   ;;  %v2298_v11 = vld [vmem:[%s2484_s23 + $0x198] sm:$0xff]   ;;  %v2299_v12 = vld [vmem:[%s2484_s23 + $0xa0] sm:$0xff]  }
  0x2f   : > { %1986 = vmatpush3.bf16.msra.mxu0 %v2255_v14  ;;  %2085 = vmatprep.subr.bf16.mxu1 %v2372_v3  ;;  %v2300_v13 = vld [vmem:[%s2484_s23 + $0x1a0] sm:$0xff]   ;;  %v2301_v14 = vld [vmem:[%s2484_s23 + $0xa8] sm:$0xff]   ;;  %v2303_v16 = vld [vmem:[%s2484_s23 + $0xb0] sm:$0xff]  }
  0x30   : > { %1987 = vmatprep.subr.bf16.mxu0 %v2372_v3  ;;  %v2304_v17 = vld [vmem:[%s2484_s23 + $0x1b0] sm:$0xff]   ;;  %v2305_v18 = vld [vmem:[%s2484_s23 + $0xb8] sm:$0xff]  }
  0x32   : > { %2086 = vmatpush3.bf16.msra.mxu1 %v2268_v27  ;;  %v2310_v27 = vld [vmem:[%s2484_s23 + $0x1c8] sm:$0xff]  }
  0x33   : > { %1988 = vmatpush3.bf16.msra.mxu0 %v2256_v15  ;;  %2087 = vmatprep.subr.bf16.mxu1 %v2372_v3  ;;  %v2302_v15 = vld [vmem:[%s2484_s23 + $0x1a8] sm:$0xff]  }
  0x34   : > { %1989 = vmatprep.subr.bf16.mxu0 %v2372_v3 }
  0x36   : > { %2088 = vmatpush3.bf16.msra.mxu1 %v2270_v29  ;;  %v2312_v29 = vld [vmem:[%s2484_s23 + $0x1d0] sm:$0xff]  }
  0x37   : > { %1990 = vmatpush3.bf16.msra.mxu0 %v2257_v19  ;;  %2089 = vmatprep.subr.bf16.mxu1 %v2372_v3  ;;  %v2306_v19 = vld [vmem:[%s2484_s23 + $0x1b8] sm:$0xff]  }
  0x38   : > { %1991 = vmatprep.subr.bf16.mxu0 %v2372_v3 }
  0x3a   : > { %2090 = vmatpush3.bf16.msra.mxu1 %v2272_v31  ;;  %v2314_v31 = vld [vmem:[%s2484_s23 + $0x1d8] sm:$0xff]  }
  0x3b   : > { %1992 = vmatpush3.bf16.msra.mxu0 %v2258_v20  ;;  %2091 = vmatprep.subr.bf16.mxu1 %v2372_v3 }
  0x3c   : > { %1997 = vmatprep.subr.bf16.mxu0 %v2372_v3 }
  0x3e   : > { %1994 = vmatmul.mubr.bf16.vlgmr.msra.gmra.mrb[0].mxu0 %v417_v22  ;;  %2092 = vmatpush3.bf16.msra.mxu1 %v2274_v33  ;;  %v2307_v22 = vld [vmem:[%s2484_s23 + $0xc0] sm:$0xff]  }
  0x3f   : > { %1998 = vmatpush3.bf16.msra.mxu0 %v2259_v21  ;;  %2013 = vmatprep.mubr.msk.bf16.mxu0 %vm2373_vm0, %v2372_v3  ;;  %v2316_v33 = vld [vmem:[%s2484_s23 + $0x1e0] sm:$0xff]  }
  0x40   : > { %1999 = vmatprep.subr.bf16.mxu0 %v2372_v3  ;;  %2097 = vmatprep.subr.bf16.mxu1 %v2372_v3 }
  0x43   : > { %2000 = vmatpush3.bf16.msra.mxu0 %v2261_v23  ;;  %v2308_v23 = vld [vmem:[%s2484_s23 + $0x1c0] sm:$0xff]  }
  0x44   : > { %2001 = vmatprep.subr.bf16.mxu0 %v2372_v3 }
  0x47   : > { %2002 = vmatpush3.bf16.msra.mxu0 %v2263_v24 }
  0x48   : > { %2003 = vmatprep.subr.bf16.mxu0 %v2372_v3 }
  0x4b   : > { %2004 = vmatpush3.bf16.msra.mxu0 %v2265_v25 }
  0x4c   : > { %2005 = vmatprep.subr.bf16.mxu0 %v2372_v3 }
  0x4f   : > { %2006 = vmatpush3.bf16.msra.mxu0 %v2267_v26  ;;  %v2309_v26 = vld [vmem:[%s2484_s23 + $0xc8] sm:$0xff]  }
  0x50   : > { %2007 = vmatprep.subr.bf16.mxu0 %v2372_v3 }
  0x53   : > { %2008 = vmatpush3.bf16.msra.mxu0 %v2269_v28  ;;  %v2311_v28 = vld [vmem:[%s2484_s23 + $0xd0] sm:$0xff]  }
  0x54   : > { %2009 = vmatprep.subr.bf16.mxu0 %v2372_v3 }
  0x57   : > { %2010 = vmatpush3.bf16.msra.mxu0 %v2271_v30  ;;  %v2313_v30 = vld [vmem:[%s2484_s23 + $0xd8] sm:$0xff]  }
  0x58   : > { %2011 = vmatprep.subr.bf16.mxu0 %v2372_v3 }
  0x5b   : > { %2012 = vmatpush3.bf16.msra.mxu0 %v2273_v32  ;;  %v2315_v32 = vld [vmem:[%s2484_s23 + $0xe0] sm:$0xff]  }
  0x5c   : > { %2017 = vmatprep.subr.bf16.mxu0 %v2372_v3 }
 0x111   : > { %v516_v35 = vpop.f32.mrb[0].mxu0 }
 0x112   : > { %v529_v37 = vmul.f32 %v1682_v34, %v516_v35  ;;  %v1995_v38 = vpop.f32.mrb[1].mxu0  ;;  %v2317_v34 = vld [vmem:[%s2484_s23 + $0xe8] sm:$0xff]  }
 0x113   : > { %v519_v39 = vpop.f32.mrb[2].mxu0  ;;  %v2318_v35 = vld [vmem:[%s2484_s23 + $0x1e8] sm:$0xff]   ;;  %v2321_v38 = vld [vmem:[%s2484_s23 + $0xf8] sm:$0xff]  }
 0x114   : > { %v537_v40 = vadd.f32 %v1683_v36, %v529_v37  ;;  %v1996_v41 = vpop.f32.mrb[3].mxu0  ;;  %v2319_v36 = vld [vmem:[%s2484_s23 + $0xf0] sm:$0xff]   ;;  %v2322_v39 = vld [vmem:[%s2484_s23 + $0x1f8] sm:$0xff]  }
 0x115   : > { %v2320_v37 = vld [vmem:[%s2484_s23 + $0x1f0] sm:$0xff]  }
 0x116   : > { %v538_v42 = vmax.f32 %v537_v40, 0.0 }
 0x118   : > { %539 = vst [vmem:[#allocation2 + $0x5] sm:$0x3] %v538_v42  ;;  %540 = vst [vmem:[#allocation2 + $0x7] sm:$0xc] %v538_v42  ;;  %v2323_v42 = vld [vmem:[%s2484_s23 + $0x200] sm:$0xff]  }
 0x11f   : > { %v541_v44 = vld [vmem:[#allocation2] sm:$0xff]  ;;  %v1198_v21 = vld [vmem:[#allocation2 + $0x8] sm:$0xff] }
 0x120   : > { %v978_v45 = vld [vmem:[#allocation2 + $0x5] sm:$0xff]  ;;  %v542_v47 = vpack.c.bf16 %v541_v44, %v541_v44  ;;  %v1199_v25 = vpack.c.bf16 %v1198_v21, %v1198_v21 }
 0x121   : > { %v979_v48 = vpack.c.bf16 %v978_v45, %v978_v45  ;;  %v648_v63 = vld [vmem:[#allocation2 + $0x1] sm:$0xff]  ;;  %v1308_v41 = vld [vmem:[#allocation2 + $0x9] sm:$0xff] }
 0x122   : > { %2014 = vmatmul.mubr.bf16.vlgmr.msra.gmra.mrb[4].mxu0 %v542_v47  ;;  %v1088_v0 = vld [vmem:[#allocation2 + $0x6] sm:$0xff]  ;;  %v649_v4 = vpack.c.bf16 %v648_v63, %v648_v63  ;;  %v1309_v44 = vpack.c.bf16 %v1308_v41, %v1308_v41  ;;  %v2326_v47 = vld [vmem:[%s2484_s23 + $0x218] sm:$0xff]   ;;  %v1528_v63 = vld [vmem:[%s2474_s15] sm:$0x3] }
 0x123   : > { %2094 = vmatmul.mubr.bf16.vlgmr.msra.gmra.mrb[0].mxu1 %v979_v48  ;;  %2018 = vmatpush3.bf16.msra.mxu0 %v2275_v43  ;;  %v1089_v5 = vpack.c.bf16 %v1088_v0, %v1088_v0  ;;  %v758_v20 = vld [vmem:[#allocation2 + $0x2] sm:$0xff] }
 0x124   : > { %2098 = vmatpush3.bf16.msra.mxu1 %v2276_v46  ;;  %2019 = vmatprep.subr.bf16.mxu0 %v2372_v3  ;;  %v759_v24 = vpack.c.bf16 %v758_v20, %v758_v20  ;;  %v868_v40 = vld [vmem:[#allocation2 + $0x4] sm:$0xff]  ;;  %v2325_v46 = vld [vmem:[%s2484_s23 + $0x210] sm:$0xff]   ;;  %v1532_v0 = vld [vmem:[%s2474_s15 + $0x2] sm:$0x3] }
 0x125   : > { %2099 = vmatprep.subr.bf16.mxu1 %v2372_v3  ;;  %2033 = vmatprep.mubr.msk.bf16.mxu0 %vm2373_vm0, %v2372_v3  ;;  %v869_v43 = vpack.c.bf16 %v868_v40, %v868_v40  ;;  %v2324_v45 = vld [vmem:[%s2484_s23 + $0x208] sm:$0xff]   ;;  %v2327_v48 = vld [vmem:[%s2484_s23 + $0x220] sm:$0xff]  }
 0x126   : > { %2113 = vmatprep.mubr.msk.bf16.mxu1 %vm2373_vm0, %v2372_v3 }
 0x127   : > { %2020 = vmatpush3.bf16.msra.mxu0 %v2277_v49  ;;  %v2328_v49 = vld [vmem:[%s2484_s23 + $0x228] sm:$0xff]  }
 0x128   : > { %2100 = vmatpush3.bf16.msra.mxu1 %v2278_v50  ;;  %2021 = vmatprep.subr.bf16.mxu0 %v2372_v3  ;;  %v2329_v50 = vld [vmem:[%s2484_s23 + $0x230] sm:$0xff]  }
 0x129   : > { %2101 = vmatprep.subr.bf16.mxu1 %v2372_v3 }
 0x12b   : > { %2022 = vmatpush3.bf16.msra.mxu0 %v2279_v51  ;;  %v2330_v51 = vld [vmem:[%s2484_s23 + $0x238] sm:$0xff]  }
 0x12c   : > { %2102 = vmatpush3.bf16.msra.mxu1 %v2280_v52  ;;  %2023 = vmatprep.subr.bf16.mxu0 %v2372_v3  ;;  %v1418_v52 = vld [vmem:[#allocation2 + $0xa] sm:$0xff] }
 0x12d   : > { %2103 = vmatprep.subr.bf16.mxu1 %v2372_v3 }
 0x12f   : > { %2024 = vmatpush3.bf16.msra.mxu0 %v2281_v53  ;;  %v1419_v53 = vpack.c.bf16 %v1418_v52, %v1418_v52 }
 0x130   : > { %2104 = vmatpush3.bf16.msra.mxu1 %v2282_v54  ;;  %2025 = vmatprep.subr.bf16.mxu0 %v2372_v3 }
 0x131   : > { %2105 = vmatprep.subr.bf16.mxu1 %v2372_v3 }
 0x133   : > { %2026 = vmatpush3.bf16.msra.mxu0 %v2283_v55 }
 0x134   : > { %2106 = vmatpush3.bf16.msra.mxu1 %v2284_v56  ;;  %2027 = vmatprep.subr.bf16.mxu0 %v2372_v3 }
 0x135   : > { %2107 = vmatprep.subr.bf16.mxu1 %v2372_v3 }
 0x137   : > { %2028 = vmatpush3.bf16.msra.mxu0 %v2285_v57 }
 0x138   : > { %2108 = vmatpush3.bf16.msra.mxu1 %v2286_v58  ;;  %2029 = vmatprep.subr.bf16.mxu0 %v2372_v3 }
 0x139   : > { %2109 = vmatprep.subr.bf16.mxu1 %v2372_v3 }
 0x13b   : > { %2030 = vmatpush3.bf16.msra.mxu0 %v2287_v59 }
 0x13c   : > { %2110 = vmatpush3.bf16.msra.mxu1 %v2288_v60  ;;  %2031 = vmatprep.subr.bf16.mxu0 %v2372_v3 }
 0x13d   : > { %2111 = vmatprep.subr.bf16.mxu1 %v2372_v3 }
 0x13f   : > { %2032 = vmatpush3.bf16.msra.mxu0 %v2289_v61 }
 0x140   : > { %2112 = vmatpush3.bf16.msra.mxu1 %v2290_v62  ;;  %2037 = vmatprep.subr.bf16.mxu0 %v2372_v3 }
 0x141   : > { %2117 = vmatprep.subr.bf16.mxu1 %v2372_v3 }
 0x142   : > { %2034 = vmatmul.mubr.bf16.vlgmr.msra.gmra.mrb[4].mxu0 %v649_v4 }
 0x143   : > { %2114 = vmatmul.mubr.bf16.vlgmr.msra.gmra.mrb[0].mxu1 %v1089_v5  ;;  %2038 = vmatpush3.bf16.msra.mxu0 %v2291_v1 }
 0x144   : > { %2118 = vmatpush3.bf16.msra.mxu1 %v2292_v2  ;;  %2039 = vmatprep.subr.bf16.mxu0 %v2372_v3 }
 0x145   : > { %2119 = vmatprep.subr.bf16.mxu1 %v2372_v3  ;;  %2053 = vmatprep.mubr.msk.bf16.mxu0 %vm2373_vm0, %v2372_v3 }
 0x146   : > { %2133 = vmatprep.mubr.msk.bf16.mxu1 %vm2373_vm0, %v2372_v3 }
 0x147   : > { %2040 = vmatpush3.bf16.msra.mxu0 %v2293_v6 }
 0x148   : > { %2120 = vmatpush3.bf16.msra.mxu1 %v2294_v7  ;;  %2041 = vmatprep.subr.bf16.mxu0 %v2372_v3 }
 0x149   : > { %2121 = vmatprep.subr.bf16.mxu1 %v2372_v3 }
 0x14b   : > { %2042 = vmatpush3.bf16.msra.mxu0 %v2295_v8 }
 0x14c   : > { %2122 = vmatpush3.bf16.msra.mxu1 %v2296_v9  ;;  %2043 = vmatprep.subr.bf16.mxu0 %v2372_v3 }
 0x14d   : > { %2123 = vmatprep.subr.bf16.mxu1 %v2372_v3 }
 0x14f   : > { %2044 = vmatpush3.bf16.msra.mxu0 %v2297_v10 }
 0x150   : > { %2124 = vmatpush3.bf16.msra.mxu1 %v2298_v11  ;;  %2045 = vmatprep.subr.bf16.mxu0 %v2372_v3 }
 0x151   : > { %2125 = vmatprep.subr.bf16.mxu1 %v2372_v3 }
 0x153   : > { %2046 = vmatpush3.bf16.msra.mxu0 %v2299_v12 }
 0x154   : > { %2126 = vmatpush3.bf16.msra.mxu1 %v2300_v13  ;;  %2047 = vmatprep.subr.bf16.mxu0 %v2372_v3 }
 0x155   : > { %2127 = vmatprep.subr.bf16.mxu1 %v2372_v3 }
 0x157   : > { %2048 = vmatpush3.bf16.msra.mxu0 %v2301_v14 }
 0x158   : > { %2128 = vmatpush3.bf16.msra.mxu1 %v2302_v15  ;;  %2049 = vmatprep.subr.bf16.mxu0 %v2372_v3 }
 0x159   : > { %2129 = vmatprep.subr.bf16.mxu1 %v2372_v3 }
 0x15b   : > { %2050 = vmatpush3.bf16.msra.mxu0 %v2303_v16 }
 0x15c   : > { %2130 = vmatpush3.bf16.msra.mxu1 %v2304_v17  ;;  %2051 = vmatprep.subr.bf16.mxu0 %v2372_v3 }
 0x15d   : > { %2131 = vmatprep.subr.bf16.mxu1 %v2372_v3 }
 0x15f   : > { %2052 = vmatpush3.bf16.msra.mxu0 %v2305_v18 }
 0x160   : > { %2132 = vmatpush3.bf16.msra.mxu1 %v2306_v19  ;;  %2057 = vmatprep.subr.bf16.mxu0 %v2372_v3 }
 0x161   : > { %2137 = vmatprep.subr.bf16.mxu1 %v2372_v3 }
 0x162   : > { %2054 = vmatmul.mubr.bf16.vlgmr.msra.gmra.mrb[4].mxu0 %v759_v24 }
 0x163   : > { %2134 = vmatmul.mubr.bf16.vlgmr.msra.gmra.mrb[0].mxu1 %v1199_v25  ;;  %2058 = vmatpush3.bf16.msra.mxu0 %v2307_v22 }
 0x164   : > { %2138 = vmatpush3.bf16.msra.mxu1 %v2308_v23  ;;  %2059 = vmatprep.subr.bf16.mxu0 %v2372_v3 }
 0x165   : > { %2139 = vmatprep.subr.bf16.mxu1 %v2372_v3  ;;  %2073 = vmatprep.mubr.msk.bf16.mxu0 %vm2373_vm0, %v2372_v3 }
 0x166   : > { %2153 = vmatprep.mubr.msk.bf16.mxu1 %vm2373_vm0, %v2372_v3 }
 0x167   : > { %2060 = vmatpush3.bf16.msra.mxu0 %v2309_v26 }
 0x168   : > { %2140 = vmatpush3.bf16.msra.mxu1 %v2310_v27  ;;  %2061 = vmatprep.subr.bf16.mxu0 %v2372_v3 }
 0x169   : > { %2141 = vmatprep.subr.bf16.mxu1 %v2372_v3 }
 0x16b   : > { %2062 = vmatpush3.bf16.msra.mxu0 %v2311_v28 }
 0x16c   : > { %2142 = vmatpush3.bf16.msra.mxu1 %v2312_v29  ;;  %2063 = vmatprep.subr.bf16.mxu0 %v2372_v3 }
 0x16d   : > { %2143 = vmatprep.subr.bf16.mxu1 %v2372_v3 }
 0x16f   : > { %2064 = vmatpush3.bf16.msra.mxu0 %v2313_v30 }
 0x170   : > { %2144 = vmatpush3.bf16.msra.mxu1 %v2314_v31  ;;  %2065 = vmatprep.subr.bf16.mxu0 %v2372_v3 }
 0x171   : > { %2145 = vmatprep.subr.bf16.mxu1 %v2372_v3 }
 0x173   : > { %2066 = vmatpush3.bf16.msra.mxu0 %v2315_v32 }
 0x174   : > { %2146 = vmatpush3.bf16.msra.mxu1 %v2316_v33  ;;  %2067 = vmatprep.subr.bf16.mxu0 %v2372_v3 }
 0x175   : > { %2147 = vmatprep.subr.bf16.mxu1 %v2372_v3 }
 0x177   : > { %2068 = vmatpush3.bf16.msra.mxu0 %v2317_v34 }
 0x178   : > { %2148 = vmatpush3.bf16.msra.mxu1 %v2318_v35  ;;  %2069 = vmatprep.subr.bf16.mxu0 %v2372_v3 }
 0x179   : > { %2149 = vmatprep.subr.bf16.mxu1 %v2372_v3 }
 0x17b   : > { %2070 = vmatpush3.bf16.msra.mxu0 %v2319_v36 }
 0x17c   : > { %2150 = vmatpush3.bf16.msra.mxu1 %v2320_v37  ;;  %2071 = vmatprep.subr.bf16.mxu0 %v2372_v3 }
 0x17d   : > { %2151 = vmatprep.subr.bf16.mxu1 %v2372_v3 }
 0x17f   : > { %2072 = vmatpush3.bf16.msra.mxu0 %v2321_v38 }
 0x180   : > { %2152 = vmatpush3.bf16.msra.mxu1 %v2322_v39 }
 0x181   : > { %2157 = vmatprep.subr.bf16.mxu1 %v2372_v3 }
 0x182   : > { %2074 = vmatmul.mubr.bf16.vlgmr.msra.gmra.mrb[4].mxu0 %v869_v43 }
 0x183   : > { %2154 = vmatmul.mubr.bf16.vlgmr.msra.gmra.mrb[0].mxu1 %v1309_v44 }
 0x184   : > { %2158 = vmatpush3.bf16.msra.mxu1 %v2323_v42  ;;  %2173 = vmatprep.mubr.msk.bf16.mxu1 %vm2373_vm0, %v2372_v3 }
 0x185   : > { %2159 = vmatprep.subr.bf16.mxu1 %v2372_v3 }
 0x188   : > { %2160 = vmatpush3.bf16.msra.mxu1 %v2324_v45 }
 0x189   : > { %2161 = vmatprep.subr.bf16.mxu1 %v2372_v3 }
 0x18c   : > { %2162 = vmatpush3.bf16.msra.mxu1 %v2325_v46 }
 0x18d   : > { %2163 = vmatprep.subr.bf16.mxu1 %v2372_v3 }
 0x190   : > { %2164 = vmatpush3.bf16.msra.mxu1 %v2326_v47 }
 0x191   : > { %2165 = vmatprep.subr.bf16.mxu1 %v2372_v3 }
 0x194   : > { %2166 = vmatpush3.bf16.msra.mxu1 %v2327_v48 }
 0x195   : > { %2167 = vmatprep.subr.bf16.mxu1 %v2372_v3 }
 0x198   : > { %2168 = vmatpush3.bf16.msra.mxu1 %v2328_v49 }
 0x199   : > { %2169 = vmatprep.subr.bf16.mxu1 %v2372_v3 }
 0x19c   : > { %2170 = vmatpush3.bf16.msra.mxu1 %v2329_v50 }
 0x19d   : > { %2171 = vmatprep.subr.bf16.mxu1 %v2372_v3 }
 0x1a0   : > { %2172 = vmatpush3.bf16.msra.mxu1 %v2330_v51 }
 0x1a3   : > { %2174 = vmatmul.mubr.bf16.vlgmr.msra.gmra.mrb[0].mxu1 %v1419_v53 }
 0x255   : > { %v969_v54 = vpop.f32.mrb[4].mxu0 }
 0x256   : > { %v2075_v55 = vpop.f32.mrb[5].mxu0 }
 0x257   : > { %v972_v56 = vpop.f32.mrb[6].mxu0 }
 0x258   : > { %v2076_v57 = vpop.f32.mrb[7].mxu0 }
 0x276   : > { %v1519_v58 = vpop.f32.mrb[0].mxu1 }
 0x277   : > { %v2179_v59 = vadd.f32 %v1519_v58, %v969_v54  ;;  %v2175_v60 = vpop.f32.mrb[1].mxu1 }
 0x278   : > { %v1522_v61 = vpop.f32.mrb[2].mxu1 }
 0x279   : > { %1527 = vst [vmem:[#allocation3] sm:$0xff] %v2179_v59  ;;  %v2176_v62 = vpop.f32.mrb[3].mxu1 }
 0x280   : > { %v1529_v3 = vld [vmem:[#allocation3] sm:$0x3]  ;;  %v1533_v1 = vld [vmem:[#allocation3 + $0x4] sm:$0x3] }
 0x281   : > { %v1530_v2 = vadd.f32 %v1529_v3, %v1528_v63  ;;  %v1534_v4 = vadd.f32 %v1533_v1, %v1532_v0 }
 0x283   : > { %1531 = vst [vmem:[%s2474_s15] sm:$0x3] %v1530_v2  ;;  %1535 = vst [vmem:[%s2474_s15 + $0x2] sm:$0x3] %v1534_v4 }
 0x284 PF: > { %s17_s28 = sadd.s32 1, %s2369_s28   ;;  %s2722_s29 = sld [smem:[#allocation4_spill]] }
 0x285   : > { %p14_p10 = scmp.ge.s32.totalorder %s17_s28, 6   ;;  %s2723_s10 = sld [smem:[#allocation5_spill]] }
 0x286   : > { %s2724_s24 = smov %s2361_s26  ;;  %s2725_s25 = smov %s2365_s27 }
 0x287   :  { %16 = sbr.rel (!%p14_p10) target bundleno = 3 (0x3), region = 108 }
 0x28a   : > { %s2726_s26 = smov %s2722_s29 }
 0x28b   : > { %s2727_s27 = smov %s2723_s10 }

// kernel: densenet_forward.19
= control target key start
LH: loop header
LB: loop body
LE: loop exit
PB: predicated region body
PF: predicated region fallthrough
CT: control target
= control target key end

     0   :  { %v208_v1 = vmov 0.0   ;;  %vm209_vm0 = vmmov 0   ;;  %s285_s0 = inlined_call_operand.vmem [shape: f32[2,64], index: 0, kind: input, shape index: {}]   ;;  %s286_s1 = inlined_call_operand.vmem [shape: bf16[64,16], index: 1, kind: input, shape index: {}]   ;;  %s287_s2 = inlined_call_operand.vmem [shape: f32[1,64], index: 2, kind: input, shape index: {}]   ;;  %s288_s3 = inlined_call_operand.vmem [shape: f32[1,64], index: 3, kind: input, shape index: {}]   ;;  %s289_s4 = inlined_call_operand.vmem [shape: f32[1,16], index: 4, kind: input, shape index: {}]   ;;  %s290_s5 = inlined_call_operand.vmem [shape: f32[1,16], index: 5, kind: input, shape index: {}]   ;;  %s291_s6 = inlined_call_operand.hbm [shape: f32[2,16], index: 6, kind: output, shape index: {}]  }
   0x1   :  { %v180_v0 = vld [vmem:[%s286_s1] sm:$0xff]   ;;  %165 = vmatprep.subr.bf16.mxu0 %v208_v1  ;;  %v181_v2 = vld [vmem:[%s286_s1 + $0x8] sm:$0xff]   ;;  %173 = vmatprep.mubr.msk.bf16.mxu0 %vm209_vm0, %v208_v1 }
   0x2   :  { %166 = vmatpush3.bf16.msra.mxu0 %v180_v0  ;;  %v25_v3 = vld [vmem:[%s285_s0] sm:$0x3] }
   0x3   :  { %167 = vmatprep.subr.bf16.mxu0 %v208_v1  ;;  %v151_v4 = vld [vmem:[%s287_s2] ss:$0 sm:$0xff] }
   0x4   :  { %v33_v5 = vmul.f32 %v151_v4, %v25_v3 }
   0x5   :  { %11 = vsyncpa [#allocation3], 0  ;;  %v182_v6 = vld [vmem:[%s286_s1 + $0x10] sm:$0xff]   ;;  %v152_v7 = vld [vmem:[%s288_s3] ss:$0 sm:$0xff]  ;;  %vm75_vm1 = vcmask 523264  }
   0x6   :  { %168 = vmatpush3.bf16.msra.mxu0 %v181_v2  ;;  %v41_v8 = vadd.f32 %v152_v7, %v33_v5  ;;  %v183_v9 = vld [vmem:[%s286_s1 + $0x18] sm:$0xff]   ;;  %v158_v11 = vld [vmem:[%s289_s4] ss:$0 sm:$0xff]  ;;  %s210_s3 = smov [#allocation2]   ;;  %vm135_vm2 = vcmask 123904  }
   0x7   :  { %169 = vmatprep.subr.bf16.mxu0 %v208_v1  ;;  %v159_v13 = vld [vmem:[%s290_s5] ss:$0 sm:$0xff]  ;;  %s143_s13 = sshll.u32 %s210_s3, 4  ;;  %s144_s13 = int_to_ptr.vmem [resolvable:$true] %s143_s13 }
   0x8   :  { %v42_v10 = vpack.c.bf16 %v41_v8, %v41_v8  ;;  %s184_s1 = scalar_lea.vmem %s144_s13, 32  ;;  %p189_p1 = scmp.lt.s32.totalorder %s144_s13, %s144_s13 }
   0x9   :  { %p185_p0 = scmp.ne.s32.totalorder %s144_s13, %s184_s1  ;;  %p190_p2 = scmp.lt.s32.totalorder %s184_s1, %s184_s1 }
   0xa   :  { %170 = vmatpush3.bf16.msra.mxu0 %v182_v6 }
   0xb   :  { %171 = vmatprep.subr.bf16.mxu0 %v208_v1  ;;  %p191_p3 = por %p190_p2, %p189_p1 }
   0xd   :  { %p192_p4 = pnand %p191_p3, %p185_p0 }
   0xe   :  { %172 = vmatpush3.bf16.msra.mxu0 %v183_v9 }
  0x11   :  { %174 = vmatmul.mubr.msk.bf16.vlgmr.msra.gmra.mrb[0].mxu0 %vm75_vm1, %v42_v10 }
  0xe4   :  { %v113_v12 = vpop.f32.mrb[0].mxu0 }
  0xe5   :  { %v126_v14 = vmul.f32 %v158_v11, %v113_v12  ;;  %v175_v15 = vpop.f32.mrb[1].mxu0 }
  0xe6   :  { %v116_v16 = vpop.f32.mrb[2].mxu0 }
  0xe7   :  { %v134_v17 = vadd.f32 %v159_v13, %v126_v14  ;;  %v176_v18 = vpop.f32.mrb[3].mxu0 }
  0xe9   :  { %136 = vst.msk [vmem:[#allocation2] sm:$0x3] %vm135_vm2, %v134_v17 }
  0xea   :  { %195 = shalt.err (!%p192_p4)
}
  0xeb   :  { %s196_s5 = scalar_lea.hbm %s291_s6, 32 }
  0xec   :  { %p197_p5 = scmp.ne.s32.totalorder %s291_s6, %s196_s5  ;;  %p200_p6 = scmp.lt.u32.totalorder %s196_s5, %s291_s6 }
  0xee   :  { %p202_p7 = pnand %p200_p6, %p197_p5 }
  0xf0   :  { %205 = shalt.err (!%p202_p7)
}
  0xf1   :  { %146 = dma.vmem_to_hbm [thread:$0]  %s144_s13, 32, %s291_s6, [#allocation3]  }
  0xf2   :  { %206 = dma.done.wait [#allocation3], 32  }
  0xf3   :  { %207 = vsyncadd [#allocation3], 4294967264 }
  0xf4   :  { %150 = vsyncpa [#allocation3], 1 }

</bundles_post_ra>
